<compile_context>
chip_gen: v6e
topology: v6e:2x2x1
jax: 0.10.0
libtpu: 0.0.40
codegen_flags: <defaults>
</compile_context>

<pallas_src>
import jax
import jax.numpy as jnp
from jax.experimental import pallas as pl
from jax.experimental.pallas import tpu as pltpu

FEAT_C = 2048          # resnet50 output channels
FEAT_H = 7             # resnet50 output spatial size (224x224 input)
FEAT_W = 7
FEAT_HW = FEAT_H * FEAT_W
HID = 512              # linear1 output
NCLS = 23              # linear_cls output
NCLS_PAD = 128         # classifier output padded to one full lane group


def avs_head_kernel(x_ref, w1_ref, b1_ref, wc_ref, bc_ref, out_ref):
    # x_ref : (tb, 2048, 49) f32  backbone features, native NCHW layout (HW flattened)
    # w1_ref: (2048, 512)    bf16 linear1 weight, pre-transposed (in, out)
    # b1_ref: (1, 512)       f32
    # wc_ref: (512, 128)     bf16 linear_cls weight, pre-transposed + zero-padded to 128
    # bc_ref: (1, 128)       f32  zero-padded
    # out_ref: (tb, 128)     f32

    # AvgPool2d(7) on a 7x7 map == mean over the 49 spatial positions (lane-axis reduce).
    # Input is already f32, so this accumulates in f32 with no materialized upcast temp.
    pooled = jnp.mean(x_ref[...], axis=-1)                              # (tb, 2048) f32

    # x_fc = linear1(x): bf16 MXU matmul, f32 accumulation, f32 bias add.
    h = jnp.dot(pooled.astype(jnp.bfloat16), w1_ref[...],
                preferred_element_type=jnp.float32) + b1_ref[...]       # (tb, 512) f32

    # result = linear_cls(x_fc); result.view(B, -1) is a no-op on (B, 23).
    y = jnp.dot(h.astype(jnp.bfloat16), wc_ref[...],
                preferred_element_type=jnp.float32) + bc_ref[...]       # (tb, 128) f32

    out_ref[...] = y.astype(out_ref.dtype)


def prepare_head_params(w1, b1, wc, bc):
    """One-time conversion from PyTorch (out, in) f32 layout to kernel layout.
    Call once (module state analogue), NOT per forward call."""
    w1_t = jnp.transpose(w1).astype(jnp.bfloat16)                       # (2048, 512)
    b1_2d = b1.reshape(1, HID).astype(jnp.float32)                      # (1, 512)
    wc_t = jnp.zeros((HID, NCLS_PAD), jnp.bfloat16)
    wc_t = wc_t.at[:, :NCLS].set(jnp.transpose(wc).astype(jnp.bfloat16))  # (512, 128)
    bc_2d = jnp.zeros((1, NCLS_PAD), jnp.float32)
    bc_2d = bc_2d.at[0, :NCLS].set(bc.astype(jnp.float32))              # (1, 128)
    return w1_t, b1_2d, wc_t, bc_2d


def _pick_tb():
    """Generation-aware default batch tile.
    v7x: 64 MiB VMEM/TC, 2 TCs  -> tb=16 (2x16 MiB feature buffers; >=2 grid blocks).
    v5e/v6e: 128 MiB VMEM, 1 TC -> tb=32 (amortizes per-step overhead; path stays mem-bound)."""
    vmem_cap = 64 << 20
    try:
        vmem_cap = int(pltpu.get_tpu_info().vmem_capacity_bytes)
    except Exception:
        pass
    return 16 if vmem_cap <= (64 << 20) else 32


def _vmem_limit_bytes(tb):
    """Right-size the VMEM limit from the actual working set.
    The (tb, 2048, 49) f32 feature block pads its lane axis 49 -> 128 in VMEM; all inputs
    and the output are double-buffered by default (weights included)."""
    feat_block = tb * FEAT_C * 128 * 4
    weights = (FEAT_C * HID + HID * NCLS_PAD) * 2 + (HID + NCLS_PAD) * 4
    out_block = tb * NCLS_PAD * 4
    return int(2 * feat_block + 2 * weights + 2 * out_block + (8 << 20))


def avs_head(x_feat, w1_t, b1_2d, wc_t, bc_2d, *, tb=None):
    """x_feat: (B, 2048, 7, 7) float32 NCHW backbone features — consumed in native layout
    (no transpose, no cast, no pad in the wrapper).
    w1_t/b1_2d/wc_t/bc_2d: outputs of prepare_head_params (kernel-layout weights)."""
    B, C, H, W = x_feat.shape
    assert (C, H, W) == (FEAT_C, FEAT_H, FEAT_W)

    # Free reshape (merges contiguous trailing dims): (B, 2048, 7, 7) -> (B, 2048, 49).
    x = x_feat.reshape(B, FEAT_C, FEAT_HW)

    if tb is None:
        tb = _pick_tb()
    tb = min(tb, B)            # small batches: one exact block, no padding anywhere
    grid = (pl.cdiv(B, tb),)   # partial final block handled by Pallas; no jnp.pad copy

    out = pl.pallas_call(
        avs_head_kernel,
        out_shape=jax.ShapeDtypeStruct((B, NCLS_PAD), jnp.float32),
        grid=grid,
        in_specs=[
            # feature blocks stream over the batch grid axis (native NCHW f32)
            pl.BlockSpec((tb, FEAT_C, FEAT_HW), lambda i: (i, 0, 0)),
            # weights / biases: constant index_map -> DMA'd once, resident across the grid
            pl.BlockSpec((FEAT_C, HID), lambda i: (0, 0)),
            pl.BlockSpec((1, HID), lambda i: (0, 0)),
            pl.BlockSpec((HID, NCLS_PAD), lambda i: (0, 0)),
            pl.BlockSpec((1, NCLS_PAD), lambda i: (0, 0)),
        ],
        out_specs=pl.BlockSpec((tb, NCLS_PAD), lambda i: (i, 0)),
        compiler_params=pltpu.CompilerParams(
            dimension_semantics=("parallel",),      # batch blocks independent (2 TCs on v7x)
            vmem_limit_bytes=_vmem_limit_bytes(tb),
        ),
    )(x, w1_t, b1_2d, wc_t, bc_2d)

    # drop the lane padding of the classifier output
    return out[:, :NCLS]


def avs_head_ref(x_feat, w1, b1, wc, bc):
    """Pure-JAX f32 reference mirroring the PyTorch forward (post-backbone)."""
    B = x_feat.shape[0]
    pooled = jnp.mean(x_feat.reshape(B, FEAT_C, FEAT_HW), axis=-1)
    h = pooled @ w1.T + b1
    y = h @ wc.T + bc
    return y.reshape(B, -1)


if __name__ == "__main__":
    key = jax.random.PRNGKey(0)
    k_feat, k_w1, k_b1, k_wc, k_bc = jax.random.split(key, 5)

    B = 2
    # Deterministic synthetic backbone features (what self.resnet(image) would emit for a
    # (B, 3, 224, 224) image) and deterministic head parameters.
    x_feat = jax.random.normal(k_feat, (B, FEAT_C, FEAT_H, FEAT_W), jnp.float32)
    w1 = jax.random.normal(k_w1, (HID, FEAT_C), jnp.float32) * 0.02
    b1 = jax.random.normal(k_b1, (HID,), jnp.float32) * 0.02
    wc = jax.random.normal(k_wc, (NCLS, HID), jnp.float32) * 0.02
    bc = jax.random.normal(k_bc, (NCLS,), jnp.float32) * 0.02

    # One-time weight layout prep (module-state analogue), outside the per-call path.
    w1_t, b1_2d, wc_t, bc_2d = prepare_head_params(w1, b1, wc, bc)

    out = avs_head(x_feat, w1_t, b1_2d, wc_t, bc_2d)
    out = jax.block_until_ready(out)

    ref = avs_head_ref(x_feat, w1, b1, wc, bc)
    assert out.shape == (B, NCLS)
    assert jnp.allclose(out, ref, rtol=1e-2, atol=1e-2)

    print("KERNEL_OK")
</pallas_src>

<mosaic_0001>
module attributes {stable_mosaic.version = 11 : i64} {
  func.func @avs_head_kernel(%arg0: i32, %arg1: memref<2x2048x49xf32, #tpu.memory_space<vmem>>, %arg2: memref<2048x512xbf16, #tpu.memory_space<vmem>>, %arg3: memref<1x512xf32, #tpu.memory_space<vmem>>, %arg4: memref<512x128xbf16, #tpu.memory_space<vmem>>, %arg5: memref<1x128xf32, #tpu.memory_space<vmem>>, %arg6: memref<2x128xf32, #tpu.memory_space<vmem>>) attributes {dimension_semantics = [#tpu.dimension_semantics<parallel>], iteration_bounds = array<i64: 1>, scalar_prefetch = 0 : i64, scratch_operands = 0 : i64, tpu.core_type = #tpu.core_type<tc>, window_params = [{transform_indices = @transform_0, window_bounds = array<i64: 2, 2048, 49>}, {pipeline_mode = #tpu.pipeline_mode<synchronous>, transform_indices = @transform_1, window_bounds = array<i64: 2048, 512>}, {pipeline_mode = #tpu.pipeline_mode<synchronous>, transform_indices = @transform_2, window_bounds = array<i64: 1, 512>}, {pipeline_mode = #tpu.pipeline_mode<synchronous>, transform_indices = @transform_3, window_bounds = array<i64: 512, 128>}, {pipeline_mode = #tpu.pipeline_mode<synchronous>, transform_indices = @transform_4, window_bounds = array<i64: 1, 128>}, {transform_indices = @transform_5, window_bounds = array<i64: 2, 128>}]} {
    %c0 = arith.constant 0 : index
    %c0_0 = arith.constant 0 : index
    %c0_1 = arith.constant 0 : index
    %0 = vector.load %arg1[%c0, %c0_0, %c0_1] : memref<2x2048x49xf32, #tpu.memory_space<vmem>>, vector<2x2048x49xf32>
    %cst = arith.constant dense<0.000000e+00> : vector<2x2048xf32>
    %1 = vector.multi_reduction <add>, %0, %cst [2] : vector<2x2048x49xf32> to vector<2x2048xf32>
    %cst_2 = arith.constant 4.900000e+01 : f32
    %2 = vector.broadcast %cst_2 : f32 to vector<2x2048xf32>
    %3 = arith.divf %1, %2 : vector<2x2048xf32>
    %4 = arith.truncf %3 : vector<2x2048xf32> to vector<2x2048xbf16>
    %c0_3 = arith.constant 0 : index
    %c0_4 = arith.constant 0 : index
    %5 = vector.load %arg2[%c0_3, %c0_4] : memref<2048x512xbf16, #tpu.memory_space<vmem>>, vector<2048x512xbf16>
    %cst_5 = arith.constant dense<0.000000e+00> : vector<2x512xf32>
    %6 = tpu.matmul %4, %5, %cst_5 {dimension_numbers = #tpu.dot_dimension_numbers<[1], [0], [0], [1], [0, 0, 1, 1], [], []>} : vector<2x2048xbf16>, vector<2048x512xbf16>, vector<2x512xf32> -> vector<2x512xf32>
    %c0_6 = arith.constant 0 : index
    %c0_7 = arith.constant 0 : index
    %7 = vector.load %arg3[%c0_6, %c0_7] : memref<1x512xf32, #tpu.memory_space<vmem>>, vector<1x512xf32>
    %8 = vector.broadcast %7 : vector<1x512xf32> to vector<2x512xf32>
    %9 = arith.addf %6, %8 : vector<2x512xf32>
    %10 = arith.truncf %9 : vector<2x512xf32> to vector<2x512xbf16>
    %c0_8 = arith.constant 0 : index
    %c0_9 = arith.constant 0 : index
    %11 = vector.load %arg4[%c0_8, %c0_9] : memref<512x128xbf16, #tpu.memory_space<vmem>>, vector<512x128xbf16>
    %cst_10 = arith.constant dense<0.000000e+00> : vector<2x128xf32>
    %12 = tpu.matmul %10, %11, %cst_10 {dimension_numbers = #tpu.dot_dimension_numbers<[1], [0], [0], [1], [0, 0, 1, 1], [], []>} : vector<2x512xbf16>, vector<512x128xbf16>, vector<2x128xf32> -> vector<2x128xf32>
    %c0_11 = arith.constant 0 : index
    %c0_12 = arith.constant 0 : index
    %13 = vector.load %arg5[%c0_11, %c0_12] : memref<1x128xf32, #tpu.memory_space<vmem>>, vector<1x128xf32>
    %14 = vector.broadcast %13 : vector<1x128xf32> to vector<2x128xf32>
    %15 = arith.addf %12, %14 : vector<2x128xf32>
    %c0_13 = arith.constant 0 : index
    %c0_14 = arith.constant 0 : index
    %16 = vector.load %arg6[%c0_13, %c0_14] : memref<2x128xf32, #tpu.memory_space<vmem>>, vector<2x128xf32>
    tpu.vector_store %arg6[%c0_13, %c0_14], %15 {strides = array<i32>} : memref<2x128xf32, #tpu.memory_space<vmem>>, vector<2x128xf32>,
    return
  }
  func.func @transform_0(%arg0: i32) -> (i32, i32, i32) {
    %c0_i32 = arith.constant 0 : i32
    %c0_i32_0 = arith.constant 0 : i32
    %c0_i32_1 = arith.constant 0 : i32
    return %arg0, %c0_i32, %c0_i32_0 : i32, i32, i32
  }
  func.func @transform_1(%arg0: i32) -> (i32, i32) {
    %c0_i32 = arith.constant 0 : i32
    %c0_i32_0 = arith.constant 0 : i32
    %c0_i32_1 = arith.constant 0 : i32
    return %c0_i32, %c0_i32_0 : i32, i32
  }
  func.func @transform_2(%arg0: i32) -> (i32, i32) {
    %c0_i32 = arith.constant 0 : i32
    %c0_i32_0 = arith.constant 0 : i32
    %c0_i32_1 = arith.constant 0 : i32
    return %c0_i32, %c0_i32_0 : i32, i32
  }
  func.func @transform_3(%arg0: i32) -> (i32, i32) {
    %c0_i32 = arith.constant 0 : i32
    %c0_i32_0 = arith.constant 0 : i32
    %c0_i32_1 = arith.constant 0 : i32
    return %c0_i32, %c0_i32_0 : i32, i32
  }
  func.func @transform_4(%arg0: i32) -> (i32, i32) {
    %c0_i32 = arith.constant 0 : i32
    %c0_i32_0 = arith.constant 0 : i32
    %c0_i32_1 = arith.constant 0 : i32
    return %c0_i32, %c0_i32_0 : i32, i32
  }
  func.func @transform_5(%arg0: i32) -> (i32, i32) {
    %c0_i32 = arith.constant 0 : i32
    %c0_i32_0 = arith.constant 0 : i32
    return %arg0, %c0_i32 : i32, i32
  }
}

</mosaic_0001>

<bundles_post_ra>
// kernel: tpu_custom_call.1
= control target key start
LH: loop header
LB: loop body
LE: loop exit
PB: predicated region body
PF: predicated region fallthrough
CT: control target
= control target key end

     0   :  { %vm534_vm0 = vcmask 400384   ;;  %vm4153_vm1 = vcmask 130112   ;;  %vm4160_vm2 = vcmask 195712   ;;  %vm17680_vm3 = vcmask 261312   ;;  %s17653_s0 = inlined_call_operand.vmem [shape: f32[2,2048,49], index: 0, kind: input, shape index: {}]   ;;  %s17654_s1 = inlined_call_operand.vmem [shape: bf16[2048,512], index: 1, kind: input, shape index: {}]   ;;  %s17655_s2 = inlined_call_operand.vmem [shape: f32[1,512], index: 2, kind: input, shape index: {}]   ;;  %s17656_s3 = inlined_call_operand.vmem [shape: bf16[512,128], index: 3, kind: input, shape index: {}]   ;;  %s17657_s4 = inlined_call_operand.vmem [shape: f32[1,128], index: 4, kind: input, shape index: {}]   ;;  %s17658_s5 = inlined_call_operand.hbm [shape: f32[2,128], index: 5, kind: output, shape index: {}]  }
   0x1   :  { %v24_v0 = vld [vmem:[%s17653_s0 + $0x10] sm:$0xff]  ;;  %v22_v1 = vld [vmem:[%s17653_s0] sm:$0xff]  ;;  %v25_v2 = vld [vmem:[%s17653_s0 + $0x18] sm:$0xff]  ;;  %vm4174_vm4 = vcmask 326912   ;;  %vm4181_vm5 = vcmask 392512   ;;  %vm4188_vm6 = vcmask 458112  }
   0x2   :  { %v541_v3 = vsel %vm534_vm0, %v24_v0, 0.0  ;;  %v535_v4 = vsel %vm534_vm0, %v22_v1, 0.0  ;;  %v23_v5 = vld [vmem:[%s17653_s0 + $0x8] sm:$0xff]  ;;  %v544_v6 = vsel %vm534_vm0, %v25_v2, 0.0  ;;  %v26_v9 = vld [vmem:[%s17653_s0 + $0x20] sm:$0xff]  ;;  %v29_v12 = vld [vmem:[%s17653_s0 + $0x38] sm:$0xff] }
   0x3   :  { %542 = vadd.xlane.f32.xlu1 %v541_v3  ;;  %536 = vadd.xlane.f32.xlu0 %v535_v4  ;;  %v538_v7 = vsel %vm534_vm0, %v23_v5, 0.0  ;;  %v27_v8 = vld [vmem:[%s17653_s0 + $0x28] sm:$0xff]  ;;  %v547_v11 = vsel %vm534_vm0, %v26_v9, 0.0  ;;  %v28_v13 = vld [vmem:[%s17653_s0 + $0x30] sm:$0xff]  ;;  %v556_v14 = vsel %vm534_vm0, %v29_v12, 0.0  ;;  %v30_v17 = vld [vmem:[%s17653_s0 + $0x40] sm:$0xff] }
   0x4   :  { %v550_v10 = vsel %vm534_vm0, %v27_v8, 0.0  ;;  %v553_v15 = vsel %vm534_vm0, %v28_v13, 0.0  ;;  %v31_v16 = vld [vmem:[%s17653_s0 + $0x48] sm:$0xff]  ;;  %v559_v19 = vsel %vm534_vm0, %v30_v17, 0.0  ;;  %v33_v20 = vld [vmem:[%s17653_s0 + $0x58] sm:$0xff]  ;;  %v32_v21 = vld [vmem:[%s17653_s0 + $0x50] sm:$0xff] }
   0x5   :  { %v562_v18 = vsel %vm534_vm0, %v31_v16, 0.0  ;;  %v568_v22 = vsel %vm534_vm0, %v33_v20, 0.0  ;;  %v565_v23 = vsel %vm534_vm0, %v32_v21, 0.0  ;;  %v35_v24 = vld [vmem:[%s17653_s0 + $0x68] sm:$0xff]  ;;  %v34_v25 = vld [vmem:[%s17653_s0 + $0x60] sm:$0xff]  ;;  %v37_v28 = vld [vmem:[%s17653_s0 + $0x78] sm:$0xff] }
   0x6   :  { %v574_v26 = vsel %vm534_vm0, %v35_v24, 0.0  ;;  %v571_v27 = vsel %vm534_vm0, %v34_v25, 0.0  ;;  %v36_v29 = vld [vmem:[%s17653_s0 + $0x70] sm:$0xff]  ;;  %v39_v30 = vld [vmem:[%s17653_s0 + $0x88] sm:$0xff]  ;;  %v580_v31 = vsel %vm534_vm0, %v37_v28, 0.0  ;;  %v38_v33 = vld [vmem:[%s17653_s0 + $0x80] sm:$0xff] }
   0x7   :  { %545 = vadd.xlane.f32.xlu1 %v544_v6  ;;  %539 = vadd.xlane.f32.xlu0 %v538_v7  ;;  %v577_v32 = vsel %vm534_vm0, %v36_v29, 0.0  ;;  %v41_v34 = vld [vmem:[%s17653_s0 + $0x98] sm:$0xff]  ;;  %v40_v35 = vld [vmem:[%s17653_s0 + $0x90] sm:$0xff]  ;;  %v586_v36 = vsel %vm534_vm0, %v39_v30, 0.0  ;;  %v583_v37 = vsel %vm534_vm0, %v38_v33, 0.0  ;;  %v43_v38 = vld [vmem:[%s17653_s0 + $0xa8] sm:$0xff] }
   0x8   :  { %v42_v39 = vld [vmem:[%s17653_s0 + $0xa0] sm:$0xff]  ;;  %v592_v40 = vsel %vm534_vm0, %v41_v34, 0.0  ;;  %v589_v41 = vsel %vm534_vm0, %v40_v35, 0.0  ;;  %v45_v42 = vld [vmem:[%s17653_s0 + $0xb8] sm:$0xff]  ;;  %v44_v43 = vld [vmem:[%s17653_s0 + $0xb0] sm:$0xff]  ;;  %v598_v44 = vsel %vm534_vm0, %v43_v38, 0.0 }
   0x9   :  { %v595_v45 = vsel %vm534_vm0, %v42_v39, 0.0  ;;  %v47_v46 = vld [vmem:[%s17653_s0 + $0xc8] sm:$0xff]  ;;  %v46_v47 = vld [vmem:[%s17653_s0 + $0xc0] sm:$0xff]  ;;  %v604_v48 = vsel %vm534_vm0, %v45_v42, 0.0  ;;  %v601_v49 = vsel %vm534_vm0, %v44_v43, 0.0  ;;  %v49_v50 = vld [vmem:[%s17653_s0 + $0xd8] sm:$0xff] }
   0xa   :  { %v48_v51 = vld [vmem:[%s17653_s0 + $0xd0] sm:$0xff]  ;;  %v610_v52 = vsel %vm534_vm0, %v47_v46, 0.0  ;;  %v607_v53 = vsel %vm534_vm0, %v46_v47, 0.0  ;;  %v51_v54 = vld [vmem:[%s17653_s0 + $0xe8] sm:$0xff]  ;;  %v50_v55 = vld [vmem:[%s17653_s0 + $0xe0] sm:$0xff]  ;;  %v616_v56 = vsel %vm534_vm0, %v49_v50, 0.0 }
   0xb   :  { %551 = vadd.xlane.f32.xlu1 %v550_v10  ;;  %548 = vadd.xlane.f32.xlu0 %v547_v11  ;;  %v613_v57 = vsel %vm534_vm0, %v48_v51, 0.0  ;;  %v53_v58 = vld [vmem:[%s17653_s0 + $0xf8] sm:$0xff]  ;;  %v52_v59 = vld [vmem:[%s17653_s0 + $0xf0] sm:$0xff]  ;;  %v622_v60 = vsel %vm534_vm0, %v51_v54, 0.0  ;;  %v619_v61 = vsel %vm534_vm0, %v50_v55, 0.0  ;;  %v55_v62 = vld [vmem:[%s17653_s0 + $0x108] sm:$0xff] }
   0xc   :  { %v54_v63 = vld [vmem:[%s17653_s0 + $0x100] sm:$0xff]  ;;  %v628_v0 = vsel %vm534_vm0, %v53_v58, 0.0  ;;  %v625_v1 = vsel %vm534_vm0, %v52_v59, 0.0  ;;  %v57_v2 = vld [vmem:[%s17653_s0 + $0x118] sm:$0xff]  ;;  %v56_v3 = vld [vmem:[%s17653_s0 + $0x110] sm:$0xff]  ;;  %v634_v4 = vsel %vm534_vm0, %v55_v62, 0.0 }
   0xd   :  { %v631_v5 = vsel %vm534_vm0, %v54_v63, 0.0  ;;  %v59_v6 = vld [vmem:[%s17653_s0 + $0x128] sm:$0xff]  ;;  %v58_v7 = vld [vmem:[%s17653_s0 + $0x120] sm:$0xff]  ;;  %v640_v8 = vsel %vm534_vm0, %v57_v2, 0.0  ;;  %v637_v9 = vsel %vm534_vm0, %v56_v3, 0.0  ;;  %v60_v11 = vld [vmem:[%s17653_s0 + $0x130] sm:$0xff] }
   0xe   :  { %v294_v10 = vld [vmem:[%s17653_s0 + $0x880] sm:$0xff]  ;;  %v646_v12 = vsel %vm534_vm0, %v59_v6, 0.0  ;;  %v643_v13 = vsel %vm534_vm0, %v58_v7, 0.0  ;;  %v649_v17 = vsel %vm534_vm0, %v60_v11, 0.0  ;;  %v72_v34 = vld [vmem:[%s17653_s0 + $0x190] sm:$0xff]  ;;  %v327_v35 = vld [vmem:[%s17653_s0 + $0x988] sm:$0xff] }
   0xf   :  { %557 = vadd.xlane.f32.xlu1 %v556_v14  ;;  %554 = vadd.xlane.f32.xlu0 %v553_v15  ;;  %v278_v14 = vld [vmem:[%s17653_s0 + $0x800] sm:$0xff]  ;;  %v295_v15 = vld [vmem:[%s17653_s0 + $0x888] sm:$0xff]  ;;  %v1351_v16 = vsel %vm534_vm0, %v294_v10, 0.0  ;;  %v73_v39 = vld [vmem:[%s17653_s0 + $0x198] sm:$0xff]  ;;  %v3354_v10 = vlaneseq  ;;  %vm17677_vm7 = vcmask 523712   ;;  %vm4202_vm8 = vcmask 589312  }
  0x10   :  { %v1303_v20 = vsel %vm534_vm0, %v278_v14, 0.0  ;;  %v1354_v21 = vsel %vm534_vm0, %v295_v15, 0.0  ;;  %v326_v30 = vld [vmem:[%s17653_s0 + $0x980] sm:$0xff]  ;;  %v299_v43 = vld [vmem:[%s17653_s0 + $0x8a8] sm:$0xff]  ;;  %v328_v46 = vld [vmem:[%s17653_s0 + $0x990] sm:$0xff]  ;;  %vm4209_vm9 = vcmask 654912  }
  0x11   :  { %v298_v38 = vld [vmem:[%s17653_s0 + $0x8a0] sm:$0xff]  ;;  %v311_v47 = vld [vmem:[%s17653_s0 + $0x908] sm:$0xff]  ;;  %v329_v51 = vld [vmem:[%s17653_s0 + $0x998] sm:$0xff]  ;;  %v12059_v15 = vand.u32 127, %v3354_v10  ;;  %vm4216_vm10 = vcmask 720512   ;;  %vm4223_vm11 = vcmask 786112  }
  0x12   :  { %v310_v42 = vld [vmem:[%s17653_s0 + $0x900] sm:$0xff]  ;;  %v312_v54 = vld [vmem:[%s17653_s0 + $0x910] sm:$0xff]  ;;  %v283_v55 = vld [vmem:[%s17653_s0 + $0x828] sm:$0xff]  ;;  %vm4230_vm12 = vcmask 851712   ;;  %vm4237_vm13 = vcmask 917312   ;;  %vm4244_vm14 = vcmask 982912  }
  0x13   :  { %563 = vadd.xlane.f32.xlu1 %v562_v18  ;;  %560 = vadd.xlane.f32.xlu0 %v559_v19  ;;  %v296_v18 = vld [vmem:[%s17653_s0 + $0x890] sm:$0xff]  ;;  %v279_v19 = vld [vmem:[%s17653_s0 + $0x808] sm:$0xff]  ;;  %v282_v50 = vld [vmem:[%s17653_s0 + $0x820] sm:$0xff]  ;;  %vm4251_vm15 = vcmask 1048512  }
  0x14   :  { %v1357_v24 = vsel %vm534_vm0, %v296_v18, 0.0  ;;  %v1306_v25 = vsel %vm534_vm0, %v279_v19, 0.0  ;;  %v74_v58 = vld [vmem:[%s17653_s0 + $0x1a0] sm:$0xff]  ;;  %v313_v59 = vld [vmem:[%s17653_s0 + $0x918] sm:$0xff]  ;;  %v300_v62 = vld [vmem:[%s17653_s0 + $0x8b0] sm:$0xff] }
  0x15   :  { %v75_v63 = vld [vmem:[%s17653_s0 + $0x1a8] sm:$0xff]  ;;  %v330_v2 = vld [vmem:[%s17653_s0 + $0x9a0] sm:$0xff]  ;;  %v301_v3 = vld [vmem:[%s17653_s0 + $0x8b8] sm:$0xff] }
  0x16   :  { %v284_v6 = vld [vmem:[%s17653_s0 + $0x830] sm:$0xff]  ;;  %v331_v7 = vld [vmem:[%s17653_s0 + $0x9a8] sm:$0xff]  ;;  %v314_v11 = vld [vmem:[%s17653_s0 + $0x920] sm:$0xff] }
  0x17   :  { %569 = vadd.xlane.f32.xlu1 %v568_v22  ;;  %566 = vadd.xlane.f32.xlu0 %v565_v23  ;;  %v70_v22 = vld [vmem:[%s17653_s0 + $0x180] sm:$0xff]  ;;  %v297_v23 = vld [vmem:[%s17653_s0 + $0x898] sm:$0xff]  ;;  %v1462_v14 = vsel %vm534_vm0, %v331_v7, 0.0 }
  0x18   :  { %v679_v28 = vsel %vm534_vm0, %v70_v22, 0.0  ;;  %v1360_v29 = vsel %vm534_vm0, %v297_v23, 0.0  ;;  %v12069_v22 = vshrl.u32 %v3354_v10, 7 }
  0x1a   :  { %17711 = vst [vmem:[#allocation5_spill] sm:$0xff] %v12069_v22 }
  0x1b   :  { %575 = vadd.xlane.f32.xlu1 %v574_v26  ;;  %572 = vadd.xlane.f32.xlu0 %v571_v27  ;;  %v280_v26 = vld [vmem:[%s17653_s0 + $0x810] sm:$0xff]  ;;  %v71_v27 = vld [vmem:[%s17653_s0 + $0x188] sm:$0xff] }
  0x1c   :  { %v682_v33 = vsel %vm534_vm0, %v71_v27, 0.0  ;;  %v4148_v27 = vadd.s32 4294967288, %v12059_v15 }
  0x1f   :  { %581 = vadd.xlane.f32.xlu1 %v580_v31  ;;  %578 = vadd.xlane.f32.xlu0 %v577_v32  ;;  %v281_v31 = vld [vmem:[%s17653_s0 + $0x818] sm:$0xff]  ;;  %v1309_v32 = vsel %vm534_vm0, %v280_v26, 0.0  ;;  %v4162_v26 = vadd.s32 4294967272, %v12059_v15 }
  0x23   :  { %587 = vadd.xlane.f32.xlu1 %v586_v36  ;;  %584 = vadd.xlane.f32.xlu0 %v583_v37  ;;  %v1447_v36 = vsel %vm534_vm0, %v326_v30, 0.0  ;;  %v1312_v37 = vsel %vm534_vm0, %v281_v31, 0.0  ;;  %v4169_v31 = vadd.s32 4294967264, %v12059_v15 }
  0x27   :  { %593 = vadd.xlane.f32.xlu1 %v592_v40  ;;  %590 = vadd.xlane.f32.xlu0 %v589_v41  ;;  %v685_v40 = vsel %vm534_vm0, %v72_v34, 0.0  ;;  %v1450_v41 = vsel %vm534_vm0, %v327_v35, 0.0  ;;  %v4176_v35 = vadd.s32 4294967256, %v12059_v15 }
  0x2b   :  { %599 = vadd.xlane.f32.xlu1 %v598_v44  ;;  %596 = vadd.xlane.f32.xlu0 %v595_v45  ;;  %v1363_v44 = vsel %vm534_vm0, %v298_v38, 0.0  ;;  %v688_v45 = vsel %vm534_vm0, %v73_v39, 0.0  ;;  %v12089_v39 = vsub.s32 %v12059_v15, %v12069_v22 }
  0x2d   :  { %17713 = vst [vmem:[#allocation7_spill] sm:$0xff] %v12089_v39 }
  0x2f   :  { %605 = vadd.xlane.f32.xlu1 %v604_v48  ;;  %602 = vadd.xlane.f32.xlu0 %v601_v49  ;;  %v1399_v48 = vsel %vm534_vm0, %v310_v42, 0.0  ;;  %v1366_v49 = vsel %vm534_vm0, %v299_v43, 0.0  ;;  %v332_v42 = vld [vmem:[%s17653_s0 + $0x9b0] sm:$0xff]  ;;  %v303_v43 = vld [vmem:[%s17653_s0 + $0x8c8] sm:$0xff] }
  0x33   :  { %611 = vadd.xlane.f32.xlu1 %v610_v52  ;;  %608 = vadd.xlane.f32.xlu0 %v607_v53  ;;  %v1453_v52 = vsel %vm534_vm0, %v328_v46, 0.0  ;;  %v1402_v53 = vsel %vm534_vm0, %v311_v47, 0.0 }
  0x37   :  { %617 = vadd.xlane.f32.xlu1 %v616_v56  ;;  %614 = vadd.xlane.f32.xlu0 %v613_v57  ;;  %v1315_v56 = vsel %vm534_vm0, %v282_v50, 0.0  ;;  %v1456_v57 = vsel %vm534_vm0, %v329_v51, 0.0  ;;  %v12107_v50 = vsub.s32 %v4169_v31, %v12069_v22  ;;  %v12110_v51 = vsub.s32 %v4176_v35, %v12069_v22 }
  0x39   :  { %17716 = vst [vmem:[#allocation10_spill] sm:$0xff] %v12107_v50  ;;  %17717 = vst [vmem:[#allocation11_spill] sm:$0xff] %v12110_v51 }
  0x3b   :  { %623 = vadd.xlane.f32.xlu1 %v622_v60  ;;  %620 = vadd.xlane.f32.xlu0 %v619_v61  ;;  %v1405_v60 = vsel %vm534_vm0, %v312_v54, 0.0  ;;  %v1318_v61 = vsel %vm534_vm0, %v283_v55, 0.0 }
  0x3f   :  { %629 = vadd.xlane.f32.xlu1 %v628_v0  ;;  %626 = vadd.xlane.f32.xlu0 %v625_v1  ;;  %v691_v0 = vsel %vm534_vm0, %v74_v58, 0.0  ;;  %v1408_v1 = vsel %vm534_vm0, %v313_v59, 0.0 }
  0x43   :  { %635 = vadd.xlane.f32.xlu1 %v634_v4  ;;  %632 = vadd.xlane.f32.xlu0 %v631_v5  ;;  %v1369_v4 = vsel %vm534_vm0, %v300_v62, 0.0  ;;  %v694_v5 = vsel %vm534_vm0, %v75_v63, 0.0  ;;  %v61_v62 = vld [vmem:[%s17653_s0 + $0x138] sm:$0xff] }
  0x47   :  { %641 = vadd.xlane.f32.xlu1 %v640_v8  ;;  %638 = vadd.xlane.f32.xlu0 %v637_v9  ;;  %v1459_v8 = vsel %vm534_vm0, %v330_v2, 0.0  ;;  %v1372_v9 = vsel %vm534_vm0, %v301_v3, 0.0  ;;  %v1378_v2 = vsel %vm534_vm0, %v303_v43, 0.0  ;;  %v333_v3 = vld [vmem:[%s17653_s0 + $0x9b8] sm:$0xff] }
  0x4b   :  { %647 = vadd.xlane.f32.xlu1 %v646_v12  ;;  %644 = vadd.xlane.f32.xlu0 %v643_v13  ;;  %v285_v12 = vld [vmem:[%s17653_s0 + $0x838] sm:$0xff]  ;;  %v1321_v13 = vsel %vm534_vm0, %v284_v6, 0.0 }
  0x4f   :  { %1352 = vadd.xlane.f32.xlu1 %v1351_v16  ;;  %650 = vadd.xlane.f32.xlu0 %v649_v17  ;;  %v76_v16 = vld [vmem:[%s17653_s0 + $0x1b0] sm:$0xff]  ;;  %v315_v17 = vld [vmem:[%s17653_s0 + $0x928] sm:$0xff] }
  0x50   :  { %v697_v23 = vsel %vm534_vm0, %v76_v16, 0.0 }
  0x53   :  { %1304 = vadd.xlane.f32.xlu1 %v1303_v20  ;;  %1355 = vadd.xlane.f32.xlu0 %v1354_v21  ;;  %v1411_v20 = vsel %vm534_vm0, %v314_v11, 0.0  ;;  %v1324_v21 = vsel %vm534_vm0, %v285_v12, 0.0 }
  0x57   :  { %1358 = vadd.xlane.f32.xlu1 %v1357_v24  ;;  %1307 = vadd.xlane.f32.xlu0 %v1306_v25  ;;  %v302_v24 = vld [vmem:[%s17653_s0 + $0x8c0] sm:$0xff]  ;;  %v4155_v25 = vadd.s32 4294967280, %v12059_v15 }
  0x59   :  { %v12085_v38 = vsub.s32 %v4155_v25, %v12069_v22 }
  0x5b   :  { %680 = vadd.xlane.f32.xlu1 %v679_v28  ;;  %1361 = vadd.xlane.f32.xlu0 %v1360_v29  ;;  %v1414_v28 = vsel %vm534_vm0, %v315_v17, 0.0  ;;  %v77_v29 = vld [vmem:[%s17653_s0 + $0x1b8] sm:$0xff]  ;;  %17712 = vst [vmem:[#allocation6_spill] sm:$0xff] %v12085_v38 }
  0x5c   :  { %v700_v47 = vsel %vm534_vm0, %v77_v29, 0.0  ;;  %v4211_v29 = vadd.s32 4294967216, %v12059_v15 }
  0x5f   :  { %1310 = vadd.xlane.f32.xlu1 %v1309_v32  ;;  %683 = vadd.xlane.f32.xlu0 %v682_v33 }
  0x63   :  { %1448 = vadd.xlane.f32.xlu1 %v1447_v36  ;;  %1313 = vadd.xlane.f32.xlu0 %v1312_v37 }
  0x67   :  { %686 = vadd.xlane.f32.xlu1 %v685_v40  ;;  %1451 = vadd.xlane.f32.xlu0 %v1450_v41  ;;  %v1375_v40 = vsel %vm534_vm0, %v302_v24, 0.0  ;;  %v4183_v41 = vadd.s32 4294967248, %v12059_v15 }
  0x6b   :  { %1364 = vadd.xlane.f32.xlu1 %v1363_v44  ;;  %689 = vadd.xlane.f32.xlu0 %v688_v45  ;;  %v12100_v45 = vsub.s32 %v4148_v27, %v12069_v22 }
  0x6d   :  { %17714 = vst [vmem:[#allocation8_spill] sm:$0xff] %v12100_v45 }
  0x6f   :  { %1400 = vadd.xlane.f32.xlu1 %v1399_v48  ;;  %1367 = vadd.xlane.f32.xlu0 %v1366_v49  ;;  %v12104_v48 = vsub.s32 %v4162_v26, %v12069_v22 }
  0x71   :  { %17715 = vst [vmem:[#allocation9_spill] sm:$0xff] %v12104_v48 }
  0x73   :  { %1454 = vadd.xlane.f32.xlu1 %v1453_v52  ;;  %1403 = vadd.xlane.f32.xlu0 %v1402_v53  ;;  %v4190_v53 = vadd.s32 4294967240, %v12059_v15 }
  0x75   :  { %v12128_v6 = vsub.s32 %v4190_v53, %v12069_v22 }
  0x77   :  { %1316 = vadd.xlane.f32.xlu1 %v1315_v56  ;;  %1457 = vadd.xlane.f32.xlu0 %v1456_v57  ;;  %17719 = vst [vmem:[#allocation13_spill] sm:$0xff] %v12128_v6 }
  0x7b   :  { %1406 = vadd.xlane.f32.xlu1 %v1405_v60  ;;  %1319 = vadd.xlane.f32.xlu0 %v1318_v61  ;;  %v12114_v60 = vsub.s32 %v4183_v41, %v12069_v22  ;;  %v1465_v61 = vsel %vm534_vm0, %v332_v42, 0.0 }
  0x7d   :  { %17718 = vst [vmem:[#allocation12_spill] sm:$0xff] %v12114_v60 }
  0x7f   :  { %692 = vadd.xlane.f32.xlu1 %v691_v0  ;;  %1409 = vadd.xlane.f32.xlu0 %v1408_v1 }
  0x83   :  { %1370 = vadd.xlane.f32.xlu1 %v1369_v4  ;;  %695 = vadd.xlane.f32.xlu0 %v694_v5 }
  0x87   :  { %1460 = vadd.xlane.f32.xlu1 %v1459_v8  ;;  %1373 = vadd.xlane.f32.xlu0 %v1372_v9  ;;  %v4197_v8 = vadd.s32 4294967232, %v12059_v15  ;;  %v4204_v9 = vadd.s32 4294967224, %v12059_v15 }
  0x89   :  { %v12149_v35 = vsub.s32 %v4197_v8, %v12069_v22 }
  0x8b   :  { %1322 = vadd.xlane.f32.xlu1 %v1321_v13  ;;  %1463 = vadd.xlane.f32.xlu0 %v1462_v14  ;;  %17720 = vst [vmem:[#allocation14_spill] sm:$0xff] %v12149_v35 }
  0x8c   :  { %v543_v18 = vpop.xlane.xlu1 %542  ;;  %v537_v19 = vpop.xlane.xlu0 %536 }
  0x8d   :  { %v2074_v30 = vmul.f32 0.020408163, %v543_v18  ;;  %v2072_v32 = vmul.f32 0.020408163, %v537_v19  ;;  %v652_v18 = vsel %vm534_vm0, %v61_v62, 0.0 }
  0x8f   :  { %1412 = vadd.xlane.f32.xlu1 %v1411_v20  ;;  %1325 = vadd.xlane.f32.xlu0 %v1324_v21  ;;  %v287_v21 = vld [vmem:[%s17653_s0 + $0x848] sm:$0xff] }
  0x90   :  { %v546_v33 = vpop.xlane.xlu1 %545  ;;  %v540_v34 = vpop.xlane.xlu0 %539  ;;  %v1330_v53 = vsel %vm534_vm0, %v287_v21, 0.0 }
  0x91   :  { %v2075_v36 = vmul.f32 0.020408163, %v546_v33  ;;  %v2073_v37 = vmul.f32 0.020408163, %v540_v34 }
  0x93   :  { %v2585_v44 = vpack.c.bf16 %v2075_v36, %v2074_v30  ;;  %v2584_v46 = vpack.c.bf16 %v2073_v37, %v2072_v32  ;;  %698 = vadd.xlane.f32.xlu1 %v697_v23  ;;  %1415 = vadd.xlane.f32.xlu0 %v1414_v28  ;;  %v286_v23 = vld [vmem:[%s17653_s0 + $0x840] sm:$0xff]  ;;  %v1468_v28 = vsel %vm534_vm0, %v333_v3, 0.0  ;;  %v12152_v36 = vsub.s32 %v4204_v9, %v12069_v22  ;;  %v79_v3 = vld [vmem:[%s17653_s0 + $0x1c8] sm:$0xff] }
  0x94   :  { %v552_v49 = vpop.xlane.xlu1 %551  ;;  %v549_v52 = vpop.xlane.xlu0 %548  ;;  %v4218_v37 = vadd.s32 4294967208, %v12059_v15 }
  0x95   :  { %v3632_v54 = vunpack.c.l.b16 %v2585_v44  ;;  %v3633_v55 = vunpack.c.h.b16 %v2585_v44  ;;  %v3630_v56 = vunpack.c.l.b16 %v2584_v46  ;;  %v3631_v57 = vunpack.c.h.b16 %v2584_v46  ;;  %17721 = vst [vmem:[#allocation15_spill] sm:$0xff] %v12152_v36  ;;  %v317_v44 = vld [vmem:[%s17653_s0 + $0x938] sm:$0xff]  ;;  %v316_v46 = vld [vmem:[%s17653_s0 + $0x930] sm:$0xff] }
  0x96   :  { %v2077_v58 = vmul.f32 0.020408163, %v552_v49  ;;  %v2076_v59 = vmul.f32 0.020408163, %v549_v52  ;;  %v12165_v49 = vsub.s32 %v4211_v29, %v12069_v22  ;;  %v1420_v9 = vsel %vm534_vm0, %v317_v44, 0.0 }
  0x97   :  { %v4159_v63 = vrot.slane %v3632_v54, %v12085_v38  ;;  %v4147_v0 = vrot.slane %v3630_v56, %v12089_v39  ;;  %v4152_v1 = vrot.slane %v3631_v57, %v12100_v45  ;;  %1376 = vadd.xlane.f32.xlu1 %v1375_v40  ;;  %701 = vadd.xlane.f32.xlu0 %v700_v47  ;;  %v1327_v54 = vsel %vm534_vm0, %v286_v23, 0.0 }
  0x98   :  { %v2586_v4 = vpack.c.bf16 %v2077_v58, %v2076_v59  ;;  %v558_v5 = vpop.xlane.xlu1 %557  ;;  %v555_v7 = vpop.xlane.xlu0 %554  ;;  %v4166_v10 = vrot.slane %v3633_v55, %v12104_v48  ;;  %v706_v29 = vsel %vm534_vm0, %v79_v3, 0.0  ;;  %v63_v3 = vld [vmem:[%s17653_s0 + $0x148] sm:$0xff] }
  0x99   :  { %v4154_v11 = vsel %vm4153_vm1, %v4152_v1, %v4147_v0  ;;  %v2079_v12 = vmul.f32 0.020408163, %v558_v5  ;;  %v2078_v13 = vmul.f32 0.020408163, %v555_v7  ;;  %v4225_v1 = vadd.s32 4294967200, %v12059_v15 }
  0x9a   :  { %v4161_v14 = vsel %vm4160_vm2, %v4159_v63, %v4154_v11  ;;  %v3634_v16 = vunpack.c.l.b16 %v2586_v4  ;;  %v3635_v17 = vunpack.c.h.b16 %v2586_v4  ;;  %v78_v4 = vld [vmem:[%s17653_s0 + $0x1c0] sm:$0xff]  ;;  %v4239_v11 = vadd.s32 4294967184, %v12059_v15 }
  0x9b   :  { %v4168_v19 = vsel %vm17680_vm3, %v4166_v10, %v4161_v14  ;;  %v2587_v20 = vpack.c.bf16 %v2079_v12, %v2078_v13  ;;  %1466 = vadd.xlane.f32.xlu1 %v1465_v61  ;;  %1379 = vadd.xlane.f32.xlu0 %v1378_v2  ;;  %v12172_v61 = vsub.s32 %v4218_v37, %v12069_v22  ;;  %v4232_v2 = vadd.s32 4294967192, %v12059_v15 }
  0x9c   :  { %v4173_v24 = vrot.slane %v3634_v16, %v12107_v50  ;;  %v4180_v25 = vrot.slane %v3635_v17, %v12110_v51  ;;  %v564_v26 = vpop.xlane.xlu1 %563  ;;  %v561_v27 = vpop.xlane.xlu0 %560  ;;  %v1417_v10 = vsel %vm534_vm0, %v316_v46, 0.0 }
  0x9d   :  { %v3636_v30 = vunpack.c.l.b16 %v2587_v20  ;;  %v3637_v31 = vunpack.c.h.b16 %v2587_v20  ;;  %v2081_v32 = vmul.f32 0.020408163, %v564_v26  ;;  %v2080_v33 = vmul.f32 0.020408163, %v561_v27 }
  0x9e   :  { %v4175_v34 = vsel %vm4174_vm4, %v4173_v24, %v4168_v19  ;;  %v4246_v19 = vadd.s32 4294967176, %v12059_v15  ;;  %v12191_v20 = vsub.s32 %v4225_v1, %v12069_v22  ;;  %v12194_v21 = vsub.s32 %v4232_v2, %v12069_v22  ;;  %v305_v24 = vld [vmem:[%s17653_s0 + $0x8d8] sm:$0xff] }
  0x9f   :  { %v4182_v40 = vsel %vm4181_vm5, %v4180_v25, %v4175_v34  ;;  %v4187_v41 = vrot.slane %v3636_v30, %v12114_v60  ;;  %v4194_v42 = vrot.slane %v3637_v31, %v12128_v6  ;;  %v2588_v43 = vpack.c.bf16 %v2081_v32, %v2080_v33  ;;  %653 = vadd.xlane.f32.xlu1 %v652_v18  ;;  %v304_v25 = vld [vmem:[%s17653_s0 + $0x8d0] sm:$0xff] }
  0xa0   :  { %1469 = vadd.xlane.f32.xlu0 %v1468_v28  ;;  %v570_v47 = vpop.xlane.xlu1 %569  ;;  %v567_v52 = vpop.xlane.xlu0 %566  ;;  %v703_v30 = vsel %vm534_vm0, %v78_v4, 0.0  ;;  %v62_v4 = vld [vmem:[%s17653_s0 + $0x140] sm:$0xff] }
  0xa1   :  { %v4189_v55 = vsel %vm4188_vm6, %v4187_v41, %v4182_v40  ;;  %v3638_v56 = vunpack.c.l.b16 %v2588_v43  ;;  %v3639_v57 = vunpack.c.h.b16 %v2588_v43  ;;  %v2083_v58 = vmul.f32 0.020408163, %v570_v47  ;;  %v335_v47 = vld [vmem:[%s17653_s0 + $0x9c8] sm:$0xff] }
  0xa2   :  { %v4196_v59 = vsel %vm17677_vm7, %v4194_v42, %v4189_v55  ;;  %v2082_v62 = vmul.f32 0.020408163, %v567_v52  ;;  %v12208_v40 = vsub.s32 %v4239_v11, %v12069_v22  ;;  %v12211_v41 = vsub.s32 %v4246_v19, %v12069_v22  ;;  %v334_v52 = vld [vmem:[%s17653_s0 + $0x9c0] sm:$0xff]  ;;  %v289_v19 = vld [vmem:[%s17653_s0 + $0x858] sm:$0xff] }
  0xa3   :  { %v4201_v63 = vrot.slane %v3638_v56, %v12149_v35  ;;  %v4208_v0 = vrot.slane %v3639_v57, %v12152_v36  ;;  %1331 = vadd.xlane.f32.xlu1 %v1330_v53  ;;  %v1384_v55 = vsel %vm534_vm0, %v305_v24, 0.0  ;;  %v1381_v56 = vsel %vm534_vm0, %v304_v25, 0.0 }
  0xa4   :  { %v2589_v5 = vpack.c.bf16 %v2083_v58, %v2082_v62  ;;  %1328 = vadd.xlane.f32.xlu0 %v1327_v54  ;;  %v576_v7 = vpop.xlane.xlu1 %575  ;;  %v573_v8 = vpop.xlane.xlu0 %572 }
  0xa5   :  { %v4203_v12 = vsel %vm4202_vm8, %v4201_v63, %v4196_v59  ;;  %v2085_v13 = vmul.f32 0.020408163, %v576_v7  ;;  %v2084_v14 = vmul.f32 0.020408163, %v573_v8 }
  0xa6   :  { %v4210_v16 = vsel %vm4209_vm9, %v4208_v0, %v4203_v12  ;;  %v3640_v17 = vunpack.c.l.b16 %v2589_v5  ;;  %v3641_v18 = vunpack.c.h.b16 %v2589_v5 }
  0xa7   :  { %v2590_v23 = vpack.c.bf16 %v2085_v13, %v2084_v14  ;;  %1421 = vadd.xlane.f32.xlu1 %v1420_v9  ;;  %v1474_v9 = vsel %vm534_vm0, %v335_v47, 0.0 }
  0xa8   :  { %v4215_v26 = vrot.slane %v3640_v17, %v12165_v49  ;;  %v4222_v15 = vrot.slane %v3641_v18, %v12172_v61  ;;  %1418 = vadd.xlane.f32.xlu0 %v1417_v10  ;;  %v582_v27 = vpop.xlane.xlu1 %581  ;;  %v579_v28 = vpop.xlane.xlu0 %578  ;;  %v1471_v10 = vsel %vm534_vm0, %v334_v52, 0.0  ;;  %v1336_v52 = vsel %vm534_vm0, %v289_v19, 0.0 }
  0xa9   :  { %v3642_v31 = vunpack.c.l.b16 %v2590_v23  ;;  %v3643_v32 = vunpack.c.h.b16 %v2590_v23  ;;  %v2087_v33 = vmul.f32 0.020408163, %v582_v27  ;;  %v2086_v34 = vmul.f32 0.020408163, %v579_v28  ;;  %v288_v23 = vld [vmem:[%s17653_s0 + $0x850] sm:$0xff] }
  0xaa   :  { %v4217_v37 = vsel %vm4216_vm10, %v4215_v26, %v4210_v16  ;;  %v658_v27 = vsel %vm534_vm0, %v63_v3, 0.0  ;;  %v655_v28 = vsel %vm534_vm0, %v62_v4, 0.0 }
  0xab   :  { %v4224_v42 = vsel %vm4223_vm11, %v4222_v15, %v4217_v37  ;;  %v4229_v43 = vrot.slane %v3642_v31, %v12191_v20  ;;  %v4236_v44 = vrot.slane %v3643_v32, %v12194_v21  ;;  %v2591_v46 = vpack.c.bf16 %v2087_v33, %v2086_v34  ;;  %707 = vadd.xlane.f32.xlu1 %v706_v29 }
  0xac   :  { %704 = vadd.xlane.f32.xlu0 %v703_v30  ;;  %v588_v53 = vpop.xlane.xlu1 %587  ;;  %v585_v54 = vpop.xlane.xlu0 %584 }
  0xad   :  { %v4231_v57 = vsel %vm4230_vm12, %v4229_v43, %v4224_v42  ;;  %v3644_v58 = vunpack.c.l.b16 %v2591_v46  ;;  %v3645_v59 = vunpack.c.h.b16 %v2591_v46  ;;  %v2089_v62 = vmul.f32 0.020408163, %v588_v53  ;;  %v319_v42 = vld [vmem:[%s17653_s0 + $0x948] sm:$0xff]  ;;  %v318_v43 = vld [vmem:[%s17653_s0 + $0x940] sm:$0xff] }
  0xae   :  { %v2088_v63 = vmul.f32 0.020408163, %v585_v54  ;;  %v4238_v0 = vsel %vm4237_vm13, %v4236_v44, %v4231_v57  ;;  %v1333_v53 = vsel %vm534_vm0, %v288_v23, 0.0 }
  0xaf   :  { %v4243_v1 = vrot.slane %v3644_v58, %v12208_v40  ;;  %v4250_v2 = vrot.slane %v3645_v59, %v12211_v41  ;;  %1385 = vadd.xlane.f32.xlu1 %v1384_v55 }
  0xb0   :  { %v2592_v5 = vpack.c.bf16 %v2089_v62, %v2088_v63  ;;  %1382 = vadd.xlane.f32.xlu0 %v1381_v56  ;;  %v594_v7 = vpop.xlane.xlu1 %593  ;;  %v591_v8 = vpop.xlane.xlu0 %590 }
  0xb1   :  { %v2091_v11 = vmul.f32 0.020408163, %v594_v7  ;;  %v2090_v12 = vmul.f32 0.020408163, %v591_v8  ;;  %v4245_v13 = vsel %vm4244_vm14, %v4243_v1, %v4238_v0  ;;  %v81_v0 = vld [vmem:[%s17653_s0 + $0x1d8] sm:$0xff]  ;;  %v80_v1 = vld [vmem:[%s17653_s0 + $0x1d0] sm:$0xff] }
  0xb2   :  { %v3646_v14 = vunpack.c.l.b16 %v2592_v5  ;;  %v3647_v16 = vunpack.c.h.b16 %v2592_v5  ;;  %v12238_v17 = vsel %vm4251_vm15, %v4250_v2, %v4245_v13  ;;  %v1426_v5 = vsel %vm534_vm0, %v319_v42, 0.0 }
  0xb3   :  { %v2593_v18 = vpack.c.bf16 %v2091_v11, %v2090_v12  ;;  %1475 = vadd.xlane.f32.xlu1 %v1474_v9  ;;  %v1423_v7 = vsel %vm534_vm0, %v318_v43, 0.0  ;;  %v337_v43 = vld [vmem:[%s17653_s0 + $0x9d8] sm:$0xff] }
  0xb4   :  { %v4256_v24 = vrot.slane %v3646_v14, %v12089_v39  ;;  %v4260_v25 = vrot.slane %v3647_v16, %v12100_v45  ;;  %1472 = vadd.xlane.f32.xlu0 %v1471_v10  ;;  %v600_v26 = vpop.xlane.xlu1 %599  ;;  %v597_v15 = vpop.xlane.xlu0 %596  ;;  %v307_v16 = vld [vmem:[%s17653_s0 + $0x8e8] sm:$0xff] }
  0xb5   :  { %v3648_v29 = vunpack.c.l.b16 %v2593_v18  ;;  %v3649_v30 = vunpack.c.h.b16 %v2593_v18  ;;  %v2093_v31 = vmul.f32 0.020408163, %v600_v26  ;;  %v2092_v32 = vmul.f32 0.020408163, %v597_v15  ;;  %v306_v18 = vld [vmem:[%s17653_s0 + $0x8e0] sm:$0xff] }
  0xb6   :  { %v4261_v44 = vsel %vm4153_vm1, %v4260_v25, %v4256_v24  ;;  %v712_v26 = vsel %vm534_vm0, %v81_v0, 0.0  ;;  %v709_v15 = vsel %vm534_vm0, %v80_v1, 0.0 }
  0xb7   :  { %v4265_v33 = vrot.slane %v3648_v29, %v12085_v38  ;;  %v4270_v34 = vrot.slane %v3649_v30, %v12104_v48  ;;  %v2594_v37 = vpack.c.bf16 %v2093_v31, %v2092_v32  ;;  %659 = vadd.xlane.f32.xlu1 %v658_v27  ;;  %v10919_v32 = vld [vmem:[%s17654_s1 + $0xe4] ss:$16 sps:$4 sm:$0xff]  }
  0xb8   :  { %656 = vadd.xlane.f32.xlu0 %v655_v28  ;;  %v606_v46 = vpop.xlane.xlu1 %605  ;;  %v603_v47 = vpop.xlane.xlu0 %602  ;;  %9311 = vmatprep.subr.bf16.mxu0 %v10919_v32 }
  0xb9   :  { %v4266_v54 = vsel %vm4160_vm2, %v4265_v33, %v4261_v44  ;;  %v3650_v55 = vunpack.c.l.b16 %v2594_v37  ;;  %v3651_v56 = vunpack.c.h.b16 %v2594_v37  ;;  %v2095_v57 = vmul.f32 0.020408163, %v606_v46  ;;  %v336_v44 = vld [vmem:[%s17653_s0 + $0x9d0] sm:$0xff] }
  0xba   :  { %v4271_v58 = vsel %vm17680_vm3, %v4270_v34, %v4266_v54  ;;  %v2094_v59 = vmul.f32 0.020408163, %v603_v47  ;;  %v10921_v46 = vld [vmem:[%s17654_s1 + $0xe0] ss:$16 sps:$4 sm:$0xff]   ;;  %v1387_v54 = vsel %vm534_vm0, %v306_v18, 0.0 }
  0xbb   :  { %v4275_v62 = vrot.slane %v3650_v55, %v12107_v50  ;;  %v4280_v63 = vrot.slane %v3651_v56, %v12110_v51  ;;  %1337 = vadd.xlane.f32.xlu1 %v1336_v52  ;;  %9312 = vmatpush1.bf16.msra.mxu0 %v10921_v46 }
  0xbc   :  { %v2595_v2 = vpack.c.bf16 %v2095_v57, %v2094_v59  ;;  %1334 = vadd.xlane.f32.xlu0 %v1333_v53  ;;  %v612_v3 = vpop.xlane.xlu1 %611  ;;  %v609_v4 = vpop.xlane.xlu0 %608  ;;  %v1390_v53 = vsel %vm534_vm0, %v307_v16, 0.0 }
  0xbd   :  { %v4276_v8 = vsel %vm4174_vm4, %v4275_v62, %v4271_v58  ;;  %v2097_v9 = vmul.f32 0.020408163, %v612_v3  ;;  %v2096_v10 = vmul.f32 0.020408163, %v609_v4  ;;  %v64_v3 = vld [vmem:[%s17653_s0 + $0x150] sm:$0xff] }
  0xbe   :  { %v4281_v11 = vsel %vm4181_vm5, %v4280_v63, %v4276_v8  ;;  %v3652_v12 = vunpack.c.l.b16 %v2595_v2  ;;  %v3653_v13 = vunpack.c.h.b16 %v2595_v2  ;;  %v10922_v63 = vld [vmem:[%s17654_s1 + $0xc4] ss:$16 sps:$4 sm:$0xff]   ;;  %v65_v2 = vld [vmem:[%s17653_s0 + $0x158] sm:$0xff]  ;;  %v10924_v4 = vld [vmem:[%s17654_s1 + $0xc0] ss:$16 sps:$4 sm:$0xff]  }
  0xbf   :  { %v2596_v14 = vpack.c.bf16 %v2097_v9, %v2096_v10  ;;  %1427 = vadd.xlane.f32.xlu1 %v1426_v5  ;;  %v1480_v9 = vsel %vm534_vm0, %v337_v43, 0.0  ;;  %v1477_v10 = vsel %vm534_vm0, %v336_v44, 0.0  ;;  %9313 = vmatprep.subr.bf16.mxu0 %v10922_v63 }
  0xc0   :  { %v4285_v19 = vrot.slane %v3652_v12, %v12114_v60  ;;  %v4290_v23 = vrot.slane %v3653_v13, %v12128_v6  ;;  %1424 = vadd.xlane.f32.xlu0 %v1423_v7  ;;  %v618_v24 = vpop.xlane.xlu1 %617  ;;  %v615_v25 = vpop.xlane.xlu0 %614  ;;  %9314 = vmatpush1.bf16.msra.mxu0 %v10924_v4 }
  0xc1   :  { %v3654_v27 = vunpack.c.l.b16 %v2596_v14  ;;  %v3655_v28 = vunpack.c.h.b16 %v2596_v14  ;;  %v2099_v29 = vmul.f32 0.020408163, %v618_v24  ;;  %v2098_v30 = vmul.f32 0.020408163, %v615_v25  ;;  %v291_v24 = vld [vmem:[%s17653_s0 + $0x868] sm:$0xff]  ;;  %v290_v25 = vld [vmem:[%s17653_s0 + $0x860] sm:$0xff] }
  0xc2   :  { %v4286_v31 = vsel %vm4188_vm6, %v4285_v19, %v4281_v11  ;;  %v10925_v19 = vld [vmem:[%s17654_s1 + $0xa4] ss:$16 sps:$4 sm:$0xff]  }
  0xc3   :  { %v4291_v33 = vsel %vm17677_vm7, %v4290_v23, %v4286_v31  ;;  %v4295_v34 = vrot.slane %v3654_v27, %v12149_v35  ;;  %v4300_v37 = vrot.slane %v3655_v28, %v12152_v36  ;;  %v2597_v42 = vpack.c.bf16 %v2099_v29, %v2098_v30  ;;  %713 = vadd.xlane.f32.xlu1 %v712_v26  ;;  %v10927_v26 = vld [vmem:[%s17654_s1 + $0xa0] ss:$16 sps:$4 sm:$0xff]  }
  0xc4   :  { %710 = vadd.xlane.f32.xlu0 %v709_v15  ;;  %v624_v47 = vpop.xlane.xlu1 %623  ;;  %v621_v52 = vpop.xlane.xlu0 %620  ;;  %v664_v30 = vsel %vm534_vm0, %v65_v2, 0.0  ;;  %v661_v31 = vsel %vm534_vm0, %v64_v3, 0.0  ;;  %9315 = vmatprep.subr.bf16.mxu0 %v10925_v19  ;;  %v10931_v2 = vld [vmem:[%s17654_s1 + $0x64] ss:$16 sps:$4 sm:$0xff]  }
  0xc5   :  { %v4296_v55 = vsel %vm4202_vm8, %v4295_v34, %v4291_v33  ;;  %v3656_v56 = vunpack.c.l.b16 %v2597_v42  ;;  %v3657_v57 = vunpack.c.h.b16 %v2597_v42  ;;  %v2101_v58 = vmul.f32 0.020408163, %v624_v47  ;;  %9316 = vmatpush1.bf16.msra.mxu0 %v10927_v26  ;;  %v10928_v42 = vld [vmem:[%s17654_s1 + $0x84] ss:$16 sps:$4 sm:$0xff]  }
  0xc6   :  { %v4301_v59 = vsel %vm4209_vm9, %v4300_v37, %v4296_v55  ;;  %v2100_v62 = vmul.f32 0.020408163, %v621_v52  ;;  %v321_v52 = vld [vmem:[%s17653_s0 + $0x958] sm:$0xff]  ;;  %9317 = vmatprep.subr.bf16.mxu0 %v10928_v42  ;;  %v10936_v26 = vld [vmem:[%s17654_s1 + $0x2e4] ss:$16 sps:$4 sm:$0xff]  }
  0xc7   :  { %v4305_v0 = vrot.slane %v3656_v56, %v12165_v49  ;;  %v4310_v1 = vrot.slane %v3657_v57, %v12172_v61  ;;  %1391 = vadd.xlane.f32.xlu1 %v1390_v53  ;;  %v10930_v53 = vld [vmem:[%s17654_s1 + $0x80] ss:$16 sps:$4 sm:$0xff]   ;;  %v1342_v57 = vsel %vm534_vm0, %v291_v24, 0.0  ;;  %9352 = vmatprep.subr.bf16.mxu1 %v10936_v26 }
  0xc8   :  { %v2598_v5 = vpack.c.bf16 %v2101_v58, %v2100_v62  ;;  %1388 = vadd.xlane.f32.xlu0 %v1387_v54  ;;  %v630_v7 = vpop.xlane.xlu1 %629  ;;  %v627_v8 = vpop.xlane.xlu0 %626  ;;  %v1339_v58 = vsel %vm534_vm0, %v290_v25, 0.0  ;;  %v10934_v25 = vld [vmem:[%s17654_s1 + $0x44] ss:$16 sps:$4 sm:$0xff]  }
  0xc9   :  { %v4306_v11 = vsel %vm4216_vm10, %v4305_v0, %v4301_v59  ;;  %v2103_v12 = vmul.f32 0.020408163, %v630_v7  ;;  %v2102_v13 = vmul.f32 0.020408163, %v627_v8  ;;  %v320_v59 = vld [vmem:[%s17653_s0 + $0x950] sm:$0xff]  ;;  %9318 = vmatpush1.bf16.msra.mxu0 %v10930_v53 }
  0xca   :  { %v4311_v14 = vsel %vm4223_vm11, %v4310_v1, %v4306_v11  ;;  %v3658_v16 = vunpack.c.l.b16 %v2598_v5  ;;  %v3659_v18 = vunpack.c.h.b16 %v2598_v5  ;;  %v83_v5 = vld [vmem:[%s17653_s0 + $0x1e8] sm:$0xff]  ;;  %v10933_v7 = vld [vmem:[%s17654_s1 + $0x60] ss:$16 sps:$4 sm:$0xff]   ;;  %9319 = vmatprep.subr.bf16.mxu0 %v10931_v2  ;;  %v10940_v53 = vld [vmem:[%s17654_s1 + $0x24] ss:$16 sps:$4 sm:$0xff]  }
  0xcb   :  { %v2599_v23 = vpack.c.bf16 %v2103_v12, %v2102_v13  ;;  %1481 = vadd.xlane.f32.xlu1 %v1480_v9  ;;  %v1432_v13 = vsel %vm534_vm0, %v321_v52, 0.0 }
  0xcc   :  { %v4315_v15 = vrot.slane %v3658_v16, %v12191_v20  ;;  %v4320_v27 = vrot.slane %v3659_v18, %v12194_v21  ;;  %1478 = vadd.xlane.f32.xlu0 %v1477_v10  ;;  %v636_v28 = vpop.xlane.xlu1 %635  ;;  %v633_v29 = vpop.xlane.xlu0 %632 }
  0xcd   :  { %v3660_v32 = vunpack.c.l.b16 %v2599_v23  ;;  %v3661_v33 = vunpack.c.h.b16 %v2599_v23  ;;  %v2105_v34 = vmul.f32 0.020408163, %v636_v28  ;;  %v2104_v37 = vmul.f32 0.020408163, %v633_v29  ;;  %9320 = vmatpush1.bf16.msra.mxu0 %v10933_v7  ;;  %v10938_v28 = vld [vmem:[%s17654_s1 + $0x40] ss:$16 sps:$4 sm:$0xff]  }
  0xce   :  { %v4316_v43 = vsel %vm4230_vm12, %v4315_v15, %v4311_v14  ;;  %v82_v14 = vld [vmem:[%s17653_s0 + $0x1e0] sm:$0xff]  ;;  %v1429_v23 = vsel %vm534_vm0, %v320_v59, 0.0  ;;  %9321 = vmatprep.subr.bf16.mxu0 %v10934_v25 }
  0xcf   :  { %v4325_v44 = vrot.slane %v3660_v32, %v12208_v40  ;;  %v4330_v46 = vrot.slane %v3661_v33, %v12211_v41  ;;  %v2600_v47 = vpack.c.bf16 %v2105_v34, %v2104_v37  ;;  %665 = vadd.xlane.f32.xlu1 %v664_v30  ;;  %v4321_v54 = vsel %vm4237_vm13, %v4320_v27, %v4316_v43  ;;  %v10939_v29 = vld [vmem:[%s17654_s1 + $0x2e0] ss:$16 sps:$4 sm:$0xff]   ;;  %v309_v43 = vld [vmem:[%s17653_s0 + $0x8f8] sm:$0xff]  ;;  %v10946_v7 = vld [vmem:[%s17654_s1 + $0x4] ss:$16 sps:$4 sm:$0xff]  }
  0xd0   :  { %662 = vadd.xlane.f32.xlu0 %v661_v31  ;;  %v642_v55 = vpop.xlane.xlu1 %641  ;;  %v639_v56 = vpop.xlane.xlu0 %638  ;;  %v718_v34 = vsel %vm534_vm0, %v83_v5, 0.0  ;;  %v715_v42 = vsel %vm534_vm0, %v82_v14, 0.0  ;;  %9353 = vmatpush1.bf16.msra.mxu1 %v10939_v29  ;;  %v10951_v14 = vld [vmem:[%s17654_s1 + $0x2a0] ss:$16 sps:$4 sm:$0xff]   ;;  %v293_v29 = vld [vmem:[%s17653_s0 + $0x878] sm:$0xff] }
  0xd1   :  { %v3662_v62 = vunpack.c.l.b16 %v2600_v47  ;;  %v3663_v63 = vunpack.c.h.b16 %v2600_v47  ;;  %v2107_v0 = vmul.f32 0.020408163, %v642_v55  ;;  %v2106_v1 = vmul.f32 0.020408163, %v639_v56  ;;  %9322 = vmatpush1.bf16.msra.mxu0 %v10938_v28  ;;  %v10944_v55 = vld [vmem:[%s17654_s1 + $0x20] ss:$16 sps:$4 sm:$0xff]  }
  0xd2   :  { %v4326_v3 = vsel %vm4244_vm14, %v4325_v44, %v4321_v54  ;;  %v308_v44 = vld [vmem:[%s17653_s0 + $0x8f0] sm:$0xff]  ;;  %9323 = vmatprep.subr.bf16.mxu0 %v10940_v53  ;;  %v323_v53 = vld [vmem:[%s17653_s0 + $0x968] sm:$0xff] }
  0xd3   :  { %v2601_v4 = vpack.c.bf16 %v2107_v0, %v2106_v1  ;;  %1343 = vadd.xlane.f32.xlu1 %v1342_v57  ;;  %v12368_v8 = vsel %vm4251_vm15, %v4330_v46, %v4326_v3  ;;  %v4335_v9 = vrot.slane %v3662_v62, %v12089_v39  ;;  %v4339_v10 = vrot.slane %v3663_v63, %v12100_v45  ;;  %v10942_v54 = vld [vmem:[%s17654_s1 + $0x2c4] ss:$16 sps:$4 sm:$0xff]   ;;  %v10945_v56 = vld [vmem:[%s17654_s1 + $0x2c0] ss:$16 sps:$4 sm:$0xff]   ;;  %v339_v1 = vld [vmem:[%s17653_s0 + $0x9e8] sm:$0xff] }
  0xd4   :  { %1340 = vadd.xlane.f32.xlu0 %v1339_v58  ;;  %v648_v11 = vpop.xlane.xlu1 %647  ;;  %v645_v12 = vpop.xlane.xlu0 %644  ;;  %v1396_v63 = vsel %vm534_vm0, %v309_v43, 0.0  ;;  %v1393_v0 = vsel %vm534_vm0, %v308_v44, 0.0  ;;  %9354 = vmatprep.subr.bf16.mxu1 %v10942_v54  ;;  %v10958_v54 = vld [vmem:[%s17654_s1 + $0x1c4] ss:$16 sps:$4 sm:$0xff]  }
  0xd5   :  { %v3664_v16 = vunpack.c.l.b16 %v2601_v4  ;;  %v3665_v18 = vunpack.c.h.b16 %v2601_v4  ;;  %v2109_v19 = vmul.f32 0.020408163, %v648_v11  ;;  %v2108_v24 = vmul.f32 0.020408163, %v645_v12  ;;  %v338_v4 = vld [vmem:[%s17653_s0 + $0x9e0] sm:$0xff]  ;;  %9324 = vmatpush1.bf16.msra.mxu0 %v10944_v55  ;;  %9355 = vmatpush1.bf16.msra.mxu1 %v10945_v56  ;;  %v67_v12 = vld [vmem:[%s17653_s0 + $0x168] sm:$0xff] }
  0xd6   :  { %v4340_v30 = vsel %vm4153_vm1, %v4339_v10, %v4335_v9  ;;  %v10948_v9 = vld [vmem:[%s17654_s1 + $0x2a4] ss:$16 sps:$4 sm:$0xff]   ;;  %9325 = vmatprep.subr.bf16.mxu0 %v10946_v7  ;;  %v10962_v56 = vld [vmem:[%s17654_s1 + $0x1c0] ss:$16 sps:$4 sm:$0xff]  }
  0xd7   :  { %v4344_v15 = vrot.slane %v3664_v16, %v12085_v38  ;;  %v4349_v27 = vrot.slane %v3665_v18, %v12104_v48  ;;  %1433 = vadd.xlane.f32.xlu1 %v1432_v13  ;;  %v2602_v31 = vpack.c.bf16 %v2109_v19, %v2108_v24  ;;  %v10950_v13 = vld [vmem:[%s17654_s1] ss:$16 sps:$4 sm:$0xff]   ;;  %v1486_v19 = vsel %vm534_vm0, %v339_v1, 0.0  ;;  %9356 = vmatprep.subr.bf16.mxu1 %v10948_v9  ;;  %v10960_v55 = vld [vmem:[%s17654_s1 + $0x264] ss:$16 sps:$4 sm:$0xff]  }
  0xd8   :  { %1430 = vadd.xlane.f32.xlu0 %v1429_v23  ;;  %v1353_v32 = vpop.xlane.xlu1 %1352  ;;  %v12392_v33 = vpop.xlane.xlu0 %650  ;;  %v1483_v23 = vsel %vm534_vm0, %v338_v4, 0.0  ;;  %v66_v24 = vld [vmem:[%s17653_s0 + $0x160] sm:$0xff] }
  0xd9   :  { %v4345_v37 = vsel %vm4160_vm2, %v4344_v15, %v4340_v30  ;;  %v3666_v47 = vunpack.c.l.b16 %v2602_v31  ;;  %v3667_v52 = vunpack.c.h.b16 %v2602_v31  ;;  %v2344_v2 = vmul.f32 0.020408163, %v1353_v32  ;;  %9326 = vmatpush1.bf16.msra.mxu0 %v10950_v13  ;;  %9357 = vmatpush1.bf16.msra.mxu1 %v10951_v14  ;;  %v10952_v15 = vld [vmem:[%s17654_s1 + $0x1e4] ss:$16 sps:$4 sm:$0xff]   ;;  %v10956_v30 = vld [vmem:[%s17654_s1 + $0x1e0] ss:$16 sps:$4 sm:$0xff]  }
  0xda   :  { %v4350_v46 = vsel %vm17680_vm3, %v4349_v27, %v4345_v37  ;;  %v10954_v27 = vld [vmem:[%s17654_s1 + $0x284] ss:$16 sps:$4 sm:$0xff]   ;;  %v10957_v31 = vld [vmem:[%s17654_s1 + $0x280] ss:$16 sps:$4 sm:$0xff]   ;;  %v670_v37 = vsel %vm534_vm0, %v67_v12, 0.0  ;;  %9327 = vmatprep.subr.bf16.mxu0 %v10952_v15 }
  0xdb   :  { %719 = vadd.xlane.f32.xlu1 %v718_v34  ;;  %v4354_v57 = vrot.slane %v3666_v47, %v12107_v50  ;;  %v4359_v58 = vrot.slane %v3667_v52, %v12110_v51  ;;  %v667_v47 = vsel %vm534_vm0, %v66_v24, 0.0  ;;  %9358 = vmatprep.subr.bf16.mxu1 %v10954_v27  ;;  %v322_v1 = vld [vmem:[%s17653_s0 + $0x960] sm:$0xff] }
  0xdc   :  { %716 = vadd.xlane.f32.xlu0 %v715_v42  ;;  %v1305_v59 = vpop.xlane.xlu1 %1304  ;;  %v1356_v62 = vpop.xlane.xlu0 %1355  ;;  %v292_v42 = vld [vmem:[%s17653_s0 + $0x870] sm:$0xff] }
  0xdd   :  { %v2345_v3 = vmul.f32 0.020408163, %v1356_v62  ;;  %v4355_v5 = vsel %vm4174_vm4, %v4354_v57, %v4350_v46  ;;  %v2328_v25 = vmul.f32 0.020408163, %v1305_v59  ;;  %9328 = vmatpush2.bf16.msra.mxu0 %v10956_v30  ;;  %9359 = vmatpush1.bf16.msra.mxu1 %v10957_v31  ;;  %v10963_v57 = vld [vmem:[%s17654_s1 + $0x260] ss:$16 sps:$4 sm:$0xff]  }
  0xde   :  { %v12434_v10 = vsel %vm4181_vm5, %v4359_v58, %v4355_v5  ;;  %9329 = vmatprep.subr.bf16.mxu0 %v10958_v54  ;;  %9360 = vmatprep.subr.bf16.mxu1 %v10960_v55  ;;  %v10964_v12 = vld [vmem:[%s17654_s1 + $0x1a4] ss:$16 sps:$4 sm:$0xff]   ;;  %v10969_v24 = vld [vmem:[%s17654_s1 + $0x240] ss:$16 sps:$4 sm:$0xff]   ;;  %v341_v31 = vld [vmem:[%s17653_s0 + $0x9f8] sm:$0xff] }
  0xdf   :  { %v2720_v11 = vpack.c.bf16 %v2345_v3, %v2344_v2  ;;  %1397 = vadd.xlane.f32.xlu1 %v1396_v63  ;;  %v1348_v63 = vsel %vm534_vm0, %v293_v29, 0.0  ;;  %v10966_v13 = vld [vmem:[%s17654_s1 + $0x244] ss:$16 sps:$4 sm:$0xff]  }
  0xe0   :  { %1394 = vadd.xlane.f32.xlu0 %v1393_v0  ;;  %v1359_v16 = vpop.xlane.xlu1 %1358  ;;  %v1308_v18 = vpop.xlane.xlu0 %1307  ;;  %v1345_v0 = vsel %vm534_vm0, %v292_v42, 0.0  ;;  %v10970_v42 = vld [vmem:[%s17654_s1 + $0x184] ss:$16 sps:$4 sm:$0xff]  }
  0xe1   :  { %v2329_v26 = vmul.f32 0.020408163, %v1308_v18  ;;  %v3902_v43 = vunpack.c.l.b16 %v2720_v11  ;;  %v3903_v44 = vunpack.c.h.b16 %v2720_v11  ;;  %v2346_v46 = vmul.f32 0.020408163, %v1359_v16  ;;  %9330 = vmatpush2.bf16.msra.mxu0 %v10962_v56  ;;  %9361 = vmatpush1.bf16.msra.mxu1 %v10963_v57  ;;  %v85_v18 = vld [vmem:[%s17653_s0 + $0x1f8] sm:$0xff] }
  0xe2   :  { %v1438_v11 = vsel %vm534_vm0, %v323_v53, 0.0  ;;  %v1435_v16 = vsel %vm534_vm0, %v322_v1, 0.0  ;;  %9331 = vmatprep.subr.bf16.mxu0 %v10964_v12  ;;  %9362 = vmatprep.subr.bf16.mxu1 %v10966_v13  ;;  %v10975_v53 = vld [vmem:[%s17654_s1 + $0x220] ss:$16 sps:$4 sm:$0xff]   ;;  %v1492_v1 = vsel %vm534_vm0, %v341_v31, 0.0 }
  0xe3   :  { %v12456_v28 = vpack.c.bf16 %v2329_v26, %v2328_v25  ;;  %1487 = vadd.xlane.f32.xlu1 %v1486_v19  ;;  %v5520_v2 = vrot.slane %v3902_v43, %v12089_v39  ;;  %v5524_v3 = vrot.slane %v3903_v44, %v12100_v45  ;;  %v84_v19 = vld [vmem:[%s17653_s0 + $0x1f0] sm:$0xff] }
  0xe4   :  { %1484 = vadd.xlane.f32.xlu0 %v1483_v23  ;;  %v681_v32 = vpop.xlane.xlu1 %680  ;;  %v1362_v34 = vpop.xlane.xlu0 %1361  ;;  %v10968_v23 = vld [vmem:[%s17654_s1 + $0x1a0] ss:$16 sps:$4 sm:$0xff]   ;;  %v10972_v43 = vld [vmem:[%s17654_s1 + $0x224] ss:$16 sps:$4 sm:$0xff]  }
  0xe5   :  { %v2347_v52 = vmul.f32 0.020408163, %v1362_v34  ;;  %v2120_v4 = vmul.f32 0.020408163, %v681_v32  ;;  %v3886_v25 = vunpack.c.l.b16 %v12456_v28  ;;  %v3887_v26 = vunpack.c.h.b16 %v12456_v28  ;;  %9332 = vmatpush2.bf16.msra.mxu0 %v10968_v23  ;;  %9363 = vmatpush1.bf16.msra.mxu1 %v10969_v24  ;;  %v10981_v12 = vld [vmem:[%s17654_s1 + $0x200] ss:$16 sps:$4 sm:$0xff]  }
  0xe6   :  { %v5525_v32 = vsel %vm4153_vm1, %v5524_v3, %v5520_v2  ;;  %9333 = vmatprep.subr.bf16.mxu0 %v10970_v42  ;;  %9364 = vmatprep.subr.bf16.mxu1 %v10972_v43  ;;  %v10984_v31 = vld [vmem:[%s17654_s1 + $0x3e4] ss:$16 sps:$4 sm:$0xff]  }
  0xe7   :  { %671 = vadd.xlane.f32.xlu1 %v670_v37  ;;  %v2721_v58 = vpack.c.bf16 %v2347_v52, %v2346_v46  ;;  %v10974_v52 = vld [vmem:[%s17654_s1 + $0x180] ss:$16 sps:$4 sm:$0xff]   ;;  %v5441_v54 = vrot.slane %v3886_v25, %v12089_v39  ;;  %v5445_v55 = vrot.slane %v3887_v26, %v12100_v45  ;;  %v69_v25 = vld [vmem:[%s17653_s0 + $0x178] sm:$0xff] }
  0xe8   :  { %668 = vadd.xlane.f32.xlu0 %v667_v47  ;;  %v1311_v59 = vpop.xlane.xlu1 %1310  ;;  %v684_v62 = vpop.xlane.xlu0 %683  ;;  %v340_v47 = vld [vmem:[%s17653_s0 + $0x9f0] sm:$0xff] }
  0xe9   :  { %v2121_v5 = vmul.f32 0.020408163, %v684_v62  ;;  %v3904_v7 = vunpack.c.l.b16 %v2721_v58  ;;  %v3905_v9 = vunpack.c.h.b16 %v2721_v58  ;;  %v2330_v34 = vmul.f32 0.020408163, %v1311_v59  ;;  %9334 = vmatpush2.bf16.msra.mxu0 %v10974_v52  ;;  %9365 = vmatpush1.bf16.msra.mxu1 %v10975_v53 }
  0xea   :  { %v724_v58 = vsel %vm534_vm0, %v85_v18, 0.0  ;;  %v721_v59 = vsel %vm534_vm0, %v84_v19, 0.0  ;;  %v1489_v3 = vsel %vm534_vm0, %v340_v47, 0.0  ;;  %v5446_v13 = vsel %vm4153_vm1, %v5445_v55, %v5441_v54  ;;  %v324_v54 = vld [vmem:[%s17653_s0 + $0x970] sm:$0xff] }
  0xeb   :  { %v12501_v14 = vpack.c.bf16 %v2121_v5, %v2120_v4  ;;  %1349 = vadd.xlane.f32.xlu1 %v1348_v63  ;;  %v5529_v15 = vrot.slane %v3904_v7, %v12085_v38  ;;  %v5534_v27 = vrot.slane %v3905_v9, %v12104_v48  ;;  %v10976_v4 = vld [vmem:[%s17654_s1 + $0x164] ss:$16 sps:$4 sm:$0xff]   ;;  %v676_v52 = vsel %vm534_vm0, %v69_v25, 0.0 }
  0xec   :  { %1346 = vadd.xlane.f32.xlu0 %v1345_v0  ;;  %v1449_v29 = vpop.xlane.xlu1 %1448  ;;  %v1314_v30 = vpop.xlane.xlu0 %1313  ;;  %v10978_v9 = vld [vmem:[%s17654_s1 + $0x204] ss:$16 sps:$4 sm:$0xff]   ;;  %9335 = vmatprep.subr.bf16.mxu0 %v10976_v4  ;;  %v10993_v4 = vld [vmem:[%s17654_s1 + $0x3c0] ss:$16 sps:$4 sm:$0xff]  }
  0xed   :  { %v2331_v37 = vmul.f32 0.020408163, %v1314_v30  ;;  %v5530_v28 = vsel %vm4160_vm2, %v5529_v15, %v5525_v32  ;;  %v2376_v62 = vmul.f32 0.020408163, %v1449_v29  ;;  %v3679_v18 = vunpack.c.h.b16 %v12501_v14  ;;  %v68_v29 = vld [vmem:[%s17653_s0 + $0x170] sm:$0xff]  ;;  %9366 = vmatprep.subr.bf16.mxu1 %v10978_v9 }
  0xee   :  { %v12532_v44 = vsel %vm17680_vm3, %v5534_v27, %v5530_v28  ;;  %9367 = vmatpush1.bf16.msra.mxu1 %v10981_v12  ;;  %v10982_v30 = vld [vmem:[%s17654_s1 + $0x144] ss:$16 sps:$4 sm:$0xff]   ;;  %v10987_v28 = vld [vmem:[%s17654_s1 + $0x3e0] ss:$16 sps:$4 sm:$0xff]   ;;  %v673_v53 = vsel %vm534_vm0, %v68_v29, 0.0  ;;  %v1441_v12 = vsel %vm534_vm0, %v324_v54, 0.0 }
  0xef   :  { %v2713_v46 = vpack.c.bf16 %v2331_v37, %v2330_v34  ;;  %1439 = vadd.xlane.f32.xlu1 %v1438_v11  ;;  %v10980_v11 = vld [vmem:[%s17654_s1 + $0x160] ss:$16 sps:$4 sm:$0xff]   ;;  %v325_v34 = vld [vmem:[%s17653_s0 + $0x978] sm:$0xff]  ;;  %v4418_v43 = vrot.slane %v3679_v18, %v12100_v45  ;;  %9368 = vmatprep.subr.bf16.mxu1 %v10984_v31  ;;  %v10996_v31 = vld [vmem:[%s17654_s1 + $0x3a4] ss:$16 sps:$4 sm:$0xff]  }
  0xf0   :  { %1436 = vadd.xlane.f32.xlu0 %v1435_v16  ;;  %v687_v56 = vpop.xlane.xlu1 %686  ;;  %v1452_v57 = vpop.xlane.xlu0 %1451  ;;  %v3678_v16 = vunpack.c.l.b16 %v12501_v14  ;;  %9336 = vmatpush2.bf16.msra.mxu0 %v10980_v11  ;;  %v10986_v37 = vld [vmem:[%s17654_s1 + $0x140] ss:$16 sps:$4 sm:$0xff]   ;;  %v1444_v11 = vsel %vm534_vm0, %v325_v34, 0.0 }
  0xf1   :  { %v3888_v63 = vunpack.c.l.b16 %v2713_v46  ;;  %v3889_v0 = vunpack.c.h.b16 %v2713_v46  ;;  %v2377_v2 = vmul.f32 0.020408163, %v1452_v57  ;;  %v2122_v15 = vmul.f32 0.020408163, %v687_v56  ;;  %9337 = vmatprep.subr.bf16.mxu0 %v10982_v30  ;;  %v10999_v34 = vld [vmem:[%s17654_s1 + $0x3a0] ss:$16 sps:$4 sm:$0xff]  }
  0xf2   :  { %v4414_v42 = vrot.slane %v3678_v16, %v12089_v39  ;;  %9369 = vmatpush2.bf16.msra.mxu1 %v10987_v28 }
  0xf3   :  { %v5450_v5 = vrot.slane %v3888_v63, %v12085_v38  ;;  %v5455_v7 = vrot.slane %v3889_v0, %v12104_v48  ;;  %725 = vadd.xlane.f32.xlu1 %v724_v58  ;;  %v12566_v19 = vpack.c.bf16 %v2377_v2, %v2376_v62  ;;  %v10990_v62 = vld [vmem:[%s17654_s1 + $0x3c4] ss:$16 sps:$4 sm:$0xff]   ;;  %v103_v2 = vld [vmem:[%s17653_s0 + $0x288] sm:$0xff] }
  0xf4   :  { %722 = vadd.xlane.f32.xlu0 %v721_v59  ;;  %v1365_v23 = vpop.xlane.xlu1 %1364  ;;  %v690_v24 = vpop.xlane.xlu0 %689  ;;  %9338 = vmatpush2.bf16.msra.mxu0 %v10986_v37  ;;  %v10988_v59 = vld [vmem:[%s17654_s1 + $0x124] ss:$16 sps:$4 sm:$0xff]  }
  0xf5   :  { %v5451_v26 = vsel %vm4160_vm2, %v5450_v5, %v5446_v13  ;;  %v2123_v27 = vmul.f32 0.020408163, %v690_v24  ;;  %v2348_v55 = vmul.f32 0.020408163, %v1365_v23  ;;  %v4419_v5 = vsel %vm4153_vm1, %v4418_v43, %v4414_v42  ;;  %v102_v13 = vld [vmem:[%s17653_s0 + $0x280] sm:$0xff]  ;;  %9339 = vmatprep.subr.bf16.mxu0 %v10988_v59  ;;  %9370 = vmatprep.subr.bf16.mxu1 %v10990_v62 }
  0xf6   :  { %v12576_v14 = vsel %vm17680_vm3, %v5455_v7, %v5451_v26  ;;  %9371 = vmatpush2.bf16.msra.mxu1 %v10993_v4  ;;  %v3934_v37 = vunpack.c.l.b16 %v12566_v19  ;;  %v3935_v28 = vunpack.c.h.b16 %v12566_v19  ;;  %v358_v19 = vld [vmem:[%s17653_s0 + $0xa80] sm:$0xff] }
  0xf7   :  { %v2609_v32 = vpack.c.bf16 %v2123_v27, %v2122_v15  ;;  %1493 = vadd.xlane.f32.xlu1 %v1492_v1  ;;  %v778_v15 = vsel %vm534_vm0, %v103_v2, 0.0  ;;  %v10994_v27 = vld [vmem:[%s17654_s1 + $0x104] ss:$16 sps:$4 sm:$0xff]   ;;  %9372 = vmatprep.subr.bf16.mxu1 %v10996_v31  ;;  %v11002_v62 = vld [vmem:[%s17654_s1 + $0x380] ss:$16 sps:$4 sm:$0xff]   ;;  %v1543_v4 = vsel %vm534_vm0, %v358_v19, 0.0 }
  0xf8   :  { %1490 = vadd.xlane.f32.xlu0 %v1489_v3  ;;  %v1401_v46 = vpop.xlane.xlu1 %1400  ;;  %v1368_v47 = vpop.xlane.xlu0 %1367  ;;  %v10992_v3 = vld [vmem:[%s17654_s1 + $0x120] ss:$16 sps:$4 sm:$0xff]   ;;  %v343_v19 = vld [vmem:[%s17653_s0 + $0xa08] sm:$0xff] }
  0xf9   :  { %v3680_v56 = vunpack.c.l.b16 %v2609_v32  ;;  %v3681_v57 = vunpack.c.h.b16 %v2609_v32  ;;  %v2349_v58 = vmul.f32 0.020408163, %v1368_v47  ;;  %v2360_v18 = vmul.f32 0.020408163, %v1401_v46  ;;  %9340 = vmatpush2.bf16.msra.mxu0 %v10992_v3  ;;  %v10998_v32 = vld [vmem:[%s17654_s1 + $0x100] ss:$16 sps:$4 sm:$0xff]  }
  0xfa   :  { %v775_v47 = vsel %vm534_vm0, %v102_v13, 0.0  ;;  %9341 = vmatprep.subr.bf16.mxu0 %v10994_v27  ;;  %9373 = vmatpush2.bf16.msra.mxu1 %v10999_v34  ;;  %v86_v59 = vld [vmem:[%s17653_s0 + $0x200] sm:$0xff] }
  0xfb   :  { %v4423_v63 = vrot.slane %v3680_v56, %v12085_v38  ;;  %v4428_v0 = vrot.slane %v3681_v57, %v12104_v48  ;;  %v2722_v1 = vpack.c.bf16 %v2349_v58, %v2348_v55  ;;  %677 = vadd.xlane.f32.xlu1 %v676_v52  ;;  %v359_v52 = vld [vmem:[%s17653_s0 + $0xa88] sm:$0xff]  ;;  %v11000_v57 = vld [vmem:[%s17654_s1 + $0x384] ss:$16 sps:$4 sm:$0xff]   ;;  %v727_v34 = vsel %vm534_vm0, %v86_v59, 0.0 }
  0xfc   :  { %674 = vadd.xlane.f32.xlu0 %v673_v53  ;;  %v1455_v7 = vpop.xlane.xlu1 %1454  ;;  %v1404_v9 = vpop.xlane.xlu0 %1403  ;;  %v1546_v3 = vsel %vm534_vm0, %v359_v52, 0.0  ;;  %9374 = vmatprep.subr.bf16.mxu1 %v11000_v57  ;;  %v342_v57 = vld [vmem:[%s17653_s0 + $0xa00] sm:$0xff] }
  0xfd   :  { %v4424_v16 = vsel %vm4160_vm2, %v4423_v63, %v4419_v5  ;;  %v3906_v23 = vunpack.c.l.b16 %v2722_v1  ;;  %v3907_v24 = vunpack.c.h.b16 %v2722_v1  ;;  %v2361_v26 = vmul.f32 0.020408163, %v1404_v9  ;;  %9342 = vmatpush2.bf16.msra.mxu0 %v10998_v32 }
  0xfe   :  { %v12625_v25 = vsel %vm17680_vm3, %v4428_v0, %v4424_v16  ;;  %v2378_v54 = vmul.f32 0.020408163, %v1455_v7  ;;  %v5678_v63 = vrot.slane %v3934_v37, %v12089_v39  ;;  %v5682_v0 = vrot.slane %v3935_v28, %v12100_v45  ;;  %9375 = vmatpush2.bf16.msra.mxu1 %v11002_v62 }
  0xff   :  { %v5539_v29 = vrot.slane %v3906_v23, %v12107_v50  ;;  %v5544_v30 = vrot.slane %v3907_v24, %v12110_v51  ;;  %1445 = vadd.xlane.f32.xlu1 %v1444_v11  ;;  %v12644_v42 = vpack.c.bf16 %v2361_v26, %v2360_v18  ;;  %v105_v24 = vld [vmem:[%s17653_s0 + $0x298] sm:$0xff]  ;;  %v104_v26 = vld [vmem:[%s17653_s0 + $0x290] sm:$0xff] }
 0x100   :  { %1442 = vadd.xlane.f32.xlu0 %v1441_v12  ;;  %v1317_v43 = vpop.xlane.xlu1 %1316  ;;  %v1458_v46 = vpop.xlane.xlu0 %1457  ;;  %v11003_v12 = vld [vmem:[%s17654_s1 + $0x364] ss:$16 sps:$4 sm:$0xff]   ;;  %v5683_v27 = vsel %vm4153_vm1, %v5682_v0, %v5678_v63 }
 0x101   :  { %v5540_v53 = vsel %vm4174_vm4, %v5539_v29, %v12532_v44  ;;  %v2379_v55 = vmul.f32 0.020408163, %v1458_v46  ;;  %v87_v44 = vld [vmem:[%s17653_s0 + $0x208] sm:$0xff]  ;;  %v2332_v5 = vmul.f32 0.020408163, %v1317_v43  ;;  %v3918_v29 = vunpack.c.l.b16 %v12644_v42  ;;  %9376 = vmatprep.subr.bf16.mxu1 %v11003_v12 }
 0x102   :  { %v12656_v56 = vsel %vm4181_vm5, %v5544_v30, %v5540_v53  ;;  %v730_v23 = vsel %vm534_vm0, %v87_v44, 0.0  ;;  %v3919_v30 = vunpack.c.h.b16 %v12644_v42  ;;  %v11006_v42 = vld [vmem:[%s17654_s1 + $0x344] ss:$16 sps:$4 sm:$0xff]  }
 0x103   :  { %v2737_v58 = vpack.c.bf16 %v2379_v55, %v2378_v54  ;;  %779 = vadd.xlane.f32.xlu1 %v778_v15  ;;  %v11005_v15 = vld [vmem:[%s17654_s1 + $0x360] ss:$16 sps:$4 sm:$0xff]   ;;  %v784_v55 = vsel %vm534_vm0, %v105_v24, 0.0  ;;  %v5599_v44 = vrot.slane %v3918_v29, %v12089_v39  ;;  %v11009_v12 = vld [vmem:[%s17654_s1 + $0x324] ss:$16 sps:$4 sm:$0xff]  }
 0x104   :  { %776 = vadd.xlane.f32.xlu0 %v775_v47  ;;  %v1407_v1 = vpop.xlane.xlu1 %1406  ;;  %v1320_v2 = vpop.xlane.xlu0 %1319  ;;  %9377 = vmatpush2.bf16.msra.mxu1 %v11005_v15  ;;  %v5603_v59 = vrot.slane %v3919_v30, %v12100_v45  ;;  %v360_v30 = vld [vmem:[%s17653_s0 + $0xa90] sm:$0xff] }
 0x105   :  { %v3936_v7 = vunpack.c.l.b16 %v2737_v58  ;;  %v3937_v9 = vunpack.c.h.b16 %v2737_v58  ;;  %v2333_v11 = vmul.f32 0.020408163, %v1320_v2  ;;  %v2362_v28 = vmul.f32 0.020408163, %v1407_v1  ;;  %v11008_v58 = vld [vmem:[%s17654_s1 + $0x340] ss:$16 sps:$4 sm:$0xff]   ;;  %9378 = vmatprep.subr.bf16.mxu1 %v11006_v42 }
 0x106   :  { %v781_v1 = vsel %vm534_vm0, %v104_v26, 0.0  ;;  %v361_v2 = vld [vmem:[%s17653_s0 + $0xa98] sm:$0xff] }
 0x107   :  { %v5687_v13 = vrot.slane %v3936_v7, %v12085_v38  ;;  %v5692_v16 = vrot.slane %v3937_v9, %v12104_v48  ;;  %v2714_v18 = vpack.c.bf16 %v2333_v11, %v2332_v5  ;;  %1547 = vadd.xlane.f32.xlu1 %v1546_v3  ;;  %v1552_v29 = vsel %vm534_vm0, %v361_v2, 0.0 }
 0x108   :  { %1544 = vadd.xlane.f32.xlu0 %v1543_v4  ;;  %v693_v31 = vpop.xlane.xlu1 %692  ;;  %v1410_v32 = vpop.xlane.xlu0 %1409  ;;  %9379 = vmatpush2.bf16.msra.mxu1 %v11008_v58  ;;  %v1549_v58 = vsel %vm534_vm0, %v360_v30, 0.0 }
 0x109   :  { %v5688_v37 = vsel %vm4160_vm2, %v5687_v13, %v5683_v27  ;;  %v3890_v43 = vunpack.c.l.b16 %v2714_v18  ;;  %v3891_v46 = vunpack.c.h.b16 %v2714_v18  ;;  %v2363_v52 = vmul.f32 0.020408163, %v1410_v32  ;;  %9380 = vmatprep.subr.bf16.mxu1 %v11009_v12 }
 0x10a   :  { %v12695_v47 = vsel %vm17680_vm3, %v5692_v16, %v5688_v37  ;;  %v2124_v4 = vmul.f32 0.020408163, %v693_v31  ;;  %v1498_v16 = vsel %vm534_vm0, %v343_v19, 0.0  ;;  %v1495_v18 = vsel %vm534_vm0, %v342_v57, 0.0 }
 0x10b   :  { %v5460_v53 = vrot.slane %v3890_v43, %v12107_v50  ;;  %v5465_v54 = vrot.slane %v3891_v46, %v12110_v51  ;;  %731 = vadd.xlane.f32.xlu1 %v730_v23  ;;  %v2729_v62 = vpack.c.bf16 %v2363_v52, %v2362_v28  ;;  %v5604_v23 = vsel %vm4153_vm1, %v5603_v59, %v5599_v44  ;;  %v11012_v43 = vld [vmem:[%s17654_s1 + $0x304] ss:$16 sps:$4 sm:$0xff]  }
 0x10c   :  { %728 = vadd.xlane.f32.xlu0 %v727_v34  ;;  %v1371_v63 = vpop.xlane.xlu1 %1370  ;;  %v696_v0 = vpop.xlane.xlu0 %695  ;;  %v88_v44 = vld [vmem:[%s17653_s0 + $0x210] sm:$0xff] }
 0x10d   :  { %v5461_v3 = vsel %vm4174_vm4, %v5460_v53, %v12576_v14  ;;  %v2125_v5 = vmul.f32 0.020408163, %v696_v0  ;;  %v3920_v9 = vunpack.c.l.b16 %v2729_v62  ;;  %v3921_v11 = vunpack.c.h.b16 %v2729_v62  ;;  %v11011_v14 = vld [vmem:[%s17654_s1 + $0x320] ss:$16 sps:$4 sm:$0xff]  }
 0x10e   :  { %v12721_v7 = vsel %vm4181_vm5, %v5465_v54, %v5461_v3  ;;  %v2350_v31 = vmul.f32 0.020408163, %v1371_v63  ;;  %9381 = vmatpush2.bf16.msra.mxu1 %v11011_v14  ;;  %v89_v54 = vld [vmem:[%s17653_s0 + $0x218] sm:$0xff]  ;;  %v135_v3 = vld [vmem:[%s17653_s0 + $0x388] sm:$0xff] }
 0x10f   :  { %v2610_v13 = vpack.c.bf16 %v2125_v5, %v2124_v4  ;;  %785 = vadd.xlane.f32.xlu1 %v784_v55  ;;  %v5608_v24 = vrot.slane %v3920_v9, %v12085_v38  ;;  %v5613_v26 = vrot.slane %v3921_v11, %v12104_v48  ;;  %v11014_v55 = vld [vmem:[%s17654_s1 + $0x300] ss:$16 sps:$4 sm:$0xff]   ;;  %9382 = vmatprep.subr.bf16.mxu1 %v11012_v43  ;;  %v345_v9 = vld [vmem:[%s17653_s0 + $0xa18] sm:$0xff]  ;;  %v874_v30 = vsel %vm534_vm0, %v135_v3, 0.0 }
 0x110   :  { %782 = vadd.xlane.f32.xlu0 %v781_v1  ;;  %v1461_v15 = vpop.xlane.xlu1 %1460  ;;  %v1374_v27 = vpop.xlane.xlu0 %1373  ;;  %v344_v43 = vld [vmem:[%s17653_s0 + $0xa10] sm:$0xff] }
 0x111   :  { %v3682_v32 = vunpack.c.l.b16 %v2610_v13  ;;  %v3683_v34 = vunpack.c.h.b16 %v2610_v13  ;;  %v2351_v37 = vmul.f32 0.020408163, %v1374_v27  ;;  %v5609_v28 = vsel %vm4160_vm2, %v5608_v24, %v5604_v23 }
 0x112   :  { %v12743_v46 = vsel %vm17680_vm3, %v5613_v26, %v5609_v28  ;;  %v2380_v62 = vmul.f32 0.020408163, %v1461_v15  ;;  %9383 = vmatpush2.bf16.msra.mxu1 %v11014_v55  ;;  %v1504_v28 = vsel %vm534_vm0, %v345_v9, 0.0 }
 0x113   :  { %v4433_v52 = vrot.slane %v3682_v32, %v12107_v50  ;;  %v4438_v42 = vrot.slane %v3683_v34, %v12110_v51  ;;  %v2723_v53 = vpack.c.bf16 %v2351_v37, %v2350_v31  ;;  %1499 = vadd.xlane.f32.xlu1 %v1498_v16  ;;  %v736_v16 = vsel %vm534_vm0, %v89_v54, 0.0 }
 0x114   :  { %1496 = vadd.xlane.f32.xlu0 %v1495_v18  ;;  %v1323_v19 = vpop.xlane.xlu1 %1322  ;;  %v1464_v57 = vpop.xlane.xlu0 %1463  ;;  %v733_v18 = vsel %vm534_vm0, %v88_v44, 0.0 }
 0x115   :  { %v4434_v59 = vsel %vm4174_vm4, %v4433_v52, %v12625_v25  ;;  %v3908_v63 = vunpack.c.l.b16 %v2723_v53  ;;  %v3909_v0 = vunpack.c.h.b16 %v2723_v53  ;;  %v2381_v2 = vmul.f32 0.020408163, %v1464_v57  ;;  %v134_v25 = vld [vmem:[%s17653_s0 + $0x380] sm:$0xff] }
 0x116   :  { %v12760_v1 = vsel %vm4181_vm5, %v4438_v42, %v4434_v59  ;;  %v2334_v23 = vmul.f32 0.020408163, %v1323_v19  ;;  %v871_v31 = vsel %vm534_vm0, %v134_v25, 0.0  ;;  %v391_v59 = vld [vmem:[%s17653_s0 + $0xb88] sm:$0xff] }
 0x117   :  { %v5549_v4 = vrot.slane %v3908_v63, %v12114_v60  ;;  %v5554_v5 = vrot.slane %v3909_v0, %v12128_v6  ;;  %1553 = vadd.xlane.f32.xlu1 %v1552_v29  ;;  %v2738_v11 = vpack.c.bf16 %v2381_v2, %v2380_v62  ;;  %v1501_v63 = vsel %vm534_vm0, %v344_v43, 0.0 }
 0x118   :  { %1550 = vadd.xlane.f32.xlu0 %v1549_v58  ;;  %v1413_v12 = vpop.xlane.xlu1 %1412  ;;  %v1326_v13 = vpop.xlane.xlu0 %1325 }
 0x119   :  { %v5550_v14 = vsel %vm4188_vm6, %v5549_v4, %v12656_v56  ;;  %v2335_v24 = vmul.f32 0.020408163, %v1326_v13  ;;  %v3938_v15 = vunpack.c.l.b16 %v2738_v11  ;;  %v3939_v27 = vunpack.c.h.b16 %v2738_v11 }
 0x11a   :  { %v12778_v26 = vsel %vm17677_vm7, %v5554_v5, %v5550_v14  ;;  %v2364_v52 = vmul.f32 0.020408163, %v1413_v12  ;;  %v1642_v13 = vsel %vm534_vm0, %v391_v59, 0.0 }
 0x11b   :  { %v2715_v29 = vpack.c.bf16 %v2335_v24, %v2334_v23  ;;  %737 = vadd.xlane.f32.xlu1 %v736_v16  ;;  %v5697_v32 = vrot.slane %v3938_v15, %v12107_v50  ;;  %v5702_v34 = vrot.slane %v3939_v27, %v12110_v51  ;;  %v107_v16 = vld [vmem:[%s17653_s0 + $0x2a8] sm:$0xff]  ;;  %v106_v23 = vld [vmem:[%s17653_s0 + $0x2a0] sm:$0xff] }
 0x11c   :  { %734 = vadd.xlane.f32.xlu0 %v733_v18  ;;  %v699_v37 = vpop.xlane.xlu1 %698  ;;  %v1416_v56 = vpop.xlane.xlu0 %1415 }
 0x11d   :  { %v3892_v42 = vunpack.c.l.b16 %v2715_v29  ;;  %v3893_v53 = vunpack.c.h.b16 %v2715_v29  ;;  %v2365_v54 = vmul.f32 0.020408163, %v1416_v56  ;;  %v5698_v55 = vsel %vm4174_vm4, %v5697_v32, %v12695_v47  ;;  %v390_v47 = vld [vmem:[%s17653_s0 + $0xb80] sm:$0xff]  ;;  %v119_v56 = vld [vmem:[%s17653_s0 + $0x308] sm:$0xff] }
 0x11e   :  { %v12791_v19 = vsel %vm4181_vm5, %v5702_v34, %v5698_v55  ;;  %v2126_v2 = vmul.f32 0.020408163, %v699_v37  ;;  %v1639_v14 = vsel %vm534_vm0, %v390_v47, 0.0  ;;  %v790_v34 = vsel %vm534_vm0, %v107_v16, 0.0  ;;  %v136_v16 = vld [vmem:[%s17653_s0 + $0x390] sm:$0xff] }
 0x11f   :  { %v5470_v57 = vrot.slane %v3892_v42, %v12114_v60  ;;  %v5475_v58 = vrot.slane %v3893_v53, %v12128_v6  ;;  %v2730_v44 = vpack.c.bf16 %v2365_v54, %v2364_v52  ;;  %875 = vadd.xlane.f32.xlu1 %v874_v30  ;;  %v787_v37 = vsel %vm534_vm0, %v106_v23, 0.0  ;;  %v118_v53 = vld [vmem:[%s17653_s0 + $0x300] sm:$0xff] }
 0x120   :  { %872 = vadd.xlane.f32.xlu0 %v871_v31  ;;  %v1377_v62 = vpop.xlane.xlu1 %1376  ;;  %v702_v5 = vpop.xlane.xlu0 %701 }
 0x121   :  { %v5471_v0 = vsel %vm4188_vm6, %v5470_v57, %v12721_v7  ;;  %v3922_v3 = vunpack.c.l.b16 %v2730_v44  ;;  %v3923_v4 = vunpack.c.h.b16 %v2730_v44  ;;  %v2127_v9 = vmul.f32 0.020408163, %v702_v5 }
 0x122   :  { %v12805_v25 = vsel %vm17677_vm7, %v5475_v58, %v5471_v0  ;;  %v2352_v15 = vmul.f32 0.020408163, %v1377_v62 }
 0x123   :  { %v5618_v11 = vrot.slane %v3922_v3, %v12107_v50  ;;  %v5623_v12 = vrot.slane %v3923_v4, %v12110_v51  ;;  %1505 = vadd.xlane.f32.xlu1 %v1504_v28  ;;  %v2611_v7 = vpack.c.bf16 %v2127_v9, %v2126_v2  ;;  %v2110_v28 = vmul.f32 0.020408163, %v12392_v33 }
 0x124   :  { %1502 = vadd.xlane.f32.xlu0 %v1501_v63  ;;  %v1467_v18 = vpop.xlane.xlu1 %1466  ;;  %v1380_v27 = vpop.xlane.xlu0 %1379  ;;  %v826_v4 = vsel %vm534_vm0, %v119_v56, 0.0 }
 0x125   :  { %v5619_v24 = vsel %vm4174_vm4, %v5618_v11, %v12743_v46  ;;  %v3684_v30 = vunpack.c.l.b16 %v2611_v7  ;;  %v3685_v31 = vunpack.c.h.b16 %v2611_v7  ;;  %v2353_v32 = vmul.f32 0.020408163, %v1380_v27 }
 0x126   :  { %v12820_v29 = vsel %vm4181_vm5, %v5623_v12, %v5619_v24  ;;  %v2382_v54 = vmul.f32 0.020408163, %v1467_v18 }
 0x127   :  { %1643 = vadd.xlane.f32.xlu1 %v1642_v13  ;;  %v4443_v46 = vrot.slane %v3684_v30, %v12114_v60  ;;  %v4448_v43 = vrot.slane %v3685_v31, %v12128_v6  ;;  %v2724_v52 = vpack.c.bf16 %v2353_v32, %v2352_v15  ;;  %v823_v13 = vsel %vm534_vm0, %v118_v53, 0.0 }
 0x128   :  { %1640 = vadd.xlane.f32.xlu0 %v1639_v14  ;;  %v654_v42 = vpop.xlane.xlu1 %653 }
 0x129   :  { %v2111_v55 = vmul.f32 0.020408163, %v654_v42  ;;  %v1470_v57 = vpop.xlane.xlu0 %1469  ;;  %v4444_v58 = vsel %vm4188_vm6, %v4443_v46, %v12760_v1  ;;  %v3910_v44 = vunpack.c.l.b16 %v2724_v52  ;;  %v3911_v59 = vunpack.c.h.b16 %v2724_v52  ;;  %v137_v1 = vld [vmem:[%s17653_s0 + $0x398] sm:$0xff]  ;;  %v362_v52 = vld [vmem:[%s17653_s0 + $0xaa0] sm:$0xff] }
 0x12a   :  { %v2383_v33 = vmul.f32 0.020408163, %v1470_v57  ;;  %v12836_v62 = vsel %vm17677_vm7, %v4448_v43, %v4444_v58  ;;  %v880_v30 = vsel %vm534_vm0, %v137_v1, 0.0  ;;  %v363_v43 = vld [vmem:[%s17653_s0 + $0xaa8] sm:$0xff] }
 0x12b   :  { %v2603_v63 = vpack.c.bf16 %v2111_v55, %v2110_v28  ;;  %791 = vadd.xlane.f32.xlu1 %v790_v34  ;;  %v5559_v47 = vrot.slane %v3910_v44, %v12149_v35  ;;  %v5564_v0 = vrot.slane %v3911_v59, %v12152_v36 }
 0x12c   :  { %v2739_v2 = vpack.c.bf16 %v2383_v33, %v2382_v54  ;;  %788 = vadd.xlane.f32.xlu0 %v787_v37  ;;  %v1332_v3 = vpop.xlane.xlu1 %1331  ;;  %v877_v37 = vsel %vm534_vm0, %v136_v16, 0.0  ;;  %v1558_v33 = vsel %vm534_vm0, %v363_v43, 0.0 }
 0x12d   :  { %v3668_v5 = vunpack.c.l.b16 %v2603_v63  ;;  %v3669_v9 = vunpack.c.h.b16 %v2603_v63  ;;  %v2337_v11 = vmul.f32 0.020408163, %v1332_v3  ;;  %v1329_v12 = vpop.xlane.xlu0 %1328  ;;  %v5560_v7 = vsel %vm4202_vm8, %v5559_v47, %v12778_v26 }
 0x12e   :  { %v3940_v18 = vunpack.c.l.b16 %v2739_v2  ;;  %v3941_v14 = vunpack.c.h.b16 %v2739_v2  ;;  %v2336_v23 = vmul.f32 0.020408163, %v1329_v12  ;;  %v12851_v24 = vsel %vm4209_vm9, %v5564_v0, %v5560_v7  ;;  %v375_v2 = vld [vmem:[%s17653_s0 + $0xb08] sm:$0xff] }
 0x12f   :  { %v4364_v15 = vrot.slane %v3668_v5, %v12114_v60  ;;  %v4369_v27 = vrot.slane %v3669_v9, %v12128_v6  ;;  %827 = vadd.xlane.f32.xlu1 %v826_v4 }
 0x130   :  { %v5707_v31 = vrot.slane %v3940_v18, %v12114_v60  ;;  %v5712_v32 = vrot.slane %v3941_v14, %v12128_v6  ;;  %v2716_v34 = vpack.c.bf16 %v2337_v11, %v2336_v23  ;;  %824 = vadd.xlane.f32.xlu0 %v823_v13  ;;  %v1422_v26 = vpop.xlane.xlu1 %1421 }
 0x131   :  { %v4365_v56 = vsel %vm4188_vm6, %v4364_v15, %v12434_v10  ;;  %v2367_v28 = vmul.f32 0.020408163, %v1422_v26  ;;  %v1419_v46 = vpop.xlane.xlu0 %1418 }
 0x132   :  { %v12868_v42 = vsel %vm17677_vm7, %v4369_v27, %v4365_v56  ;;  %v5708_v53 = vsel %vm4188_vm6, %v5707_v31, %v12791_v19  ;;  %v3894_v54 = vunpack.c.l.b16 %v2716_v34  ;;  %v3895_v55 = vunpack.c.h.b16 %v2716_v34 }
 0x133   :  { %v12873_v10 = vsel %vm17677_vm7, %v5712_v32, %v5708_v53  ;;  %v2366_v57 = vmul.f32 0.020408163, %v1419_v46  ;;  %881 = vadd.xlane.f32.xlu1 %v880_v30  ;;  %v1555_v19 = vsel %vm534_vm0, %v362_v52, 0.0 }
 0x134   :  { %v5480_v58 = vrot.slane %v3894_v54, %v12149_v35  ;;  %v5485_v44 = vrot.slane %v3895_v55, %v12152_v36  ;;  %878 = vadd.xlane.f32.xlu0 %v877_v37  ;;  %v708_v59 = vpop.xlane.xlu1 %707 }
 0x135   :  { %v2731_v63 = vpack.c.bf16 %v2367_v28, %v2366_v57  ;;  %v2129_v47 = vmul.f32 0.020408163, %v708_v59  ;;  %v705_v0 = vpop.xlane.xlu0 %704 }
 0x136   :  { %10 = vsyncpa [#allocation3], 0  ;;  %v5481_v3 = vsel %vm4202_vm8, %v5480_v58, %v12805_v25  ;;  %v2128_v4 = vmul.f32 0.020408163, %v705_v0  ;;  %v374_v1 = vld [vmem:[%s17653_s0 + $0xb00] sm:$0xff]  ;;  %v1594_v16 = vsel %vm534_vm0, %v375_v2, 0.0 }
 0x137   :  { %v12888_v5 = vsel %vm4209_vm9, %v5485_v44, %v5481_v3  ;;  %v3924_v9 = vunpack.c.l.b16 %v2731_v63  ;;  %v3925_v11 = vunpack.c.h.b16 %v2731_v63  ;;  %1559 = vadd.xlane.f32.xlu1 %v1558_v33  ;;  %v1591_v14 = vsel %vm534_vm0, %v374_v1, 0.0  ;;  %v393_v23 = vld [vmem:[%s17653_s0 + $0xb98] sm:$0xff]  ;;  %v392_v30 = vld [vmem:[%s17653_s0 + $0xb90] sm:$0xff]  ;;  %v90_v52 = vld [vmem:[%s17653_s0 + $0x220] sm:$0xff]  ;;  %s11742_s7 = smov [#allocation2]  }
 0x138   :  { %v2612_v12 = vpack.c.bf16 %v2129_v47, %v2128_v4  ;;  %1556 = vadd.xlane.f32.xlu0 %v1555_v19  ;;  %v12890_v13 = vpop.xlane.xlu1 %1385  ;;  %v1648_v56 = vsel %vm534_vm0, %v393_v23, 0.0  ;;  %v1645_v46 = vsel %vm534_vm0, %v392_v30, 0.0  ;;  %v739_v44 = vsel %vm534_vm0, %v90_v52, 0.0  ;;  %v120_v33 = vld [vmem:[%s17653_s0 + $0x310] sm:$0xff]  ;;  %v347_v3 = vld [vmem:[%s17653_s0 + $0xa28] sm:$0xff]  ;;  %v377_v23 = vld [vmem:[%s17653_s0 + $0xb18] sm:$0xff] }
 0x139   :  { %v5628_v7 = vrot.slane %v3924_v9, %v12114_v60  ;;  %v5633_v25 = vrot.slane %v3925_v11, %v12128_v6  ;;  %v12895_v18 = vpop.xlane.xlu0 %1382  ;;  %v829_v2 = vsel %vm534_vm0, %v120_v33, 0.0  ;;  %v346_v9 = vld [vmem:[%s17653_s0 + $0xa20] sm:$0xff]  ;;  %s10321_s8 = sshll.u32 %s11742_s7, 4  ;;  %s10322_s8 = int_to_ptr.vmem [resolvable:$true] %s10321_s8 }
 0x13a   :  { %v3686_v15 = vunpack.c.l.b16 %v2612_v12  ;;  %v3687_v27 = vunpack.c.h.b16 %v2612_v12  ;;  %s11720_s9 = scalar_lea.vmem %s10322_s8, 32  ;;  %p11725_p1 = scmp.lt.s32.totalorder %s10322_s8, %s10322_s8 }
 0x13b   :  { %v5629_v31 = vsel %vm4188_vm6, %v5628_v7, %v12820_v29  ;;  %1595 = vadd.xlane.f32.xlu1 %v1594_v16  ;;  %v91_v29 = vld [vmem:[%s17653_s0 + $0x228] sm:$0xff]  ;;  %v1510_v7 = vsel %vm534_vm0, %v347_v3, 0.0  ;;  %p11721_p0 = scmp.ne.s32.totalorder %s10322_s8, %s11720_s9  ;;  %p11726_p2 = scmp.lt.s32.totalorder %s11720_s9, %s11720_s9 }
 0x13c   :  { %v12907_v32 = vsel %vm17677_vm7, %v5633_v25, %v5629_v31  ;;  %v4453_v34 = vrot.slane %v3686_v15, %v12149_v35  ;;  %v4458_v26 = vrot.slane %v3687_v27, %v12152_v36  ;;  %1592 = vadd.xlane.f32.xlu0 %v1591_v14  ;;  %v12911_v37 = vpop.xlane.xlu1 %1475  ;;  %v742_v55 = vsel %vm534_vm0, %v91_v29, 0.0  ;;  %v376_v27 = vld [vmem:[%s17653_s0 + $0xb10] sm:$0xff]  ;;  %v395_v3 = vld [vmem:[%s17653_s0 + $0xba8] sm:$0xff] }
 0x13d   :  { %v12914_v28 = vpop.xlane.xlu0 %1472  ;;  %v1507_v14 = vsel %vm534_vm0, %v346_v9, 0.0  ;;  %v92_v9 = vld [vmem:[%s17653_s0 + $0x230] sm:$0xff]  ;;  %vm6702_vm7 = vcmask 1041409   ;;  %p11727_p3 = por %p11726_p2, %p11725_p1 }
 0x13e   :  { %v4454_v43 = vsel %vm4202_vm8, %v4453_v34, %v12836_v62  ;;  %v121_v62 = vld [vmem:[%s17653_s0 + $0x318] sm:$0xff]  ;;  %v1600_v34 = vsel %vm534_vm0, %v377_v23, 0.0  ;;  %v122_v23 = vld [vmem:[%s17653_s0 + $0x320] sm:$0xff] }
 0x13f   :  { %v12926_v53 = vsel %vm4209_vm9, %v4458_v26, %v4454_v43  ;;  %1649 = vadd.xlane.f32.xlu1 %v1648_v56  ;;  %v832_v0 = vsel %vm534_vm0, %v121_v62, 0.0  ;;  %v1597_v56 = vsel %vm534_vm0, %v376_v27, 0.0  ;;  %v2355_v62 = vmul.f32 0.020408163, %v12890_v13  ;;  %p11728_p4 = pnand %p11727_p3, %p11721_p0 }
 0x140   :  { %1646 = vadd.xlane.f32.xlu0 %v1645_v46  ;;  %v660_v54 = vpop.xlane.xlu1 %659  ;;  %v108_v46 = vld [vmem:[%s17653_s0 + $0x2b0] sm:$0xff]  ;;  %v1654_v27 = vsel %vm534_vm0, %v395_v3, 0.0 }
 0x141   :  { %v2113_v57 = vmul.f32 0.020408163, %v660_v54  ;;  %v657_v58 = vpop.xlane.xlu0 %656  ;;  %v793_v54 = vsel %vm534_vm0, %v108_v46, 0.0  ;;  %v2385_v46 = vmul.f32 0.020408163, %v12911_v37  ;;  %v13046_v37 = vsel %vm534_vm0, %v122_v23, 0.0 }
 0x142   :  { %v2112_v59 = vmul.f32 0.020408163, %v657_v58  ;;  %v397_v23 = vld [vmem:[%s17653_s0 + $0xbb8] sm:$0xff] }
 0x143   :  { %743 = vadd.xlane.f32.xlu1 %v742_v55  ;;  %v139_v55 = vld [vmem:[%s17653_s0 + $0x3a8] sm:$0xff] }
 0x144   :  { %v2604_v63 = vpack.c.bf16 %v2113_v57, %v2112_v59  ;;  %740 = vadd.xlane.f32.xlu0 %v739_v44  ;;  %v12936_v47 = vpop.xlane.xlu1 %1337  ;;  %v138_v57 = vld [vmem:[%s17653_s0 + $0x3a0] sm:$0xff]  ;;  %v886_v44 = vsel %vm534_vm0, %v139_v55, 0.0  ;;  %v2354_v59 = vmul.f32 0.020408163, %v12895_v18  ;;  %v348_v55 = vld [vmem:[%s17653_s0 + $0xa30] sm:$0xff] }
 0x145   :  { %v12939_v19 = vpop.xlane.xlu0 %1334 }
 0x146   :  { %v3670_v4 = vunpack.c.l.b16 %v2604_v63  ;;  %v3671_v1 = vunpack.c.h.b16 %v2604_v63  ;;  %v883_v63 = vsel %vm534_vm0, %v138_v57, 0.0  ;;  %v379_v57 = vld [vmem:[%s17653_s0 + $0xb28] sm:$0xff] }
 0x147   :  { %833 = vadd.xlane.f32.xlu1 %v832_v0  ;;  %v365_v0 = vld [vmem:[%s17653_s0 + $0xab8] sm:$0xff]  ;;  %v13090_v60 = vsel %vm534_vm0, %v379_v57, 0.0 }
 0x148   :  { %v4374_v11 = vrot.slane %v3670_v4, %v12149_v35  ;;  %v4379_v12 = vrot.slane %v3671_v1, %v12152_v36  ;;  %830 = vadd.xlane.f32.xlu0 %v829_v2  ;;  %v12950_v16 = vpop.xlane.xlu1 %1427  ;;  %v364_v2 = vld [vmem:[%s17653_s0 + $0xab0] sm:$0xff]  ;;  %v1564_v18 = vsel %vm534_vm0, %v365_v0, 0.0  ;;  %v394_v4 = vld [vmem:[%s17653_s0 + $0xba0] sm:$0xff]  ;;  %v93_v1 = vld [vmem:[%s17653_s0 + $0x238] sm:$0xff] }
 0x149   :  { %v12953_v25 = vpop.xlane.xlu0 %1424  ;;  %v111_v0 = vld [vmem:[%s17653_s0 + $0x2c8] sm:$0xff] }
 0x14a   :  { %v4375_v15 = vsel %vm4202_vm8, %v4374_v11, %v12868_v42  ;;  %v109_v42 = vld [vmem:[%s17653_s0 + $0x2b8] sm:$0xff]  ;;  %v2725_v11 = vpack.c.bf16 %v2355_v62, %v2354_v59 }
 0x14b   :  { %v12965_v30 = vsel %vm4209_vm9, %v4379_v12, %v4375_v15  ;;  %1511 = vadd.xlane.f32.xlu1 %v1510_v7  ;;  %v796_v43 = vsel %vm534_vm0, %v109_v42, 0.0  ;;  %v1561_v7 = vsel %vm534_vm0, %v364_v2, 0.0  ;;  %v349_v15 = vld [vmem:[%s17653_s0 + $0xa38] sm:$0xff]  ;;  %v745_v42 = vsel %vm534_vm0, %v92_v9, 0.0  ;;  %v110_v2 = vld [vmem:[%s17653_s0 + $0x2c0] sm:$0xff] }
 0x14c   :  { %1508 = vadd.xlane.f32.xlu0 %v1507_v14  ;;  %v12967_v31 = vpop.xlane.xlu1 %713  ;;  %v123_v14 = vld [vmem:[%s17653_s0 + $0x328] sm:$0xff]  ;;  %v3913_v9 = vunpack.c.h.b16 %v2725_v11 }
 0x14d   :  { %v12970_v26 = vpop.xlane.xlu0 %710  ;;  %v838_v59 = vsel %vm534_vm0, %v123_v14, 0.0  ;;  %v13068_v14 = vsel %vm534_vm0, %v348_v55, 0.0 }
 0x14f   :  { %1601 = vadd.xlane.f32.xlu1 %v1600_v34  ;;  %v1651_v34 = vsel %vm534_vm0, %v394_v4, 0.0  ;;  %v141_v4 = vld [vmem:[%s17653_s0 + $0x3b8] sm:$0xff] }
 0x150   :  { %1598 = vadd.xlane.f32.xlu0 %v1597_v56  ;;  %v1392_v29 = vpop.xlane.xlu1 %1391  ;;  %v748_v56 = vsel %vm534_vm0, %v93_v1, 0.0  ;;  %v140_v1 = vld [vmem:[%s17653_s0 + $0x3b0] sm:$0xff] }
 0x151   :  { %v1389_v52 = vpop.xlane.xlu0 %1388  ;;  %v2357_v3 = vmul.f32 0.020408163, %v1392_v29  ;;  %v367_v29 = vld [vmem:[%s17653_s0 + $0xac8] sm:$0xff] }
 0x152   :  { %v13113_v57 = vsel %vm534_vm0, %v367_v29, 0.0 }
 0x153   :  { %797 = vadd.xlane.f32.xlu1 %v796_v43  ;;  %v2384_v43 = vmul.f32 0.020408163, %v12914_v28  ;;  %v13049_v28 = vsel %vm534_vm0, %v349_v15, 0.0 }
 0x154   :  { %794 = vadd.xlane.f32.xlu0 %v793_v54  ;;  %v12987_v58 = vpop.xlane.xlu1 %1481 }
 0x155   :  { %v12992_v33 = vpop.xlane.xlu0 %1478  ;;  %v13079_v15 = vpack.c.bf16 %v2385_v46, %v2384_v43  ;;  %v13096_v46 = vsel %vm534_vm0, %v111_v0, 0.0  ;;  %v396_v43 = vld [vmem:[%s17653_s0 + $0xbb0] sm:$0xff]  ;;  %v95_v0 = vld [vmem:[%s17653_s0 + $0x248] sm:$0xff] }
 0x156   :  { %v13158_v48 = vsel %vm534_vm0, %v95_v0, 0.0 }
 0x157   :  { %887 = vadd.xlane.f32.xlu1 %v886_v44  ;;  %v3912_v44 = vunpack.c.l.b16 %v2725_v11  ;;  %v2369_v11 = vmul.f32 0.020408163, %v12950_v16  ;;  %v13101_v16 = vsel %vm534_vm0, %v110_v2, 0.0  ;;  %v94_v2 = vld [vmem:[%s17653_s0 + $0x240] sm:$0xff] }
 0x158   :  { %884 = vadd.xlane.f32.xlu0 %v883_v63  ;;  %v13004_v13 = vpop.xlane.xlu1 %665  ;;  %v378_v63 = vld [vmem:[%s17653_s0 + $0xb20] sm:$0xff]  ;;  %v13161_v38 = vsel %vm534_vm0, %v94_v2, 0.0 }
 0x159   :  { %v13016_v12 = vpop.xlane.xlu0 %662  ;;  %v5569_v22 = vrot.slane %v3912_v44, %v12165_v49  ;;  %v13093_v51 = vsel %vm534_vm0, %v378_v63, 0.0  ;;  %v13119_v63 = vsel %vm534_vm0, %v397_v23, 0.0  ;;  %v351_v23 = vld [vmem:[%s17653_s0 + $0xa48] sm:$0xff] }
 0x15b   :  { %1565 = vadd.xlane.f32.xlu1 %v1564_v18  ;;  %v2356_v18 = vmul.f32 0.020408163, %v1389_v52  ;;  %v366_v52 = vld [vmem:[%s17653_s0 + $0xac0] sm:$0xff] }
 0x15c   :  { %1562 = vadd.xlane.f32.xlu0 %v1561_v7  ;;  %v13034_v54 = vpop.xlane.xlu1 %1343  ;;  %v2339_v7 = vmul.f32 0.020408163, %v12936_v47  ;;  %v2338_v47 = vmul.f32 0.020408163, %v12939_v19  ;;  %v13116_v44 = vsel %vm534_vm0, %v366_v52, 0.0  ;;  %v124_v52 = vld [vmem:[%s17653_s0 + $0x330] sm:$0xff] }
 0x15d   :  { %v13042_v62 = vpop.xlane.xlu0 %1340  ;;  %v13098_v19 = vpack.c.bf16 %v2357_v3, %v2356_v18  ;;  %v5574_v3 = vrot.slane %v3913_v9, %v12172_v61  ;;  %v3942_v18 = vunpack.c.l.b16 %v13079_v15  ;;  %v350_v9 = vld [vmem:[%s17653_s0 + $0xa40] sm:$0xff] }
 0x15f   :  { %1655 = vadd.xlane.f32.xlu1 %v1654_v27  ;;  %v2368_v27 = vmul.f32 0.020408163, %v12953_v25  ;;  %v13104_v25 = vsel %vm534_vm0, %v141_v4, 0.0  ;;  %v13132_v4 = vpack.c.bf16 %v2339_v7, %v2338_v47  ;;  %v5570_v7 = vsel %vm4216_vm10, %v5569_v22, %v12851_v24 }
 0x160   :  { %1652 = vadd.xlane.f32.xlu0 %v1651_v34  ;;  %v13084_v55 = vpop.xlane.xlu1 %1433  ;;  %v13107_v34 = vsel %vm534_vm0, %v140_v1, 0.0  ;;  %v2131_v47 = vmul.f32 0.020408163, %v12967_v31  ;;  %v3914_v50 = vunpack.c.l.b16 %v13098_v19  ;;  %v3943_v22 = vunpack.c.h.b16 %v13079_v15 }
 0x161   :  { %v13087_v6 = vpop.xlane.xlu0 %1430  ;;  %v13134_v1 = vpack.c.bf16 %v2369_v11, %v2368_v27  ;;  %v13154_v27 = vsel %vm534_vm0, %v396_v43, 0.0  ;;  %v13168_v24 = vsel %vm534_vm0, %v124_v52, 0.0  ;;  %v13171_v31 = vsel %vm534_vm0, %v351_v23, 0.0 }
 0x162   :  { %17722 = vst [vmem:[#allocation16_spill] sm:$0xff] %v13171_v31  ;;  %v5575_v43 = vsel %vm4223_vm11, %v5574_v3, %v5570_v7  ;;  %v5717_v0 = vrot.slane %v3942_v18, %v12149_v35  ;;  %v3896_v2 = vunpack.c.l.b16 %v13132_v4  ;;  %v3915_v52 = vunpack.c.h.b16 %v13098_v19 }
 0x163   :  { %749 = vadd.xlane.f32.xlu1 %v748_v56  ;;  %v125_v56 = vld [vmem:[%s17653_s0 + $0x338] sm:$0xff]  ;;  %v2387_v23 = vmul.f32 0.020408163, %v12987_v58  ;;  %v2341_v3 = vmul.f32 0.020408163, %v13034_v54 }
 0x164   :  { %746 = vadd.xlane.f32.xlu0 %v745_v42  ;;  %v13136_v29 = vpop.xlane.xlu1 %719  ;;  %v2130_v42 = vmul.f32 0.020408163, %v12970_v26  ;;  %v13164_v45 = vsel %vm534_vm0, %v125_v56, 0.0  ;;  %v13174_v26 = vsel %vm534_vm0, %v350_v9, 0.0  ;;  %v3926_v56 = vunpack.c.l.b16 %v13134_v1 }
 0x165   :  { %v13151_v11 = vpop.xlane.xlu0 %716  ;;  %17723 = vst [vmem:[#allocation17_spill] sm:$0xff] %v13174_v26  ;;  %v5579_v9 = vrot.slane %v3914_v50, %v12191_v20  ;;  %v2340_v18 = vmul.f32 0.020408163, %v13042_v62  ;;  %v5722_v26 = vrot.slane %v3943_v22, %v12152_v36  ;;  %v2114_v19 = vmul.f32 0.020408163, %v13016_v12 }
 0x166   :  { %v2613_v15 = vpack.c.bf16 %v2131_v47, %v2130_v42  ;;  %v2115_v47 = vmul.f32 0.020408163, %v13004_v13  ;;  %v5718_v58 = vsel %vm4202_vm8, %v5717_v0, %v12873_v10  ;;  %v3897_v50 = vunpack.c.h.b16 %v13132_v4  ;;  %v380_v4 = vld [vmem:[%s17653_s0 + $0xb30] sm:$0xff] }
 0x167   :  { %839 = vadd.xlane.f32.xlu1 %v838_v59  ;;  %v5490_v54 = vrot.slane %v3896_v2, %v12165_v49  ;;  %v3927_v13 = vunpack.c.h.b16 %v13134_v1  ;;  %v5638_v12 = vrot.slane %v3926_v56, %v12149_v35  ;;  %v5584_v22 = vrot.slane %v3915_v52, %v12194_v21 }
 0x168   :  { %836 = vadd.xlane.f32.xlu0 %v13046_v37  ;;  %v1398_v59 = vpop.xlane.xlu1 %1397  ;;  %v2386_v37 = vmul.f32 0.020408163, %v12992_v33  ;;  %v381_v33 = vld [vmem:[%s17653_s0 + $0xb38] sm:$0xff]  ;;  %v5580_v0 = vsel %vm4230_vm12, %v5579_v9, %v5575_v43  ;;  %v3689_v2 = vunpack.c.h.b16 %v2613_v15  ;;  %v5723_v56 = vsel %vm4209_vm9, %v5722_v26, %v5718_v58 }
 0x169   :  { %v2359_v39 = vmul.f32 0.020408163, %v1398_v59  ;;  %v1395_v31 = vpop.xlane.xlu0 %1394  ;;  %v13210_v1 = vsel %vm534_vm0, %v381_v33, 0.0  ;;  %v13217_v43 = vsel %vm534_vm0, %v380_v4, 0.0  ;;  %v5585_v26 = vsel %vm4237_vm13, %v5584_v22, %v5580_v0 }
 0x16a   :  { %v2358_v7 = vmul.f32 0.020408163, %v1395_v31  ;;  %v2741_v59 = vpack.c.bf16 %v2387_v23, %v2386_v37  ;;  %v5643_v23 = vrot.slane %v3927_v13, %v12152_v36  ;;  %v2132_v33 = vmul.f32 0.020408163, %v13151_v11 }
 0x16b   :  { %1517 = vadd.xlane.f32.xlu1 %v13049_v28  ;;  %v3688_v28 = vunpack.c.l.b16 %v2613_v15  ;;  %v5491_v15 = vsel %vm4216_vm10, %v5490_v54, %v12888_v5 }
 0x16c   :  { %v2727_v42 = vpack.c.bf16 %v2359_v39, %v2358_v7  ;;  %1514 = vadd.xlane.f32.xlu0 %v13068_v14  ;;  %v1488_v62 = vpop.xlane.xlu1 %1487  ;;  %v2718_v39 = vpack.c.bf16 %v2341_v3, %v2340_v18  ;;  %v13206_v7 = vpack.c.bf16 %v2115_v47, %v2114_v19  ;;  %v5639_v18 = vsel %vm4202_vm8, %v5638_v12, %v12907_v32 }
 0x16d   :  { %v1485_v10 = vpop.xlane.xlu0 %1484  ;;  %v4463_v37 = vrot.slane %v3688_v28, %v12165_v49  ;;  %v4468_v19 = vrot.slane %v3689_v2, %v12172_v61  ;;  %v3944_v58 = vunpack.c.l.b16 %v2741_v59  ;;  %v2389_v12 = vmul.f32 0.020408163, %v1488_v62 }
 0x16e   :  { %v3916_v31 = vunpack.c.l.b16 %v2727_v42  ;;  %v3917_v14 = vunpack.c.h.b16 %v2727_v42  ;;  %v3672_v5 = vunpack.c.l.b16 %v13206_v7  ;;  %v3899_v54 = vunpack.c.h.b16 %v2718_v39 }
 0x16f   :  { %1607 = vadd.xlane.f32.xlu1 %v13090_v60  ;;  %v5495_v60 = vrot.slane %v3897_v50, %v12172_v61  ;;  %v2133_v42 = vmul.f32 0.020408163, %v13136_v29  ;;  %v2388_v28 = vmul.f32 0.020408163, %v1485_v10  ;;  %v13249_v62 = vsel %vm4209_vm9, %v5643_v23, %v5639_v18 }
 0x170   :  { %v5589_v52 = vrot.slane %v3916_v31, %v12208_v40  ;;  %v5594_v35 = vrot.slane %v3917_v14, %v12211_v41  ;;  %1604 = vadd.xlane.f32.xlu0 %v13093_v51  ;;  %v672_v3 = vpop.xlane.xlu1 %671  ;;  %v3898_v51 = vunpack.c.l.b16 %v2718_v39  ;;  %v2371_v14 = vmul.f32 0.020408163, %v13084_v55 }
 0x171   :  { %v669_v9 = vpop.xlane.xlu0 %668  ;;  %v5496_v11 = vsel %vm4223_vm11, %v5495_v60, %v5491_v15  ;;  %v2614_v10 = vpack.c.bf16 %v2133_v42, %v2132_v33  ;;  %v4384_v55 = vrot.slane %v3672_v5, %v12165_v49 }
 0x172   :  { %v5590_v47 = vsel %vm4244_vm14, %v5589_v52, %v5585_v26  ;;  %v5500_v29 = vrot.slane %v3898_v51, %v12191_v20  ;;  %v2742_v52 = vpack.c.bf16 %v2389_v12, %v2388_v28 }
 0x173   :  { %803 = vadd.xlane.f32.xlu1 %v13096_v46  ;;  %v5595_v50 = vsel %vm4251_vm15, %v5594_v35, %v5590_v47  ;;  %v4464_v35 = vsel %vm4216_vm10, %v4463_v37, %v12926_v53  ;;  %v3945_v46 = vunpack.c.h.b16 %v2741_v59  ;;  %v3673_v53 = vunpack.c.h.b16 %v13206_v7 }
 0x174   :  { %800 = vadd.xlane.f32.xlu0 %v13101_v16  ;;  %v1350_v32 = vpop.xlane.xlu1 %1349  ;;  %v6704_v13 = vsel %vm6702_vm7, %v5595_v50, %v12368_v8  ;;  %v5727_v16 = vrot.slane %v3944_v58, %v12165_v49  ;;  %v2370_v8 = vmul.f32 0.020408163, %v13087_v6  ;;  %v4469_v59 = vsel %vm4223_vm11, %v4468_v19, %v4464_v35 }
 0x175   :  { %v2343_v22 = vmul.f32 0.020408163, %v1350_v32  ;;  %v1347_v4 = vpop.xlane.xlu0 %1346  ;;  %v13237_v31 = vpack.c.b16 %v6704_v13, %v6704_v13  ;;  %v5505_v6 = vrot.slane %v3899_v54, %v12194_v21  ;;  %v5501_v60 = vsel %vm4230_vm12, %v5500_v29, %v5496_v11 }
 0x176   :  { %v2342_v39 = vmul.f32 0.020408163, %v1347_v4  ;;  %v5728_v7 = vsel %vm4216_vm10, %v5727_v16, %v5723_v56  ;;  %v2733_v18 = vpack.c.bf16 %v2371_v14, %v2370_v8  ;;  %v2117_v37 = vmul.f32 0.020408163, %v672_v3 }
 0x177   :  { %17724 = vst [vmem:[#allocation18_spill] sm:$0xff] %v13237_v31  ;;  %9343 = vmatprep.mubr.bf16.mxu0 %v13237_v31  ;;  %893 = vadd.xlane.f32.xlu1 %v13104_v25  ;;  %v5732_v25 = vrot.slane %v3945_v46, %v12172_v61  ;;  %v4389_v51 = vrot.slane %v3673_v53, %v12172_v61  ;;  %v3690_v47 = vunpack.c.l.b16 %v2614_v10  ;;  %v3946_v54 = vunpack.c.l.b16 %v2742_v52 }
 0x178   :  { %v2719_v0 = vpack.c.bf16 %v2343_v22, %v2342_v39  ;;  %890 = vadd.xlane.f32.xlu0 %v13107_v34  ;;  %v1440_v2 = vpop.xlane.xlu1 %1439  ;;  %v2116_v34 = vmul.f32 0.020408163, %v669_v9  ;;  %v4385_v50 = vsel %vm4216_vm10, %v4384_v55, %v12965_v30  ;;  %v5506_v3 = vsel %vm4237_vm13, %v5505_v6, %v5501_v60 }
 0x179   :  { %v1437_v15 = vpop.xlane.xlu0 %1436  ;;  %v2373_v9 = vmul.f32 0.020408163, %v1440_v2  ;;  %v3928_v13 = vunpack.c.l.b16 %v2733_v18  ;;  %v3691_v12 = vunpack.c.h.b16 %v2614_v10  ;;  %v3929_v22 = vunpack.c.h.b16 %v2733_v18 }
 0x17a   :  { %v3900_v23 = vunpack.c.l.b16 %v2719_v0  ;;  %v3901_v26 = vunpack.c.h.b16 %v2719_v0  ;;  %v2606_v28 = vpack.c.bf16 %v2117_v37, %v2116_v34  ;;  %v4473_v30 = vrot.slane %v3690_v47, %v12191_v20 }
 0x17b   :  { %1571 = vadd.xlane.f32.xlu1 %v13113_v57  ;;  %v2372_v57 = vmul.f32 0.020408163, %v1437_v15  ;;  %v3947_v29 = vunpack.c.h.b16 %v2742_v52  ;;  %v5737_v39 = vrot.slane %v3946_v54, %v12191_v20  ;;  %v4390_v0 = vsel %vm4223_vm11, %v4389_v51, %v4385_v50 }
 0x17c   :  { %v5510_v19 = vrot.slane %v3900_v23, %v12208_v40  ;;  %v5515_v58 = vrot.slane %v3901_v26, %v12211_v41  ;;  %1568 = vadd.xlane.f32.xlu0 %v13116_v44  ;;  %v726_v5 = vpop.xlane.xlu1 %725  ;;  %v3674_v2 = vunpack.c.l.b16 %v2606_v28  ;;  %v5653_v60 = vrot.slane %v3929_v22, %v12172_v61 }
 0x17d   :  { %v2135_v56 = vmul.f32 0.020408163, %v726_v5  ;;  %v723_v42 = vpop.xlane.xlu0 %722  ;;  %v2734_v8 = vpack.c.bf16 %v2373_v9, %v2372_v57  ;;  %v5742_v23 = vrot.slane %v3947_v29, %v12194_v21  ;;  %v3675_v47 = vunpack.c.h.b16 %v2606_v28 }
 0x17e   :  { %v2134_v33 = vmul.f32 0.020408163, %v723_v42  ;;  %v5511_v32 = vsel %vm4244_vm14, %v5510_v19, %v5506_v3  ;;  %v4394_v19 = vrot.slane %v3674_v2, %v12191_v20 }
 0x17f   :  { %1661 = vadd.xlane.f32.xlu1 %v13119_v63  ;;  %v5516_v44 = vsel %vm4251_vm15, %v5515_v58, %v5511_v32  ;;  %v5733_v63 = vsel %vm4223_vm11, %v5732_v25, %v5728_v7  ;;  %v4474_v25 = vsel %vm4230_vm12, %v4473_v30, %v4469_v59  ;;  %v3930_v37 = vunpack.c.l.b16 %v2734_v8 }
 0x180   :  { %v2615_v4 = vpack.c.bf16 %v2135_v56, %v2134_v33  ;;  %1658 = vadd.xlane.f32.xlu0 %v13154_v27  ;;  %v1494_v35 = vpop.xlane.xlu1 %1493  ;;  %v6703_v46 = vsel %vm6702_vm7, %v5516_v44, %v12238_v17  ;;  %v4478_v27 = vrot.slane %v3691_v12, %v12194_v21  ;;  %v5648_v17 = vrot.slane %v3928_v13, %v12165_v49  ;;  %v17726_v44 = vld [vmem:[#allocation16_spill] sm:$0xff] }
 0x181   :  { %v2391_v11 = vmul.f32 0.020408163, %v1494_v35  ;;  %v1491_v16 = vpop.xlane.xlu0 %1490  ;;  %v13275_v14 = vpack.c.b16 %v6703_v46, %v6703_v46  ;;  %v5738_v18 = vsel %vm4230_vm12, %v5737_v39, %v5733_v63  ;;  %v3931_v3 = vunpack.c.h.b16 %v2734_v8  ;;  %v17727_v46 = vld [vmem:[#allocation17_spill] sm:$0xff] }
 0x182   :  { %v3692_v53 = vunpack.c.l.b16 %v2615_v4  ;;  %v2390_v10 = vmul.f32 0.020408163, %v1491_v16  ;;  %v3693_v55 = vunpack.c.h.b16 %v2615_v4  ;;  %v4479_v59 = vsel %vm4237_vm13, %v4478_v27, %v4474_v25 }
 0x183   :  { %17725 = vst [vmem:[#allocation19_spill] sm:$0xff] %v13275_v14  ;;  %9344 = vmatmul.mubr.bf16.vlgmr.msra.gmra.mxu0 %v13275_v14  ;;  %755 = vadd.xlane.f32.xlu1 %v13158_v48  ;;  %v5649_v42 = vsel %vm4216_vm10, %v5648_v17, %v13249_v62  ;;  %v5658_v33 = vrot.slane %v3930_v37, %v12191_v20  ;;  %v112_v17 = vld [vmem:[%s17653_s0 + $0x2d0] sm:$0xff] }
 0x184   :  { %v4483_v6 = vrot.slane %v3692_v53, %v12208_v40  ;;  %v2743_v52 = vpack.c.bf16 %v2391_v11, %v2390_v10  ;;  %752 = vadd.xlane.f32.xlu0 %v13161_v38  ;;  %v678_v15 = vpop.xlane.xlu1 %677  ;;  %v4488_v38 = vrot.slane %v3693_v55, %v12211_v41  ;;  %v4399_v28 = vrot.slane %v3675_v47, %v12194_v21  ;;  %v113_v11 = vld [vmem:[%s17653_s0 + $0x2d8] sm:$0xff] }
 0x185   :  { %v2119_v26 = vmul.f32 0.020408163, %v678_v15  ;;  %v675_v7 = vpop.xlane.xlu0 %674  ;;  %v4395_v30 = vsel %vm4230_vm12, %v4394_v19, %v4390_v0  ;;  %v5654_v16 = vsel %vm4223_vm11, %v5653_v60, %v5649_v42  ;;  %v5663_v63 = vrot.slane %v3931_v3, %v12194_v21 }
 0x186   :  { %v3948_v48 = vunpack.c.l.b16 %v2743_v52  ;;  %v3949_v34 = vunpack.c.h.b16 %v2743_v52  ;;  %v2118_v51 = vmul.f32 0.020408163, %v675_v7  ;;  %v4484_v56 = vsel %vm4244_vm14, %v4483_v6, %v4479_v59 }
 0x187   :  { %845 = vadd.xlane.f32.xlu1 %v13164_v45  ;;  %v5743_v45 = vsel %vm4237_vm13, %v5742_v23, %v5738_v18  ;;  %v4489_v22 = vsel %vm4251_vm15, %v4488_v38, %v4484_v56  ;;  %v5659_v0 = vsel %vm4230_vm12, %v5658_v33, %v5654_v16  ;;  %v808_v52 = vsel %vm534_vm0, %v113_v11, 0.0  ;;  %v17730_v11 = vld [vmem:[#allocation7_spill] sm:$0xff] }
 0x188   :  { %v5747_v58 = vrot.slane %v3948_v48, %v12208_v40  ;;  %v5752_v5 = vrot.slane %v3949_v34, %v12211_v41  ;;  %v2607_v50 = vpack.c.bf16 %v2119_v26, %v2118_v51  ;;  %842 = vadd.xlane.f32.xlu0 %v13168_v24  ;;  %v1446_v54 = vpop.xlane.xlu1 %1445  ;;  %v4400_v15 = vsel %vm4237_vm13, %v4399_v28, %v4395_v30  ;;  %v143_v34 = vld [vmem:[%s17653_s0 + $0x3c8] sm:$0xff] }
 0x189   :  { %v2375_v9 = vmul.f32 0.020408163, %v1446_v54  ;;  %v1443_v57 = vpop.xlane.xlu0 %1442  ;;  %v805_v48 = vsel %vm534_vm0, %v112_v17, 0.0 }
 0x18a   :  { %v3676_v32 = vunpack.c.l.b16 %v2607_v50  ;;  %v2374_v13 = vmul.f32 0.020408163, %v1443_v57  ;;  %v5748_v12 = vsel %vm4244_vm14, %v5747_v58, %v5743_v45  ;;  %v3677_v24 = vunpack.c.h.b16 %v2607_v50  ;;  %v368_v45 = vld [vmem:[%s17653_s0 + $0xad0] sm:$0xff] }
 0x18b   :  { %1523 = vadd.xlane.f32.xlu1 %v17726_v44  ;;  %v5753_v62 = vsel %vm4251_vm15, %v5752_v5, %v5748_v12  ;;  %v898_v50 = vsel %vm534_vm0, %v143_v34, 0.0 }
 0x18c   :  { %v4404_v4 = vrot.slane %v3676_v32, %v12208_v40  ;;  %v2735_v35 = vpack.c.bf16 %v2375_v9, %v2374_v13  ;;  %1520 = vadd.xlane.f32.xlu0 %v17727_v46  ;;  %v780_v29 = vpop.xlane.xlu1 %779  ;;  %v6706_v39 = vsel %vm6702_vm7, %v5753_v62, %v4489_v22  ;;  %v4409_v6 = vrot.slane %v3677_v24, %v12211_v41  ;;  %v369_v9 = vld [vmem:[%s17653_s0 + $0xad8] sm:$0xff]  ;;  %v399_v62 = vld [vmem:[%s17653_s0 + $0xbc8] sm:$0xff] }
 0x18d   :  { %v2153_v8 = vmul.f32 0.020408163, %v780_v29  ;;  %v777_v53 = vpop.xlane.xlu0 %776  ;;  %v13315_v10 = vpack.c.b16 %v6706_v39, %v6706_v39  ;;  %v1576_v13 = vsel %vm534_vm0, %v369_v9, 0.0  ;;  %v1573_v22 = vsel %vm534_vm0, %v368_v45, 0.0  ;;  %v97_v39 = vld [vmem:[%s17653_s0 + $0x258] sm:$0xff] }
 0x18e   :  { %v3932_v27 = vunpack.c.l.b16 %v2735_v35  ;;  %v3933_v2 = vunpack.c.h.b16 %v2735_v35  ;;  %v2152_v55 = vmul.f32 0.020408163, %v777_v53  ;;  %v4405_v7 = vsel %vm4244_vm14, %v4404_v4, %v4400_v15  ;;  %v398_v4 = vld [vmem:[%s17653_s0 + $0xbc0] sm:$0xff] }
 0x18f   :  { %17728 = vst [vmem:[#allocation16_spill] sm:$0xff] %v13315_v10  ;;  %9384 = vmatprep.mubr.bf16.mxu1 %v13315_v10  ;;  %1613 = vadd.xlane.f32.xlu1 %v13210_v1  ;;  %v5664_v1 = vsel %vm4237_vm13, %v5663_v63, %v5659_v0  ;;  %v4410_v19 = vsel %vm4251_vm15, %v4409_v6, %v4405_v7  ;;  %v1666_v29 = vsel %vm534_vm0, %v399_v62, 0.0  ;;  %v17731_v63 = vld [vmem:[#allocation8_spill] sm:$0xff]  ;;  %v96_v6 = vld [vmem:[%s17653_s0 + $0x250] sm:$0xff] }
 0x190   :  { %v5668_v25 = vrot.slane %v3932_v27, %v12208_v40  ;;  %v5673_v60 = vrot.slane %v3933_v2, %v12211_v41  ;;  %v2624_v23 = vpack.c.bf16 %v2153_v8, %v2152_v55  ;;  %1610 = vadd.xlane.f32.xlu0 %v13217_v43  ;;  %v1548_v26 = vpop.xlane.xlu1 %1547  ;;  %v142_v43 = vld [vmem:[%s17653_s0 + $0x3c0] sm:$0xff]  ;;  %v1663_v27 = vsel %vm534_vm0, %v398_v4, 0.0 }
 0x191   :  { %v2409_v18 = vmul.f32 0.020408163, %v1548_v26  ;;  %v1545_v37 = vpop.xlane.xlu0 %1544  ;;  %v895_v3 = vsel %vm534_vm0, %v142_v43, 0.0  ;;  %v126_v43 = vld [vmem:[%s17653_s0 + $0x340] sm:$0xff] }
 0x192   :  { %v2408_v51 = vmul.f32 0.020408163, %v1545_v37  ;;  %v5669_v47 = vsel %vm4244_vm14, %v5668_v25, %v5664_v1  ;;  %v3710_v12 = vunpack.c.l.b16 %v2624_v23  ;;  %v3711_v28 = vunpack.c.h.b16 %v2624_v23  ;;  %v17732_v25 = vld [vmem:[#allocation6_spill] sm:$0xff]  ;;  %v17733_v23 = vld [vmem:[#allocation9_spill] sm:$0xff] }
 0x193   :  { %809 = vadd.xlane.f32.xlu1 %v808_v52  ;;  %v5674_v38 = vsel %vm4251_vm15, %v5673_v60, %v5669_v47  ;;  %v760_v52 = vsel %vm534_vm0, %v97_v39, 0.0  ;;  %v127_v47 = vld [vmem:[%s17653_s0 + $0x348] sm:$0xff] }
 0x194   :  { %v13341_v59 = vpack.c.bf16 %v2409_v18, %v2408_v51  ;;  %806 = vadd.xlane.f32.xlu0 %v805_v48  ;;  %v732_v58 = vpop.xlane.xlu1 %731  ;;  %v6705_v5 = vsel %vm6702_vm7, %v5674_v38, %v4410_v19  ;;  %v4572_v16 = vrot.slane %v3710_v12, %v17730_v11  ;;  %v4576_v8 = vrot.slane %v3711_v28, %v17731_v63  ;;  %v352_v12 = vld [vmem:[%s17653_s0 + $0xa50] sm:$0xff] }
 0x195   :  { %v2137_v54 = vmul.f32 0.020408163, %v732_v58  ;;  %v729_v56 = vpop.xlane.xlu0 %728  ;;  %v13345_v42 = vpack.c.b16 %v6705_v5, %v6705_v5  ;;  %v757_v51 = vsel %vm534_vm0, %v96_v6, 0.0 }
 0x196   :  { %v2136_v57 = vmul.f32 0.020408163, %v729_v56  ;;  %v3966_v15 = vunpack.c.l.b16 %v13341_v59  ;;  %v4577_v37 = vsel %vm4153_vm1, %v4576_v8, %v4572_v16  ;;  %v3967_v48 = vunpack.c.h.b16 %v13341_v59 }
 0x197   :  { %17729 = vst [vmem:[#allocation17_spill] sm:$0xff] %v13345_v42  ;;  %9385 = vmatmul.mubr.bf16.vlgmr.msra.gmra.mxu1 %v13345_v42  ;;  %899 = vadd.xlane.f32.xlu1 %v898_v50  ;;  %v847_v56 = vsel %vm534_vm0, %v126_v43, 0.0  ;;  %v115_v43 = vld [vmem:[%s17653_s0 + $0x2e8] sm:$0xff]  ;;  %v413_v42 = vld [vmem:[%s17653_s0 + $0xc38] sm:$0xff] }
 0x198   :  { %v13355_v33 = vpack.c.bf16 %v2137_v54, %v2136_v57  ;;  %896 = vadd.xlane.f32.xlu0 %v895_v3  ;;  %v786_v32 = vpop.xlane.xlu1 %785  ;;  %v5836_v59 = vrot.slane %v3966_v15, %v17730_v11  ;;  %v850_v54 = vsel %vm534_vm0, %v127_v47, 0.0  ;;  %v353_v3 = vld [vmem:[%s17653_s0 + $0xa58] sm:$0xff]  ;;  %v5840_v9 = vrot.slane %v3967_v48, %v17731_v63 }
 0x199   :  { %v2155_v24 = vmul.f32 0.020408163, %v786_v32  ;;  %v783_v44 = vpop.xlane.xlu0 %782 }
 0x19a   :  { %v2154_v30 = vmul.f32 0.020408163, %v783_v44  ;;  %v3694_v57 = vunpack.c.l.b16 %v13355_v33  ;;  %v3695_v45 = vunpack.c.h.b16 %v13355_v33  ;;  %v1525_v33 = vsel %vm534_vm0, %v352_v12, 0.0 }
 0x19b   :  { %1577 = vadd.xlane.f32.xlu1 %v1576_v13 }
 0x19c   :  { %v2625_v35 = vpack.c.bf16 %v2155_v24, %v2154_v30  ;;  %1574 = vadd.xlane.f32.xlu0 %v1573_v22  ;;  %v1500_v46 = vpop.xlane.xlu1 %1499  ;;  %v1528_v22 = vsel %vm534_vm0, %v353_v3, 0.0  ;;  %v4493_v39 = vrot.slane %v3694_v57, %v17730_v11  ;;  %v4497_v16 = vrot.slane %v3695_v45, %v17731_v63 }
 0x19d   :  { %v2393_v53 = vmul.f32 0.020408163, %v1500_v46  ;;  %v1497_v0 = vpop.xlane.xlu0 %1496  ;;  %v383_v46 = vld [vmem:[%s17653_s0 + $0xb48] sm:$0xff] }
 0x19e   :  { %v3712_v2 = vunpack.c.l.b16 %v2625_v35  ;;  %v3713_v55 = vunpack.c.h.b16 %v2625_v35  ;;  %v2392_v17 = vmul.f32 0.020408163, %v1497_v0  ;;  %v382_v0 = vld [vmem:[%s17653_s0 + $0xb40] sm:$0xff]  ;;  %v4498_v48 = vsel %vm4153_vm1, %v4497_v16, %v4493_v39  ;;  %v371_v39 = vld [vmem:[%s17653_s0 + $0xae8] sm:$0xff] }
 0x19f   :  { %1667 = vadd.xlane.f32.xlu1 %v1666_v29  ;;  %v5841_v29 = vsel %vm4153_vm1, %v5840_v9, %v5836_v59  ;;  %v114_v59 = vld [vmem:[%s17653_s0 + $0x2e0] sm:$0xff] }
 0x1a0   :  { %v4581_v60 = vrot.slane %v3712_v2, %v17732_v25  ;;  %v4586_v26 = vrot.slane %v3713_v55, %v17733_v23  ;;  %v13379_v7 = vpack.c.bf16 %v2393_v53, %v2392_v17  ;;  %1664 = vadd.xlane.f32.xlu0 %v1663_v27  ;;  %v1554_v18 = vpop.xlane.xlu1 %1553  ;;  %v811_v45 = vsel %vm534_vm0, %v114_v59, 0.0 }
 0x1a1   :  { %v2411_v1 = vmul.f32 0.020408163, %v1554_v18  ;;  %v1551_v34 = vpop.xlane.xlu0 %1550 }
 0x1a2   :  { %v4582_v19 = vsel %vm4160_vm2, %v4581_v60, %v4577_v37  ;;  %v2410_v38 = vmul.f32 0.020408163, %v1551_v34  ;;  %v1615_v37 = vsel %vm534_vm0, %v382_v0, 0.0  ;;  %v3951_v34 = vunpack.c.h.b16 %v13379_v7 }
 0x1a3   :  { %v13392_v58 = vsel %vm17680_vm3, %v4586_v26, %v4582_v19  ;;  %761 = vadd.xlane.f32.xlu1 %v760_v52  ;;  %v1618_v52 = vsel %vm534_vm0, %v383_v46, 0.0 }
 0x1a4   :  { %v2753_v5 = vpack.c.bf16 %v2411_v1, %v2410_v38  ;;  %758 = vadd.xlane.f32.xlu0 %v757_v51  ;;  %v738_v50 = vpop.xlane.xlu1 %737  ;;  %v3950_v1 = vunpack.c.l.b16 %v13379_v7  ;;  %v5761_v3 = vrot.slane %v3951_v34, %v17731_v63  ;;  %v17734_v34 = vld [vmem:[#allocation10_spill] sm:$0xff] }
 0x1a5   :  { %v2139_v32 = vmul.f32 0.020408163, %v738_v50  ;;  %v735_v13 = vpop.xlane.xlu0 %734 }
 0x1a6   :  { %v3968_v28 = vunpack.c.l.b16 %v2753_v5  ;;  %v3969_v24 = vunpack.c.h.b16 %v2753_v5  ;;  %v2138_v44 = vmul.f32 0.020408163, %v735_v13 }
 0x1a7   :  { %851 = vadd.xlane.f32.xlu1 %v850_v54  ;;  %v814_v54 = vsel %vm534_vm0, %v115_v43, 0.0 }
 0x1a8   :  { %v5845_v62 = vrot.slane %v3968_v28, %v17732_v25  ;;  %v5850_v30 = vrot.slane %v3969_v24, %v17733_v23  ;;  %v2617_v4 = vpack.c.bf16 %v2139_v32, %v2138_v44  ;;  %848 = vadd.xlane.f32.xlu0 %v847_v56  ;;  %v876_v35 = vpop.xlane.xlu1 %875  ;;  %v5757_v56 = vrot.slane %v3950_v1, %v17730_v11  ;;  %v145_v32 = vld [vmem:[%s17653_s0 + $0x3d8] sm:$0xff]  ;;  %v144_v24 = vld [vmem:[%s17653_s0 + $0x3d0] sm:$0xff] }
 0x1a9   :  { %v2185_v8 = vmul.f32 0.020408163, %v876_v35  ;;  %v873_v53 = vpop.xlane.xlu0 %872  ;;  %v400_v1 = vld [vmem:[%s17653_s0 + $0xbd0] sm:$0xff] }
 0x1aa   :  { %v5846_v27 = vsel %vm4160_vm2, %v5845_v62, %v5841_v29  ;;  %v3696_v2 = vunpack.c.l.b16 %v2617_v4  ;;  %v3697_v55 = vunpack.c.h.b16 %v2617_v4  ;;  %v2184_v17 = vmul.f32 0.020408163, %v873_v53  ;;  %v370_v53 = vld [vmem:[%s17653_s0 + $0xae0] sm:$0xff] }
 0x1ab   :  { %v13421_v6 = vsel %vm17680_vm3, %v5850_v30, %v5846_v27  ;;  %1529 = vadd.xlane.f32.xlu1 %v1528_v22  ;;  %v904_v4 = vsel %vm534_vm0, %v145_v32, 0.0  ;;  %v5762_v35 = vsel %vm4153_vm1, %v5761_v3, %v5757_v56  ;;  %v901_v29 = vsel %vm534_vm0, %v144_v24, 0.0  ;;  %v98_v32 = vld [vmem:[%s17653_s0 + $0x260] sm:$0xff] }
 0x1ac   :  { %v4502_v15 = vrot.slane %v3696_v2, %v17732_v25  ;;  %v4507_v60 = vrot.slane %v3697_v55, %v17733_v23  ;;  %v13426_v26 = vpack.c.bf16 %v2185_v8, %v2184_v17  ;;  %1526 = vadd.xlane.f32.xlu0 %v1525_v33  ;;  %v1506_v18 = vpop.xlane.xlu1 %1505  ;;  %v1582_v55 = vsel %vm534_vm0, %v371_v39, 0.0  ;;  %v11017_v39 = vld [vmem:[%s17654_s1 + $0x4e4] ss:$16 sps:$4 sm:$0xff]  }
 0x1ad   :  { %v2395_v51 = vmul.f32 0.020408163, %v1506_v18  ;;  %v1503_v47 = vpop.xlane.xlu0 %1502  ;;  %v1669_v3 = vsel %vm534_vm0, %v400_v1, 0.0  ;;  %9393 = vmatprep.subr.bf16.mxu0 %v11017_v39 }
 0x1ae   :  { %v4503_v19 = vsel %vm4160_vm2, %v4502_v15, %v4498_v48  ;;  %v2394_v38 = vmul.f32 0.020408163, %v1503_v47  ;;  %v1579_v15 = vsel %vm534_vm0, %v370_v53, 0.0  ;;  %v17735_v47 = vld [vmem:[#allocation11_spill] sm:$0xff] }
 0x1af   :  { %v13440_v5 = vsel %vm17680_vm3, %v4507_v60, %v4503_v19  ;;  %1619 = vadd.xlane.f32.xlu1 %v1618_v52  ;;  %v401_v60 = vld [vmem:[%s17653_s0 + $0xbd8] sm:$0xff] }
 0x1b0   :  { %v2745_v50 = vpack.c.bf16 %v2395_v51, %v2394_v38  ;;  %1616 = vadd.xlane.f32.xlu0 %v1615_v37  ;;  %v1644_v7 = vpop.xlane.xlu1 %1643  ;;  %v1672_v59 = vsel %vm534_vm0, %v401_v60, 0.0 }
 0x1b1   :  { %v2441_v9 = vmul.f32 0.020408163, %v1644_v7  ;;  %v1641_v57 = vpop.xlane.xlu0 %1640  ;;  %v3743_v7 = vunpack.c.h.b16 %v13426_v26 }
 0x1b2   :  { %v3952_v13 = vunpack.c.l.b16 %v2745_v50  ;;  %v3953_v12 = vunpack.c.h.b16 %v2745_v50  ;;  %v2440_v28 = vmul.f32 0.020408163, %v1641_v57  ;;  %v3742_v50 = vunpack.c.l.b16 %v13426_v26 }
 0x1b3   :  { %815 = vadd.xlane.f32.xlu1 %v814_v54 }
 0x1b4   :  { %v5766_v44 = vrot.slane %v3952_v13, %v17732_v25  ;;  %v5771_v22 = vrot.slane %v3953_v12, %v17733_v23  ;;  %v13454_v62 = vpack.c.bf16 %v2441_v9, %v2440_v28  ;;  %812 = vadd.xlane.f32.xlu0 %v811_v45  ;;  %v792_v30 = vpop.xlane.xlu1 %791  ;;  %v99_v9 = vld [vmem:[%s17653_s0 + $0x268] sm:$0xff]  ;;  %v4730_v24 = vrot.slane %v3742_v50, %v17730_v11  ;;  %v11018_v50 = vld [vmem:[%s17654_s1 + $0x4c0] ss:$16 sps:$4 sm:$0xff]  }
 0x1b5   :  { %v2157_v33 = vmul.f32 0.020408163, %v792_v30  ;;  %v789_v46 = vpop.xlane.xlu0 %788  ;;  %v766_v28 = vsel %vm534_vm0, %v99_v9, 0.0  ;;  %v763_v30 = vsel %vm534_vm0, %v98_v32, 0.0 }
 0x1b6   :  { %v5767_v16 = vsel %vm4160_vm2, %v5766_v44, %v5762_v35  ;;  %v2156_v8 = vmul.f32 0.020408163, %v789_v46  ;;  %v4734_v44 = vrot.slane %v3743_v7, %v17731_v63 }
 0x1b7   :  { %v13467_v0 = vsel %vm17680_vm3, %v5771_v22, %v5767_v16  ;;  %905 = vadd.xlane.f32.xlu1 %v904_v4  ;;  %v129_v4 = vld [vmem:[%s17653_s0 + $0x358] sm:$0xff]  ;;  %v11015_v16 = vld [vmem:[%s17654_s1 + $0x4e0] ss:$16 sps:$4 sm:$0xff]  }
 0x1b8   :  { %v2626_v27 = vpack.c.bf16 %v2157_v33, %v2156_v8  ;;  %902 = vadd.xlane.f32.xlu0 %v901_v29  ;;  %v828_v2 = vpop.xlane.xlu1 %827  ;;  %v128_v29 = vld [vmem:[%s17653_s0 + $0x350] sm:$0xff]  ;;  %9394 = vmatpush1.bf16.msra.mxu0 %v11015_v16 }
 0x1b9   :  { %v2169_v17 = vmul.f32 0.020408163, %v828_v2  ;;  %v825_v52 = vpop.xlane.xlu0 %824  ;;  %v853_v60 = vsel %vm534_vm0, %v128_v29, 0.0 }
 0x1ba   :  { %v3714_v18 = vunpack.c.l.b16 %v2626_v27  ;;  %v3715_v37 = vunpack.c.h.b16 %v2626_v27  ;;  %v2168_v48 = vmul.f32 0.020408163, %v825_v52 }
 0x1bb   :  { %1583 = vadd.xlane.f32.xlu1 %v1582_v55  ;;  %v856_v55 = vsel %vm534_vm0, %v129_v4, 0.0 }
 0x1bc   :  { %v4591_v51 = vrot.slane %v3714_v18, %v17734_v34  ;;  %v4596_v43 = vrot.slane %v3715_v37, %v17735_v47  ;;  %v13479_v19 = vpack.c.bf16 %v2169_v17, %v2168_v48  ;;  %1580 = vadd.xlane.f32.xlu0 %v1579_v15  ;;  %v882_v38 = vpop.xlane.xlu1 %881  ;;  %v4735_v17 = vsel %vm4153_vm1, %v4734_v44, %v4730_v24  ;;  %v355_v18 = vld [vmem:[%s17653_s0 + $0xa68] sm:$0xff] }
 0x1bd   :  { %v2187_v54 = vmul.f32 0.020408163, %v882_v38  ;;  %v879_v56 = vpop.xlane.xlu0 %878  ;;  %v11020_v38 = vld [vmem:[%s17654_s1 + $0x4c4] ss:$16 sps:$4 sm:$0xff]   ;;  %v1534_v9 = vsel %vm534_vm0, %v355_v18, 0.0 }
 0x1be   :  { %v4592_v57 = vsel %vm4174_vm4, %v4591_v51, %v13392_v58  ;;  %v2186_v45 = vmul.f32 0.020408163, %v879_v56  ;;  %9395 = vmatprep.subr.bf16.mxu0 %v11020_v38  ;;  %v3727_v38 = vunpack.c.h.b16 %v13479_v19 }
 0x1bf   :  { %v13494_v13 = vsel %vm4181_vm5, %v4596_v43, %v4592_v57  ;;  %1673 = vadd.xlane.f32.xlu1 %v1672_v59  ;;  %v354_v43 = vld [vmem:[%s17653_s0 + $0xa60] sm:$0xff]  ;;  %v3998_v57 = vunpack.c.l.b16 %v13454_v62  ;;  %9396 = vmatpush1.bf16.msra.mxu0 %v11018_v50 }
 0x1c0   :  { %v2641_v26 = vpack.c.bf16 %v2187_v54, %v2186_v45  ;;  %1670 = vadd.xlane.f32.xlu0 %v1669_v3  ;;  %v1560_v12 = vpop.xlane.xlu1 %1559  ;;  %v3999_v45 = vunpack.c.h.b16 %v13454_v62  ;;  %v11023_v62 = vld [vmem:[%s17654_s1 + $0x4a4] ss:$16 sps:$4 sm:$0xff]  }
 0x1c1   :  { %v2413_v22 = vmul.f32 0.020408163, %v1560_v12  ;;  %v1557_v58 = vpop.xlane.xlu0 %1556  ;;  %v1531_v12 = vsel %vm534_vm0, %v354_v43, 0.0  ;;  %9397 = vmatprep.subr.bf16.mxu0 %v11023_v62  ;;  %v3726_v43 = vunpack.c.l.b16 %v13479_v19  ;;  %v11029_v19 = vld [vmem:[%s17654_s1 + $0x464] ss:$16 sps:$4 sm:$0xff]  }
 0x1c2   :  { %v3744_v35 = vunpack.c.l.b16 %v2641_v26  ;;  %v3745_v33 = vunpack.c.h.b16 %v2641_v26  ;;  %v2412_v46 = vmul.f32 0.020408163, %v1557_v58  ;;  %v5998_v29 = vrot.slane %v3999_v45, %v17731_v63 }
 0x1c3   :  { %767 = vadd.xlane.f32.xlu1 %v766_v28  ;;  %v385_v28 = vld [vmem:[%s17653_s0 + $0xb58] sm:$0xff] }
 0x1c4   :  { %v4739_v8 = vrot.slane %v3744_v35, %v17732_v25  ;;  %v4744_v53 = vrot.slane %v3745_v33, %v17733_v23  ;;  %v2754_v27 = vpack.c.bf16 %v2413_v22, %v2412_v46  ;;  %764 = vadd.xlane.f32.xlu0 %v763_v30  ;;  %v1596_v2 = vpop.xlane.xlu1 %1595  ;;  %v384_v22 = vld [vmem:[%s17653_s0 + $0xb50] sm:$0xff]  ;;  %v1624_v35 = vsel %vm534_vm0, %v385_v28, 0.0  ;;  %v117_v33 = vld [vmem:[%s17653_s0 + $0x2f8] sm:$0xff] }
 0x1c5   :  { %v2425_v52 = vmul.f32 0.020408163, %v1596_v2  ;;  %v1593_v15 = vpop.xlane.xlu0 %1592  ;;  %v11021_v30 = vld [vmem:[%s17654_s1 + $0x4a0] ss:$16 sps:$4 sm:$0xff]   ;;  %v5994_v46 = vrot.slane %v3998_v57, %v17730_v11 }
 0x1c6   :  { %v4740_v37 = vsel %vm4160_vm2, %v4739_v8, %v4735_v17  ;;  %v3970_v48 = vunpack.c.l.b16 %v2754_v27  ;;  %v3971_v1 = vunpack.c.h.b16 %v2754_v27  ;;  %v2424_v51 = vmul.f32 0.020408163, %v1593_v15  ;;  %9398 = vmatpush1.bf16.msra.mxu0 %v11021_v30  ;;  %v11026_v17 = vld [vmem:[%s17654_s1 + $0x484] ss:$16 sps:$4 sm:$0xff]   ;;  %v11024_v15 = vld [vmem:[%s17654_s1 + $0x480] ss:$16 sps:$4 sm:$0xff]  }
 0x1c7   :  { %v13528_v59 = vsel %vm17680_vm3, %v4744_v53, %v4740_v37  ;;  %857 = vadd.xlane.f32.xlu1 %v856_v55  ;;  %v1621_v8 = vsel %vm534_vm0, %v384_v22, 0.0  ;;  %v116_v53 = vld [vmem:[%s17653_s0 + $0x2f0] sm:$0xff]  ;;  %9399 = vmatprep.subr.bf16.mxu0 %v11026_v17  ;;  %v373_v30 = vld [vmem:[%s17653_s0 + $0xaf8] sm:$0xff] }
 0x1c8   :  { %v5855_v7 = vrot.slane %v3970_v48, %v17734_v34  ;;  %v5860_v54 = vrot.slane %v3971_v1, %v17735_v47  ;;  %v13535_v56 = vpack.c.bf16 %v2425_v52, %v2424_v51  ;;  %854 = vadd.xlane.f32.xlu0 %v853_v60  ;;  %v1650_v3 = vpop.xlane.xlu1 %1649  ;;  %v820_v52 = vsel %vm534_vm0, %v117_v33, 0.0 }
 0x1c9   :  { %v2443_v32 = vmul.f32 0.020408163, %v1650_v3  ;;  %v1647_v26 = vpop.xlane.xlu0 %1646  ;;  %v817_v1 = vsel %vm534_vm0, %v116_v53, 0.0  ;;  %v5999_v51 = vsel %vm4153_vm1, %v5998_v29, %v5994_v46  ;;  %v372_v29 = vld [vmem:[%s17653_s0 + $0xaf0] sm:$0xff]  ;;  %v1588_v17 = vsel %vm534_vm0, %v373_v30, 0.0 }
 0x1ca   :  { %v5856_v24 = vsel %vm4174_vm4, %v5855_v7, %v13421_v6  ;;  %v2442_v44 = vmul.f32 0.020408163, %v1647_v26  ;;  %9400 = vmatpush1.bf16.msra.mxu0 %v11024_v15 }
 0x1cb   :  { %v13553_v58 = vsel %vm4181_vm5, %v5860_v54, %v5856_v24  ;;  %1535 = vadd.xlane.f32.xlu1 %v1534_v9  ;;  %v147_v54 = vld [vmem:[%s17653_s0 + $0x3e8] sm:$0xff]  ;;  %9401 = vmatprep.subr.bf16.mxu0 %v11029_v19 }
 0x1cc   :  { %v2769_v4 = vpack.c.bf16 %v2443_v32, %v2442_v44  ;;  %1532 = vadd.xlane.f32.xlu0 %v1531_v12  ;;  %v744_v6 = vpop.xlane.xlu1 %743  ;;  %v146_v32 = vld [vmem:[%s17653_s0 + $0x3e0] sm:$0xff]  ;;  %v910_v62 = vsel %vm534_vm0, %v147_v54, 0.0 }
 0x1cd   :  { %v2141_v39 = vmul.f32 0.020408163, %v744_v6  ;;  %v741_v16 = vpop.xlane.xlu0 %740  ;;  %v11027_v12 = vld [vmem:[%s17654_s1 + $0x460] ss:$16 sps:$4 sm:$0xff]   ;;  %v4655_v6 = vrot.slane %v3727_v38, %v17731_v63  ;;  %v907_v46 = vsel %vm534_vm0, %v146_v32, 0.0 }
 0x1ce   :  { %v4000_v27 = vunpack.c.l.b16 %v2769_v4  ;;  %v4001_v2 = vunpack.c.h.b16 %v2769_v4  ;;  %v2140_v55 = vmul.f32 0.020408163, %v741_v16  ;;  %v4651_v4 = vrot.slane %v3726_v43, %v17730_v11  ;;  %9402 = vmatpush1.bf16.msra.mxu0 %v11027_v12  ;;  %v402_v54 = vld [vmem:[%s17653_s0 + $0xbe0] sm:$0xff] }
 0x1cf   :  { %1625 = vadd.xlane.f32.xlu1 %v1624_v35  ;;  %v3983_v43 = vunpack.c.h.b16 %v13535_v56  ;;  %v11041_v32 = vld [vmem:[%s17654_s1 + $0x6c4] ss:$16 sps:$4 sm:$0xff]   ;;  %v11036_v12 = vld [vmem:[%s17654_s1 + $0x420] ss:$16 sps:$4 sm:$0xff]  }
 0x1d0   :  { %v6003_v60 = vrot.slane %v4000_v27, %v17732_v25  ;;  %v6008_v18 = vrot.slane %v4001_v2, %v17733_v23  ;;  %v2618_v37 = vpack.c.bf16 %v2141_v39, %v2140_v55  ;;  %1622 = vadd.xlane.f32.xlu0 %v1621_v8  ;;  %v834_v48 = vpop.xlane.xlu1 %833  ;;  %v11032_v27 = vld [vmem:[%s17654_s1 + $0x444] ss:$16 sps:$4 sm:$0xff]  }
 0x1d1   :  { %v2171_v50 = vmul.f32 0.020408163, %v834_v48  ;;  %v831_v7 = vpop.xlane.xlu0 %830  ;;  %v11035_v2 = vld [vmem:[%s17654_s1 + $0x6e4] ss:$16 sps:$4 sm:$0xff]   ;;  %v1585_v48 = vsel %vm534_vm0, %v372_v29, 0.0  ;;  %9403 = vmatprep.subr.bf16.mxu0 %v11032_v27  ;;  %v101_v29 = vld [vmem:[%s17653_s0 + $0x278] sm:$0xff] }
 0x1d2   :  { %v6004_v3 = vsel %vm4160_vm2, %v6003_v60, %v5999_v51  ;;  %v3698_v9 = vunpack.c.l.b16 %v2618_v37  ;;  %v3699_v57 = vunpack.c.h.b16 %v2618_v37  ;;  %v2170_v45 = vmul.f32 0.020408163, %v831_v7  ;;  %v403_v7 = vld [vmem:[%s17653_s0 + $0xbe8] sm:$0xff]  ;;  %9434 = vmatprep.subr.bf16.mxu1 %v11035_v2  ;;  %v11044_v2 = vld [vmem:[%s17654_s1 + $0x404] ss:$16 sps:$4 sm:$0xff]  }
 0x1d3   :  { %v13592_v26 = vsel %vm17680_vm3, %v6008_v18, %v6004_v3  ;;  %821 = vadd.xlane.f32.xlu1 %v820_v52  ;;  %v11033_v52 = vld [vmem:[%s17654_s1 + $0x6e0] ss:$16 sps:$4 sm:$0xff]   ;;  %v3982_v51 = vunpack.c.l.b16 %v13535_v56  ;;  %v11038_v56 = vld [vmem:[%s17654_s1 + $0x424] ss:$16 sps:$4 sm:$0xff]   ;;  %v1678_v30 = vsel %vm534_vm0, %v403_v7, 0.0 }
 0x1d4   :  { %v4512_v28 = vrot.slane %v3698_v9, %v17734_v34  ;;  %v4517_v24 = vrot.slane %v3699_v57, %v17735_v47  ;;  %v2633_v44 = vpack.c.bf16 %v2171_v50, %v2170_v45  ;;  %818 = vadd.xlane.f32.xlu0 %v817_v1  ;;  %v1512_v22 = vpop.xlane.xlu1 %1511  ;;  %v4656_v1 = vsel %vm4153_vm1, %v4655_v6, %v4651_v4  ;;  %v130_v7 = vld [vmem:[%s17653_s0 + $0x360] sm:$0xff] }
 0x1d5   :  { %v2397_v35 = vmul.f32 0.020408163, %v1512_v22  ;;  %v1509_v33 = vpop.xlane.xlu0 %1508  ;;  %9435 = vmatpush1.bf16.msra.mxu1 %v11033_v52  ;;  %v5915_v4 = vrot.slane %v3982_v51, %v17730_v11  ;;  %v5919_v6 = vrot.slane %v3983_v43, %v17731_v63  ;;  %v11045_v52 = vld [vmem:[%s17654_s1 + $0x6a0] ss:$16 sps:$4 sm:$0xff]  }
 0x1d6   :  { %v4513_v39 = vsel %vm4174_vm4, %v4512_v28, %v13440_v5  ;;  %v3728_v16 = vunpack.c.l.b16 %v2633_v44  ;;  %v3729_v8 = vunpack.c.h.b16 %v2633_v44  ;;  %v2396_v53 = vmul.f32 0.020408163, %v1509_v33  ;;  %v11030_v5 = vld [vmem:[%s17654_s1 + $0x440] ss:$16 sps:$4 sm:$0xff]   ;;  %9436 = vmatprep.subr.bf16.mxu1 %v11041_v32 }
 0x1d7   :  { %v13618_v55 = vsel %vm4181_vm5, %v4517_v24, %v4513_v39  ;;  %911 = vadd.xlane.f32.xlu1 %v910_v62  ;;  %9404 = vmatpush1.bf16.msra.mxu0 %v11030_v5  ;;  %v11039_v28 = vld [vmem:[%s17654_s1 + $0x6c0] ss:$16 sps:$4 sm:$0xff]  }
 0x1d8   :  { %v4660_v15 = vrot.slane %v3728_v16, %v17732_v25  ;;  %v4665_v60 = vrot.slane %v3729_v8, %v17733_v23  ;;  %v2746_v18 = vpack.c.bf16 %v2397_v35, %v2396_v53  ;;  %908 = vadd.xlane.f32.xlu0 %v907_v46  ;;  %v1602_v37 = vpop.xlane.xlu1 %1601  ;;  %9405 = vmatprep.subr.bf16.mxu0 %v11038_v56  ;;  %v1675_v46 = vsel %vm534_vm0, %v402_v54, 0.0  ;;  %v100_v39 = vld [vmem:[%s17653_s0 + $0x270] sm:$0xff] }
 0x1d9   :  { %v2427_v38 = vmul.f32 0.020408163, %v1602_v37  ;;  %v1599_v50 = vpop.xlane.xlu0 %1598  ;;  %9437 = vmatpush1.bf16.msra.mxu1 %v11039_v28  ;;  %v11053_v56 = vld [vmem:[%s17654_s1 + $0x684] ss:$16 sps:$4 sm:$0xff]   ;;  %v11051_v28 = vld [vmem:[%s17654_s1 + $0x680] ss:$16 sps:$4 sm:$0xff]  }
 0x1da   :  { %v4661_v3 = vsel %vm4160_vm2, %v4660_v15, %v4656_v1  ;;  %v3954_v9 = vunpack.c.l.b16 %v2746_v18  ;;  %v3955_v57 = vunpack.c.h.b16 %v2746_v18  ;;  %v2426_v45 = vmul.f32 0.020408163, %v1599_v50  ;;  %v131_v50 = vld [vmem:[%s17653_s0 + $0x368] sm:$0xff] }
 0x1db   :  { %v13647_v19 = vsel %vm17680_vm3, %v4665_v60, %v4661_v3  ;;  %1589 = vadd.xlane.f32.xlu1 %v1588_v17  ;;  %9406 = vmatpush1.bf16.msra.mxu0 %v11036_v12  ;;  %v11047_v17 = vld [vmem:[%s17654_s1 + $0x6a4] ss:$16 sps:$4 sm:$0xff]   ;;  %v5920_v1 = vsel %vm4153_vm1, %v5919_v6, %v5915_v4  ;;  %v11048_v12 = vld [vmem:[%s17654_s1 + $0x5e0] ss:$16 sps:$4 sm:$0xff]   ;;  %v862_v6 = vsel %vm534_vm0, %v131_v50, 0.0 }
 0x1dc   :  { %v5776_v24 = vrot.slane %v3954_v9, %v17734_v34  ;;  %v5781_v44 = vrot.slane %v3955_v57, %v17735_v47  ;;  %v2761_v22 = vpack.c.bf16 %v2427_v38, %v2426_v45  ;;  %1586 = vadd.xlane.f32.xlu0 %v1585_v48  ;;  %v798_v62 = vpop.xlane.xlu1 %797  ;;  %v772_v48 = vsel %vm534_vm0, %v101_v29, 0.0  ;;  %9407 = vmatprep.subr.bf16.mxu0 %v11044_v2  ;;  %v11050_v45 = vld [vmem:[%s17654_s1 + $0x5e4] ss:$16 sps:$4 sm:$0xff]   ;;  %v357_v29 = vld [vmem:[%s17653_s0 + $0xa78] sm:$0xff] }
 0x1dd   :  { %v2159_v35 = vmul.f32 0.020408163, %v798_v62  ;;  %v795_v33 = vpop.xlane.xlu0 %794  ;;  %v769_v38 = vsel %vm534_vm0, %v100_v39, 0.0  ;;  %9438 = vmatprep.subr.bf16.mxu1 %v11047_v17  ;;  %v356_v39 = vld [vmem:[%s17653_s0 + $0xa70] sm:$0xff]  ;;  %v386_v50 = vld [vmem:[%s17653_s0 + $0xb60] sm:$0xff] }
 0x1de   :  { %v5777_v16 = vsel %vm4174_vm4, %v5776_v24, %v13467_v0  ;;  %v3984_v8 = vunpack.c.l.b16 %v2761_v22  ;;  %v3985_v53 = vunpack.c.h.b16 %v2761_v22  ;;  %v2158_v27 = vmul.f32 0.020408163, %v795_v33  ;;  %v11042_v0 = vld [vmem:[%s17654_s1 + $0x400] ss:$16 sps:$4 sm:$0xff]   ;;  %9439 = vmatpush1.bf16.msra.mxu1 %v11045_v52  ;;  %v11056_v2 = vld [vmem:[%s17654_s1 + $0x5c4] ss:$16 sps:$4 sm:$0xff]  }
 0x1df   :  { %v13676_v5 = vsel %vm4181_vm5, %v5781_v44, %v5777_v16  ;;  %1679 = vadd.xlane.f32.xlu1 %v1678_v30  ;;  %9408 = vmatpush1.bf16.msra.mxu0 %v11042_v0  ;;  %v17736_v24 = vld [vmem:[#allocation12_spill] sm:$0xff]  ;;  %v17737_v22 = vld [vmem:[#allocation13_spill] sm:$0xff] }
 0x1e0   :  { %v5924_v15 = vrot.slane %v3984_v8, %v17732_v25  ;;  %v5929_v60 = vrot.slane %v3985_v53, %v17733_v23  ;;  %v2627_v18 = vpack.c.bf16 %v2159_v35, %v2158_v27  ;;  %1676 = vadd.xlane.f32.xlu0 %v1675_v46  ;;  %v888_v37 = vpop.xlane.xlu1 %887  ;;  %9409 = vmatprep.subr.bf16.mxu0 %v11050_v45  ;;  %v859_v46 = vsel %vm534_vm0, %v130_v7, 0.0  ;;  %v11059_v17 = vld [vmem:[%s17654_s1 + $0x664] ss:$16 sps:$4 sm:$0xff]   ;;  %v11057_v52 = vld [vmem:[%s17654_s1 + $0x660] ss:$16 sps:$4 sm:$0xff]  }
 0x1e1   :  { %v2189_v51 = vmul.f32 0.020408163, %v888_v37  ;;  %v885_v43 = vpop.xlane.xlu0 %884  ;;  %9440 = vmatprep.subr.bf16.mxu1 %v11053_v56  ;;  %v11065_v45 = vld [vmem:[%s17654_s1 + $0x644] ss:$16 sps:$4 sm:$0xff]  }
 0x1e2   :  { %v5925_v54 = vsel %vm4160_vm2, %v5924_v15, %v5920_v1  ;;  %v3716_v3 = vunpack.c.l.b16 %v2627_v18  ;;  %v3717_v9 = vunpack.c.h.b16 %v2627_v18  ;;  %v2188_v57 = vmul.f32 0.020408163, %v885_v43  ;;  %9441 = vmatpush1.bf16.msra.mxu1 %v11051_v28 }
 0x1e3   :  { %v13703_v32 = vsel %vm17680_vm3, %v5929_v60, %v5925_v54  ;;  %773 = vadd.xlane.f32.xlu1 %v772_v48  ;;  %9410 = vmatpush2.bf16.msra.mxu0 %v11048_v12  ;;  %vm17738_vm3 = vcmask 523712   ;;  %v1540_v48 = vsel %vm534_vm0, %v357_v29, 0.0  ;;  %v1537_v43 = vsel %vm534_vm0, %v356_v39, 0.0  ;;  %v11063_v12 = vld [vmem:[%s17654_s1 + $0x640] ss:$16 sps:$4 sm:$0xff]  }
 0x1e4   :  { %v4601_v44 = vrot.slane %v3716_v3, %v17736_v24  ;;  %v4606_v62 = vrot.slane %v3717_v9, %v17737_v22  ;;  %v2642_v30 = vpack.c.bf16 %v2189_v51, %v2188_v57  ;;  %770 = vadd.xlane.f32.xlu0 %v769_v38  ;;  %v1566_v4 = vpop.xlane.xlu1 %1565  ;;  %9411 = vmatprep.subr.bf16.mxu0 %v11056_v2  ;;  %v387_v38 = vld [vmem:[%s17653_s0 + $0xb68] sm:$0xff]  ;;  %v11062_v57 = vld [vmem:[%s17654_s1 + $0x5a4] ss:$16 sps:$4 sm:$0xff]  }
 0x1e5   :  { %v2415_v35 = vmul.f32 0.020408163, %v1566_v4  ;;  %v1563_v33 = vpop.xlane.xlu0 %1562  ;;  %9442 = vmatprep.subr.bf16.mxu1 %v11059_v17  ;;  %v1630_v4 = vsel %vm534_vm0, %v387_v38, 0.0  ;;  %v148_v29 = vld [vmem:[%s17653_s0 + $0x3f0] sm:$0xff] }
 0x1e6   :  { %v4602_v16 = vsel %vm4188_vm6, %v4601_v44, %v13494_v13  ;;  %v3746_v8 = vunpack.c.l.b16 %v2642_v30  ;;  %v3747_v53 = vunpack.c.h.b16 %v2642_v30  ;;  %v2414_v27 = vmul.f32 0.020408163, %v1563_v33  ;;  %v11054_v13 = vld [vmem:[%s17654_s1 + $0x5c0] ss:$16 sps:$4 sm:$0xff]   ;;  %9443 = vmatpush1.bf16.msra.mxu1 %v11057_v52  ;;  %v11071_v2 = vld [vmem:[%s17654_s1 + $0x624] ss:$16 sps:$4 sm:$0xff]  }
 0x1e7   :  { %v13730_v0 = vsel %vm17738_vm3, %v4606_v62, %v4602_v16  ;;  %863 = vadd.xlane.f32.xlu1 %v862_v6  ;;  %9412 = vmatpush2.bf16.msra.mxu0 %v11054_v13  ;;  %v1627_v33 = vsel %vm534_vm0, %v386_v50, 0.0  ;;  %v11069_v13 = vld [vmem:[%s17654_s1 + $0x620] ss:$16 sps:$4 sm:$0xff]  }
 0x1e8   :  { %v4749_v15 = vrot.slane %v3746_v8, %v17734_v34  ;;  %v4754_v60 = vrot.slane %v3747_v53, %v17735_v47  ;;  %v2755_v18 = vpack.c.bf16 %v2415_v35, %v2414_v27  ;;  %860 = vadd.xlane.f32.xlu0 %v859_v46  ;;  %v1656_v37 = vpop.xlane.xlu1 %1655  ;;  %9413 = vmatprep.subr.bf16.mxu0 %v11062_v57  ;;  %v149_v46 = vld [vmem:[%s17653_s0 + $0x3f8] sm:$0xff]  ;;  %v11068_v27 = vld [vmem:[%s17654_s1 + $0x584] ss:$16 sps:$4 sm:$0xff]  }
 0x1e9   :  { %v2445_v1 = vmul.f32 0.020408163, %v1656_v37  ;;  %v1653_v51 = vpop.xlane.xlu0 %1652  ;;  %9444 = vmatprep.subr.bf16.mxu1 %v11065_v45  ;;  %v916_v37 = vsel %vm534_vm0, %v149_v46, 0.0  ;;  %v404_v38 = vld [vmem:[%s17653_s0 + $0xbf0] sm:$0xff] }
 0x1ea   :  { %v4750_v7 = vsel %vm4174_vm4, %v4749_v15, %v13528_v59  ;;  %v3972_v54 = vunpack.c.l.b16 %v2755_v18  ;;  %v3973_v3 = vunpack.c.h.b16 %v2755_v18  ;;  %v2444_v9 = vmul.f32 0.020408163, %v1653_v51  ;;  %v11060_v59 = vld [vmem:[%s17654_s1 + $0x5a0] ss:$16 sps:$4 sm:$0xff]   ;;  %9445 = vmatpush1.bf16.msra.mxu1 %v11063_v12  ;;  %v11077_v57 = vld [vmem:[%s17654_s1 + $0x604] ss:$16 sps:$4 sm:$0xff]  }
 0x1eb   :  { %v13757_v56 = vsel %vm4181_vm5, %v4754_v60, %v4750_v7  ;;  %1541 = vadd.xlane.f32.xlu1 %v1540_v48  ;;  %9414 = vmatpush2.bf16.msra.mxu0 %v11060_v59  ;;  %v913_v51 = vsel %vm534_vm0, %v148_v29, 0.0  ;;  %v11075_v59 = vld [vmem:[%s17654_s1 + $0x600] ss:$16 sps:$4 sm:$0xff]  }
 0x1ec   :  { %v5865_v28 = vrot.slane %v3972_v54, %v17736_v24  ;;  %v5870_v44 = vrot.slane %v3973_v3, %v17737_v22  ;;  %v2770_v62 = vpack.c.bf16 %v2445_v1, %v2444_v9  ;;  %1538 = vadd.xlane.f32.xlu0 %v1537_v43  ;;  %v750_v30 = vpop.xlane.xlu1 %749  ;;  %9415 = vmatprep.subr.bf16.mxu0 %v11068_v27  ;;  %v405_v43 = vld [vmem:[%s17653_s0 + $0xbf8] sm:$0xff]  ;;  %v11074_v9 = vld [vmem:[%s17654_s1 + $0x564] ss:$16 sps:$4 sm:$0xff]  }
 0x1ed   :  { %v2143_v6 = vmul.f32 0.020408163, %v750_v30  ;;  %v747_v35 = vpop.xlane.xlu0 %746  ;;  %9446 = vmatprep.subr.bf16.mxu1 %v11071_v2  ;;  %v1684_v30 = vsel %vm534_vm0, %v405_v43, 0.0  ;;  %v132_v46 = vld [vmem:[%s17653_s0 + $0x370] sm:$0xff] }
 0x1ee   :  { %v5866_v39 = vsel %vm4188_vm6, %v5865_v28, %v13553_v58  ;;  %v4002_v16 = vunpack.c.l.b16 %v2770_v62  ;;  %v4003_v8 = vunpack.c.h.b16 %v2770_v62  ;;  %v2142_v53 = vmul.f32 0.020408163, %v747_v35  ;;  %v11066_v58 = vld [vmem:[%s17654_s1 + $0x580] ss:$16 sps:$4 sm:$0xff]   ;;  %9447 = vmatpush1.bf16.msra.mxu1 %v11069_v13  ;;  %v11083_v27 = vld [vmem:[%s17654_s1 + $0x7e4] ss:$16 sps:$4 sm:$0xff]  }
 0x1ef   :  { %v13784_v17 = vsel %vm17738_vm3, %v5870_v44, %v5866_v39  ;;  %1631 = vadd.xlane.f32.xlu1 %v1630_v4  ;;  %9416 = vmatpush2.bf16.msra.mxu0 %v11066_v58  ;;  %v1681_v35 = vsel %vm534_vm0, %v404_v38, 0.0  ;;  %v11081_v58 = vld [vmem:[%s17654_s1 + $0x7e0] ss:$16 sps:$4 sm:$0xff]  }
 0x1f0   :  { %v6013_v52 = vrot.slane %v4002_v16, %v17734_v34  ;;  %v6018_v15 = vrot.slane %v4003_v8, %v17735_v47  ;;  %v2619_v60 = vpack.c.bf16 %v2143_v6, %v2142_v53  ;;  %1628 = vadd.xlane.f32.xlu0 %v1627_v33  ;;  %v840_v18 = vpop.xlane.xlu1 %839  ;;  %9417 = vmatprep.subr.bf16.mxu0 %v11074_v9  ;;  %v133_v33 = vld [vmem:[%s17653_s0 + $0x378] sm:$0xff]  ;;  %v11080_v53 = vld [vmem:[%s17654_s1 + $0x544] ss:$16 sps:$4 sm:$0xff]  }
 0x1f1   :  { %v2173_v48 = vmul.f32 0.020408163, %v840_v18  ;;  %v837_v1 = vpop.xlane.xlu0 %836  ;;  %9448 = vmatprep.subr.bf16.mxu1 %v11077_v57  ;;  %v868_v18 = vsel %vm534_vm0, %v133_v33, 0.0  ;;  %v388_v43 = vld [vmem:[%s17653_s0 + $0xb70] sm:$0xff]  ;;  %v166_v33 = vld [vmem:[%s17653_s0 + $0x480] sm:$0xff] }
 0x1f2   :  { %v6014_v50 = vsel %vm4174_vm4, %v6013_v52, %v13592_v26  ;;  %v3700_v7 = vunpack.c.l.b16 %v2619_v60  ;;  %v3701_v54 = vunpack.c.h.b16 %v2619_v60  ;;  %v2172_v3 = vmul.f32 0.020408163, %v837_v1  ;;  %v11072_v26 = vld [vmem:[%s17654_s1 + $0x560] ss:$16 sps:$4 sm:$0xff]   ;;  %9449 = vmatpush1.bf16.msra.mxu1 %v11075_v59  ;;  %v11089_v9 = vld [vmem:[%s17654_s1 + $0x7c4] ss:$16 sps:$4 sm:$0xff]  }
 0x1f3   :  { %v13811_v45 = vsel %vm4181_vm5, %v6018_v15, %v6014_v50  ;;  %917 = vadd.xlane.f32.xlu1 %v916_v37  ;;  %9418 = vmatpush2.bf16.msra.mxu0 %v11072_v26  ;;  %v865_v1 = vsel %vm534_vm0, %v132_v46, 0.0  ;;  %v11087_v26 = vld [vmem:[%s17654_s1 + $0x7c0] ss:$16 sps:$4 sm:$0xff]  }
 0x1f4   :  { %v4522_v12 = vrot.slane %v3700_v7, %v17736_v24  ;;  %v4527_v28 = vrot.slane %v3701_v54, %v17737_v22  ;;  %v2634_v44 = vpack.c.bf16 %v2173_v48, %v2172_v3  ;;  %914 = vadd.xlane.f32.xlu0 %v913_v51  ;;  %v1518_v62 = vpop.xlane.xlu1 %1517  ;;  %9419 = vmatprep.subr.bf16.mxu0 %v11080_v53  ;;  %v389_v51 = vld [vmem:[%s17653_s0 + $0xb78] sm:$0xff]  ;;  %v11086_v3 = vld [vmem:[%s17654_s1 + $0x524] ss:$16 sps:$4 sm:$0xff]  }
 0x1f5   :  { %v2399_v4 = vmul.f32 0.020408163, %v1518_v62  ;;  %v1515_v6 = vpop.xlane.xlu0 %1514  ;;  %9450 = vmatprep.subr.bf16.mxu1 %v11083_v27  ;;  %v1636_v62 = vsel %vm534_vm0, %v389_v51, 0.0  ;;  %v11095_v53 = vld [vmem:[%s17654_s1 + $0x7a4] ss:$16 sps:$4 sm:$0xff]  }
 0x1f6   :  { %v4523_v29 = vsel %vm4188_vm6, %v4522_v12, %v13618_v55  ;;  %v3730_v39 = vunpack.c.l.b16 %v2634_v44  ;;  %v3731_v16 = vunpack.c.h.b16 %v2634_v44  ;;  %v2398_v8 = vmul.f32 0.020408163, %v1515_v6  ;;  %v11078_v55 = vld [vmem:[%s17654_s1 + $0x540] ss:$16 sps:$4 sm:$0xff]   ;;  %9451 = vmatpush2.bf16.msra.mxu1 %v11081_v58 }
 0x1f7   :  { %v13838_v2 = vsel %vm17738_vm3, %v4527_v28, %v4523_v29  ;;  %1685 = vadd.xlane.f32.xlu1 %v1684_v30  ;;  %9420 = vmatpush2.bf16.msra.mxu0 %v11078_v55  ;;  %v1633_v6 = vsel %vm534_vm0, %v388_v43, 0.0  ;;  %v11093_v55 = vld [vmem:[%s17654_s1 + $0x7a0] ss:$16 sps:$4 sm:$0xff]  }
 0x1f8   :  { %v4670_v13 = vrot.slane %v3730_v39, %v17734_v34  ;;  %v4675_v52 = vrot.slane %v3731_v16, %v17735_v47  ;;  %v2747_v15 = vpack.c.bf16 %v2399_v4, %v2398_v8  ;;  %1682 = vadd.xlane.f32.xlu0 %v1681_v35  ;;  %v1608_v60 = vpop.xlane.xlu1 %1607  ;;  %9421 = vmatprep.subr.bf16.mxu0 %v11086_v3  ;;  %v167_v35 = vld [vmem:[%s17653_s0 + $0x488] sm:$0xff]  ;;  %v11092_v8 = vld [vmem:[%s17654_s1 + $0x504] ss:$16 sps:$4 sm:$0xff]  }
 0x1f9   :  { %v2429_v37 = vmul.f32 0.020408163, %v1608_v60  ;;  %v1605_v48 = vpop.xlane.xlu0 %1604  ;;  %9452 = vmatprep.subr.bf16.mxu1 %v11089_v9  ;;  %v970_v60 = vsel %vm534_vm0, %v167_v35, 0.0  ;;  %v17739_v9 = vld [vmem:[#allocation14_spill] sm:$0xff] }
 0x1fa   :  { %v4671_v38 = vsel %vm4174_vm4, %v4670_v13, %v13647_v19  ;;  %v3956_v50 = vunpack.c.l.b16 %v2747_v15  ;;  %v3957_v7 = vunpack.c.h.b16 %v2747_v15  ;;  %v2428_v54 = vmul.f32 0.020408163, %v1605_v48  ;;  %v11084_v19 = vld [vmem:[%s17654_s1 + $0x520] ss:$16 sps:$4 sm:$0xff]   ;;  %9453 = vmatpush2.bf16.msra.mxu1 %v11087_v26 }
 0x1fb   :  { %v13865_v57 = vsel %vm4181_vm5, %v4675_v52, %v4671_v38  ;;  %869 = vadd.xlane.f32.xlu1 %v868_v18  ;;  %9422 = vmatpush2.bf16.msra.mxu0 %v11084_v19  ;;  %v967_v48 = vsel %vm534_vm0, %v166_v33, 0.0 }
 0x1fc   :  { %v5786_v59 = vrot.slane %v3956_v50, %v17736_v24  ;;  %v5791_v12 = vrot.slane %v3957_v7, %v17737_v22  ;;  %v2762_v28 = vpack.c.bf16 %v2429_v37, %v2428_v54  ;;  %866 = vadd.xlane.f32.xlu0 %v865_v1  ;;  %v804_v44 = vpop.xlane.xlu1 %803  ;;  %9423 = vmatprep.subr.bf16.mxu0 %v11092_v8  ;;  %v423_v1 = vld [vmem:[%s17653_s0 + $0xc88] sm:$0xff]  ;;  %v422_v7 = vld [vmem:[%s17653_s0 + $0xc80] sm:$0xff] }
 0x1fd   :  { %v2161_v30 = vmul.f32 0.020408163, %v804_v44  ;;  %v801_v4 = vpop.xlane.xlu0 %800  ;;  %9454 = vmatprep.subr.bf16.mxu1 %v11095_v53  ;;  %v11098_v54 = vld [vmem:[%s17654_s1 + $0x784] ss:$16 sps:$4 sm:$0xff]  }
 0x1fe   :  { %v5787_v46 = vsel %vm4188_vm6, %v5786_v59, %v13676_v5  ;;  %v3986_v29 = vunpack.c.l.b16 %v2762_v28  ;;  %v3987_v39 = vunpack.c.h.b16 %v2762_v28  ;;  %v2160_v16 = vmul.f32 0.020408163, %v801_v4  ;;  %v11090_v5 = vld [vmem:[%s17654_s1 + $0x500] ss:$16 sps:$4 sm:$0xff]   ;;  %9455 = vmatpush2.bf16.msra.mxu1 %v11093_v55  ;;  %v151_v4 = vld [vmem:[%s17653_s0 + $0x408] sm:$0xff] }
 0x1ff   :  { %v13892_v27 = vsel %vm17738_vm3, %v5791_v12, %v5787_v46  ;;  %1637 = vadd.xlane.f32.xlu1 %v1636_v62  ;;  %9424 = vmatpush2.bf16.msra.mxu0 %v11090_v5  ;;  %v1738_v28 = vsel %vm534_vm0, %v423_v1, 0.0 }
 0x200   :  { %v5934_v58 = vrot.slane %v3986_v29, %v17734_v34  ;;  %v5939_v13 = vrot.slane %v3987_v39, %v17735_v47  ;;  %v2628_v52 = vpack.c.bf16 %v2161_v30, %v2160_v16  ;;  %1634 = vadd.xlane.f32.xlu0 %v1633_v6  ;;  %v894_v15 = vpop.xlane.xlu1 %893  ;;  %9456 = vmatprep.subr.bf16.mxu1 %v11098_v54  ;;  %v1735_v30 = vsel %vm534_vm0, %v422_v7, 0.0  ;;  %v150_v29 = vld [vmem:[%s17653_s0 + $0x400] sm:$0xff] }
 0x201   :  { %v2191_v18 = vmul.f32 0.020408163, %v894_v15  ;;  %v891_v37 = vpop.xlane.xlu0 %890  ;;  %v11101_v39 = vld [vmem:[%s17654_s1 + $0x764] ss:$16 sps:$4 sm:$0xff]   ;;  %v919_v15 = vsel %vm534_vm0, %v150_v29, 0.0 }
 0x202   :  { %v5935_v51 = vsel %vm4174_vm4, %v5934_v58, %v13703_v32  ;;  %v3718_v43 = vunpack.c.l.b16 %v2628_v52  ;;  %v3719_v38 = vunpack.c.h.b16 %v2628_v52  ;;  %v2190_v50 = vmul.f32 0.020408163, %v891_v37  ;;  %v11096_v32 = vld [vmem:[%s17654_s1 + $0x780] ss:$16 sps:$4 sm:$0xff]  }
 0x203   :  { %v13916_v3 = vsel %vm4181_vm5, %v5939_v13, %v5935_v51  ;;  %971 = vadd.xlane.f32.xlu1 %v970_v60  ;;  %9457 = vmatpush2.bf16.msra.mxu1 %v11096_v32  ;;  %v922_v58 = vsel %vm534_vm0, %v151_v4, 0.0  ;;  %v169_v60 = vld [vmem:[%s17653_s0 + $0x498] sm:$0xff]  ;;  %v168_v51 = vld [vmem:[%s17653_s0 + $0x490] sm:$0xff] }
 0x204   :  { %v4611_v19 = vrot.slane %v3718_v43, %v17739_v9  ;;  %v4616_v26 = vrot.slane %v3719_v38, %v12152_v36  ;;  %v2643_v59 = vpack.c.bf16 %v2191_v18, %v2190_v50  ;;  %968 = vadd.xlane.f32.xlu0 %v967_v48  ;;  %v1572_v12 = vpop.xlane.xlu1 %1571  ;;  %9458 = vmatprep.subr.bf16.mxu1 %v11101_v39  ;;  %v11104_v43 = vld [vmem:[%s17654_s1 + $0x744] ss:$16 sps:$4 sm:$0xff]  }
 0x205   :  { %v2417_v44 = vmul.f32 0.020408163, %v1572_v12  ;;  %v1569_v62 = vpop.xlane.xlu0 %1568  ;;  %v973_v12 = vsel %vm534_vm0, %v168_v51, 0.0 }
 0x206   :  { %v4612_v6 = vsel %vm4202_vm8, %v4611_v19, %v13730_v0  ;;  %v3748_v35 = vunpack.c.l.b16 %v2643_v59  ;;  %v3749_v33 = vunpack.c.h.b16 %v2643_v59  ;;  %v2416_v46 = vmul.f32 0.020408163, %v1569_v62  ;;  %v11099_v0 = vld [vmem:[%s17654_s1 + $0x760] ss:$16 sps:$4 sm:$0xff]  }
 0x207   :  { %v13937_v16 = vsel %vm4209_vm9, %v4616_v26, %v4612_v6  ;;  %1739 = vadd.xlane.f32.xlu1 %v1738_v28  ;;  %9459 = vmatpush2.bf16.msra.mxu1 %v11099_v0  ;;  %v976_v19 = vsel %vm534_vm0, %v169_v60, 0.0  ;;  %v407_v28 = vld [vmem:[%s17653_s0 + $0xc08] sm:$0xff]  ;;  %v406_v6 = vld [vmem:[%s17653_s0 + $0xc00] sm:$0xff] }
 0x208   :  { %v4759_v8 = vrot.slane %v3748_v35, %v17736_v24  ;;  %v4764_v53 = vrot.slane %v3749_v33, %v17737_v22  ;;  %v2756_v5 = vpack.c.bf16 %v2417_v44, %v2416_v46  ;;  %1736 = vadd.xlane.f32.xlu0 %v1735_v30  ;;  %v1662_v55 = vpop.xlane.xlu1 %1661  ;;  %9460 = vmatprep.subr.bf16.mxu1 %v11104_v43  ;;  %v11107_v35 = vld [vmem:[%s17654_s1 + $0x724] ss:$16 sps:$4 sm:$0xff]  }
 0x209   :  { %v2447_v13 = vmul.f32 0.020408163, %v1662_v55  ;;  %v1659_v52 = vpop.xlane.xlu0 %1658  ;;  %v1687_v55 = vsel %vm534_vm0, %v406_v6, 0.0 }
 0x20a   :  { %v4760_v18 = vsel %vm4188_vm6, %v4759_v8, %v13757_v56  ;;  %v3974_v37 = vunpack.c.l.b16 %v2756_v5  ;;  %v3975_v48 = vunpack.c.h.b16 %v2756_v5  ;;  %v2446_v1 = vmul.f32 0.020408163, %v1659_v52  ;;  %v11102_v56 = vld [vmem:[%s17654_s1 + $0x740] ss:$16 sps:$4 sm:$0xff]  }
 0x20b   :  { %v13958_v38 = vsel %vm17738_vm3, %v4764_v53, %v4760_v18  ;;  %923 = vadd.xlane.f32.xlu1 %v922_v58  ;;  %9461 = vmatpush2.bf16.msra.mxu1 %v11102_v56  ;;  %v1690_v8 = vsel %vm534_vm0, %v407_v28, 0.0  ;;  %v425_v58 = vld [vmem:[%s17653_s0 + $0xc98] sm:$0xff]  ;;  %v424_v18 = vld [vmem:[%s17653_s0 + $0xc90] sm:$0xff] }
 0x20c   :  { %v5875_v50 = vrot.slane %v3974_v37, %v17739_v9  ;;  %v5880_v7 = vrot.slane %v3975_v48, %v12152_v36  ;;  %v2771_v54 = vpack.c.bf16 %v2447_v13, %v2446_v1  ;;  %920 = vadd.xlane.f32.xlu0 %v919_v15  ;;  %v756_v32 = vpop.xlane.xlu1 %755  ;;  %9462 = vmatprep.subr.bf16.mxu1 %v11107_v35  ;;  %v11110_v37 = vld [vmem:[%s17654_s1 + $0x704] ss:$16 sps:$4 sm:$0xff]  }
 0x20d   :  { %v2145_v26 = vmul.f32 0.020408163, %v756_v32  ;;  %v753_v59 = vpop.xlane.xlu0 %752  ;;  %v1741_v32 = vsel %vm534_vm0, %v424_v18, 0.0 }
 0x20e   :  { %v5876_v44 = vsel %vm4202_vm8, %v5875_v50, %v13784_v17  ;;  %v4004_v62 = vunpack.c.l.b16 %v2771_v54  ;;  %v4005_v30 = vunpack.c.h.b16 %v2771_v54  ;;  %v2144_v4 = vmul.f32 0.020408163, %v753_v59  ;;  %v11105_v17 = vld [vmem:[%s17654_s1 + $0x720] ss:$16 sps:$4 sm:$0xff]  }
 0x20f   :  { %v13979_v33 = vsel %vm4209_vm9, %v5880_v7, %v5876_v44  ;;  %977 = vadd.xlane.f32.xlu1 %v976_v19  ;;  %9463 = vmatpush2.bf16.msra.mxu1 %v11105_v17  ;;  %v1744_v50 = vsel %vm534_vm0, %v425_v58, 0.0  ;;  %v153_v19 = vld [vmem:[%s17653_s0 + $0x418] sm:$0xff]  ;;  %v152_v44 = vld [vmem:[%s17653_s0 + $0x410] sm:$0xff] }
 0x210   :  { %v6023_v46 = vrot.slane %v4004_v62, %v17736_v24  ;;  %v6028_v29 = vrot.slane %v4005_v30, %v17737_v22  ;;  %v2620_v39 = vpack.c.bf16 %v2145_v26, %v2144_v4  ;;  %974 = vadd.xlane.f32.xlu0 %v973_v12  ;;  %v846_v0 = vpop.xlane.xlu1 %845  ;;  %9464 = vmatprep.subr.bf16.mxu1 %v11110_v37 }
 0x211   :  { %v2175_v53 = vmul.f32 0.020408163, %v846_v0  ;;  %v843_v5 = vpop.xlane.xlu0 %842 }
 0x212   :  { %v6024_v13 = vsel %vm4188_vm6, %v6023_v46, %v13811_v45  ;;  %v3702_v52 = vunpack.c.l.b16 %v2620_v39  ;;  %v3703_v15 = vunpack.c.h.b16 %v2620_v39  ;;  %v2174_v60 = vmul.f32 0.020408163, %v843_v5  ;;  %v11108_v45 = vld [vmem:[%s17654_s1 + $0x700] ss:$16 sps:$4 sm:$0xff]   ;;  %v199_v39 = vld [vmem:[%s17653_s0 + $0x588] sm:$0xff] }
 0x213   :  { %v14000_v48 = vsel %vm17738_vm3, %v6028_v29, %v6024_v13  ;;  %1691 = vadd.xlane.f32.xlu1 %v1690_v8  ;;  %9465 = vmatpush2.bf16.msra.mxu1 %v11108_v45  ;;  %v925_v29 = vsel %vm534_vm0, %v152_v44, 0.0 }
 0x214   :  { %v4532_v1 = vrot.slane %v3702_v52, %v17739_v9  ;;  %v4537_v51 = vrot.slane %v3703_v15, %v12152_v36  ;;  %v2635_v43 = vpack.c.bf16 %v2175_v53, %v2174_v60  ;;  %1688 = vadd.xlane.f32.xlu0 %v1687_v55  ;;  %v1524_v56 = vpop.xlane.xlu1 %1523  ;;  %v198_v55 = vld [vmem:[%s17653_s0 + $0x580] sm:$0xff] }
 0x215   :  { %v2401_v7 = vmul.f32 0.020408163, %v1524_v56  ;;  %v1521_v54 = vpop.xlane.xlu0 %1520  ;;  %v1063_v45 = vsel %vm534_vm0, %v198_v55, 0.0  ;;  %v171_v55 = vld [vmem:[%s17653_s0 + $0x4a8] sm:$0xff] }
 0x216   :  { %v4533_v26 = vsel %vm4202_vm8, %v4532_v1, %v13838_v2  ;;  %v3732_v59 = vunpack.c.l.b16 %v2635_v43  ;;  %v3733_v12 = vunpack.c.h.b16 %v2635_v43  ;;  %v2400_v28 = vmul.f32 0.020408163, %v1521_v54  ;;  %v409_v1 = vld [vmem:[%s17653_s0 + $0xc18] sm:$0xff] }
 0x217   :  { %v14018_v62 = vsel %vm4209_vm9, %v4537_v51, %v4533_v26  ;;  %1745 = vadd.xlane.f32.xlu1 %v1744_v50  ;;  %v928_v2 = vsel %vm534_vm0, %v153_v19, 0.0 }
 0x218   :  { %v4680_v30 = vrot.slane %v3732_v59, %v17736_v24  ;;  %v4685_v4 = vrot.slane %v3733_v12, %v17737_v22  ;;  %v2748_v6 = vpack.c.bf16 %v2401_v7, %v2400_v28  ;;  %1742 = vadd.xlane.f32.xlu0 %v1741_v32  ;;  %v1614_v35 = vpop.xlane.xlu1 %1613  ;;  %v408_v7 = vld [vmem:[%s17653_s0 + $0xc10] sm:$0xff] }
 0x219   :  { %v2431_v17 = vmul.f32 0.020408163, %v1614_v35  ;;  %v1611_v46 = vpop.xlane.xlu0 %1610  ;;  %v1693_v44 = vsel %vm534_vm0, %v408_v7, 0.0 }
 0x21a   :  { %v4681_v0 = vsel %vm4188_vm6, %v4680_v30, %v13865_v57  ;;  %v3958_v8 = vunpack.c.l.b16 %v2748_v6  ;;  %v3959_v53 = vunpack.c.h.b16 %v2748_v6  ;;  %v2430_v5 = vmul.f32 0.020408163, %v1611_v46  ;;  %v455_v30 = vld [vmem:[%s17653_s0 + $0xd88] sm:$0xff] }
 0x21b   :  { %v14033_v58 = vsel %vm17738_vm3, %v4685_v4, %v4681_v0  ;;  %929 = vadd.xlane.f32.xlu1 %v928_v2  ;;  %v1066_v57 = vsel %vm534_vm0, %v199_v39, 0.0 }
 0x21c   :  { %v5796_v13 = vrot.slane %v3958_v8, %v17739_v9  ;;  %v5801_v52 = vrot.slane %v3959_v53, %v12152_v36  ;;  %v2763_v15 = vpack.c.bf16 %v2431_v17, %v2430_v5  ;;  %926 = vadd.xlane.f32.xlu0 %v925_v29  ;;  %v810_v60 = vpop.xlane.xlu1 %809  ;;  %v454_v17 = vld [vmem:[%s17653_s0 + $0xd80] sm:$0xff] }
 0x21d   :  { %v2163_v18 = vmul.f32 0.020408163, %v810_v60  ;;  %v807_v37 = vpop.xlane.xlu0 %806  ;;  %v1831_v5 = vsel %vm534_vm0, %v454_v17, 0.0  ;;  %v170_v60 = vld [vmem:[%s17653_s0 + $0x4a0] sm:$0xff] }
 0x21e   :  { %v5797_v51 = vsel %vm4202_vm8, %v5796_v13, %v13892_v27  ;;  %v3988_v43 = vunpack.c.l.b16 %v2763_v15  ;;  %v3989_v56 = vunpack.c.h.b16 %v2763_v15  ;;  %v2162_v50 = vmul.f32 0.020408163, %v807_v37 }
 0x21f   :  { %v14048_v54 = vsel %vm4209_vm9, %v5801_v52, %v5797_v51  ;;  %1067 = vadd.xlane.f32.xlu1 %v1066_v57  ;;  %v1696_v27 = vsel %vm534_vm0, %v409_v1, 0.0  ;;  %v982_v1 = vsel %vm534_vm0, %v171_v55, 0.0 }
 0x220   :  { %v5944_v32 = vrot.slane %v3988_v43, %v17736_v24  ;;  %v5949_v19 = vrot.slane %v3989_v56, %v17737_v22  ;;  %v2629_v26 = vpack.c.bf16 %v2163_v18, %v2162_v50  ;;  %1064 = vadd.xlane.f32.xlu0 %v1063_v45  ;;  %v900_v59 = vpop.xlane.xlu1 %899  ;;  %v979_v43 = vsel %vm534_vm0, %v170_v60, 0.0  ;;  %v183_v56 = vld [vmem:[%s17653_s0 + $0x508] sm:$0xff] }
 0x221   :  { %v2193_v12 = vmul.f32 0.020408163, %v900_v59  ;;  %v897_v28 = vpop.xlane.xlu0 %896  ;;  %v14338_v24 = vsel %vm534_vm0, %v413_v42, 0.0 }
 0x222   :  { %v5945_v4 = vsel %vm4188_vm6, %v5944_v32, %v13916_v3  ;;  %v3720_v6 = vunpack.c.l.b16 %v2629_v26  ;;  %v3721_v35 = vunpack.c.h.b16 %v2629_v26  ;;  %v2192_v2 = vmul.f32 0.020408163, %v897_v28  ;;  %v182_v32 = vld [vmem:[%s17653_s0 + $0x500] sm:$0xff] }
 0x223   :  { %v14063_v46 = vsel %vm17738_vm3, %v5949_v19, %v5945_v4  ;;  %1697 = vadd.xlane.f32.xlu1 %v1696_v27  ;;  %v1834_v3 = vsel %vm534_vm0, %v455_v30, 0.0  ;;  %v1018_v27 = vsel %vm534_vm0, %v183_v56, 0.0  ;;  %vm17757_vm3 = vcmask 261312  }
 0x224   :  { %v4621_v29 = vrot.slane %v3720_v6, %v12165_v49  ;;  %v4626_v39 = vrot.slane %v3721_v35, %v12172_v61  ;;  %v2644_v0 = vpack.c.bf16 %v2193_v12, %v2192_v2  ;;  %1694 = vadd.xlane.f32.xlu0 %v1693_v44  ;;  %v14067_v8 = vpop.xlane.xlu1 %1577  ;;  %v1015_v44 = vsel %vm534_vm0, %v182_v32, 0.0  ;;  %v200_v35 = vld [vmem:[%s17653_s0 + $0x590] sm:$0xff] }
 0x225   :  { %v14070_v53 = vpop.xlane.xlu0 %1574  ;;  %v1069_v55 = vsel %vm534_vm0, %v200_v35, 0.0  ;;  %v457_v35 = vld [vmem:[%s17653_s0 + $0xd98] sm:$0xff] }
 0x226   :  { %v4622_v13 = vsel %vm4216_vm10, %v4621_v29, %v13937_v16  ;;  %v3750_v52 = vunpack.c.l.b16 %v2644_v0  ;;  %v3751_v15 = vunpack.c.h.b16 %v2644_v0 }
 0x227   :  { %v14082_v57 = vsel %vm4223_vm11, %v4626_v39, %v4622_v13  ;;  %1835 = vadd.xlane.f32.xlu1 %v1834_v3  ;;  %v427_v13 = vld [vmem:[%s17653_s0 + $0xca8] sm:$0xff] }
 0x228   :  { %v4769_v18 = vrot.slane %v3750_v52, %v17739_v9  ;;  %v4774_v37 = vrot.slane %v3751_v15, %v12152_v36  ;;  %1832 = vadd.xlane.f32.xlu0 %v1831_v5  ;;  %v1668_v45 = vpop.xlane.xlu1 %1667 }
 0x229   :  { %v2449_v51 = vmul.f32 0.020408163, %v1668_v45  ;;  %v1665_v16 = vpop.xlane.xlu0 %1664 }
 0x22a   :  { %v4770_v50 = vsel %vm4202_vm8, %v4769_v18, %v13958_v38  ;;  %v2448_v7 = vmul.f32 0.020408163, %v1665_v16  ;;  %v201_v38 = vld [vmem:[%s17653_s0 + $0x598] sm:$0xff] }
 0x22b   :  { %v14097_v19 = vsel %vm4209_vm9, %v4774_v37, %v4770_v50  ;;  %983 = vadd.xlane.f32.xlu1 %v982_v1  ;;  %v1072_v0 = vsel %vm534_vm0, %v201_v38, 0.0  ;;  %v426_v37 = vld [vmem:[%s17653_s0 + $0xca0] sm:$0xff] }
 0x22c   :  { %v2772_v26 = vpack.c.bf16 %v2449_v51, %v2448_v7  ;;  %980 = vadd.xlane.f32.xlu0 %v979_v43  ;;  %v762_v59 = vpop.xlane.xlu1 %761  ;;  %v1747_v50 = vsel %vm534_vm0, %v426_v37, 0.0  ;;  %v439_v7 = vld [vmem:[%s17653_s0 + $0xd08] sm:$0xff] }
 0x22d   :  { %v2147_v12 = vmul.f32 0.020408163, %v762_v59  ;;  %v759_v28 = vpop.xlane.xlu0 %758 }
 0x22e   :  { %v4006_v30 = vunpack.c.l.b16 %v2772_v26  ;;  %v4007_v4 = vunpack.c.h.b16 %v2772_v26  ;;  %v2146_v6 = vmul.f32 0.020408163, %v759_v28 }
 0x22f   :  { %1019 = vadd.xlane.f32.xlu1 %v1018_v27  ;;  %v438_v27 = vld [vmem:[%s17653_s0 + $0xd00] sm:$0xff] }
 0x230   :  { %v6033_v2 = vrot.slane %v4006_v30, %v17739_v9  ;;  %v6038_v17 = vrot.slane %v4007_v4, %v12152_v36  ;;  %v2621_v29 = vpack.c.bf16 %v2147_v12, %v2146_v6  ;;  %1016 = vadd.xlane.f32.xlu0 %v1015_v44  ;;  %v852_v39 = vpop.xlane.xlu1 %851  ;;  %v1786_v30 = vsel %vm534_vm0, %v439_v7, 0.0 }
 0x231   :  { %v2177_v3 = vmul.f32 0.020408163, %v852_v39  ;;  %v849_v5 = vpop.xlane.xlu0 %848  ;;  %v1783_v6 = vsel %vm534_vm0, %v438_v27, 0.0 }
 0x232   :  { %v6034_v52 = vsel %vm4202_vm8, %v6033_v2, %v14000_v48  ;;  %v3704_v15 = vunpack.c.l.b16 %v2621_v29  ;;  %v3705_v60 = vunpack.c.h.b16 %v2621_v29  ;;  %v2176_v18 = vmul.f32 0.020408163, %v849_v5  ;;  %v456_v29 = vld [vmem:[%s17653_s0 + $0xd90] sm:$0xff] }
 0x233   :  { %v14120_v45 = vsel %vm4209_vm9, %v6038_v17, %v6034_v52  ;;  %1073 = vadd.xlane.f32.xlu1 %v1072_v0  ;;  %v1750_v48 = vsel %vm534_vm0, %v427_v13, 0.0  ;;  %v1840_v5 = vsel %vm534_vm0, %v457_v35, 0.0  ;;  %v1837_v13 = vsel %vm534_vm0, %v456_v29, 0.0 }
 0x234   :  { %v4542_v1 = vrot.slane %v3704_v15, %v12165_v49  ;;  %v4547_v51 = vrot.slane %v3705_v60, %v12172_v61  ;;  %v2636_v16 = vpack.c.bf16 %v2177_v3, %v2176_v18  ;;  %1070 = vadd.xlane.f32.xlu0 %v1069_v55  ;;  %v14124_v43 = vpop.xlane.xlu1 %1529  ;;  %v154_v60 = vld [vmem:[%s17653_s0 + $0x420] sm:$0xff] }
 0x235   :  { %v14127_v56 = vpop.xlane.xlu0 %1526 }
 0x236   :  { %v4543_v32 = vsel %vm4216_vm10, %v4542_v1, %v14018_v62  ;;  %v3734_v26 = vunpack.c.l.b16 %v2636_v16  ;;  %v3735_v59 = vunpack.c.h.b16 %v2636_v16 }
 0x237   :  { %v14139_v12 = vsel %vm4223_vm11, %v4547_v51, %v4543_v32  ;;  %1751 = vadd.xlane.f32.xlu1 %v1750_v48  ;;  %v931_v48 = vsel %vm534_vm0, %v154_v60, 0.0  ;;  %v184_v32 = vld [vmem:[%s17653_s0 + $0x510] sm:$0xff]  ;;  %v173_v60 = vld [vmem:[%s17653_s0 + $0x4b8] sm:$0xff] }
 0x238   :  { %v4690_v28 = vrot.slane %v3734_v26, %v17739_v9  ;;  %v4695_v44 = vrot.slane %v3735_v59, %v12152_v36  ;;  %1748 = vadd.xlane.f32.xlu0 %v1747_v50  ;;  %v1620_v38 = vpop.xlane.xlu1 %1619  ;;  %v185_v50 = vld [vmem:[%s17653_s0 + $0x518] sm:$0xff] }
 0x239   :  { %v2433_v4 = vmul.f32 0.020408163, %v1620_v38  ;;  %v1617_v62 = vpop.xlane.xlu0 %1616 }
 0x23a   :  { %v4691_v2 = vsel %vm4202_vm8, %v4690_v28, %v14033_v58  ;;  %v2432_v17 = vmul.f32 0.020408163, %v1617_v62  ;;  %v155_v58 = vld [vmem:[%s17653_s0 + $0x428] sm:$0xff]  ;;  %v1024_v28 = vsel %vm534_vm0, %v185_v50, 0.0 }
 0x23b   :  { %v14154_v39 = vsel %vm4209_vm9, %v4695_v44, %v4691_v2  ;;  %1787 = vadd.xlane.f32.xlu1 %v1786_v30  ;;  %v934_v51 = vsel %vm534_vm0, %v155_v58, 0.0  ;;  %v411_v30 = vld [vmem:[%s17653_s0 + $0xc28] sm:$0xff] }
 0x23c   :  { %v2764_v0 = vpack.c.bf16 %v2433_v4, %v2432_v17  ;;  %1784 = vadd.xlane.f32.xlu0 %v1783_v6  ;;  %v14156_v3 = vpop.xlane.xlu1 %815  ;;  %v410_v4 = vld [vmem:[%s17653_s0 + $0xc20] sm:$0xff]  ;;  %v1702_v35 = vsel %vm534_vm0, %v411_v30, 0.0  ;;  %v203_v30 = vld [vmem:[%s17653_s0 + $0x5a8] sm:$0xff] }
 0x23d   :  { %v14159_v55 = vpop.xlane.xlu0 %812  ;;  %v1699_v29 = vsel %vm534_vm0, %v410_v4, 0.0  ;;  %v202_v4 = vld [vmem:[%s17653_s0 + $0x5a0] sm:$0xff] }
 0x23e   :  { %v3990_v52 = vunpack.c.l.b16 %v2764_v0  ;;  %v3991_v15 = vunpack.c.h.b16 %v2764_v0  ;;  %v441_v0 = vld [vmem:[%s17653_s0 + $0xd18] sm:$0xff] }
 0x23f   :  { %1841 = vadd.xlane.f32.xlu1 %v1840_v5  ;;  %v440_v5 = vld [vmem:[%s17653_s0 + $0xd10] sm:$0xff]  ;;  %v1792_v58 = vsel %vm534_vm0, %v441_v0, 0.0 }
 0x240   :  { %v5954_v18 = vrot.slane %v3990_v52, %v17739_v9  ;;  %v5959_v37 = vrot.slane %v3991_v15, %v12152_v36  ;;  %1838 = vadd.xlane.f32.xlu0 %v1837_v13  ;;  %v14170_v1 = vpop.xlane.xlu1 %905  ;;  %v1789_v15 = vsel %vm534_vm0, %v440_v5, 0.0  ;;  %v428_v0 = vld [vmem:[%s17653_s0 + $0xcb0] sm:$0xff]  ;;  %v459_v5 = vld [vmem:[%s17653_s0 + $0xda8] sm:$0xff] }
 0x241   :  { %v14173_v16 = vpop.xlane.xlu0 %902 }
 0x242   :  { %v5955_v7 = vsel %vm4202_vm8, %v5954_v18, %v14063_v46  ;;  %v1021_v46 = vsel %vm534_vm0, %v184_v32, 0.0  ;;  %v17741_v18 = vld [vmem:[#allocation5_spill] sm:$0xff]  ;;  %v988_v32 = vsel %vm534_vm0, %v173_v60, 0.0 }
 0x243   :  { %v14185_v26 = vsel %vm4209_vm9, %v5959_v37, %v5955_v7  ;;  %v9345_v59 = vpop.f32.mrf.mxu0  ;;  %935 = vadd.xlane.f32.xlu1 %v934_v51  ;;  %v3356_v37 = vsub.s32 0, %v17741_v18  ;;  %v172_v51 = vld [vmem:[%s17653_s0 + $0x4b0] sm:$0xff]  ;;  %v3360_v50 = vsub.s32 1, %v17741_v18  ;;  %v1753_v18 = vsel %vm534_vm0, %v428_v0, 0.0  ;;  %v187_v0 = vld [vmem:[%s17653_s0 + $0x528] sm:$0xff] }
 0x244   :  { %17740 = vst [vmem:[#allocation20_spill] sm:$0xff] %v14185_v26  ;;  %932 = vadd.xlane.f32.xlu0 %v931_v48  ;;  %v14187_v27 = vpop.xlane.xlu1 %1583  ;;  %v3352_v48 = vld [vmem:[%s17655_s2] sm:$0xf] }
 0x245   :  { %v14190_v44 = vpop.f32.mrf.mxu0  ;;  %v14192_v38 = vpop.xlane.xlu0 %1580 }
 0x247   :  { %v9349_v62 = vpop.f32.mrf.mxu0  ;;  %1025 = vadd.xlane.f32.xlu1 %v1024_v28 }
 0x248   :  { %1022 = vadd.xlane.f32.xlu0 %v1021_v46  ;;  %v14201_v6 = vpop.xlane.xlu1 %1673  ;;  %v985_v46 = vsel %vm534_vm0, %v172_v51, 0.0  ;;  %v429_v62 = vld [vmem:[%s17653_s0 + $0xcb8] sm:$0xff] }
 0x249   :  { %v9350_v2 = vpop.f32.mrf.mxu0  ;;  %v14204_v17 = vpop.xlane.xlu0 %1670  ;;  %v1756_v51 = vsel %vm534_vm0, %v429_v62, 0.0 }
 0x24a   :  { %v2418_v2 = vmul.f32 0.020408163, %v14070_v53 }
 0x24b   :  { %1703 = vadd.xlane.f32.xlu1 %v1702_v35  ;;  %v2419_v35 = vmul.f32 0.020408163, %v14067_v8  ;;  %v1078_v8 = vsel %vm534_vm0, %v203_v30, 0.0  ;;  %v2403_v30 = vmul.f32 0.020408163, %v14124_v43 }
 0x24c   :  { %1700 = vadd.xlane.f32.xlu0 %v1699_v29  ;;  %v14213_v13 = vpop.xlane.xlu1 %767  ;;  %v3357_v29 = vrot.slane %v3352_v48, %v3356_v37  ;;  %v1075_v37 = vsel %vm534_vm0, %v202_v4, 0.0  ;;  %v2165_v43 = vmul.f32 0.020408163, %v14156_v3  ;;  %v443_v3 = vld [vmem:[%s17653_s0 + $0xd28] sm:$0xff] }
 0x24d   :  { %v14216_v52 = vpop.xlane.xlu0 %764 }
 0x24e   :  { %v9346_v4 = vadd.f32 %v9345_v59, %v3357_v29  ;;  %v2164_v59 = vmul.f32 0.020408163, %v14159_v55  ;;  %v442_v55 = vld [vmem:[%s17653_s0 + $0xd20] sm:$0xff] }
 0x24f   :  { %1793 = vadd.xlane.f32.xlu1 %v1792_v58  ;;  %v458_v58 = vld [vmem:[%s17653_s0 + $0xda0] sm:$0xff] }
 0x250   :  { %1790 = vadd.xlane.f32.xlu0 %v1789_v15  ;;  %v14230_v7 = vpop.xlane.xlu1 %857  ;;  %v3361_v15 = vrot.slane %v3352_v48, %v3360_v50  ;;  %v157_v48 = vld [vmem:[%s17653_s0 + $0x438] sm:$0xff]  ;;  %v156_v50 = vld [vmem:[%s17653_s0 + $0x430] sm:$0xff]  ;;  %v14277_v62 = vsel %vm534_vm0, %v458_v58, 0.0  ;;  %v14335_v9 = vpack.c.bf16 %v2165_v43, %v2164_v59 }
 0x251   :  { %v14233_v28 = vpop.xlane.xlu0 %854  ;;  %v14297_v10 = vsel %vm534_vm0, %v157_v48, 0.0  ;;  %v14300_v31 = vsel %vm534_vm0, %v156_v50, 0.0  ;;  %v175_v48 = vld [vmem:[%s17653_s0 + $0x4c8] sm:$0xff]  ;;  %v174_v50 = vld [vmem:[%s17653_s0 + $0x4c0] sm:$0xff] }
 0x252   :  { %v9348_v29 = vadd.f32 %v14190_v44, %v3361_v15  ;;  %v2421_v44 = vmul.f32 0.020408163, %v14187_v27  ;;  %v2420_v15 = vmul.f32 0.020408163, %v14192_v38  ;;  %v205_v38 = vld [vmem:[%s17653_s0 + $0x5b8] sm:$0xff]  ;;  %v14356_v42 = vsel %vm534_vm0, %v174_v50, 0.0 }
 0x253   :  { %989 = vadd.xlane.f32.xlu1 %v988_v32  ;;  %v14265_v32 = vsel %vm534_vm0, %v459_v5, 0.0  ;;  %v186_v5 = vld [vmem:[%s17653_s0 + $0x520] sm:$0xff] }
 0x254   :  { %986 = vadd.xlane.f32.xlu0 %v985_v46  ;;  %v14256_v60 = vpop.xlane.xlu1 %1535  ;;  %v14273_v46 = vpack.c.bf16 %v2419_v35, %v2418_v2  ;;  %v2402_v35 = vmul.f32 0.020408163, %v14127_v56  ;;  %v412_v56 = vld [vmem:[%s17653_s0 + $0xc30] sm:$0xff]  ;;  %v14328_v27 = vsel %vm534_vm0, %v186_v5, 0.0 }
 0x255   :  { %v14259_v53 = vpop.xlane.xlu0 %1532 }
 0x256   :  { %v14333_v36 = vpack.c.bf16 %v2403_v30, %v2402_v35  ;;  %v14350_v30 = vsel %vm534_vm0, %v442_v55, 0.0  ;;  %v461_v55 = vld [vmem:[%s17653_s0 + $0xdb8] sm:$0xff] }
 0x257   :  { %v9386_v2 = vpop.f32.mrf.mxu1  ;;  %1079 = vadd.xlane.f32.xlu1 %v1078_v8 }
 0x258   :  { %v14292_v58 = vadd.f32 %v9386_v2, %v9346_v4  ;;  %1076 = vadd.xlane.f32.xlu0 %v1075_v37  ;;  %v14294_v14 = vpop.xlane.xlu1 %1625  ;;  %v3976_v4 = vunpack.c.l.b16 %v14273_v46 }
 0x259   :  { %v9388_v8 = vpop.f32.mrf.mxu1  ;;  %v14313_v37 = vpop.xlane.xlu0 %1622 }
 0x25a   :  { %17742 = vst [vmem:[#allocation21_spill] sm:$0xff] %v14292_v58  ;;  %v14322_v2 = vadd.f32 %v9388_v8, %v9348_v29  ;;  %v14325_v58 = vsel %vm534_vm0, %v187_v0, 0.0  ;;  %v14341_v29 = vsel %vm534_vm0, %v412_v56, 0.0  ;;  %v204_v0 = vld [vmem:[%s17653_s0 + $0x5b0] sm:$0xff]  ;;  %v14347_v8 = vsel %vm534_vm0, %v443_v3, 0.0  ;;  %v431_v56 = vld [vmem:[%s17653_s0 + $0xcc8] sm:$0xff] }
 0x25b   :  { %v9390_v22 = vpop.f32.mrf.mxu1  ;;  %1757 = vadd.xlane.f32.xlu1 %v1756_v51  ;;  %v14358_v51 = vpack.c.bf16 %v2421_v44, %v2420_v15  ;;  %v430_v3 = vld [vmem:[%s17653_s0 + $0xcc0] sm:$0xff]  ;;  %v3977_v44 = vunpack.c.h.b16 %v14273_v46  ;;  %v5885_v15 = vrot.slane %v3976_v4, %v12165_v49  ;;  %v14375_v50 = vsel %vm534_vm0, %v204_v0, 0.0 }
 0x25c   :  { %17743 = vst [vmem:[#allocation22_spill] sm:$0xff] %v14322_v2  ;;  %1754 = vadd.xlane.f32.xlu0 %v1753_v18  ;;  %v822_v5 = vpop.xlane.xlu1 %821  ;;  %v14353_v22 = vsel %vm534_vm0, %v175_v48, 0.0  ;;  %v14361_v18 = vsel %vm534_vm0, %v205_v38, 0.0  ;;  %v460_v38 = vld [vmem:[%s17653_s0 + $0xdb0] sm:$0xff]  ;;  %v3960_v46 = vunpack.c.l.b16 %v14333_v36  ;;  %v3722_v4 = vunpack.c.l.b16 %v14335_v9  ;;  %v189_v2 = vld [vmem:[%s17653_s0 + $0x538] sm:$0xff] }
 0x25d   :  { %v2167_v35 = vmul.f32 0.020408163, %v822_v5  ;;  %v9391_v43 = vpop.f32.mrf.mxu1  ;;  %v819_v59 = vpop.xlane.xlu0 %818  ;;  %v159_v5 = vld [vmem:[%s17653_s0 + $0x448] sm:$0xff]  ;;  %v2194_v0 = vmul.f32 0.020408163, %v14173_v16  ;;  %v14398_v23 = vsel %vm534_vm0, %v431_v56, 0.0  ;;  %v3978_v16 = vunpack.c.l.b16 %v14358_v51 }
 0x25e   :  { %v2166_v48 = vmul.f32 0.020408163, %v819_v59  ;;  %v158_v43 = vld [vmem:[%s17653_s0 + $0x440] sm:$0xff]  ;;  %v2195_v59 = vmul.f32 0.020408163, %v14170_v1  ;;  %v14401_v25 = vsel %vm534_vm0, %v430_v3, 0.0  ;;  %v5886_v56 = vsel %vm4216_vm10, %v5885_v15, %v13979_v33 }
 0x25f   :  { %1847 = vadd.xlane.f32.xlu1 %v14265_v32  ;;  %v14404_v1 = vsel %vm534_vm0, %v461_v55, 0.0  ;;  %v14410_v63 = vsel %vm534_vm0, %v460_v38, 0.0  ;;  %v5890_v3 = vrot.slane %v3977_v44, %v12172_v61  ;;  %v3961_v55 = vunpack.c.h.b16 %v14333_v36  ;;  %v188_v33 = vld [vmem:[%s17653_s0 + $0x530] sm:$0xff]  ;;  %v415_v36 = vld [vmem:[%s17653_s0 + $0xc48] sm:$0xff] }
 0x260   :  { %v2631_v47 = vpack.c.bf16 %v2167_v35, %v2166_v48  ;;  %1844 = vadd.xlane.f32.xlu0 %v14277_v62  ;;  %v14395_v34 = vpop.xlane.xlu1 %911  ;;  %v14413_v62 = vsel %vm534_vm0, %v159_v5, 0.0  ;;  %v14416_v35 = vsel %vm534_vm0, %v158_v43, 0.0  ;;  %v14423_v48 = vsel %vm534_vm0, %v189_v2, 0.0 }
 0x261   :  { %v14407_v32 = vpop.xlane.xlu0 %908  ;;  %17744 = vst [vmem:[#allocation23_spill] sm:$0xff] %v14416_v35  ;;  %17745 = vst [vmem:[#allocation24_spill] sm:$0xff] %v14423_v48  ;;  %v5806_v11 = vrot.slane %v3960_v46, %v12165_v49  ;;  %v3723_v38 = vunpack.c.h.b16 %v14335_v9  ;;  %v4631_v5 = vrot.slane %v3722_v4, %v12191_v20  ;;  %v14428_v26 = vpack.c.bf16 %v2195_v59, %v2194_v0 }
 0x262   :  { %v3979_v2 = vunpack.c.h.b16 %v14358_v51  ;;  %v2451_v44 = vmul.f32 0.020408163, %v14201_v6  ;;  %v2450_v9 = vmul.f32 0.020408163, %v14204_v17  ;;  %v3724_v15 = vunpack.c.l.b16 %v2631_v47 }
 0x263   :  { %941 = vadd.xlane.f32.xlu1 %v14297_v10  ;;  %v5895_v10 = vrot.slane %v3978_v16, %v12191_v20  ;;  %v2149_v46 = vmul.f32 0.020408163, %v14213_v13  ;;  %v2148_v4 = vmul.f32 0.020408163, %v14216_v52  ;;  %v5891_v48 = vsel %vm4223_vm11, %v5890_v3, %v5886_v56 }
 0x264   :  { %938 = vadd.xlane.f32.xlu0 %v14300_v31  ;;  %v1590_v43 = vpop.xlane.xlu1 %1589  ;;  %v14446_v51 = vsel %vm534_vm0, %v188_v33, 0.0  ;;  %v14449_v6 = vsel %vm534_vm0, %v415_v36, 0.0  ;;  %v5807_v31 = vsel %vm4216_vm10, %v5806_v11, %v14048_v54  ;;  %v5811_v17 = vrot.slane %v3961_v55, %v12172_v61 }
 0x265   :  { %v2423_v59 = vmul.f32 0.020408163, %v1590_v43  ;;  %v1587_v0 = vpop.xlane.xlu0 %1586  ;;  %v4636_v13 = vrot.slane %v3723_v38, %v12194_v21  ;;  %v3725_v16 = vunpack.c.h.b16 %v2631_v47  ;;  %v4632_v52 = vsel %vm4230_vm12, %v4631_v5, %v14082_v57 }
 0x266   :  { %v2422_v35 = vmul.f32 0.020408163, %v1587_v0  ;;  %v3752_v56 = vunpack.c.l.b16 %v14428_v26  ;;  %v4641_v3 = vrot.slane %v3724_v15, %v12208_v40  ;;  %v5896_v11 = vsel %vm4230_vm12, %v5895_v10, %v5891_v48 }
 0x267   :  { %1031 = vadd.xlane.f32.xlu1 %v14325_v58  ;;  %v5900_v54 = vrot.slane %v3979_v2, %v12194_v21  ;;  %v14465_v55 = vpack.c.bf16 %v2451_v44, %v2450_v9  ;;  %v2622_v47 = vpack.c.bf16 %v2149_v46, %v2148_v4  ;;  %v2405_v38 = vmul.f32 0.020408163, %v14256_v60  ;;  %v445_v4 = vld [vmem:[%s17653_s0 + $0xd38] sm:$0xff] }
 0x268   :  { %v2759_v33 = vpack.c.bf16 %v2423_v59, %v2422_v35  ;;  %1028 = vadd.xlane.f32.xlu0 %v14328_v27  ;;  %v14461_v36 = vpop.xlane.xlu1 %1679  ;;  %v2404_v57 = vmul.f32 0.020408163, %v14259_v53  ;;  %v2179_v35 = vmul.f32 0.020408163, %v14230_v7  ;;  %v2178_v27 = vmul.f32 0.020408163, %v14233_v28 }
 0x269   :  { %v1677_v58 = vpop.xlane.xlu0 %1676  ;;  %v4646_v15 = vrot.slane %v3725_v16, %v12211_v41  ;;  %v4637_v48 = vsel %vm4237_vm13, %v4636_v13, %v4632_v52  ;;  %v3753_v2 = vunpack.c.h.b16 %v14428_v26  ;;  %v4779_v7 = vrot.slane %v3752_v56, %v12165_v49  ;;  %v414_v26 = vld [vmem:[%s17653_s0 + $0xc40] sm:$0xff]  ;;  %v444_v16 = vld [vmem:[%s17653_s0 + $0xd30] sm:$0xff] }
 0x26a   :  { %v3980_v5 = vunpack.c.l.b16 %v2759_v33  ;;  %v3981_v43 = vunpack.c.h.b16 %v2759_v33  ;;  %v4642_v9 = vsel %vm4244_vm14, %v4641_v3, %v4637_v48  ;;  %v4008_v28 = vunpack.c.l.b16 %v14465_v55 }
 0x26b   :  { %1709 = vadd.xlane.f32.xlu1 %v14338_v24  ;;  %v5901_v24 = vsel %vm4237_vm13, %v5900_v54, %v5896_v11  ;;  %v2750_v59 = vpack.c.bf16 %v2405_v38, %v2404_v57  ;;  %v3707_v52 = vunpack.c.h.b16 %v2622_v47  ;;  %v2637_v56 = vpack.c.bf16 %v2179_v35, %v2178_v27 }
 0x26c   :  { %v5905_v44 = vrot.slane %v3980_v5, %v12208_v40  ;;  %v5910_v60 = vrot.slane %v3981_v43, %v12211_v41  ;;  %1706 = vadd.xlane.f32.xlu0 %v14341_v29  ;;  %v774_v53 = vpop.xlane.xlu1 %773  ;;  %v3706_v29 = vunpack.c.l.b16 %v2622_v47  ;;  %v4647_v3 = vsel %vm4251_vm15, %v4646_v15, %v4642_v9 }
 0x26d   :  { %v2151_v10 = vmul.f32 0.020408163, %v774_v53  ;;  %v771_v46 = vpop.xlane.xlu0 %770  ;;  %v14498_v57 = vsel %vm534_vm0, %v414_v26, 0.0  ;;  %v14501_v5 = vsel %vm534_vm0, %v445_v4, 0.0  ;;  %v5812_v47 = vsel %vm4223_vm11, %v5811_v17, %v5807_v31 }
 0x26e   :  { %v2150_v0 = vmul.f32 0.020408163, %v771_v46  ;;  %v5906_v13 = vsel %vm4244_vm14, %v5905_v44, %v5901_v24  ;;  %v14508_v27 = vsel %vm534_vm0, %v444_v16, 0.0  ;;  %v4009_v15 = vunpack.c.h.b16 %v14465_v55 }
 0x26f   :  { %1799 = vadd.xlane.f32.xlu1 %v14347_v8  ;;  %v5911_v33 = vsel %vm4251_vm15, %v5910_v60, %v5906_v13  ;;  %v4784_v8 = vrot.slane %v3753_v2, %v12172_v61  ;;  %v4552_v48 = vrot.slane %v3706_v29, %v12191_v20  ;;  %v3962_v44 = vunpack.c.l.b16 %v2750_v59 }
 0x270   :  { %v2623_v11 = vpack.c.bf16 %v2151_v10, %v2150_v0  ;;  %1796 = vadd.xlane.f32.xlu0 %v14350_v30  ;;  %v864_v54 = vpop.xlane.xlu1 %863  ;;  %v6708_v38 = vsel %vm6702_vm7, %v5911_v33, %v4647_v3  ;;  %v4780_v30 = vsel %vm4216_vm10, %v4779_v7, %v14097_v19  ;;  %v6043_v60 = vrot.slane %v4008_v28, %v12165_v49 }
 0x271   :  { %v861_v43 = vpop.xlane.xlu0 %860  ;;  %v14505_v35 = vpack.c.b16 %v6708_v38, %v6708_v38  ;;  %v4557_v31 = vrot.slane %v3707_v52, %v12194_v21  ;;  %v3736_v17 = vunpack.c.l.b16 %v2637_v56  ;;  %v2435_v2 = vmul.f32 0.020408163, %v14294_v14 }
 0x272   :  { %v2434_v53 = vmul.f32 0.020408163, %v14313_v37  ;;  %v2197_v19 = vmul.f32 0.020408163, %v14395_v34  ;;  %v2196_v55 = vmul.f32 0.020408163, %v14407_v32  ;;  %v3708_v9 = vunpack.c.l.b16 %v2623_v11 }
 0x273   :  { %17746 = vst [vmem:[#allocation25_spill] sm:$0xff] %v14505_v35  ;;  %9425 = vmatprep.mubr.bf16.mxu0 %v14505_v35  ;;  %995 = vadd.xlane.f32.xlu1 %v14353_v22  ;;  %v3963_v28 = vunpack.c.h.b16 %v2750_v59  ;;  %v2453_v10 = vmul.f32 0.020408163, %v14461_v36  ;;  %v2452_v46 = vmul.f32 0.020408163, %v1677_v58  ;;  %v4553_v26 = vsel %vm4230_vm12, %v4552_v48, %v14139_v12 }
 0x274   :  { %992 = vadd.xlane.f32.xlu0 %v14356_v42  ;;  %v1542_v7 = vpop.xlane.xlu1 %1541  ;;  %v3737_v22 = vunpack.c.h.b16 %v2637_v56  ;;  %v5816_v37 = vrot.slane %v3962_v44, %v12191_v20  ;;  %v14528_v34 = vsel %vm4223_vm11, %v4784_v8, %v4780_v30  ;;  %v6048_v32 = vrot.slane %v4009_v15, %v12172_v61 }
 0x275   :  { %v2407_v24 = vmul.f32 0.020408163, %v1542_v7  ;;  %v1539_v14 = vpop.xlane.xlu0 %1538  ;;  %v4700_v42 = vrot.slane %v3736_v17, %v12165_v49  ;;  %v3709_v29 = vunpack.c.h.b16 %v2623_v11  ;;  %v6044_v36 = vsel %vm4216_vm10, %v6043_v60, %v14120_v45 }
 0x276   :  { %v2406_v4 = vmul.f32 0.020408163, %v1539_v14  ;;  %v2646_v58 = vpack.c.bf16 %v2197_v19, %v2196_v55  ;;  %v4562_v12 = vrot.slane %v3708_v9, %v12208_v40  ;;  %v4558_v13 = vsel %vm4237_vm13, %v4557_v31, %v4553_v26 }
 0x277   :  { %1085 = vadd.xlane.f32.xlu1 %v14361_v18  ;;  %v5821_v16 = vrot.slane %v3963_v28, %v12194_v21  ;;  %v2765_v52 = vpack.c.bf16 %v2435_v2, %v2434_v53  ;;  %v2774_v56 = vpack.c.bf16 %v2453_v10, %v2452_v46  ;;  %v4705_v33 = vrot.slane %v3737_v22, %v12172_v61 }
 0x278   :  { %v2751_v59 = vpack.c.bf16 %v2407_v24, %v2406_v4  ;;  %1082 = vadd.xlane.f32.xlu0 %v14375_v50  ;;  %v1632_v0 = vpop.xlane.xlu1 %1631  ;;  %v5817_v18 = vsel %vm4230_vm12, %v5816_v37, %v5812_v47  ;;  %v4701_v38 = vsel %vm4216_vm10, %v4700_v42, %v14154_v39  ;;  %v4567_v8 = vrot.slane %v3709_v29, %v12211_v41 }
 0x279   :  { %v1629_v3 = vpop.xlane.xlu0 %1628  ;;  %v2181_v50 = vmul.f32 0.020408163, %v864_v54  ;;  %v2180_v30 = vmul.f32 0.020408163, %v861_v43  ;;  %v3754_v15 = vunpack.c.l.b16 %v2646_v58  ;;  %v4563_v47 = vsel %vm4244_vm14, %v4562_v12, %v4558_v13 }
 0x27a   :  { %v3964_v11 = vunpack.c.l.b16 %v2751_v59  ;;  %v3965_v45 = vunpack.c.h.b16 %v2751_v59  ;;  %v5822_v31 = vsel %vm4237_vm13, %v5821_v16, %v5817_v18  ;;  %v3992_v17 = vunpack.c.l.b16 %v2765_v52 }
 0x27b   :  { %1763 = vadd.xlane.f32.xlu1 %v14398_v23  ;;  %v4010_v39 = vunpack.c.l.b16 %v2774_v56  ;;  %v2437_v54 = vmul.f32 0.020408163, %v1632_v0  ;;  %v2436_v43 = vmul.f32 0.020408163, %v1629_v3  ;;  %v3755_v55 = vunpack.c.h.b16 %v2646_v58 }
 0x27c   :  { %v5826_v48 = vrot.slane %v3964_v11, %v12208_v40  ;;  %v5831_v44 = vrot.slane %v3965_v45, %v12211_v41  ;;  %1760 = vadd.xlane.f32.xlu0 %v14401_v25  ;;  %v918_v60 = vpop.xlane.xlu1 %917  ;;  %v2638_v9 = vpack.c.bf16 %v2181_v50, %v2180_v30  ;;  %v4568_v25 = vsel %vm4251_vm15, %v4567_v8, %v4563_v47 }
 0x27d   :  { %v2199_v2 = vmul.f32 0.020408163, %v918_v60  ;;  %v915_v53 = vpop.xlane.xlu0 %914  ;;  %v3993_v28 = vunpack.c.h.b16 %v2765_v52  ;;  %v4789_v10 = vrot.slane %v3754_v15, %v12191_v20  ;;  %v4011_v26 = vunpack.c.h.b16 %v2774_v56  ;;  %v17748_v56 = vld [vmem:[#allocation23_spill] sm:$0xff] }
 0x27e   :  { %v2198_v19 = vmul.f32 0.020408163, %v915_v53  ;;  %v5827_v23 = vsel %vm4244_vm14, %v5826_v48, %v5822_v31  ;;  %v6053_v22 = vrot.slane %v4010_v39, %v12191_v20  ;;  %v2766_v29 = vpack.c.bf16 %v2437_v54, %v2436_v43  ;;  %v17750_v53 = vld [vmem:[#allocation20_spill] sm:$0xff] }
 0x27f   :  { %1853 = vadd.xlane.f32.xlu1 %v14404_v1  ;;  %v5832_v7 = vsel %vm4251_vm15, %v5831_v44, %v5827_v23  ;;  %v6049_v1 = vsel %vm4223_vm11, %v6048_v32, %v6044_v36  ;;  %v4706_v59 = vsel %vm4223_vm11, %v4705_v33, %v4701_v38  ;;  %v4794_v0 = vrot.slane %v3755_v55, %v12194_v21  ;;  %v17749_v44 = vld [vmem:[#allocation24_spill] sm:$0xff] }
 0x280   :  { %v2647_v46 = vpack.c.bf16 %v2199_v2, %v2198_v19  ;;  %1850 = vadd.xlane.f32.xlu0 %v14410_v63  ;;  %v1686_v24 = vpop.xlane.xlu1 %1685  ;;  %v6707_v14 = vsel %vm6702_vm7, %v5832_v7, %v4568_v25  ;;  %v3738_v63 = vunpack.c.l.b16 %v2638_v9  ;;  %v5964_v16 = vrot.slane %v3992_v17, %v12165_v49 }
 0x281   :  { %v2455_v37 = vmul.f32 0.020408163, %v1686_v24  ;;  %v1683_v4 = vpop.xlane.xlu0 %1682  ;;  %v14558_v42 = vpack.c.b16 %v6707_v14, %v6707_v14  ;;  %v4790_v52 = vsel %vm4230_vm12, %v4789_v10, %v14528_v34  ;;  %v5969_v33 = vrot.slane %v3993_v28, %v12172_v61 }
 0x282   :  { %v3756_v58 = vunpack.c.l.b16 %v2647_v46  ;;  %v2454_v12 = vmul.f32 0.020408163, %v1683_v4  ;;  %v3757_v13 = vunpack.c.h.b16 %v2647_v46  ;;  %v6054_v18 = vsel %vm4230_vm12, %v6053_v22, %v6049_v1  ;;  %v177_v1 = vld [vmem:[%s17653_s0 + $0x4d8] sm:$0xff] }
 0x283   :  { %17747 = vst [vmem:[#allocation26_spill] sm:$0xff] %v14558_v42  ;;  %9426 = vmatmul.mubr.bf16.vlgmr.msra.gmra.mxu0 %v14558_v42  ;;  %947 = vadd.xlane.f32.xlu1 %v14413_v62  ;;  %v6058_v11 = vrot.slane %v4011_v26, %v12194_v21  ;;  %v3994_v62 = vunpack.c.l.b16 %v2766_v29  ;;  %v3739_v15 = vunpack.c.h.b16 %v2638_v9  ;;  %v4710_v34 = vrot.slane %v3738_v63, %v12191_v20 }
 0x284   :  { %v4799_v32 = vrot.slane %v3756_v58, %v12208_v40  ;;  %v2775_v36 = vpack.c.bf16 %v2455_v37, %v2454_v12  ;;  %944 = vadd.xlane.f32.xlu0 %v17748_v56  ;;  %v870_v3 = vpop.xlane.xlu1 %869  ;;  %v4804_v48 = vrot.slane %v3757_v13, %v12211_v41  ;;  %v4795_v60 = vsel %vm4237_vm13, %v4794_v0, %v4790_v52 }
 0x285   :  { %v2183_v45 = vmul.f32 0.020408163, %v870_v3  ;;  %v867_v38 = vpop.xlane.xlu0 %866  ;;  %v5965_v54 = vsel %vm4216_vm10, %v5964_v16, %v17750_v53  ;;  %v3995_v43 = vunpack.c.h.b16 %v2766_v29  ;;  %v6059_v55 = vsel %vm4237_vm13, %v6058_v11, %v6054_v18  ;;  %v176_v16 = vld [vmem:[%s17653_s0 + $0x4d0] sm:$0xff]  ;;  %v433_v53 = vld [vmem:[%s17653_s0 + $0xcd8] sm:$0xff] }
 0x286   :  { %v4012_v8 = vunpack.c.l.b16 %v2775_v36  ;;  %v4013_v50 = vunpack.c.h.b16 %v2775_v36  ;;  %v2182_v30 = vmul.f32 0.020408163, %v867_v38  ;;  %v4800_v2 = vsel %vm4244_vm14, %v4799_v32, %v4795_v60 }
 0x287   :  { %1037 = vadd.xlane.f32.xlu1 %v17749_v44  ;;  %v5974_v9 = vrot.slane %v3994_v62, %v12191_v20  ;;  %v4715_v10 = vrot.slane %v3739_v15, %v12194_v21  ;;  %v4805_v46 = vsel %vm4251_vm15, %v4804_v48, %v4800_v2  ;;  %v4711_v14 = vsel %vm4230_vm12, %v4710_v34, %v4706_v59 }
 0x288   :  { %v6063_v47 = vrot.slane %v4012_v8, %v12208_v40  ;;  %v6068_v31 = vrot.slane %v4013_v50, %v12211_v41  ;;  %v2639_v17 = vpack.c.bf16 %v2183_v45, %v2182_v30  ;;  %1034 = vadd.xlane.f32.xlu0 %v14446_v51  ;;  %v1638_v39 = vpop.xlane.xlu1 %1637  ;;  %v5979_v29 = vrot.slane %v3995_v43, %v12194_v21  ;;  %v432_v43 = vld [vmem:[%s17653_s0 + $0xcd0] sm:$0xff] }
 0x289   :  { %v2439_v19 = vmul.f32 0.020408163, %v1638_v39  ;;  %v1635_v23 = vpop.xlane.xlu0 %1634  ;;  %v4716_v52 = vsel %vm4237_vm13, %v4715_v10, %v4711_v14  ;;  %v1000_v36 = vsel %vm534_vm0, %v177_v1, 0.0  ;;  %v997_v8 = vsel %vm534_vm0, %v176_v16, 0.0  ;;  %v160_v16 = vld [vmem:[%s17653_s0 + $0x450] sm:$0xff] }
 0x28a   :  { %v3740_v25 = vunpack.c.l.b16 %v2639_v17  ;;  %v2438_v7 = vmul.f32 0.020408163, %v1635_v23  ;;  %v6064_v28 = vsel %vm4244_vm14, %v6063_v47, %v6059_v55  ;;  %v3741_v51 = vunpack.c.h.b16 %v2639_v17 }
 0x28b   :  { %1715 = vadd.xlane.f32.xlu1 %v14449_v6  ;;  %v6069_v24 = vsel %vm4251_vm15, %v6068_v31, %v6064_v28  ;;  %v5970_v6 = vsel %vm4223_vm11, %v5969_v33, %v5965_v54  ;;  %v1768_v55 = vsel %vm534_vm0, %v433_v53, 0.0  ;;  %v1765_v10 = vsel %vm534_vm0, %v432_v43, 0.0 }
 0x28c   :  { %v4720_v26 = vrot.slane %v3740_v25, %v12208_v40  ;;  %v2767_v22 = vpack.c.bf16 %v2439_v19, %v2438_v7  ;;  %1712 = vadd.xlane.f32.xlu0 %v14498_v57  ;;  %v972_v37 = vpop.xlane.xlu1 %971  ;;  %v6710_v4 = vsel %vm6702_vm7, %v6069_v24, %v4805_v46  ;;  %v5975_v59 = vsel %vm4230_vm12, %v5974_v9, %v5970_v6  ;;  %v462_v24 = vld [vmem:[%s17653_s0 + $0xdc0] sm:$0xff] }
 0x28d   :  { %v2217_v58 = vmul.f32 0.020408163, %v972_v37  ;;  %v969_v12 = vpop.xlane.xlu0 %968  ;;  %v14599_v0 = vpack.c.b16 %v6710_v4, %v6710_v4  ;;  %v4725_v32 = vrot.slane %v3741_v51, %v12211_v41  ;;  %v5980_v45 = vsel %vm4237_vm13, %v5979_v29, %v5975_v59  ;;  %v463_v51 = vld [vmem:[%s17653_s0 + $0xdc8] sm:$0xff]  ;;  %v161_v37 = vld [vmem:[%s17653_s0 + $0x458] sm:$0xff] }
 0x28e   :  { %v3996_v63 = vunpack.c.l.b16 %v2767_v22  ;;  %v3997_v13 = vunpack.c.h.b16 %v2767_v22  ;;  %v2216_v57 = vmul.f32 0.020408163, %v969_v12  ;;  %v4721_v11 = vsel %vm4244_vm14, %v4720_v26, %v4716_v52  ;;  %v17753_v4 = vld [vmem:[#allocation7_spill] sm:$0xff]  ;;  %v17754_v6 = vld [vmem:[#allocation8_spill] sm:$0xff] }
 0x28f   :  { %17751 = vst [vmem:[#allocation23_spill] sm:$0xff] %v14599_v0  ;;  %9466 = vmatprep.mubr.bf16.mxu1 %v14599_v0  ;;  %1805 = vadd.xlane.f32.xlu1 %v14501_v5  ;;  %v207_v5 = vld [vmem:[%s17653_s0 + $0x5c8] sm:$0xff]  ;;  %v4726_v15 = vsel %vm4251_vm15, %v4725_v32, %v4721_v11  ;;  %v1858_v22 = vsel %vm534_vm0, %v463_v51, 0.0  ;;  %v1855_v59 = vsel %vm534_vm0, %v462_v24, 0.0  ;;  %v952_v52 = vsel %vm534_vm0, %v161_v37, 0.0 }
 0x290   :  { %v5984_v56 = vrot.slane %v3996_v63, %v12208_v40  ;;  %v5989_v3 = vrot.slane %v3997_v13, %v12211_v41  ;;  %v2656_v33 = vpack.c.bf16 %v2217_v58, %v2216_v57  ;;  %1802 = vadd.xlane.f32.xlu0 %v14508_v27  ;;  %v1740_v18 = vpop.xlane.xlu1 %1739  ;;  %v206_v27 = vld [vmem:[%s17653_s0 + $0x5c0] sm:$0xff]  ;;  %v1090_v47 = vsel %vm534_vm0, %v207_v5, 0.0 }
 0x291   :  { %v2473_v38 = vmul.f32 0.020408163, %v1740_v18  ;;  %v1737_v62 = vpop.xlane.xlu0 %1736  ;;  %v1087_v2 = vsel %vm534_vm0, %v206_v27, 0.0  ;;  %v949_v5 = vsel %vm534_vm0, %v160_v16, 0.0 }
 0x292   :  { %v2472_v50 = vmul.f32 0.020408163, %v1737_v62  ;;  %v5985_v30 = vsel %vm4244_vm14, %v5984_v56, %v5980_v45  ;;  %v3774_v9 = vunpack.c.l.b16 %v2656_v33  ;;  %v3775_v25 = vunpack.c.h.b16 %v2656_v33 }
 0x293   :  { %1001 = vadd.xlane.f32.xlu1 %v1000_v36  ;;  %v5990_v34 = vsel %vm4251_vm15, %v5989_v3, %v5985_v30  ;;  %v17755_v36 = vld [vmem:[#allocation6_spill] sm:$0xff]  ;;  %v17756_v3 = vld [vmem:[#allocation9_spill] sm:$0xff] }
 0x294   :  { %v14625_v48 = vpack.c.bf16 %v2473_v38, %v2472_v50  ;;  %998 = vadd.xlane.f32.xlu0 %v997_v8  ;;  %v924_v44 = vpop.xlane.xlu1 %923  ;;  %v6709_v60 = vsel %vm6702_vm7, %v5990_v34, %v4726_v15  ;;  %v4888_v1 = vrot.slane %v3774_v9, %v17753_v4  ;;  %v4892_v29 = vrot.slane %v3775_v25, %v17754_v6  ;;  %v191_v50 = vld [vmem:[%s17653_s0 + $0x548] sm:$0xff]  ;;  %v190_v30 = vld [vmem:[%s17653_s0 + $0x540] sm:$0xff] }
 0x295   :  { %v2201_v31 = vmul.f32 0.020408163, %v924_v44  ;;  %v921_v17 = vpop.xlane.xlu0 %920  ;;  %v14629_v39 = vpack.c.b16 %v6709_v60, %v6709_v60 }
 0x296   :  { %v2200_v54 = vmul.f32 0.020408163, %v921_v17  ;;  %v4030_v32 = vunpack.c.l.b16 %v14625_v48  ;;  %v4893_v45 = vsel %vm4153_vm1, %v4892_v29, %v4888_v1  ;;  %v4031_v38 = vunpack.c.h.b16 %v14625_v48  ;;  %v417_v17 = vld [vmem:[%s17653_s0 + $0xc58] sm:$0xff] }
 0x297   :  { %17752 = vst [vmem:[#allocation24_spill] sm:$0xff] %v14629_v39  ;;  %9467 = vmatmul.mubr.bf16.vlgmr.msra.gmra.mxu1 %v14629_v39  ;;  %1091 = vadd.xlane.f32.xlu1 %v1090_v47  ;;  %v1042_v47 = vsel %vm534_vm0, %v191_v50, 0.0  ;;  %v179_v50 = vld [vmem:[%s17653_s0 + $0x4e8] sm:$0xff] }
 0x298   :  { %v14639_v19 = vpack.c.bf16 %v2201_v31, %v2200_v54  ;;  %1088 = vadd.xlane.f32.xlu0 %v1087_v2  ;;  %v978_v23 = vpop.xlane.xlu1 %977  ;;  %v6152_v48 = vrot.slane %v4030_v32, %v17753_v4  ;;  %v1039_v31 = vsel %vm534_vm0, %v190_v30, 0.0  ;;  %v6156_v2 = vrot.slane %v4031_v38, %v17754_v6 }
 0x299   :  { %v2219_v7 = vmul.f32 0.020408163, %v978_v23  ;;  %v975_v28 = vpop.xlane.xlu0 %974 }
 0x29a   :  { %v2218_v46 = vmul.f32 0.020408163, %v975_v28  ;;  %v3758_v53 = vunpack.c.l.b16 %v14639_v19  ;;  %v3759_v54 = vunpack.c.h.b16 %v14639_v19  ;;  %v1720_v28 = vsel %vm534_vm0, %v417_v17, 0.0 }
 0x29b   :  { %1769 = vadd.xlane.f32.xlu1 %v1768_v55  ;;  %v416_v55 = vld [vmem:[%s17653_s0 + $0xc50] sm:$0xff] }
 0x29c   :  { %v2657_v14 = vpack.c.bf16 %v2219_v7, %v2218_v46  ;;  %1766 = vadd.xlane.f32.xlu0 %v1765_v10  ;;  %v1692_v26 = vpop.xlane.xlu1 %1691  ;;  %v1717_v19 = vsel %vm534_vm0, %v416_v55, 0.0  ;;  %v4813_v37 = vrot.slane %v3759_v54, %v17754_v6  ;;  %v209_v54 = vld [vmem:[%s17653_s0 + $0x5d8] sm:$0xff] }
 0x29d   :  { %v2457_v58 = vmul.f32 0.020408163, %v1692_v26  ;;  %v1689_v12 = vpop.xlane.xlu0 %1688  ;;  %v6157_v26 = vsel %vm4153_vm1, %v6156_v2, %v6152_v48 }
 0x29e   :  { %v3776_v63 = vunpack.c.l.b16 %v2657_v14  ;;  %v3777_v13 = vunpack.c.h.b16 %v2657_v14  ;;  %v2456_v57 = vmul.f32 0.020408163, %v1689_v12  ;;  %v447_v14 = vld [vmem:[%s17653_s0 + $0xd48] sm:$0xff] }
 0x29f   :  { %1859 = vadd.xlane.f32.xlu1 %v1858_v22  ;;  %v4809_v22 = vrot.slane %v3758_v53, %v17753_v4  ;;  %v1810_v16 = vsel %vm534_vm0, %v447_v14, 0.0 }
 0x2a0   :  { %v4897_v56 = vrot.slane %v3776_v63, %v17755_v36  ;;  %v4902_v33 = vrot.slane %v3777_v13, %v17756_v3  ;;  %v14663_v18 = vpack.c.bf16 %v2457_v58, %v2456_v57  ;;  %1856 = vadd.xlane.f32.xlu0 %v1855_v59  ;;  %v1746_v11 = vpop.xlane.xlu1 %1745  ;;  %v446_v58 = vld [vmem:[%s17653_s0 + $0xd40] sm:$0xff] }
 0x2a1   :  { %v2475_v62 = vmul.f32 0.020408163, %v1746_v11  ;;  %v1743_v8 = vpop.xlane.xlu0 %1742  ;;  %v1807_v11 = vsel %vm534_vm0, %v446_v58, 0.0 }
 0x2a2   :  { %v4898_v27 = vsel %vm4160_vm2, %v4897_v56, %v4893_v45  ;;  %v2474_v15 = vmul.f32 0.020408163, %v1743_v8  ;;  %v4814_v45 = vsel %vm4153_vm1, %v4813_v37, %v4809_v22  ;;  %v4014_v38 = vunpack.c.l.b16 %v14663_v18 }
 0x2a3   :  { %v14676_v34 = vsel %vm17757_vm3, %v4902_v33, %v4898_v27  ;;  %953 = vadd.xlane.f32.xlu1 %v952_v52 }
 0x2a4   :  { %v2785_v44 = vpack.c.bf16 %v2475_v62, %v2474_v15  ;;  %950 = vadd.xlane.f32.xlu0 %v949_v5  ;;  %v930_v60 = vpop.xlane.xlu1 %929  ;;  %v4015_v62 = vunpack.c.h.b16 %v14663_v18  ;;  %v178_v15 = vld [vmem:[%s17653_s0 + $0x4e0] sm:$0xff] }
 0x2a5   :  { %v2203_v43 = vmul.f32 0.020408163, %v930_v60  ;;  %v927_v23 = vpop.xlane.xlu0 %926  ;;  %v1006_v60 = vsel %vm534_vm0, %v179_v50, 0.0  ;;  %v1003_v53 = vsel %vm534_vm0, %v178_v15, 0.0 }
 0x2a6   :  { %v4032_v9 = vunpack.c.l.b16 %v2785_v44  ;;  %v4033_v25 = vunpack.c.h.b16 %v2785_v44  ;;  %v2202_v7 = vmul.f32 0.020408163, %v927_v23 }
 0x2a7   :  { %1043 = vadd.xlane.f32.xlu1 %v1042_v47  ;;  %v6073_v47 = vrot.slane %v4014_v38, %v17753_v4  ;;  %v17758_v38 = vld [vmem:[#allocation10_spill] sm:$0xff] }
 0x2a8   :  { %v6161_v10 = vrot.slane %v4032_v9, %v17755_v36  ;;  %v6166_v51 = vrot.slane %v4033_v25, %v17756_v3  ;;  %v2649_v46 = vpack.c.bf16 %v2203_v43, %v2202_v7  ;;  %1040 = vadd.xlane.f32.xlu0 %v1039_v31  ;;  %v1068_v24 = vpop.xlane.xlu1 %1067  ;;  %v6077_v31 = vrot.slane %v4015_v62, %v17754_v6  ;;  %v208_v9 = vld [vmem:[%s17653_s0 + $0x5d0] sm:$0xff] }
 0x2a9   :  { %v2249_v1 = vmul.f32 0.020408163, %v1068_v24  ;;  %v1065_v29 = vpop.xlane.xlu0 %1064  ;;  %v1093_v14 = vsel %vm534_vm0, %v208_v9, 0.0 }
 0x2aa   :  { %v6162_v12 = vsel %vm4160_vm2, %v6161_v10, %v6157_v26  ;;  %v3760_v59 = vunpack.c.l.b16 %v2649_v46  ;;  %v3761_v63 = vunpack.c.h.b16 %v2649_v46  ;;  %v2248_v13 = vmul.f32 0.020408163, %v1065_v29  ;;  %v435_v26 = vld [vmem:[%s17653_s0 + $0xce8] sm:$0xff] }
 0x2ab   :  { %v14705_v57 = vsel %vm17757_vm3, %v6166_v51, %v6162_v12  ;;  %1721 = vadd.xlane.f32.xlu1 %v1720_v28  ;;  %v1096_v51 = vsel %vm534_vm0, %v209_v54, 0.0  ;;  %v6078_v46 = vsel %vm4153_vm1, %v6077_v31, %v6073_v47  ;;  %v163_v31 = vld [vmem:[%s17653_s0 + $0x468] sm:$0xff] }
 0x2ac   :  { %v4818_v52 = vrot.slane %v3760_v59, %v17755_v36  ;;  %v4823_v32 = vrot.slane %v3761_v63, %v17756_v3  ;;  %v14710_v56 = vpack.c.bf16 %v2249_v1, %v2248_v13  ;;  %1718 = vadd.xlane.f32.xlu0 %v1717_v19  ;;  %v1698_v33 = vpop.xlane.xlu1 %1697  ;;  %v434_v1 = vld [vmem:[%s17653_s0 + $0xce0] sm:$0xff]  ;;  %v1774_v59 = vsel %vm534_vm0, %v435_v26, 0.0 }
 0x2ad   :  { %v2459_v8 = vmul.f32 0.020408163, %v1698_v33  ;;  %v1695_v5 = vpop.xlane.xlu0 %1694  ;;  %v11111_v26 = vld [vmem:[%s17654_s1 + $0x8e0] ss:$16 sps:$4 sm:$0xff]  }
 0x2ae   :  { %v4819_v30 = vsel %vm4160_vm2, %v4818_v52, %v4814_v45  ;;  %v2458_v27 = vmul.f32 0.020408163, %v1695_v5  ;;  %v465_v52 = vld [vmem:[%s17653_s0 + $0xdd8] sm:$0xff]  ;;  %v464_v45 = vld [vmem:[%s17653_s0 + $0xdd0] sm:$0xff]  ;;  %v3806_v15 = vunpack.c.l.b16 %v14710_v56 }
 0x2af   :  { %v14724_v48 = vsel %vm17757_vm3, %v4823_v32, %v4819_v30  ;;  %1811 = vadd.xlane.f32.xlu1 %v1810_v16  ;;  %v1771_v16 = vsel %vm534_vm0, %v434_v1, 0.0  ;;  %v1861_v47 = vsel %vm534_vm0, %v464_v45, 0.0 }
 0x2b0   :  { %v2777_v44 = vpack.c.bf16 %v2459_v8, %v2458_v27  ;;  %1808 = vadd.xlane.f32.xlu0 %v1807_v11  ;;  %v1836_v18 = vpop.xlane.xlu1 %1835  ;;  %v17759_v8 = vld [vmem:[#allocation11_spill] sm:$0xff]  ;;  %v1864_v27 = vsel %vm534_vm0, %v465_v52, 0.0  ;;  %v419_v52 = vld [vmem:[%s17653_s0 + $0xc68] sm:$0xff] }
 0x2b1   :  { %v2505_v17 = vmul.f32 0.020408163, %v1836_v18  ;;  %v1833_v2 = vpop.xlane.xlu0 %1832 }
 0x2b2   :  { %v4016_v43 = vunpack.c.l.b16 %v2777_v44  ;;  %v4017_v23 = vunpack.c.h.b16 %v2777_v44  ;;  %v2504_v55 = vmul.f32 0.020408163, %v1833_v2  ;;  %v3807_v44 = vunpack.c.h.b16 %v14710_v56 }
 0x2b3   :  { %1007 = vadd.xlane.f32.xlu1 %v1006_v60 }
 0x2b4   :  { %v6082_v25 = vrot.slane %v4016_v43, %v17755_v36  ;;  %v6087_v7 = vrot.slane %v4017_v23, %v17756_v3  ;;  %v14738_v28 = vpack.c.bf16 %v2505_v17, %v2504_v55  ;;  %1004 = vadd.xlane.f32.xlu0 %v1003_v53  ;;  %v984_v10 = vpop.xlane.xlu1 %983  ;;  %v162_v53 = vld [vmem:[%s17653_s0 + $0x460] sm:$0xff]  ;;  %v958_v23 = vsel %vm534_vm0, %v163_v31, 0.0 }
 0x2b5   :  { %v2221_v24 = vmul.f32 0.020408163, %v984_v10  ;;  %v981_v19 = vpop.xlane.xlu0 %980  ;;  %v5046_v55 = vrot.slane %v3806_v15, %v17753_v4  ;;  %v5050_v9 = vrot.slane %v3807_v44, %v17754_v6  ;;  %v193_v10 = vld [vmem:[%s17653_s0 + $0x558] sm:$0xff] }
 0x2b6   :  { %v6083_v22 = vsel %vm4160_vm2, %v6082_v25, %v6078_v46  ;;  %v2220_v37 = vmul.f32 0.020408163, %v981_v19  ;;  %v192_v19 = vld [vmem:[%s17653_s0 + $0x550] sm:$0xff]  ;;  %v4062_v31 = vunpack.c.l.b16 %v14738_v28 }
 0x2b7   :  { %v14751_v29 = vsel %vm17757_vm3, %v6087_v7, %v6083_v22  ;;  %1097 = vadd.xlane.f32.xlu1 %v1096_v51  ;;  %v955_v7 = vsel %vm534_vm0, %v162_v53, 0.0 }
 0x2b8   :  { %v2658_v58 = vpack.c.bf16 %v2221_v24, %v2220_v37  ;;  %1094 = vadd.xlane.f32.xlu0 %v1093_v14  ;;  %v1020_v12 = vpop.xlane.xlu1 %1019  ;;  %v11113_v14 = vld [vmem:[%s17654_s1 + $0x8e4] ss:$16 sps:$4 sm:$0xff]  }
 0x2b9   :  { %v2233_v63 = vmul.f32 0.020408163, %v1020_v12  ;;  %v1017_v13 = vpop.xlane.xlu0 %1016  ;;  %v1048_v12 = vsel %vm534_vm0, %v193_v10, 0.0  ;;  %9475 = vmatprep.subr.bf16.mxu0 %v11113_v14 }
 0x2ba   :  { %v3778_v32 = vunpack.c.l.b16 %v2658_v58  ;;  %v3779_v33 = vunpack.c.h.b16 %v2658_v58  ;;  %v2232_v11 = vmul.f32 0.020408163, %v1017_v13  ;;  %9476 = vmatpush1.bf16.msra.mxu0 %v11111_v26 }
 0x2bb   :  { %1775 = vadd.xlane.f32.xlu1 %v1774_v59  ;;  %v5051_v59 = vsel %vm4153_vm1, %v5050_v9, %v5046_v55  ;;  %v448_v9 = vld [vmem:[%s17653_s0 + $0xd50] sm:$0xff] }
 0x2bc   :  { %v4907_v62 = vrot.slane %v3778_v32, %v17758_v38  ;;  %v4912_v5 = vrot.slane %v3779_v33, %v17759_v8  ;;  %v14763_v50 = vpack.c.bf16 %v2233_v63, %v2232_v11  ;;  %1772 = vadd.xlane.f32.xlu0 %v1771_v16  ;;  %v1074_v30 = vpop.xlane.xlu1 %1073  ;;  %v1045_v16 = vsel %vm534_vm0, %v192_v19, 0.0 }
 0x2bd   :  { %v2251_v18 = vmul.f32 0.020408163, %v1074_v30  ;;  %v1071_v60 = vpop.xlane.xlu0 %1070  ;;  %v1813_v26 = vsel %vm534_vm0, %v448_v9, 0.0 }
 0x2be   :  { %v4908_v17 = vsel %vm4174_vm4, %v4907_v62, %v14676_v34  ;;  %v2250_v2 = vmul.f32 0.020408163, %v1071_v60  ;;  %v418_v62 = vld [vmem:[%s17653_s0 + $0xc60] sm:$0xff] }
 0x2bf   :  { %v14778_v54 = vsel %vm4181_vm5, %v4912_v5, %v4908_v17  ;;  %1865 = vadd.xlane.f32.xlu1 %v1864_v27  ;;  %v11116_v5 = vld [vmem:[%s17654_s1 + $0x8c4] ss:$16 sps:$4 sm:$0xff]   ;;  %v11114_v27 = vld [vmem:[%s17654_s1 + $0x8c0] ss:$16 sps:$4 sm:$0xff]   ;;  %v4063_v17 = vunpack.c.h.b16 %v14738_v28 }
 0x2c0   :  { %v2673_v56 = vpack.c.bf16 %v2251_v18, %v2250_v2  ;;  %1862 = vadd.xlane.f32.xlu0 %v1861_v47  ;;  %v1752_v43 = vpop.xlane.xlu1 %1751  ;;  %v1726_v47 = vsel %vm534_vm0, %v419_v52, 0.0  ;;  %9477 = vmatprep.subr.bf16.mxu0 %v11116_v5  ;;  %v11119_v28 = vld [vmem:[%s17654_s1 + $0x8a4] ss:$16 sps:$4 sm:$0xff]  }
 0x2c1   :  { %v2477_v25 = vmul.f32 0.020408163, %v1752_v43  ;;  %v1749_v34 = vpop.xlane.xlu0 %1748  ;;  %v449_v43 = vld [vmem:[%s17653_s0 + $0xd58] sm:$0xff]  ;;  %9478 = vmatpush1.bf16.msra.mxu0 %v11114_v27 }
 0x2c2   :  { %v3808_v51 = vunpack.c.l.b16 %v2673_v56  ;;  %v3809_v46 = vunpack.c.h.b16 %v2673_v56  ;;  %v2476_v24 = vmul.f32 0.020408163, %v1749_v34  ;;  %v1723_v56 = vsel %vm534_vm0, %v418_v62, 0.0  ;;  %v11117_v34 = vld [vmem:[%s17654_s1 + $0x8a0] ss:$16 sps:$4 sm:$0xff]   ;;  %9479 = vmatprep.subr.bf16.mxu0 %v11119_v28  ;;  %v437_v28 = vld [vmem:[%s17653_s0 + $0xcf8] sm:$0xff] }
 0x2c3   :  { %959 = vadd.xlane.f32.xlu1 %v958_v23  ;;  %v1816_v10 = vsel %vm534_vm0, %v449_v43, 0.0  ;;  %v3791_v62 = vunpack.c.h.b16 %v14763_v50 }
 0x2c4   :  { %v5055_v22 = vrot.slane %v3808_v51, %v17755_v36  ;;  %v5060_v37 = vrot.slane %v3809_v46, %v17756_v3  ;;  %v2786_v1 = vpack.c.bf16 %v2477_v25, %v2476_v24  ;;  %956 = vadd.xlane.f32.xlu0 %v955_v7  ;;  %v1788_v58 = vpop.xlane.xlu1 %1787  ;;  %v181_v51 = vld [vmem:[%s17653_s0 + $0x4f8] sm:$0xff]  ;;  %v6310_v46 = vrot.slane %v4062_v31, %v17753_v4 }
 0x2c5   :  { %v2489_v63 = vmul.f32 0.020408163, %v1788_v58  ;;  %v1785_v13 = vpop.xlane.xlu0 %1784  ;;  %v6314_v24 = vrot.slane %v4063_v17, %v17754_v6  ;;  %9480 = vmatpush1.bf16.msra.mxu0 %v11117_v34  ;;  %v210_v17 = vld [vmem:[%s17653_s0 + $0x5e0] sm:$0xff] }
 0x2c6   :  { %v5056_v32 = vsel %vm4160_vm2, %v5055_v22, %v5051_v59  ;;  %v4034_v33 = vunpack.c.l.b16 %v2786_v1  ;;  %v4035_v11 = vunpack.c.h.b16 %v2786_v1  ;;  %v2488_v45 = vmul.f32 0.020408163, %v1785_v13  ;;  %v180_v22 = vld [vmem:[%s17653_s0 + $0x4f0] sm:$0xff] }
 0x2c7   :  { %v14812_v30 = vsel %vm17757_vm3, %v5060_v37, %v5056_v32  ;;  %1049 = vadd.xlane.f32.xlu1 %v1048_v12  ;;  %v11122_v12 = vld [vmem:[%s17654_s1 + $0x884] ss:$16 sps:$4 sm:$0xff]   ;;  %v1012_v59 = vsel %vm534_vm0, %v181_v51, 0.0  ;;  %v1099_v51 = vsel %vm534_vm0, %v210_v17, 0.0 }
 0x2c8   :  { %v6171_v15 = vrot.slane %v4034_v33, %v17758_v38  ;;  %v6176_v44 = vrot.slane %v4035_v11, %v17759_v8  ;;  %v14819_v18 = vpack.c.bf16 %v2489_v63, %v2488_v45  ;;  %1046 = vadd.xlane.f32.xlu0 %v1045_v16  ;;  %v1842_v60 = vpop.xlane.xlu1 %1841  ;;  %v11120_v63 = vld [vmem:[%s17654_s1 + $0x880] ss:$16 sps:$4 sm:$0xff]   ;;  %v1009_v33 = vsel %vm534_vm0, %v180_v22, 0.0  ;;  %9481 = vmatprep.subr.bf16.mxu0 %v11122_v12  ;;  %v11128_v22 = vld [vmem:[%s17654_s1 + $0x844] ss:$16 sps:$4 sm:$0xff]  }
 0x2c9   :  { %v2507_v2 = vmul.f32 0.020408163, %v1842_v60  ;;  %v1839_v53 = vpop.xlane.xlu0 %1838  ;;  %v6315_v11 = vsel %vm4153_vm1, %v6314_v24, %v6310_v46  ;;  %v3790_v45 = vunpack.c.l.b16 %v14763_v50  ;;  %9482 = vmatpush1.bf16.msra.mxu0 %v11120_v63  ;;  %v11125_v50 = vld [vmem:[%s17654_s1 + $0x864] ss:$16 sps:$4 sm:$0xff]   ;;  %v11129_v12 = vld [vmem:[%s17654_s1 + $0xae0] ss:$16 sps:$4 sm:$0xff]  }
 0x2ca   :  { %v6172_v23 = vsel %vm4174_vm4, %v6171_v15, %v14705_v57  ;;  %v2506_v55 = vmul.f32 0.020408163, %v1839_v53  ;;  %v211_v15 = vld [vmem:[%s17653_s0 + $0x5e8] sm:$0xff]  ;;  %v11123_v53 = vld [vmem:[%s17654_s1 + $0x860] ss:$16 sps:$4 sm:$0xff]   ;;  %9483 = vmatprep.subr.bf16.mxu0 %v11125_v50 }
 0x2cb   :  { %v14837_v25 = vsel %vm4181_vm5, %v6176_v44, %v6172_v23  ;;  %1727 = vadd.xlane.f32.xlu1 %v1726_v47  ;;  %v1102_v9 = vsel %vm534_vm0, %v211_v15, 0.0  ;;  %v4967_v34 = vrot.slane %v3790_v45, %v17753_v4  ;;  %v436_v46 = vld [vmem:[%s17653_s0 + $0xcf0] sm:$0xff] }
 0x2cc   :  { %v2801_v7 = vpack.c.bf16 %v2507_v2, %v2506_v55  ;;  %1724 = vadd.xlane.f32.xlu0 %v1723_v56  ;;  %v936_v57 = vpop.xlane.xlu1 %935  ;;  %v11132_v50 = vld [vmem:[%s17654_s1 + $0x820] ss:$16 sps:$4 sm:$0xff]  }
 0x2cd   :  { %v2205_v19 = vmul.f32 0.020408163, %v936_v57  ;;  %v933_v14 = vpop.xlane.xlu0 %932  ;;  %9484 = vmatpush1.bf16.msra.mxu0 %v11123_v53  ;;  %v11135_v53 = vld [vmem:[%s17654_s1 + $0xac0] ss:$16 sps:$4 sm:$0xff]  }
 0x2ce   :  { %v4064_v37 = vunpack.c.l.b16 %v2801_v7  ;;  %v4065_v1 = vunpack.c.h.b16 %v2801_v7  ;;  %v2204_v58 = vmul.f32 0.020408163, %v933_v14  ;;  %v4971_v7 = vrot.slane %v3791_v62, %v17754_v6  ;;  %9485 = vmatprep.subr.bf16.mxu0 %v11128_v22  ;;  %v11140_v22 = vld [vmem:[%s17654_s1 + $0x804] ss:$16 sps:$4 sm:$0xff]  }
 0x2cf   :  { %1817 = vadd.xlane.f32.xlu1 %v1816_v10 }
 0x2d0   :  { %v6319_v13 = vrot.slane %v4064_v37, %v17755_v36  ;;  %v6324_v16 = vrot.slane %v4065_v1, %v17756_v3  ;;  %v2650_v52 = vpack.c.bf16 %v2205_v19, %v2204_v58  ;;  %1814 = vadd.xlane.f32.xlu0 %v1813_v26  ;;  %v1026_v32 = vpop.xlane.xlu1 %1025  ;;  %v11131_v37 = vld [vmem:[%s17654_s1 + $0xae4] ss:$16 sps:$4 sm:$0xff]   ;;  %v1780_v58 = vsel %vm534_vm0, %v437_v28, 0.0 }
 0x2d1   :  { %v2235_v5 = vmul.f32 0.020408163, %v1026_v32  ;;  %v1023_v27 = vpop.xlane.xlu0 %1022  ;;  %v4972_v32 = vsel %vm4153_vm1, %v4971_v7, %v4967_v34  ;;  %9516 = vmatprep.subr.bf16.mxu1 %v11131_v37  ;;  %v11143_v37 = vld [vmem:[%s17654_s1 + $0xaa4] ss:$16 sps:$4 sm:$0xff]  }
 0x2d2   :  { %v6320_v44 = vsel %vm4160_vm2, %v6319_v13, %v6315_v11  ;;  %v3762_v60 = vunpack.c.l.b16 %v2650_v52  ;;  %v3763_v47 = vunpack.c.h.b16 %v2650_v52  ;;  %v2234_v31 = vmul.f32 0.020408163, %v1023_v27  ;;  %v466_v27 = vld [vmem:[%s17653_s0 + $0xde0] sm:$0xff]  ;;  %9517 = vmatpush1.bf16.msra.mxu1 %v11129_v12 }
 0x2d3   :  { %v14876_v2 = vsel %vm17757_vm3, %v6324_v16, %v6320_v44  ;;  %1013 = vadd.xlane.f32.xlu1 %v1012_v59  ;;  %v1777_v52 = vsel %vm534_vm0, %v436_v46, 0.0  ;;  %v4047_v11 = vunpack.c.h.b16 %v14819_v18  ;;  %v164_v46 = vld [vmem:[%s17653_s0 + $0x470] sm:$0xff] }
 0x2d4   :  { %v4828_v56 = vrot.slane %v3762_v60, %v17758_v38  ;;  %v4833_v43 = vrot.slane %v3763_v47, %v17759_v8  ;;  %v2665_v23 = vpack.c.bf16 %v2235_v5, %v2234_v31  ;;  %1010 = vadd.xlane.f32.xlu0 %v1009_v33  ;;  %v1704_v55 = vpop.xlane.xlu1 %1703  ;;  %v4046_v33 = vunpack.c.l.b16 %v14819_v18  ;;  %v467_v5 = vld [vmem:[%s17653_s0 + $0xde8] sm:$0xff]  ;;  %v11134_v18 = vld [vmem:[%s17654_s1 + $0x824] ss:$16 sps:$4 sm:$0xff]  }
 0x2d5   :  { %v2461_v57 = vmul.f32 0.020408163, %v1704_v55  ;;  %v1701_v10 = vpop.xlane.xlu0 %1700  ;;  %v11137_v31 = vld [vmem:[%s17654_s1 + $0xac4] ss:$16 sps:$4 sm:$0xff]   ;;  %v6235_v34 = vrot.slane %v4047_v11, %v17754_v6  ;;  %v961_v11 = vsel %vm534_vm0, %v164_v46, 0.0 }
 0x2d6   :  { %v4829_v24 = vsel %vm4174_vm4, %v4828_v56, %v14724_v48  ;;  %v3792_v19 = vunpack.c.l.b16 %v2665_v23  ;;  %v3793_v14 = vunpack.c.h.b16 %v2665_v23  ;;  %v2460_v26 = vmul.f32 0.020408163, %v1701_v10  ;;  %v11126_v48 = vld [vmem:[%s17654_s1 + $0x840] ss:$16 sps:$4 sm:$0xff]   ;;  %9518 = vmatprep.subr.bf16.mxu1 %v11137_v31 }
 0x2d7   :  { %v14902_v1 = vsel %vm4181_vm5, %v4833_v43, %v4829_v24  ;;  %1103 = vadd.xlane.f32.xlu1 %v1102_v9  ;;  %9486 = vmatpush1.bf16.msra.mxu0 %v11126_v48  ;;  %v1870_v9 = vsel %vm534_vm0, %v467_v5, 0.0  ;;  %v6231_v28 = vrot.slane %v4046_v33, %v17753_v4  ;;  %v1867_v10 = vsel %vm534_vm0, %v466_v27, 0.0  ;;  %v11141_v48 = vld [vmem:[%s17654_s1 + $0xaa0] ss:$16 sps:$4 sm:$0xff]  }
 0x2d8   :  { %v4976_v59 = vrot.slane %v3792_v19, %v17755_v36  ;;  %v4981_v63 = vrot.slane %v3793_v14, %v17756_v3  ;;  %v2778_v13 = vpack.c.bf16 %v2461_v57, %v2460_v26  ;;  %1100 = vadd.xlane.f32.xlu0 %v1099_v51  ;;  %v1794_v16 = vpop.xlane.xlu1 %1793  ;;  %9487 = vmatprep.subr.bf16.mxu0 %v11134_v18  ;;  %v165_v51 = vld [vmem:[%s17653_s0 + $0x478] sm:$0xff]  ;;  %v11144_v31 = vld [vmem:[%s17654_s1 + $0x9e0] ss:$16 sps:$4 sm:$0xff]  }
 0x2d9   :  { %v2491_v45 = vmul.f32 0.020408163, %v1794_v16  ;;  %v1791_v62 = vpop.xlane.xlu0 %1790  ;;  %9519 = vmatpush1.bf16.msra.mxu1 %v11135_v53  ;;  %v964_v16 = vsel %vm534_vm0, %v165_v51, 0.0  ;;  %v17760_v53 = vld [vmem:[#allocation12_spill] sm:$0xff]  ;;  %v420_v51 = vld [vmem:[%s17653_s0 + $0xc70] sm:$0xff] }
 0x2da   :  { %v4977_v15 = vsel %vm4160_vm2, %v4976_v59, %v4972_v32  ;;  %v4018_v44 = vunpack.c.l.b16 %v2778_v13  ;;  %v4019_v60 = vunpack.c.h.b16 %v2778_v13  ;;  %v2490_v47 = vmul.f32 0.020408163, %v1791_v62  ;;  %v194_v62 = vld [vmem:[%s17653_s0 + $0x560] sm:$0xff]  ;;  %9520 = vmatprep.subr.bf16.mxu1 %v11143_v37 }
 0x2db   :  { %v14931_v17 = vsel %vm17757_vm3, %v4981_v63, %v4977_v15  ;;  %1781 = vadd.xlane.f32.xlu1 %v1780_v58  ;;  %9488 = vmatpush1.bf16.msra.mxu0 %v11132_v50  ;;  %v11147_v50 = vld [vmem:[%s17654_s1 + $0xa80] ss:$16 sps:$4 sm:$0xff]  }
 0x2dc   :  { %v6092_v56 = vrot.slane %v4018_v44, %v17758_v38  ;;  %v6097_v43 = vrot.slane %v4019_v60, %v17759_v8  ;;  %v2793_v23 = vpack.c.bf16 %v2491_v45, %v2490_v47  ;;  %1778 = vadd.xlane.f32.xlu0 %v1777_v52  ;;  %v990_v55 = vpop.xlane.xlu1 %989  ;;  %9489 = vmatprep.subr.bf16.mxu0 %v11140_v22  ;;  %v195_v45 = vld [vmem:[%s17653_s0 + $0x568] sm:$0xff]  ;;  %v11146_v60 = vld [vmem:[%s17654_s1 + $0x9e4] ss:$16 sps:$4 sm:$0xff]  }
 0x2dd   :  { %v2223_v7 = vmul.f32 0.020408163, %v990_v55  ;;  %v987_v57 = vpop.xlane.xlu0 %986  ;;  %v6236_v52 = vsel %vm4153_vm1, %v6235_v34, %v6231_v28  ;;  %9521 = vmatpush1.bf16.msra.mxu1 %v11141_v48  ;;  %v11149_v47 = vld [vmem:[%s17654_s1 + $0xa84] ss:$16 sps:$4 sm:$0xff]   ;;  %v1054_v28 = vsel %vm534_vm0, %v195_v45, 0.0 }
 0x2de   :  { %v6093_v24 = vsel %vm4174_vm4, %v6092_v56, %v14751_v29  ;;  %v4048_v19 = vunpack.c.l.b16 %v2793_v23  ;;  %v4049_v14 = vunpack.c.h.b16 %v2793_v23  ;;  %v2222_v26 = vmul.f32 0.020408163, %v987_v57  ;;  %v11138_v29 = vld [vmem:[%s17654_s1 + $0x800] ss:$16 sps:$4 sm:$0xff]   ;;  %9522 = vmatprep.subr.bf16.mxu1 %v11149_v47  ;;  %v11155_v22 = vld [vmem:[%s17654_s1 + $0xa64] ss:$16 sps:$4 sm:$0xff]  }
 0x2df   :  { %v14960_v58 = vsel %vm4181_vm5, %v6097_v43, %v6093_v24  ;;  %1871 = vadd.xlane.f32.xlu1 %v1870_v9  ;;  %9490 = vmatpush1.bf16.msra.mxu0 %v11138_v29  ;;  %v17761_v43 = vld [vmem:[#allocation13_spill] sm:$0xff]  ;;  %v1051_v57 = vsel %vm534_vm0, %v194_v62, 0.0 }
 0x2e0   :  { %v6240_v12 = vrot.slane %v4048_v19, %v17755_v36  ;;  %v6245_v59 = vrot.slane %v4049_v14, %v17756_v3  ;;  %v2659_v63 = vpack.c.bf16 %v2223_v7, %v2222_v26  ;;  %1868 = vadd.xlane.f32.xlu0 %v1867_v10  ;;  %v1080_v13 = vpop.xlane.xlu1 %1079  ;;  %9491 = vmatprep.subr.bf16.mxu0 %v11146_v60  ;;  %v421_v10 = vld [vmem:[%s17653_s0 + $0xc78] sm:$0xff]  ;;  %v11152_v26 = vld [vmem:[%s17654_s1 + $0x9c4] ss:$16 sps:$4 sm:$0xff]   ;;  %v11153_v29 = vld [vmem:[%s17654_s1 + $0xa60] ss:$16 sps:$4 sm:$0xff]  }
 0x2e1   :  { %v2253_v32 = vmul.f32 0.020408163, %v1080_v13  ;;  %v1077_v33 = vpop.xlane.xlu0 %1076  ;;  %9523 = vmatpush1.bf16.msra.mxu1 %v11147_v50  ;;  %v1732_v13 = vsel %vm534_vm0, %v421_v10, 0.0  ;;  %v11159_v47 = vld [vmem:[%s17654_s1 + $0xa40] ss:$16 sps:$4 sm:$0xff]  }
 0x2e2   :  { %v6241_v5 = vsel %vm4160_vm2, %v6240_v12, %v6236_v52  ;;  %v3780_v27 = vunpack.c.l.b16 %v2659_v63  ;;  %v3781_v15 = vunpack.c.h.b16 %v2659_v63  ;;  %v2252_v44 = vmul.f32 0.020408163, %v1077_v33  ;;  %v451_v33 = vld [vmem:[%s17653_s0 + $0xd68] sm:$0xff]  ;;  %9524 = vmatprep.subr.bf16.mxu1 %v11155_v22  ;;  %v11165_v22 = vld [vmem:[%s17654_s1 + $0xa20] ss:$16 sps:$4 sm:$0xff]  }
 0x2e3   :  { %v14987_v18 = vsel %vm17757_vm3, %v6245_v59, %v6241_v5  ;;  %965 = vadd.xlane.f32.xlu1 %v964_v16  ;;  %9492 = vmatpush2.bf16.msra.mxu0 %v11144_v31  ;;  %vm17762_vm3 = vcmask 523712  }
 0x2e4   :  { %v4917_v56 = vrot.slane %v3780_v27, %v17760_v53  ;;  %v4922_v23 = vrot.slane %v3781_v15, %v17761_v43  ;;  %v2674_v55 = vpack.c.bf16 %v2253_v32, %v2252_v44  ;;  %962 = vadd.xlane.f32.xlu0 %v961_v11  ;;  %v1758_v9 = vpop.xlane.xlu1 %1757  ;;  %9493 = vmatprep.subr.bf16.mxu0 %v11152_v26  ;;  %v1729_v32 = vsel %vm534_vm0, %v420_v51, 0.0  ;;  %v450_v11 = vld [vmem:[%s17653_s0 + $0xd60] sm:$0xff] }
 0x2e5   :  { %v2479_v34 = vmul.f32 0.020408163, %v1758_v9  ;;  %v1755_v7 = vpop.xlane.xlu0 %1754  ;;  %9525 = vmatpush1.bf16.msra.mxu1 %v11153_v29  ;;  %v11158_v15 = vld [vmem:[%s17654_s1 + $0x9a4] ss:$16 sps:$4 sm:$0xff]  }
 0x2e6   :  { %v4918_v46 = vsel %vm4188_vm6, %v4917_v56, %v14778_v54  ;;  %v3810_v24 = vunpack.c.l.b16 %v2674_v55  ;;  %v3811_v19 = vunpack.c.h.b16 %v2674_v55  ;;  %v2478_v14 = vmul.f32 0.020408163, %v1755_v7  ;;  %v11150_v54 = vld [vmem:[%s17654_s1 + $0x9c0] ss:$16 sps:$4 sm:$0xff]   ;;  %v11161_v44 = vld [vmem:[%s17654_s1 + $0xa44] ss:$16 sps:$4 sm:$0xff]  }
 0x2e7   :  { %v15014_v37 = vsel %vm17762_vm3, %v4922_v23, %v4918_v46  ;;  %1055 = vadd.xlane.f32.xlu1 %v1054_v28  ;;  %9494 = vmatpush2.bf16.msra.mxu0 %v11150_v54  ;;  %v1822_v55 = vsel %vm534_vm0, %v451_v33, 0.0  ;;  %v213_v7 = vld [vmem:[%s17653_s0 + $0x5f8] sm:$0xff] }
 0x2e8   :  { %v5065_v48 = vrot.slane %v3810_v24, %v17758_v38  ;;  %v5070_v12 = vrot.slane %v3811_v19, %v17759_v8  ;;  %v2787_v59 = vpack.c.bf16 %v2479_v34, %v2478_v14  ;;  %1052 = vadd.xlane.f32.xlu0 %v1051_v57  ;;  %v1848_v63 = vpop.xlane.xlu1 %1847  ;;  %9495 = vmatprep.subr.bf16.mxu0 %v11158_v15  ;;  %v1819_v34 = vsel %vm534_vm0, %v450_v11, 0.0  ;;  %v212_v57 = vld [vmem:[%s17653_s0 + $0x5f0] sm:$0xff] }
 0x2e9   :  { %v2509_v16 = vmul.f32 0.020408163, %v1848_v63  ;;  %v1845_v52 = vpop.xlane.xlu0 %1844  ;;  %9526 = vmatprep.subr.bf16.mxu1 %v11161_v44  ;;  %v11164_v19 = vld [vmem:[%s17654_s1 + $0x984] ss:$16 sps:$4 sm:$0xff]   ;;  %v11171_v44 = vld [vmem:[%s17654_s1 + $0xa00] ss:$16 sps:$4 sm:$0xff]  }
 0x2ea   :  { %v5066_v45 = vsel %vm4174_vm4, %v5065_v48, %v14812_v30  ;;  %v4036_v62 = vunpack.c.l.b16 %v2787_v59  ;;  %v4037_v5 = vunpack.c.h.b16 %v2787_v59  ;;  %v2508_v27 = vmul.f32 0.020408163, %v1845_v52  ;;  %v11156_v30 = vld [vmem:[%s17654_s1 + $0x9a0] ss:$16 sps:$4 sm:$0xff]   ;;  %9527 = vmatpush1.bf16.msra.mxu1 %v11159_v47  ;;  %v11167_v14 = vld [vmem:[%s17654_s1 + $0xa24] ss:$16 sps:$4 sm:$0xff]  }
 0x2eb   :  { %v15041_v60 = vsel %vm4181_vm5, %v5070_v12, %v5066_v45  ;;  %1733 = vadd.xlane.f32.xlu1 %v1732_v13  ;;  %9496 = vmatpush2.bf16.msra.mxu0 %v11156_v30  ;;  %v1108_v59 = vsel %vm534_vm0, %v213_v7, 0.0  ;;  %v469_v52 = vld [vmem:[%s17653_s0 + $0xdf8] sm:$0xff] }
 0x2ec   :  { %v6181_v31 = vrot.slane %v4036_v62, %v17760_v53  ;;  %v6186_v50 = vrot.slane %v4037_v5, %v17761_v43  ;;  %v2802_v56 = vpack.c.bf16 %v2509_v16, %v2508_v27  ;;  %1730 = vadd.xlane.f32.xlu0 %v1729_v32  ;;  %v942_v23 = vpop.xlane.xlu1 %941  ;;  %9497 = vmatprep.subr.bf16.mxu0 %v11164_v19  ;;  %v1105_v16 = vsel %vm534_vm0, %v212_v57, 0.0  ;;  %v468_v32 = vld [vmem:[%s17653_s0 + $0xdf0] sm:$0xff] }
 0x2ed   :  { %v2207_v9 = vmul.f32 0.020408163, %v942_v23  ;;  %v939_v28 = vpop.xlane.xlu0 %938  ;;  %9528 = vmatprep.subr.bf16.mxu1 %v11167_v14  ;;  %v11170_v5 = vld [vmem:[%s17654_s1 + $0x964] ss:$16 sps:$4 sm:$0xff]   ;;  %v11177_v14 = vld [vmem:[%s17654_s1 + $0xbe0] ss:$16 sps:$4 sm:$0xff]  }
 0x2ee   :  { %v6182_v10 = vsel %vm4188_vm6, %v6181_v31, %v14837_v25  ;;  %v4066_v51 = vunpack.c.l.b16 %v2802_v56  ;;  %v4067_v46 = vunpack.c.h.b16 %v2802_v56  ;;  %v2206_v24 = vmul.f32 0.020408163, %v939_v28  ;;  %v11162_v25 = vld [vmem:[%s17654_s1 + $0x980] ss:$16 sps:$4 sm:$0xff]   ;;  %9529 = vmatpush1.bf16.msra.mxu1 %v11165_v22  ;;  %v11173_v27 = vld [vmem:[%s17654_s1 + $0xa04] ss:$16 sps:$4 sm:$0xff]  }
 0x2ef   :  { %v15068_v26 = vsel %vm17762_vm3, %v6186_v50, %v6182_v10  ;;  %1823 = vadd.xlane.f32.xlu1 %v1822_v55  ;;  %9498 = vmatpush2.bf16.msra.mxu0 %v11162_v25  ;;  %v1876_v56 = vsel %vm534_vm0, %v469_v52, 0.0  ;;  %v197_v28 = vld [vmem:[%s17653_s0 + $0x578] sm:$0xff] }
 0x2f0   :  { %v6329_v54 = vrot.slane %v4066_v51, %v17758_v38  ;;  %v6334_v29 = vrot.slane %v4067_v46, %v17759_v8  ;;  %v2651_v48 = vpack.c.bf16 %v2207_v9, %v2206_v24  ;;  %1820 = vadd.xlane.f32.xlu0 %v1819_v34  ;;  %v1032_v12 = vpop.xlane.xlu1 %1031  ;;  %9499 = vmatprep.subr.bf16.mxu0 %v11170_v5  ;;  %v1873_v9 = vsel %vm534_vm0, %v468_v32, 0.0  ;;  %v196_v34 = vld [vmem:[%s17653_s0 + $0x570] sm:$0xff] }
 0x2f1   :  { %v2237_v63 = vmul.f32 0.020408163, %v1032_v12  ;;  %v1029_v13 = vpop.xlane.xlu0 %1028  ;;  %9530 = vmatprep.subr.bf16.mxu1 %v11173_v27  ;;  %v11176_v46 = vld [vmem:[%s17654_s1 + $0x944] ss:$16 sps:$4 sm:$0xff]   ;;  %v11183_v27 = vld [vmem:[%s17654_s1 + $0xbc0] ss:$16 sps:$4 sm:$0xff]  }
 0x2f2   :  { %v6330_v33 = vsel %vm4174_vm4, %v6329_v54, %v14876_v2  ;;  %v3764_v11 = vunpack.c.l.b16 %v2651_v48  ;;  %v3765_v45 = vunpack.c.h.b16 %v2651_v48  ;;  %v2236_v62 = vmul.f32 0.020408163, %v1029_v13  ;;  %v11168_v2 = vld [vmem:[%s17654_s1 + $0x960] ss:$16 sps:$4 sm:$0xff]   ;;  %9531 = vmatpush1.bf16.msra.mxu1 %v11171_v44  ;;  %v11179_v24 = vld [vmem:[%s17654_s1 + $0xbe4] ss:$16 sps:$4 sm:$0xff]  }
 0x2f3   :  { %v15095_v15 = vsel %vm4181_vm5, %v6334_v29, %v6330_v33  ;;  %1109 = vadd.xlane.f32.xlu1 %v1108_v59  ;;  %9500 = vmatpush2.bf16.msra.mxu0 %v11168_v2  ;;  %v1060_v48 = vsel %vm534_vm0, %v197_v28, 0.0  ;;  %v453_v13 = vld [vmem:[%s17653_s0 + $0xd78] sm:$0xff] }
 0x2f4   :  { %v4838_v30 = vrot.slane %v3764_v11, %v17760_v53  ;;  %v4843_v47 = vrot.slane %v3765_v45, %v17761_v43  ;;  %v2666_v31 = vpack.c.bf16 %v2237_v63, %v2236_v62  ;;  %1106 = vadd.xlane.f32.xlu0 %v1105_v16  ;;  %v1710_v50 = vpop.xlane.xlu1 %1709  ;;  %9501 = vmatprep.subr.bf16.mxu0 %v11176_v46  ;;  %v1057_v63 = vsel %vm534_vm0, %v196_v34, 0.0  ;;  %v452_v16 = vld [vmem:[%s17653_s0 + $0xd70] sm:$0xff] }
 0x2f5   :  { %v2463_v23 = vmul.f32 0.020408163, %v1710_v50  ;;  %v1707_v55 = vpop.xlane.xlu0 %1706  ;;  %9532 = vmatprep.subr.bf16.mxu1 %v11179_v24  ;;  %v11182_v45 = vld [vmem:[%s17654_s1 + $0x924] ss:$16 sps:$4 sm:$0xff]   ;;  %v11189_v24 = vld [vmem:[%s17654_s1 + $0xba0] ss:$16 sps:$4 sm:$0xff]  }
 0x2f6   :  { %v4839_v7 = vsel %vm4188_vm6, %v4838_v30, %v14902_v1  ;;  %v3794_v57 = vunpack.c.l.b16 %v2666_v31  ;;  %v3795_v10 = vunpack.c.h.b16 %v2666_v31  ;;  %v2462_v51 = vmul.f32 0.020408163, %v1707_v55  ;;  %v11174_v1 = vld [vmem:[%s17654_s1 + $0x940] ss:$16 sps:$4 sm:$0xff]   ;;  %9533 = vmatpush2.bf16.msra.mxu1 %v11177_v14  ;;  %v11185_v62 = vld [vmem:[%s17654_s1 + $0xbc4] ss:$16 sps:$4 sm:$0xff]  }
 0x2f7   :  { %v15122_v19 = vsel %vm17762_vm3, %v4843_v47, %v4839_v7  ;;  %1877 = vadd.xlane.f32.xlu1 %v1876_v56  ;;  %9502 = vmatpush2.bf16.msra.mxu0 %v11174_v1  ;;  %v1828_v31 = vsel %vm534_vm0, %v453_v13, 0.0  ;;  %v231_v55 = vld [vmem:[%s17653_s0 + $0x688] sm:$0xff] }
 0x2f8   :  { %v4986_v25 = vrot.slane %v3794_v57, %v17758_v38  ;;  %v4991_v22 = vrot.slane %v3795_v10, %v17759_v8  ;;  %v2779_v54 = vpack.c.bf16 %v2463_v23, %v2462_v51  ;;  %1874 = vadd.xlane.f32.xlu0 %v1873_v9  ;;  %v1800_v29 = vpop.xlane.xlu1 %1799  ;;  %9503 = vmatprep.subr.bf16.mxu0 %v11182_v45  ;;  %v1825_v23 = vsel %vm534_vm0, %v452_v16, 0.0  ;;  %v230_v9 = vld [vmem:[%s17653_s0 + $0x680] sm:$0xff]  ;;  %v17763_v45 = vld [vmem:[#allocation14_spill] sm:$0xff] }
 0x2f9   :  { %v2493_v12 = vmul.f32 0.020408163, %v1800_v29  ;;  %v1797_v59 = vpop.xlane.xlu0 %1796  ;;  %9534 = vmatprep.subr.bf16.mxu1 %v11185_v62  ;;  %v11188_v10 = vld [vmem:[%s17654_s1 + $0x904] ss:$16 sps:$4 sm:$0xff]  }
 0x2fa   :  { %v4987_v52 = vsel %vm4174_vm4, %v4986_v25, %v14931_v17  ;;  %v4020_v32 = vunpack.c.l.b16 %v2779_v54  ;;  %v4021_v33 = vunpack.c.h.b16 %v2779_v54  ;;  %v2492_v11 = vmul.f32 0.020408163, %v1797_v59  ;;  %v11180_v17 = vld [vmem:[%s17654_s1 + $0x920] ss:$16 sps:$4 sm:$0xff]   ;;  %9535 = vmatpush2.bf16.msra.mxu1 %v11183_v27  ;;  %v11191_v51 = vld [vmem:[%s17654_s1 + $0xba4] ss:$16 sps:$4 sm:$0xff]  }
 0x2fb   :  { %v15149_v5 = vsel %vm4181_vm5, %v4991_v22, %v4987_v52  ;;  %1061 = vadd.xlane.f32.xlu1 %v1060_v48  ;;  %9504 = vmatpush2.bf16.msra.mxu0 %v11180_v17  ;;  %v1162_v54 = vsel %vm534_vm0, %v231_v55, 0.0  ;;  %v487_v59 = vld [vmem:[%s17653_s0 + $0xe88] sm:$0xff]  ;;  %v17764_v17 = vld [vmem:[#allocation15_spill] sm:$0xff] }
 0x2fc   :  { %v6102_v2 = vrot.slane %v4020_v32, %v17760_v53  ;;  %v6107_v44 = vrot.slane %v4021_v33, %v17761_v43  ;;  %v2794_v30 = vpack.c.bf16 %v2493_v12, %v2492_v11  ;;  %1058 = vadd.xlane.f32.xlu0 %v1057_v63  ;;  %v996_v47 = vpop.xlane.xlu1 %995  ;;  %9505 = vmatprep.subr.bf16.mxu0 %v11188_v10  ;;  %v1159_v12 = vsel %vm534_vm0, %v230_v9, 0.0  ;;  %v486_v32 = vld [vmem:[%s17653_s0 + $0xe80] sm:$0xff] }
 0x2fd   :  { %v2225_v50 = vmul.f32 0.020408163, %v996_v47  ;;  %v993_v56 = vpop.xlane.xlu0 %992  ;;  %9536 = vmatprep.subr.bf16.mxu1 %v11191_v51  ;;  %v11194_v33 = vld [vmem:[%s17654_s1 + $0xb84] ss:$16 sps:$4 sm:$0xff]  }
 0x2fe   :  { %v6103_v28 = vsel %vm4188_vm6, %v6102_v2, %v14960_v58  ;;  %v4050_v34 = vunpack.c.l.b16 %v2794_v30  ;;  %v4051_v7 = vunpack.c.h.b16 %v2794_v30  ;;  %v2224_v57 = vmul.f32 0.020408163, %v993_v56  ;;  %v11186_v58 = vld [vmem:[%s17654_s1 + $0x900] ss:$16 sps:$4 sm:$0xff]   ;;  %9537 = vmatpush2.bf16.msra.mxu1 %v11189_v24  ;;  %v215_v56 = vld [vmem:[%s17653_s0 + $0x608] sm:$0xff] }
 0x2ff   :  { %v15176_v46 = vsel %vm17762_vm3, %v6107_v44, %v6103_v28  ;;  %1829 = vadd.xlane.f32.xlu1 %v1828_v31  ;;  %9506 = vmatpush2.bf16.msra.mxu0 %v11186_v58  ;;  %v1930_v30 = vsel %vm534_vm0, %v487_v59, 0.0 }
 0x300   :  { %v6250_v1 = vrot.slane %v4050_v34, %v17758_v38  ;;  %v6255_v14 = vrot.slane %v4051_v7, %v17759_v8  ;;  %v2660_v25 = vpack.c.bf16 %v2225_v50, %v2224_v57  ;;  %1826 = vadd.xlane.f32.xlu0 %v1825_v23  ;;  %v1086_v22 = vpop.xlane.xlu1 %1085  ;;  %9538 = vmatprep.subr.bf16.mxu1 %v11194_v33  ;;  %v1927_v50 = vsel %vm534_vm0, %v486_v32, 0.0  ;;  %v214_v34 = vld [vmem:[%s17653_s0 + $0x600] sm:$0xff] }
 0x301   :  { %v2255_v29 = vmul.f32 0.020408163, %v1086_v22  ;;  %v1083_v48 = vpop.xlane.xlu0 %1082  ;;  %v11197_v7 = vld [vmem:[%s17654_s1 + $0xb64] ss:$16 sps:$4 sm:$0xff]   ;;  %v1111_v22 = vsel %vm534_vm0, %v214_v34, 0.0 }
 0x302   :  { %v6251_v63 = vsel %vm4174_vm4, %v6250_v1, %v14987_v18  ;;  %v3782_v13 = vunpack.c.l.b16 %v2660_v25  ;;  %v3783_v16 = vunpack.c.h.b16 %v2660_v25  ;;  %v2254_v52 = vmul.f32 0.020408163, %v1083_v48  ;;  %v11192_v18 = vld [vmem:[%s17654_s1 + $0xb80] ss:$16 sps:$4 sm:$0xff]  }
 0x303   :  { %v15200_v11 = vsel %vm4181_vm5, %v6255_v14, %v6251_v63  ;;  %1163 = vadd.xlane.f32.xlu1 %v1162_v54  ;;  %9539 = vmatpush2.bf16.msra.mxu1 %v11192_v18  ;;  %v1114_v1 = vsel %vm534_vm0, %v215_v56, 0.0  ;;  %v233_v54 = vld [vmem:[%s17653_s0 + $0x698] sm:$0xff]  ;;  %v232_v63 = vld [vmem:[%s17653_s0 + $0x690] sm:$0xff] }
 0x304   :  { %v4927_v62 = vrot.slane %v3782_v13, %v17763_v45  ;;  %v4932_v27 = vrot.slane %v3783_v16, %v17764_v17  ;;  %v2675_v2 = vpack.c.bf16 %v2255_v29, %v2254_v52  ;;  %1160 = vadd.xlane.f32.xlu0 %v1159_v12  ;;  %v1764_v44 = vpop.xlane.xlu1 %1763  ;;  %9540 = vmatprep.subr.bf16.mxu1 %v11197_v7  ;;  %v11200_v13 = vld [vmem:[%s17654_s1 + $0xb44] ss:$16 sps:$4 sm:$0xff]  }
 0x305   :  { %v2481_v47 = vmul.f32 0.020408163, %v1764_v44  ;;  %v1761_v31 = vpop.xlane.xlu0 %1760  ;;  %v1165_v44 = vsel %vm534_vm0, %v232_v63, 0.0 }
 0x306   :  { %v4928_v23 = vsel %vm4202_vm8, %v4927_v62, %v15014_v37  ;;  %v3812_v55 = vunpack.c.l.b16 %v2675_v2  ;;  %v3813_v9 = vunpack.c.h.b16 %v2675_v2  ;;  %v2480_v28 = vmul.f32 0.020408163, %v1761_v31  ;;  %v11195_v37 = vld [vmem:[%s17654_s1 + $0xb60] ss:$16 sps:$4 sm:$0xff]  }
 0x307   :  { %v15221_v57 = vsel %vm4209_vm9, %v4932_v27, %v4928_v23  ;;  %1931 = vadd.xlane.f32.xlu1 %v1930_v30  ;;  %9541 = vmatpush2.bf16.msra.mxu1 %v11195_v37  ;;  %v1168_v62 = vsel %vm534_vm0, %v233_v54, 0.0  ;;  %v471_v30 = vld [vmem:[%s17653_s0 + $0xe08] sm:$0xff]  ;;  %v470_v23 = vld [vmem:[%s17653_s0 + $0xe00] sm:$0xff] }
 0x308   :  { %v5075_v10 = vrot.slane %v3812_v55, %v17760_v53  ;;  %v5080_v51 = vrot.slane %v3813_v9, %v17761_v43  ;;  %v2788_v58 = vpack.c.bf16 %v2481_v47, %v2480_v28  ;;  %1928 = vadd.xlane.f32.xlu0 %v1927_v50  ;;  %v1854_v24 = vpop.xlane.xlu1 %1853  ;;  %9542 = vmatprep.subr.bf16.mxu1 %v11200_v13  ;;  %v11203_v55 = vld [vmem:[%s17654_s1 + $0xb24] ss:$16 sps:$4 sm:$0xff]  }
 0x309   :  { %v2511_v14 = vmul.f32 0.020408163, %v1854_v24  ;;  %v1851_v25 = vpop.xlane.xlu0 %1850  ;;  %v1879_v24 = vsel %vm534_vm0, %v470_v23, 0.0 }
 0x30a   :  { %v5076_v29 = vsel %vm4188_vm6, %v5075_v10, %v15041_v60  ;;  %v4038_v48 = vunpack.c.l.b16 %v2788_v58  ;;  %v4039_v12 = vunpack.c.h.b16 %v2788_v58  ;;  %v2510_v59 = vmul.f32 0.020408163, %v1851_v25  ;;  %v11198_v60 = vld [vmem:[%s17654_s1 + $0xb40] ss:$16 sps:$4 sm:$0xff]  }
 0x30b   :  { %v15242_v16 = vsel %vm17762_vm3, %v5080_v51, %v5076_v29  ;;  %1115 = vadd.xlane.f32.xlu1 %v1114_v1  ;;  %9543 = vmatpush2.bf16.msra.mxu1 %v11198_v60  ;;  %v1882_v10 = vsel %vm534_vm0, %v471_v30, 0.0  ;;  %v489_v1 = vld [vmem:[%s17653_s0 + $0xe98] sm:$0xff]  ;;  %v488_v29 = vld [vmem:[%s17653_s0 + $0xe90] sm:$0xff] }
 0x30c   :  { %v6191_v52 = vrot.slane %v4038_v48, %v17763_v45  ;;  %v6196_v32 = vrot.slane %v4039_v12, %v17764_v17  ;;  %v2803_v33 = vpack.c.bf16 %v2511_v14, %v2510_v59  ;;  %1112 = vadd.xlane.f32.xlu0 %v1111_v22  ;;  %v948_v18 = vpop.xlane.xlu1 %947  ;;  %9544 = vmatprep.subr.bf16.mxu1 %v11203_v55  ;;  %v11206_v48 = vld [vmem:[%s17654_s1 + $0xb04] ss:$16 sps:$4 sm:$0xff]  }
 0x30d   :  { %v2209_v27 = vmul.f32 0.020408163, %v948_v18  ;;  %v945_v2 = vpop.xlane.xlu0 %944  ;;  %v1933_v18 = vsel %vm534_vm0, %v488_v29, 0.0 }
 0x30e   :  { %v6192_v47 = vsel %vm4202_vm8, %v6191_v52, %v15068_v26  ;;  %v4068_v31 = vunpack.c.l.b16 %v2803_v33  ;;  %v4069_v50 = vunpack.c.h.b16 %v2803_v33  ;;  %v2208_v56 = vmul.f32 0.020408163, %v945_v2  ;;  %v11201_v26 = vld [vmem:[%s17654_s1 + $0xb20] ss:$16 sps:$4 sm:$0xff]  }
 0x30f   :  { %v15263_v9 = vsel %vm4209_vm9, %v6196_v32, %v6192_v47  ;;  %1169 = vadd.xlane.f32.xlu1 %v1168_v62  ;;  %9545 = vmatpush2.bf16.msra.mxu1 %v11201_v26  ;;  %v1936_v52 = vsel %vm534_vm0, %v489_v1, 0.0  ;;  %v217_v62 = vld [vmem:[%s17653_s0 + $0x618] sm:$0xff]  ;;  %v216_v47 = vld [vmem:[%s17653_s0 + $0x610] sm:$0xff] }
 0x310   :  { %v6339_v28 = vrot.slane %v4068_v31, %v17760_v53  ;;  %v6344_v34 = vrot.slane %v4069_v50, %v17761_v43  ;;  %v2652_v7 = vpack.c.bf16 %v2209_v27, %v2208_v56  ;;  %1166 = vadd.xlane.f32.xlu0 %v1165_v44  ;;  %v1038_v37 = vpop.xlane.xlu1 %1037  ;;  %9546 = vmatprep.subr.bf16.mxu1 %v11206_v48 }
 0x311   :  { %v2239_v51 = vmul.f32 0.020408163, %v1038_v37  ;;  %v1035_v58 = vpop.xlane.xlu0 %1034 }
 0x312   :  { %v6340_v14 = vsel %vm4188_vm6, %v6339_v28, %v15095_v15  ;;  %v3766_v25 = vunpack.c.l.b16 %v2652_v7  ;;  %v3767_v22 = vunpack.c.h.b16 %v2652_v7  ;;  %v2238_v54 = vmul.f32 0.020408163, %v1035_v58  ;;  %v11204_v15 = vld [vmem:[%s17654_s1 + $0xb00] ss:$16 sps:$4 sm:$0xff]   ;;  %v263_v7 = vld [vmem:[%s17653_s0 + $0x788] sm:$0xff] }
 0x313   :  { %v15284_v12 = vsel %vm17762_vm3, %v6344_v34, %v6340_v14  ;;  %1883 = vadd.xlane.f32.xlu1 %v1882_v10  ;;  %9547 = vmatpush2.bf16.msra.mxu1 %v11204_v15  ;;  %v1117_v34 = vsel %vm534_vm0, %v216_v47, 0.0 }
 0x314   :  { %v4848_v59 = vrot.slane %v3766_v25, %v17763_v45  ;;  %v4853_v63 = vrot.slane %v3767_v22, %v17764_v17  ;;  %v2667_v13 = vpack.c.bf16 %v2239_v51, %v2238_v54  ;;  %1880 = vadd.xlane.f32.xlu0 %v1879_v24  ;;  %v1716_v60 = vpop.xlane.xlu1 %1715  ;;  %v262_v24 = vld [vmem:[%s17653_s0 + $0x780] sm:$0xff] }
 0x315   :  { %v2465_v32 = vmul.f32 0.020408163, %v1716_v60  ;;  %v1713_v33 = vpop.xlane.xlu0 %1712  ;;  %v1255_v15 = vsel %vm534_vm0, %v262_v24, 0.0  ;;  %v235_v24 = vld [vmem:[%s17653_s0 + $0x6a8] sm:$0xff] }
 0x316   :  { %v4849_v27 = vsel %vm4202_vm8, %v4848_v59, %v15122_v19  ;;  %v3796_v2 = vunpack.c.l.b16 %v2667_v13  ;;  %v3797_v44 = vunpack.c.h.b16 %v2667_v13  ;;  %v2464_v30 = vmul.f32 0.020408163, %v1713_v33  ;;  %v473_v59 = vld [vmem:[%s17653_s0 + $0xe18] sm:$0xff] }
 0x317   :  { %v15302_v31 = vsel %vm4209_vm9, %v4853_v63, %v4849_v27  ;;  %1937 = vadd.xlane.f32.xlu1 %v1936_v52  ;;  %v1120_v19 = vsel %vm534_vm0, %v217_v62, 0.0 }
 0x318   :  { %v4996_v50 = vrot.slane %v3796_v2, %v17760_v53  ;;  %v5001_v56 = vrot.slane %v3797_v44, %v17761_v43  ;;  %v2780_v23 = vpack.c.bf16 %v2465_v32, %v2464_v30  ;;  %1934 = vadd.xlane.f32.xlu0 %v1933_v18  ;;  %v1806_v55 = vpop.xlane.xlu1 %1805  ;;  %v472_v32 = vld [vmem:[%s17653_s0 + $0xe10] sm:$0xff] }
 0x319   :  { %v2495_v26 = vmul.f32 0.020408163, %v1806_v55  ;;  %v1803_v28 = vpop.xlane.xlu0 %1802  ;;  %v1885_v47 = vsel %vm534_vm0, %v472_v32, 0.0 }
 0x31a   :  { %v4997_v37 = vsel %vm4188_vm6, %v4996_v50, %v15149_v5  ;;  %v4022_v10 = vunpack.c.l.b16 %v2780_v23  ;;  %v4023_v51 = vunpack.c.h.b16 %v2780_v23  ;;  %v2494_v58 = vmul.f32 0.020408163, %v1803_v28  ;;  %v519_v50 = vld [vmem:[%s17653_s0 + $0xf88] sm:$0xff] }
 0x31b   :  { %v15317_v1 = vsel %vm17762_vm3, %v5001_v56, %v4997_v37  ;;  %1121 = vadd.xlane.f32.xlu1 %v1120_v19  ;;  %v1258_v5 = vsel %vm534_vm0, %v263_v7, 0.0 }
 0x31c   :  { %v6112_v14 = vrot.slane %v4022_v10, %v17763_v45  ;;  %v6117_v25 = vrot.slane %v4023_v51, %v17764_v17  ;;  %v2795_v22 = vpack.c.bf16 %v2495_v26, %v2494_v58  ;;  %1118 = vadd.xlane.f32.xlu0 %v1117_v34  ;;  %v1002_v54 = vpop.xlane.xlu1 %1001  ;;  %v518_v26 = vld [vmem:[%s17653_s0 + $0xf80] sm:$0xff] }
 0x31d   :  { %v2227_v29 = vmul.f32 0.020408163, %v1002_v54  ;;  %v999_v48 = vpop.xlane.xlu0 %998  ;;  %v2023_v58 = vsel %vm534_vm0, %v518_v26, 0.0  ;;  %v234_v54 = vld [vmem:[%s17653_s0 + $0x6a0] sm:$0xff] }
 0x31e   :  { %v6113_v63 = vsel %vm4202_vm8, %v6112_v14, %v15176_v46  ;;  %v4052_v13 = vunpack.c.l.b16 %v2795_v22  ;;  %v4053_v60 = vunpack.c.h.b16 %v2795_v22  ;;  %v2226_v52 = vmul.f32 0.020408163, %v999_v48 }
 0x31f   :  { %v15332_v33 = vsel %vm4209_vm9, %v6117_v25, %v6113_v63  ;;  %1259 = vadd.xlane.f32.xlu1 %v1258_v5  ;;  %v1888_v46 = vsel %vm534_vm0, %v473_v59, 0.0  ;;  %v1174_v59 = vsel %vm534_vm0, %v235_v24, 0.0 }
 0x320   :  { %v6260_v18 = vrot.slane %v4052_v13, %v17760_v53  ;;  %v6265_v62 = vrot.slane %v4053_v60, %v17761_v43  ;;  %v2661_v27 = vpack.c.bf16 %v2227_v29, %v2226_v52  ;;  %1256 = vadd.xlane.f32.xlu0 %v1255_v15  ;;  %v1092_v2 = vpop.xlane.xlu1 %1091  ;;  %v1171_v13 = vsel %vm534_vm0, %v234_v54, 0.0  ;;  %v247_v60 = vld [vmem:[%s17653_s0 + $0x708] sm:$0xff] }
 0x321   :  { %v2257_v44 = vmul.f32 0.020408163, %v1092_v2  ;;  %v1089_v30 = vpop.xlane.xlu0 %1088 }
 0x322   :  { %v6261_v56 = vsel %vm4188_vm6, %v6260_v18, %v15200_v11  ;;  %v3784_v23 = vunpack.c.l.b16 %v2661_v27  ;;  %v3785_v55 = vunpack.c.h.b16 %v2661_v27  ;;  %v2256_v19 = vmul.f32 0.020408163, %v1089_v30  ;;  %v246_v18 = vld [vmem:[%s17653_s0 + $0x700] sm:$0xff] }
 0x323   :  { %v15347_v28 = vsel %vm17762_vm3, %v6265_v62, %v6261_v56  ;;  %1889 = vadd.xlane.f32.xlu1 %v1888_v46  ;;  %v2026_v11 = vsel %vm534_vm0, %v519_v50, 0.0  ;;  %v1210_v46 = vsel %vm534_vm0, %v247_v60, 0.0  ;;  %vm17779_vm3 = vcmask 261312  }
 0x324   :  { %v4937_v34 = vrot.slane %v3784_v23, %v12165_v49  ;;  %v4942_v7 = vrot.slane %v3785_v55, %v12172_v61  ;;  %v2676_v37 = vpack.c.bf16 %v2257_v44, %v2256_v19  ;;  %1886 = vadd.xlane.f32.xlu0 %v1885_v47  ;;  %v15351_v10 = vpop.xlane.xlu1 %1769  ;;  %v1207_v47 = vsel %vm534_vm0, %v246_v18, 0.0  ;;  %v264_v55 = vld [vmem:[%s17653_s0 + $0x790] sm:$0xff] }
 0x325   :  { %v15354_v51 = vpop.xlane.xlu0 %1766  ;;  %v1261_v24 = vsel %vm534_vm0, %v264_v55, 0.0  ;;  %v521_v55 = vld [vmem:[%s17653_s0 + $0xf98] sm:$0xff] }
 0x326   :  { %v4938_v14 = vsel %vm4216_vm10, %v4937_v34, %v15221_v57  ;;  %v3814_v25 = vunpack.c.l.b16 %v2676_v37  ;;  %v3815_v22 = vunpack.c.h.b16 %v2676_v37 }
 0x327   :  { %v15366_v5 = vsel %vm4223_vm11, %v4942_v7, %v4938_v14  ;;  %2027 = vadd.xlane.f32.xlu1 %v2026_v11  ;;  %v491_v14 = vld [vmem:[%s17653_s0 + $0xea8] sm:$0xff] }
 0x328   :  { %v5085_v29 = vrot.slane %v3814_v25, %v17763_v45  ;;  %v5090_v48 = vrot.slane %v3815_v22, %v17764_v17  ;;  %2024 = vadd.xlane.f32.xlu0 %v2023_v58  ;;  %v1860_v15 = vpop.xlane.xlu1 %1859 }
 0x329   :  { %v2513_v63 = vmul.f32 0.020408163, %v1860_v15  ;;  %v1857_v57 = vpop.xlane.xlu0 %1856 }
 0x32a   :  { %v5086_v52 = vsel %vm4202_vm8, %v5085_v29, %v15242_v16  ;;  %v2512_v32 = vmul.f32 0.020408163, %v1857_v57  ;;  %v265_v16 = vld [vmem:[%s17653_s0 + $0x798] sm:$0xff] }
 0x32b   :  { %v15381_v62 = vsel %vm4209_vm9, %v5090_v48, %v5086_v52  ;;  %1175 = vadd.xlane.f32.xlu1 %v1174_v59  ;;  %v1264_v37 = vsel %vm534_vm0, %v265_v16, 0.0  ;;  %v490_v48 = vld [vmem:[%s17653_s0 + $0xea0] sm:$0xff] }
 0x32c   :  { %v2804_v27 = vpack.c.bf16 %v2513_v63, %v2512_v32  ;;  %1172 = vadd.xlane.f32.xlu0 %v1171_v13  ;;  %v954_v2 = vpop.xlane.xlu1 %953  ;;  %v1939_v52 = vsel %vm534_vm0, %v490_v48, 0.0  ;;  %v503_v32 = vld [vmem:[%s17653_s0 + $0xf08] sm:$0xff] }
 0x32d   :  { %v2211_v44 = vmul.f32 0.020408163, %v954_v2  ;;  %v951_v30 = vpop.xlane.xlu0 %950 }
 0x32e   :  { %v4070_v50 = vunpack.c.l.b16 %v2804_v27  ;;  %v4071_v56 = vunpack.c.h.b16 %v2804_v27  ;;  %v2210_v23 = vmul.f32 0.020408163, %v951_v30 }
 0x32f   :  { %1211 = vadd.xlane.f32.xlu1 %v1210_v46  ;;  %v502_v46 = vld [vmem:[%s17653_s0 + $0xf00] sm:$0xff] }
 0x330   :  { %v6349_v19 = vrot.slane %v4070_v50, %v17763_v45  ;;  %v6354_v26 = vrot.slane %v4071_v56, %v17764_v17  ;;  %v2653_v34 = vpack.c.bf16 %v2211_v44, %v2210_v23  ;;  %1208 = vadd.xlane.f32.xlu0 %v1207_v47  ;;  %v1044_v7 = vpop.xlane.xlu1 %1043  ;;  %v1978_v50 = vsel %vm534_vm0, %v503_v32, 0.0 }
 0x331   :  { %v2241_v11 = vmul.f32 0.020408163, %v1044_v7  ;;  %v1041_v58 = vpop.xlane.xlu0 %1040  ;;  %v1975_v23 = vsel %vm534_vm0, %v502_v46, 0.0  ;;  %v17766_v46 = vld [vmem:[#allocation21_spill] sm:$0xff] }
 0x332   :  { %v6350_v25 = vsel %vm4202_vm8, %v6349_v19, %v15284_v12  ;;  %v3768_v22 = vunpack.c.l.b16 %v2653_v34  ;;  %v3769_v54 = vunpack.c.h.b16 %v2653_v34  ;;  %v2240_v29 = vmul.f32 0.020408163, %v1041_v58  ;;  %v520_v34 = vld [vmem:[%s17653_s0 + $0xf90] sm:$0xff] }
 0x333   :  { %v15404_v15 = vsel %vm4209_vm9, %v6354_v26, %v6350_v25  ;;  %1265 = vadd.xlane.f32.xlu1 %v1264_v37  ;;  %v1942_v12 = vsel %vm534_vm0, %v491_v14, 0.0  ;;  %v2032_v58 = vsel %vm534_vm0, %v521_v55, 0.0  ;;  %v2029_v14 = vsel %vm534_vm0, %v520_v34, 0.0 }
 0x334   :  { %v4858_v59 = vrot.slane %v3768_v22, %v12165_v49  ;;  %v4863_v63 = vrot.slane %v3769_v54, %v12172_v61  ;;  %v2668_v57 = vpack.c.bf16 %v2241_v11, %v2240_v29  ;;  %1262 = vadd.xlane.f32.xlu0 %v1261_v24  ;;  %v15408_v13 = vpop.xlane.xlu1 %1721  ;;  %v218_v54 = vld [vmem:[%s17653_s0 + $0x620] sm:$0xff] }
 0x335   :  { %v15411_v60 = vpop.xlane.xlu0 %1718 }
 0x336   :  { %v4859_v18 = vsel %vm4216_vm10, %v4858_v59, %v15302_v31  ;;  %v3798_v27 = vunpack.c.l.b16 %v2668_v57  ;;  %v3799_v2 = vunpack.c.h.b16 %v2668_v57 }
 0x337   :  { %v15423_v44 = vsel %vm4223_vm11, %v4863_v63, %v4859_v18  ;;  %1943 = vadd.xlane.f32.xlu1 %v1942_v12  ;;  %v1123_v12 = vsel %vm534_vm0, %v218_v54, 0.0  ;;  %v248_v18 = vld [vmem:[%s17653_s0 + $0x710] sm:$0xff] }
 0x338   :  { %v5006_v30 = vrot.slane %v3798_v27, %v17763_v45  ;;  %v5011_v47 = vrot.slane %v3799_v2, %v17764_v17  ;;  %1940 = vadd.xlane.f32.xlu0 %v1939_v52  ;;  %v1812_v16 = vpop.xlane.xlu1 %1811  ;;  %v249_v52 = vld [vmem:[%s17653_s0 + $0x718] sm:$0xff] }
 0x339   :  { %v2497_v56 = vmul.f32 0.020408163, %v1812_v16  ;;  %v1809_v31 = vpop.xlane.xlu0 %1808  ;;  %v1216_v16 = vsel %vm534_vm0, %v249_v52, 0.0  ;;  %v236_v52 = vld [vmem:[%s17653_s0 + $0x6b0] sm:$0xff] }
 0x33a   :  { %v5007_v19 = vsel %vm4202_vm8, %v5006_v30, %v15317_v1  ;;  %v2496_v26 = vmul.f32 0.020408163, %v1809_v31  ;;  %v219_v1 = vld [vmem:[%s17653_s0 + $0x628] sm:$0xff] }
 0x33b   :  { %v15438_v7 = vsel %vm4209_vm9, %v5011_v47, %v5007_v19  ;;  %1979 = vadd.xlane.f32.xlu1 %v1978_v50  ;;  %v1126_v63 = vsel %vm534_vm0, %v219_v1, 0.0  ;;  %v475_v31 = vld [vmem:[%s17653_s0 + $0xe28] sm:$0xff]  ;;  %v474_v19 = vld [vmem:[%s17653_s0 + $0xe20] sm:$0xff] }
 0x33c   :  { %v2796_v37 = vpack.c.bf16 %v2497_v56, %v2496_v26  ;;  %1976 = vadd.xlane.f32.xlu0 %v1975_v23  ;;  %v15440_v11 = vpop.xlane.xlu1 %1007  ;;  %v17767_v23 = vld [vmem:[#allocation22_spill] sm:$0xff]  ;;  %v1891_v1 = vsel %vm534_vm0, %v474_v19, 0.0 }
 0x33d   :  { %v15443_v24 = vpop.xlane.xlu0 %1004  ;;  %v492_v19 = vld [vmem:[%s17653_s0 + $0xeb0] sm:$0xff] }
 0x33e   :  { %v4054_v25 = vunpack.c.l.b16 %v2796_v37  ;;  %v4055_v22 = vunpack.c.h.b16 %v2796_v37  ;;  %v1894_v37 = vsel %vm534_vm0, %v475_v31, 0.0  ;;  %v2482_v31 = vmul.f32 0.020408163, %v15354_v51 }
 0x33f   :  { %2033 = vadd.xlane.f32.xlu1 %v2032_v58 }
 0x340   :  { %v6270_v29 = vrot.slane %v4054_v25, %v17763_v45  ;;  %v6275_v48 = vrot.slane %v4055_v22, %v17764_v17  ;;  %2030 = vadd.xlane.f32.xlu0 %v2029_v14  ;;  %v15454_v59 = vpop.xlane.xlu1 %1097  ;;  %v505_v25 = vld [vmem:[%s17653_s0 + $0xf18] sm:$0xff]  ;;  %v504_v22 = vld [vmem:[%s17653_s0 + $0xf10] sm:$0xff] }
 0x341   :  { %v15457_v57 = vpop.xlane.xlu0 %1094 }
 0x342   :  { %v6271_v32 = vsel %vm4202_vm8, %v6270_v29, %v15347_v28  ;;  %v1213_v28 = vsel %vm534_vm0, %v248_v18, 0.0  ;;  %v1984_v29 = vsel %vm534_vm0, %v505_v25, 0.0  ;;  %v1945_v25 = vsel %vm534_vm0, %v492_v19, 0.0 }
 0x343   :  { %v15469_v27 = vsel %vm4209_vm9, %v6275_v48, %v6271_v32  ;;  %v9427_v2 = vpop.f32.mrf.mxu0  ;;  %1127 = vadd.xlane.f32.xlu1 %v1126_v63  ;;  %v1981_v63 = vsel %vm534_vm0, %v504_v22, 0.0  ;;  %v522_v22 = vld [vmem:[%s17653_s0 + $0xfa0] sm:$0xff] }
 0x344   :  { %17765 = vst [vmem:[#allocation20_spill] sm:$0xff] %v15469_v27  ;;  %v15472_v30 = vadd.f32 %v9427_v2, %v17766_v46  ;;  %1124 = vadd.xlane.f32.xlu0 %v1123_v12  ;;  %v15474_v47 = vpop.xlane.xlu1 %1775  ;;  %v237_v12 = vld [vmem:[%s17653_s0 + $0x6b8] sm:$0xff]  ;;  %v1177_v46 = vsel %vm534_vm0, %v236_v52, 0.0  ;;  %v2467_v52 = vmul.f32 0.020408163, %v15408_v13  ;;  %v2035_v39 = vsel %vm534_vm0, %v522_v22, 0.0 }
 0x345   :  { %v9429_v50 = vpop.f32.mrf.mxu0  ;;  %v15477_v56 = vpop.xlane.xlu0 %1772  ;;  %v1180_v18 = vsel %vm534_vm0, %v237_v12, 0.0  ;;  %v2228_v13 = vmul.f32 0.020408163, %v15443_v24  ;;  %v506_v24 = vld [vmem:[%s17653_s0 + $0xf20] sm:$0xff] }
 0x346   :  { %v15484_v55 = vadd.f32 %v9429_v50, %v17767_v23  ;;  %v266_v50 = vld [vmem:[%s17653_s0 + $0x7a0] sm:$0xff]  ;;  %v493_v23 = vld [vmem:[%s17653_s0 + $0xeb8] sm:$0xff] }
 0x347   :  { %v9431_v26 = vpop.f32.mrf.mxu0  ;;  %1217 = vadd.xlane.f32.xlu1 %v1216_v16  ;;  %v267_v16 = vld [vmem:[%s17653_s0 + $0x7a8] sm:$0xff]  ;;  %v1267_v51 = vsel %vm534_vm0, %v266_v50, 0.0  ;;  %v477_v50 = vld [vmem:[%s17653_s0 + $0xe38] sm:$0xff] }
 0x348   :  { %1214 = vadd.xlane.f32.xlu0 %v1213_v28  ;;  %v15489_v34 = vpop.xlane.xlu1 %1865  ;;  %v2483_v28 = vmul.f32 0.020408163, %v15351_v10  ;;  %v523_v26 = vld [vmem:[%s17653_s0 + $0xfa8] sm:$0xff]  ;;  %v1270_v10 = vsel %vm534_vm0, %v267_v16, 0.0  ;;  %v250_v16 = vld [vmem:[%s17653_s0 + $0x720] sm:$0xff]  ;;  %v15618_v53 = vsel %vm534_vm0, %v477_v50, 0.0 }
 0x349   :  { %v9432_v58 = vpop.f32.mrf.mxu0  ;;  %v15492_v14 = vpop.xlane.xlu0 %1862 }
 0x34a   :  { %v15553_v12 = vpack.c.bf16 %v2483_v28, %v2482_v31  ;;  %v2229_v28 = vmul.f32 0.020408163, %v15440_v11  ;;  %v507_v11 = vld [vmem:[%s17653_s0 + $0xf28] sm:$0xff] }
 0x34b   :  { %1895 = vadd.xlane.f32.xlu1 %v1894_v37 }
 0x34c   :  { %1892 = vadd.xlane.f32.xlu0 %v1891_v1  ;;  %v15501_v54 = vpop.xlane.xlu1 %959  ;;  %v1948_v1 = vsel %vm534_vm0, %v493_v23, 0.0  ;;  %v2466_v23 = vmul.f32 0.020408163, %v15411_v60  ;;  %v476_v60 = vld [vmem:[%s17653_s0 + $0xe30] sm:$0xff]  ;;  %v15615_v45 = vpack.c.bf16 %v2229_v28, %v2228_v13 }
 0x34d   :  { %v15504_v48 = vpop.xlane.xlu0 %956 }
 0x34e   :  { %v15613_v17 = vpack.c.bf16 %v2467_v52, %v2466_v23  ;;  %v15630_v52 = vsel %vm534_vm0, %v506_v24, 0.0  ;;  %v525_v24 = vld [vmem:[%s17653_s0 + $0xfb8] sm:$0xff] }
 0x34f   :  { %1985 = vadd.xlane.f32.xlu1 %v1984_v29  ;;  %v221_v29 = vld [vmem:[%s17653_s0 + $0x638] sm:$0xff]  ;;  %v15682_v6 = vsel %vm534_vm0, %v525_v24, 0.0 }
 0x350   :  { %1982 = vadd.xlane.f32.xlu0 %v1981_v63  ;;  %v15513_v32 = vpop.xlane.xlu1 %1049  ;;  %v220_v63 = vld [vmem:[%s17653_s0 + $0x630] sm:$0xff]  ;;  %v15576_v42 = vsel %vm534_vm0, %v221_v29, 0.0  ;;  %v239_v29 = vld [vmem:[%s17653_s0 + $0x6c8] sm:$0xff]  ;;  %v4025_v24 = vunpack.c.h.b16 %v15613_v17 }
 0x351   :  { %v15516_v2 = vpop.xlane.xlu0 %1046  ;;  %v15579_v0 = vsel %vm534_vm0, %v220_v63, 0.0  ;;  %v238_v63 = vld [vmem:[%s17653_s0 + $0x6c0] sm:$0xff] }
 0x353   :  { %1181 = vadd.xlane.f32.xlu1 %v1180_v18  ;;  %v2038_v18 = vsel %vm534_vm0, %v523_v26, 0.0 }
 0x354   :  { %1178 = vadd.xlane.f32.xlu0 %v1177_v46  ;;  %v15536_v37 = vpop.xlane.xlu1 %1727  ;;  %v251_v46 = vld [vmem:[%s17653_s0 + $0x728] sm:$0xff] }
 0x355   :  { %v15539_v58 = vpop.xlane.xlu0 %1724 }
 0x357   :  { %v9468_v31 = vpop.f32.mrf.mxu1  ;;  %1271 = vadd.xlane.f32.xlu1 %v1270_v10  ;;  %v2484_v10 = vmul.f32 0.020408163, %v15477_v56  ;;  %v15608_v56 = vsel %vm534_vm0, %v250_v16, 0.0 }
 0x358   :  { %v15570_v19 = vadd.f32 %v9468_v31, %v15472_v30  ;;  %1268 = vadd.xlane.f32.xlu0 %v1267_v51  ;;  %v15572_v26 = vpop.xlane.xlu1 %1817  ;;  %v2485_v30 = vmul.f32 0.020408163, %v15474_v47  ;;  %v4040_v31 = vunpack.c.l.b16 %v15553_v12  ;;  %v15605_v47 = vsel %vm534_vm0, %v251_v46, 0.0  ;;  %v268_v46 = vld [vmem:[%s17653_s0 + $0x7b0] sm:$0xff] }
 0x359   :  { %v9470_v51 = vpop.f32.mrf.mxu1  ;;  %v15592_v22 = vpop.xlane.xlu0 %1814 }
 0x35a   :  { %17768 = vst [vmem:[#allocation21_spill] sm:$0xff] %v15570_v19  ;;  %v15602_v35 = vadd.f32 %v9470_v51, %v15484_v55  ;;  %v269_v19 = vld [vmem:[%s17653_s0 + $0x7b8] sm:$0xff]  ;;  %v15621_v55 = vsel %vm534_vm0, %v476_v60, 0.0  ;;  %v15627_v51 = vsel %vm534_vm0, %v507_v11, 0.0  ;;  %v15638_v50 = vpack.c.bf16 %v2485_v30, %v2484_v10  ;;  %v495_v60 = vld [vmem:[%s17653_s0 + $0xec8] sm:$0xff]  ;;  %v494_v11 = vld [vmem:[%s17653_s0 + $0xec0] sm:$0xff] }
 0x35b   :  { %v9472_v43 = vpop.f32.mrf.mxu1  ;;  %1949 = vadd.xlane.f32.xlu1 %v1948_v1  ;;  %v15636_v1 = vsel %vm534_vm0, %v238_v63, 0.0  ;;  %v4041_v30 = vunpack.c.h.b16 %v15553_v12  ;;  %v6201_v10 = vrot.slane %v4040_v31, %v12165_v49  ;;  %v524_v63 = vld [vmem:[%s17653_s0 + $0xfb0] sm:$0xff]  ;;  %v4024_v12 = vunpack.c.l.b16 %v15613_v17  ;;  %v479_v17 = vld [vmem:[%s17653_s0 + $0xe48] sm:$0xff] }
 0x35c   :  { %17769 = vst [vmem:[#allocation22_spill] sm:$0xff] %v15602_v35  ;;  %1946 = vadd.xlane.f32.xlu0 %v1945_v25  ;;  %v1014_v16 = vpop.xlane.xlu1 %1013  ;;  %v15633_v43 = vsel %vm534_vm0, %v239_v29, 0.0  ;;  %v15641_v25 = vsel %vm534_vm0, %v269_v19, 0.0  ;;  %v15655_v19 = vsel %vm534_vm0, %v268_v46, 0.0  ;;  %v3786_v31 = vunpack.c.l.b16 %v15615_v45  ;;  %v253_v35 = vld [vmem:[%s17653_s0 + $0x738] sm:$0xff] }
 0x35d   :  { %v2231_v23 = vmul.f32 0.020408163, %v1014_v16  ;;  %v9473_v28 = vpop.f32.mrf.mxu1  ;;  %v1011_v13 = vpop.xlane.xlu0 %1010  ;;  %v223_v16 = vld [vmem:[%s17653_s0 + $0x648] sm:$0xff]  ;;  %v2258_v46 = vmul.f32 0.020408163, %v15457_v57  ;;  %v15676_v3 = vsel %vm534_vm0, %v495_v60, 0.0  ;;  %v6202_v60 = vsel %vm4216_vm10, %v6201_v10, %v15263_v9 }
 0x35e   :  { %v2230_v29 = vmul.f32 0.020408163, %v1011_v13  ;;  %v222_v28 = vld [vmem:[%s17653_s0 + $0x640] sm:$0xff]  ;;  %v2259_v13 = vmul.f32 0.020408163, %v15454_v59  ;;  %v15679_v36 = vsel %vm534_vm0, %v494_v11, 0.0  ;;  %v4042_v59 = vunpack.c.l.b16 %v15638_v50 }
 0x35f   :  { %2039 = vadd.xlane.f32.xlu1 %v2038_v18  ;;  %v15688_v18 = vsel %vm534_vm0, %v524_v63, 0.0  ;;  %v6206_v11 = vrot.slane %v4041_v30, %v12172_v61  ;;  %v6122_v4 = vrot.slane %v4024_v12, %v12165_v49  ;;  %v3787_v63 = vunpack.c.h.b16 %v15615_v45  ;;  %v252_v9 = vld [vmem:[%s17653_s0 + $0x730] sm:$0xff] }
 0x360   :  { %v2663_v8 = vpack.c.bf16 %v2231_v23, %v2230_v29  ;;  %2036 = vadd.xlane.f32.xlu0 %v2035_v39  ;;  %v15673_v38 = vpop.xlane.xlu1 %1103  ;;  %v15691_v39 = vsel %vm534_vm0, %v223_v16, 0.0  ;;  %v15694_v23 = vsel %vm534_vm0, %v222_v28, 0.0  ;;  %v15701_v29 = vsel %vm534_vm0, %v253_v35, 0.0 }
 0x361   :  { %v15685_v57 = vpop.xlane.xlu0 %1100  ;;  %17770 = vst [vmem:[#allocation27_spill] sm:$0xff] %v15694_v23  ;;  %17771 = vst [vmem:[#allocation28_spill] sm:$0xff] %v15701_v29  ;;  %v4947_v16 = vrot.slane %v3786_v31, %v12191_v20  ;;  %v15706_v27 = vpack.c.bf16 %v2259_v13, %v2258_v46  ;;  %v4043_v35 = vunpack.c.h.b16 %v15638_v50  ;;  %v2515_v30 = vmul.f32 0.020408163, %v15489_v34 }
 0x362   :  { %v2514_v45 = vmul.f32 0.020408163, %v15492_v14  ;;  %v3788_v10 = vunpack.c.l.b16 %v2663_v8  ;;  %v2213_v12 = vmul.f32 0.020408163, %v15501_v54  ;;  %v2212_v31 = vmul.f32 0.020408163, %v15504_v48 }
 0x363   :  { %1133 = vadd.xlane.f32.xlu1 %v15576_v42  ;;  %v6211_v42 = vrot.slane %v4042_v59, %v12191_v20  ;;  %v6207_v29 = vsel %vm4223_vm11, %v6206_v11, %v6202_v60  ;;  %v15724_v50 = vsel %vm534_vm0, %v252_v9, 0.0  ;;  %v15727_v34 = vsel %vm534_vm0, %v479_v17, 0.0 }
 0x364   :  { %1130 = vadd.xlane.f32.xlu0 %v15579_v0  ;;  %v1782_v28 = vpop.xlane.xlu1 %1781  ;;  %v6123_v0 = vsel %vm4216_vm10, %v6122_v4, %v15332_v33  ;;  %v6127_v14 = vrot.slane %v4025_v24, %v12172_v61  ;;  %v4952_v54 = vrot.slane %v3787_v63, %v12194_v21  ;;  %v3789_v59 = vunpack.c.h.b16 %v2663_v8 }
 0x365   :  { %v2487_v13 = vmul.f32 0.020408163, %v1782_v28  ;;  %v1779_v46 = vpop.xlane.xlu0 %1778  ;;  %v4948_v48 = vsel %vm4230_vm12, %v4947_v16, %v15366_v5  ;;  %v3816_v60 = vunpack.c.l.b16 %v15706_v27  ;;  %v4957_v11 = vrot.slane %v3788_v10, %v12208_v40 }
 0x366   :  { %v2486_v23 = vmul.f32 0.020408163, %v1779_v46  ;;  %v6212_v4 = vsel %vm4230_vm12, %v6211_v42, %v6207_v29  ;;  %v6216_v33 = vrot.slane %v4043_v35, %v12194_v21  ;;  %v15743_v24 = vpack.c.bf16 %v2515_v30, %v2514_v45 }
 0x367   :  { %1223 = vadd.xlane.f32.xlu1 %v15605_v47  ;;  %v2654_v8 = vpack.c.bf16 %v2213_v12, %v2212_v31  ;;  %v2469_v63 = vmul.f32 0.020408163, %v15536_v37  ;;  %v2468_v5 = vmul.f32 0.020408163, %v15539_v58  ;;  %v4962_v10 = vrot.slane %v3789_v59, %v12211_v41  ;;  %v509_v31 = vld [vmem:[%s17653_s0 + $0xf38] sm:$0xff]  ;;  %v508_v59 = vld [vmem:[%s17653_s0 + $0xf30] sm:$0xff] }
 0x368   :  { %v2791_v9 = vpack.c.bf16 %v2487_v13, %v2486_v23  ;;  %1220 = vadd.xlane.f32.xlu0 %v15608_v56  ;;  %v15739_v17 = vpop.xlane.xlu1 %1871  ;;  %v2243_v23 = vmul.f32 0.020408163, %v15513_v32  ;;  %v2242_v56 = vmul.f32 0.020408163, %v15516_v2  ;;  %v4953_v29 = vsel %vm4237_vm13, %v4952_v54, %v4948_v48 }
 0x369   :  { %v1869_v47 = vpop.xlane.xlu0 %1868  ;;  %v3817_v35 = vunpack.c.h.b16 %v15706_v27  ;;  %v4958_v45 = vsel %vm4244_vm14, %v4957_v11, %v4953_v29  ;;  %v5095_v32 = vrot.slane %v3816_v60, %v12165_v49  ;;  %v4072_v2 = vunpack.c.l.b16 %v15743_v24  ;;  %v478_v27 = vld [vmem:[%s17653_s0 + $0xe40] sm:$0xff] }
 0x36a   :  { %v4044_v16 = vunpack.c.l.b16 %v2791_v9  ;;  %v4045_v28 = vunpack.c.h.b16 %v2791_v9  ;;  %v2782_v13 = vpack.c.bf16 %v2469_v63, %v2468_v5  ;;  %v3771_v48 = vunpack.c.h.b16 %v2654_v8 }
 0x36b   :  { %1901 = vadd.xlane.f32.xlu1 %v15618_v53  ;;  %v6217_v53 = vsel %vm4237_vm13, %v6216_v33, %v6212_v4  ;;  %v2669_v60 = vpack.c.bf16 %v2243_v23, %v2242_v56  ;;  %v4963_v11 = vsel %vm4251_vm15, %v4962_v10, %v4958_v45  ;;  %v15776_v5 = vsel %vm534_vm0, %v478_v27, 0.0 }
 0x36c   :  { %v6221_v30 = vrot.slane %v4044_v16, %v12208_v40  ;;  %v6226_v37 = vrot.slane %v4045_v28, %v12211_v41  ;;  %1898 = vadd.xlane.f32.xlu0 %v15621_v55  ;;  %v966_v58 = vpop.xlane.xlu1 %965  ;;  %v3770_v55 = vunpack.c.l.b16 %v2654_v8  ;;  %v15779_v16 = vsel %vm534_vm0, %v509_v31, 0.0 }
 0x36d   :  { %v2215_v42 = vmul.f32 0.020408163, %v966_v58  ;;  %v963_v12 = vpop.xlane.xlu0 %962  ;;  %v6128_v8 = vsel %vm4223_vm11, %v6127_v14, %v6123_v0  ;;  %v15786_v56 = vsel %vm534_vm0, %v508_v59, 0.0  ;;  %v4073_v10 = vunpack.c.h.b16 %v15743_v24 }
 0x36e   :  { %v2214_v46 = vmul.f32 0.020408163, %v963_v12  ;;  %v6222_v54 = vsel %vm4244_vm14, %v6221_v30, %v6217_v53  ;;  %v4868_v29 = vrot.slane %v3770_v55, %v12191_v20  ;;  %v4026_v30 = vunpack.c.l.b16 %v2782_v13 }
 0x36f   :  { %1991 = vadd.xlane.f32.xlu1 %v15627_v51  ;;  %v6227_v9 = vsel %vm4251_vm15, %v6226_v37, %v6222_v54  ;;  %v5100_v51 = vrot.slane %v3817_v35, %v12172_v61  ;;  %v6359_v37 = vrot.slane %v4072_v2, %v12165_v49  ;;  %v4873_v0 = vrot.slane %v3771_v48, %v12194_v21 }
 0x370   :  { %v2655_v4 = vpack.c.bf16 %v2215_v42, %v2214_v46  ;;  %1988 = vadd.xlane.f32.xlu0 %v15630_v52  ;;  %v1056_v33 = vpop.xlane.xlu1 %1055  ;;  %v6712_v63 = vsel %vm6702_vm7, %v6227_v9, %v4963_v11  ;;  %v5096_v52 = vsel %vm4216_vm10, %v5095_v32, %v15381_v62  ;;  %v3800_v14 = vunpack.c.l.b16 %v2669_v60 }
 0x371   :  { %v1053_v28 = vpop.xlane.xlu0 %1052  ;;  %v15783_v23 = vpack.c.b16 %v6712_v63, %v6712_v63  ;;  %v2499_v35 = vmul.f32 0.020408163, %v15572_v26  ;;  %v2498_v58 = vmul.f32 0.020408163, %v15592_v22  ;;  %v2261_v62 = vmul.f32 0.020408163, %v15673_v38 }
 0x372   :  { %v2260_v24 = vmul.f32 0.020408163, %v15685_v57  ;;  %v3772_v45 = vunpack.c.l.b16 %v2655_v4  ;;  %v4027_v2 = vunpack.c.h.b16 %v2782_v13  ;;  %v2517_v42 = vmul.f32 0.020408163, %v15739_v17 }
 0x373   :  { %9507 = vmatprep.mubr.bf16.mxu0 %v15783_v23  ;;  %1187 = vadd.xlane.f32.xlu1 %v15633_v43  ;;  %v2516_v12 = vmul.f32 0.020408163, %v1869_v47  ;;  %v4869_v27 = vsel %vm4230_vm12, %v4868_v29, %v15423_v44  ;;  %v3801_v43 = vunpack.c.h.b16 %v2669_v60  ;;  %v6132_v22 = vrot.slane %v4026_v30, %v12191_v20 }
 0x374   :  { %1184 = vadd.xlane.f32.xlu0 %v15636_v1  ;;  %v1734_v32 = vpop.xlane.xlu1 %1733  ;;  %v15806_v38 = vsel %vm4223_vm11, %v5100_v51, %v5096_v52  ;;  %v6364_v57 = vrot.slane %v4073_v10, %v12172_v61  ;;  %v5016_v1 = vrot.slane %v3800_v14, %v12165_v49  ;;  %v3773_v55 = vunpack.c.h.b16 %v2655_v4 }
 0x375   :  { %v2471_v53 = vmul.f32 0.020408163, %v1734_v32  ;;  %v1731_v26 = vpop.xlane.xlu0 %1730  ;;  %v6360_v17 = vsel %vm4216_vm10, %v6359_v37, %v15404_v15  ;;  %v2678_v47 = vpack.c.bf16 %v2261_v62, %v2260_v24  ;;  %v4878_v44 = vrot.slane %v3772_v45, %v12208_v40 }
 0x376   :  { %v2470_v31 = vmul.f32 0.020408163, %v1731_v26  ;;  %v4874_v54 = vsel %vm4237_vm13, %v4873_v0, %v4869_v27  ;;  %v6137_v59 = vrot.slane %v4027_v2, %v12194_v21  ;;  %v2797_v48 = vpack.c.bf16 %v2499_v35, %v2498_v58 }
 0x377   :  { %1277 = vadd.xlane.f32.xlu1 %v15641_v25  ;;  %v2806_v60 = vpack.c.bf16 %v2517_v42, %v2516_v12  ;;  %v5021_v9 = vrot.slane %v3801_v43, %v12172_v61  ;;  %v6133_v25 = vsel %vm4230_vm12, %v6132_v22, %v6128_v8  ;;  %v5017_v63 = vsel %vm4216_vm10, %v5016_v1, %v15438_v7 }
 0x378   :  { %v2783_v13 = vpack.c.bf16 %v2471_v53, %v2470_v31  ;;  %1274 = vadd.xlane.f32.xlu0 %v15655_v19  ;;  %v1824_v46 = vpop.xlane.xlu1 %1823  ;;  %v4883_v51 = vrot.slane %v3773_v55, %v12211_v41  ;;  %v2245_v19 = vmul.f32 0.020408163, %v1056_v33  ;;  %v2244_v52 = vmul.f32 0.020408163, %v1053_v28 }
 0x379   :  { %v1821_v11 = vpop.xlane.xlu0 %1820  ;;  %v3818_v10 = vunpack.c.l.b16 %v2678_v47  ;;  %v4879_v8 = vsel %vm4244_vm14, %v4878_v44, %v4874_v54  ;;  %v6138_v0 = vsel %vm4237_vm13, %v6137_v59, %v6133_v25  ;;  %v4056_v14 = vunpack.c.l.b16 %v2797_v48 }
 0x37a   :  { %v4028_v4 = vunpack.c.l.b16 %v2783_v13  ;;  %v4029_v15 = vunpack.c.h.b16 %v2783_v13  ;;  %v4074_v7 = vunpack.c.l.b16 %v2806_v60  ;;  %v2501_v33 = vmul.f32 0.020408163, %v1824_v46 }
 0x37b   :  { %1955 = vadd.xlane.f32.xlu1 %v15676_v3  ;;  %v2500_v28 = vmul.f32 0.020408163, %v1821_v11  ;;  %v3819_v24 = vunpack.c.h.b16 %v2678_v47  ;;  %v2670_v45 = vpack.c.bf16 %v2245_v19, %v2244_v52  ;;  %v4057_v2 = vunpack.c.h.b16 %v2797_v48 }
 0x37c   :  { %v6142_v29 = vrot.slane %v4028_v4, %v12208_v40  ;;  %v6147_v30 = vrot.slane %v4029_v15, %v12211_v41  ;;  %1952 = vadd.xlane.f32.xlu0 %v15679_v36  ;;  %v1110_v37 = vpop.xlane.xlu1 %1109  ;;  %v4884_v36 = vsel %vm4251_vm15, %v4883_v51, %v4879_v8  ;;  %v5105_v42 = vrot.slane %v3818_v10, %v12191_v20 }
 0x37d   :  { %v2263_v35 = vmul.f32 0.020408163, %v1110_v37  ;;  %v1107_v58 = vpop.xlane.xlu0 %1106  ;;  %v4075_v27 = vunpack.c.h.b16 %v2806_v60  ;;  %v6369_v43 = vrot.slane %v4074_v7, %v12191_v20  ;;  %v2798_v55 = vpack.c.bf16 %v2501_v33, %v2500_v28  ;;  %v17772_v60 = vld [vmem:[#allocation27_spill] sm:$0xff] }
 0x37e   :  { %v2262_v62 = vmul.f32 0.020408163, %v1107_v58  ;;  %v6143_v3 = vsel %vm4244_vm14, %v6142_v29, %v6138_v0  ;;  %v5022_v13 = vsel %vm4223_vm11, %v5021_v9, %v5017_v63  ;;  %v5110_v46 = vrot.slane %v3819_v24, %v12194_v21  ;;  %v17774_v58 = vld [vmem:[#allocation20_spill] sm:$0xff] }
 0x37f   :  { %2045 = vadd.xlane.f32.xlu1 %v15682_v6  ;;  %v6148_v32 = vsel %vm4251_vm15, %v6147_v30, %v6143_v3  ;;  %v6365_v6 = vsel %vm4223_vm11, %v6364_v57, %v6360_v17  ;;  %v6280_v59 = vrot.slane %v4056_v14, %v12165_v49  ;;  %v5106_v48 = vsel %vm4230_vm12, %v5105_v42, %v15806_v38  ;;  %v17773_v30 = vld [vmem:[#allocation28_spill] sm:$0xff] }
 0x380   :  { %v2679_v12 = vpack.c.bf16 %v2263_v35, %v2262_v62  ;;  %2042 = vadd.xlane.f32.xlu0 %v15688_v18  ;;  %v1878_v53 = vpop.xlane.xlu1 %1877  ;;  %v6711_v26 = vsel %vm6702_vm7, %v6148_v32, %v4884_v36  ;;  %v3802_v18 = vunpack.c.l.b16 %v2670_v45  ;;  %v6285_v9 = vrot.slane %v4057_v2, %v12172_v61 }
 0x381   :  { %v2519_v22 = vmul.f32 0.020408163, %v1878_v53  ;;  %v1875_v31 = vpop.xlane.xlu0 %1874  ;;  %v15836_v1 = vpack.c.b16 %v6711_v26, %v6711_v26  ;;  %v6370_v25 = vsel %vm4230_vm12, %v6369_v43, %v6365_v6  ;;  %v6374_v4 = vrot.slane %v4075_v27, %v12194_v21  ;;  %v241_v6 = vld [vmem:[%s17653_s0 + $0x6d8] sm:$0xff] }
 0x382   :  { %v3820_v47 = vunpack.c.l.b16 %v2679_v12  ;;  %v2518_v44 = vmul.f32 0.020408163, %v1875_v31  ;;  %v3821_v54 = vunpack.c.h.b16 %v2679_v12  ;;  %v3803_v10 = vunpack.c.h.b16 %v2670_v45 }
 0x383   :  { %9508 = vmatmul.mubr.bf16.vlgmr.msra.gmra.mxu0 %v15836_v1  ;;  %1139 = vadd.xlane.f32.xlu1 %v15691_v39  ;;  %v4058_v39 = vunpack.c.l.b16 %v2798_v55  ;;  %v5026_v38 = vrot.slane %v3802_v18, %v12191_v20  ;;  %v5111_v37 = vsel %vm4237_vm13, %v5110_v46, %v5106_v48  ;;  %v6281_v33 = vsel %vm4216_vm10, %v6280_v59, %v17774_v58  ;;  %v240_v59 = vld [vmem:[%s17653_s0 + $0x6d0] sm:$0xff]  ;;  %v497_v58 = vld [vmem:[%s17653_s0 + $0xed8] sm:$0xff] }
 0x384   :  { %v5115_v57 = vrot.slane %v3820_v47, %v12208_v40  ;;  %v2807_v17 = vpack.c.bf16 %v2519_v22, %v2518_v44  ;;  %1136 = vadd.xlane.f32.xlu0 %v17772_v60  ;;  %v1062_v11 = vpop.xlane.xlu1 %1061  ;;  %v5120_v29 = vrot.slane %v3821_v54, %v12211_v41  ;;  %v4059_v28 = vunpack.c.h.b16 %v2798_v55 }
 0x385   :  { %v2247_v15 = vmul.f32 0.020408163, %v1062_v11  ;;  %v1059_v63 = vpop.xlane.xlu0 %1058  ;;  %v6375_v24 = vsel %vm4237_vm13, %v6374_v4, %v6370_v25  ;;  %v6290_v45 = vrot.slane %v4058_v39, %v12191_v20  ;;  %v5031_v42 = vrot.slane %v3803_v10, %v12194_v21 }
 0x386   :  { %v4076_v51 = vunpack.c.l.b16 %v2807_v17  ;;  %v4077_v19 = vunpack.c.h.b16 %v2807_v17  ;;  %v2246_v52 = vmul.f32 0.020408163, %v1059_v63  ;;  %v5116_v35 = vsel %vm4244_vm14, %v5115_v57, %v5111_v37 }
 0x387   :  { %1229 = vadd.xlane.f32.xlu1 %v17773_v30  ;;  %v5121_v12 = vsel %vm4251_vm15, %v5120_v29, %v5116_v35  ;;  %v5027_v26 = vsel %vm4230_vm12, %v5026_v38, %v5022_v13  ;;  %v6295_v55 = vrot.slane %v4059_v28, %v12194_v21  ;;  %v1192_v17 = vsel %vm534_vm0, %v241_v6, 0.0  ;;  %v496_v28 = vld [vmem:[%s17653_s0 + $0xed0] sm:$0xff] }
 0x388   :  { %v6379_v8 = vrot.slane %v4076_v51, %v12208_v40  ;;  %v6384_v0 = vrot.slane %v4077_v19, %v12211_v41  ;;  %v2671_v14 = vpack.c.bf16 %v2247_v15, %v2246_v52  ;;  %1226 = vadd.xlane.f32.xlu0 %v15724_v50  ;;  %v1830_v7 = vpop.xlane.xlu1 %1829  ;;  %v5032_v48 = vsel %vm4237_vm13, %v5031_v42, %v5027_v26 }
 0x389   :  { %v2503_v62 = vmul.f32 0.020408163, %v1830_v7  ;;  %v1827_v3 = vpop.xlane.xlu0 %1826  ;;  %v1189_v51 = vsel %vm534_vm0, %v240_v59, 0.0  ;;  %v1957_v42 = vsel %vm534_vm0, %v496_v28, 0.0  ;;  %v224_v59 = vld [vmem:[%s17653_s0 + $0x650] sm:$0xff] }
 0x38a   :  { %v3804_v36 = vunpack.c.l.b16 %v2671_v14  ;;  %v2502_v32 = vmul.f32 0.020408163, %v1827_v3  ;;  %v6380_v2 = vsel %vm4244_vm14, %v6379_v8, %v6375_v24  ;;  %v3805_v50 = vunpack.c.h.b16 %v2671_v14 }
 0x38b   :  { %1907 = vadd.xlane.f32.xlu1 %v15727_v34  ;;  %v6385_v53 = vsel %vm4251_vm15, %v6384_v0, %v6380_v2  ;;  %v6286_v34 = vsel %vm4223_vm11, %v6285_v9, %v6281_v33  ;;  %v1960_v24 = vsel %vm534_vm0, %v497_v58, 0.0 }
 0x38c   :  { %v5036_v27 = vrot.slane %v3804_v36, %v12208_v40  ;;  %v2799_v43 = vpack.c.bf16 %v2503_v62, %v2502_v32  ;;  %1904 = vadd.xlane.f32.xlu0 %v15776_v5  ;;  %v1164_v22 = vpop.xlane.xlu1 %1163  ;;  %v6714_v31 = vsel %vm6702_vm7, %v6385_v53, %v5121_v12  ;;  %v6291_v13 = vsel %vm4230_vm12, %v6290_v45, %v6286_v34  ;;  %v526_v53 = vld [vmem:[%s17653_s0 + $0xfc0] sm:$0xff] }
 0x38d   :  { %v2281_v47 = vmul.f32 0.020408163, %v1164_v22  ;;  %v1161_v44 = vpop.xlane.xlu0 %1160  ;;  %v15877_v46 = vpack.c.b16 %v6714_v31, %v6714_v31  ;;  %v5041_v57 = vrot.slane %v3805_v50, %v12211_v41  ;;  %v6296_v15 = vsel %vm4237_vm13, %v6295_v55, %v6291_v13  ;;  %v527_v50 = vld [vmem:[%s17653_s0 + $0xfc8] sm:$0xff]  ;;  %v225_v22 = vld [vmem:[%s17653_s0 + $0x658] sm:$0xff] }
 0x38e   :  { %v4060_v18 = vunpack.c.l.b16 %v2799_v43  ;;  %v4061_v54 = vunpack.c.h.b16 %v2799_v43  ;;  %v2280_v5 = vmul.f32 0.020408163, %v1161_v44  ;;  %v5037_v4 = vsel %vm4244_vm14, %v5036_v27, %v5032_v48  ;;  %v17775_v31 = vld [vmem:[#allocation7_spill] sm:$0xff]  ;;  %v17776_v34 = vld [vmem:[#allocation8_spill] sm:$0xff] }
 0x38f   :  { %9548 = vmatprep.mubr.bf16.mxu1 %v15877_v46  ;;  %1997 = vadd.xlane.f32.xlu1 %v15779_v16  ;;  %v271_v16 = vld [vmem:[%s17653_s0 + $0x7c8] sm:$0xff]  ;;  %v5042_v10 = vsel %vm4251_vm15, %v5041_v57, %v5037_v4  ;;  %v2050_v43 = vsel %vm534_vm0, %v527_v50, 0.0  ;;  %v2047_v13 = vsel %vm534_vm0, %v526_v53, 0.0  ;;  %v1144_v48 = vsel %vm534_vm0, %v225_v22, 0.0 }
 0x390   :  { %v6300_v60 = vrot.slane %v4060_v18, %v12208_v40  ;;  %v6305_v11 = vrot.slane %v4061_v54, %v12211_v41  ;;  %v2688_v9 = vpack.c.bf16 %v2281_v47, %v2280_v5  ;;  %1994 = vadd.xlane.f32.xlu0 %v15786_v56  ;;  %v1932_v25 = vpop.xlane.xlu1 %1931  ;;  %v270_v56 = vld [vmem:[%s17653_s0 + $0x7c0] sm:$0xff]  ;;  %v1282_v8 = vsel %vm534_vm0, %v271_v16, 0.0 }
 0x391   :  { %v2537_v63 = vmul.f32 0.020408163, %v1932_v25  ;;  %v1929_v39 = vpop.xlane.xlu0 %1928  ;;  %v1279_v35 = vsel %vm534_vm0, %v270_v56, 0.0  ;;  %v1141_v16 = vsel %vm534_vm0, %v224_v59, 0.0 }
 0x392   :  { %v2536_v19 = vmul.f32 0.020408163, %v1929_v39  ;;  %v6301_v52 = vsel %vm4244_vm14, %v6300_v60, %v6296_v15  ;;  %v3838_v45 = vunpack.c.l.b16 %v2688_v9  ;;  %v3839_v36 = vunpack.c.h.b16 %v2688_v9 }
 0x393   :  { %1193 = vadd.xlane.f32.xlu1 %v1192_v17  ;;  %v6306_v38 = vsel %vm4251_vm15, %v6305_v11, %v6301_v52  ;;  %v17777_v17 = vld [vmem:[#allocation6_spill] sm:$0xff]  ;;  %v17778_v11 = vld [vmem:[#allocation9_spill] sm:$0xff] }
 0x394   :  { %v15903_v29 = vpack.c.bf16 %v2537_v63, %v2536_v19  ;;  %1190 = vadd.xlane.f32.xlu0 %v1189_v51  ;;  %v1116_v30 = vpop.xlane.xlu1 %1115  ;;  %v6713_v37 = vsel %vm6702_vm7, %v6306_v38, %v5042_v10  ;;  %v5204_v6 = vrot.slane %v3838_v45, %v17775_v31  ;;  %v5208_v55 = vrot.slane %v3839_v36, %v17776_v34  ;;  %v255_v19 = vld [vmem:[%s17653_s0 + $0x748] sm:$0xff]  ;;  %v254_v52 = vld [vmem:[%s17653_s0 + $0x740] sm:$0xff] }
 0x395   :  { %v2265_v0 = vmul.f32 0.020408163, %v1116_v30  ;;  %v1113_v14 = vpop.xlane.xlu0 %1112  ;;  %v15907_v7 = vpack.c.b16 %v6713_v37, %v6713_v37 }
 0x396   :  { %v2264_v33 = vmul.f32 0.020408163, %v1113_v14  ;;  %v4094_v57 = vunpack.c.l.b16 %v15903_v29  ;;  %v5209_v15 = vsel %vm4153_vm1, %v5208_v55, %v5204_v6  ;;  %v4095_v63 = vunpack.c.h.b16 %v15903_v29  ;;  %v481_v14 = vld [vmem:[%s17653_s0 + $0xe58] sm:$0xff] }
 0x397   :  { %9549 = vmatmul.mubr.bf16.vlgmr.msra.gmra.mxu1 %v15907_v7  ;;  %1283 = vadd.xlane.f32.xlu1 %v1282_v8  ;;  %v1234_v8 = vsel %vm534_vm0, %v255_v19, 0.0  ;;  %v243_v19 = vld [vmem:[%s17653_s0 + $0x6e8] sm:$0xff] }
 0x398   :  { %v15917_v62 = vpack.c.bf16 %v2265_v0, %v2264_v33  ;;  %1280 = vadd.xlane.f32.xlu0 %v1279_v35  ;;  %v1170_v3 = vpop.xlane.xlu1 %1169  ;;  %v6468_v29 = vrot.slane %v4094_v57, %v17775_v31  ;;  %v1231_v0 = vsel %vm534_vm0, %v254_v52, 0.0  ;;  %v6472_v35 = vrot.slane %v4095_v63, %v17776_v34 }
 0x399   :  { %v2283_v32 = vmul.f32 0.020408163, %v1170_v3  ;;  %v1167_v2 = vpop.xlane.xlu0 %1166 }
 0x39a   :  { %v2282_v12 = vmul.f32 0.020408163, %v1167_v2  ;;  %v3822_v58 = vunpack.c.l.b16 %v15917_v62  ;;  %v3823_v33 = vunpack.c.h.b16 %v15917_v62  ;;  %v1912_v2 = vsel %vm534_vm0, %v481_v14, 0.0 }
 0x39b   :  { %1961 = vadd.xlane.f32.xlu1 %v1960_v24  ;;  %v480_v24 = vld [vmem:[%s17653_s0 + $0xe50] sm:$0xff] }
 0x39c   :  { %v2689_v26 = vpack.c.bf16 %v2283_v32, %v2282_v12  ;;  %1958 = vadd.xlane.f32.xlu0 %v1957_v42  ;;  %v1884_v27 = vpop.xlane.xlu1 %1883  ;;  %v1909_v62 = vsel %vm534_vm0, %v480_v24, 0.0  ;;  %v5129_v22 = vrot.slane %v3823_v33, %v17776_v34  ;;  %v273_v33 = vld [vmem:[%s17653_s0 + $0x7d8] sm:$0xff] }
 0x39d   :  { %v2521_v47 = vmul.f32 0.020408163, %v1884_v27  ;;  %v1881_v44 = vpop.xlane.xlu0 %1880  ;;  %v6473_v27 = vsel %vm4153_vm1, %v6472_v35, %v6468_v29 }
 0x39e   :  { %v3840_v18 = vunpack.c.l.b16 %v2689_v26  ;;  %v3841_v54 = vunpack.c.h.b16 %v2689_v26  ;;  %v2520_v5 = vmul.f32 0.020408163, %v1881_v44  ;;  %v511_v26 = vld [vmem:[%s17653_s0 + $0xf48] sm:$0xff] }
 0x39f   :  { %2051 = vadd.xlane.f32.xlu1 %v2050_v43  ;;  %v5125_v43 = vrot.slane %v3822_v58, %v17775_v31  ;;  %v2002_v59 = vsel %vm534_vm0, %v511_v26, 0.0 }
 0x3a0   :  { %v5213_v60 = vrot.slane %v3840_v18, %v17777_v17  ;;  %v5218_v9 = vrot.slane %v3841_v54, %v17778_v11  ;;  %v15941_v25 = vpack.c.bf16 %v2521_v47, %v2520_v5  ;;  %2048 = vadd.xlane.f32.xlu0 %v2047_v13  ;;  %v1938_v4 = vpop.xlane.xlu1 %1937  ;;  %v510_v47 = vld [vmem:[%s17653_s0 + $0xf40] sm:$0xff] }
 0x3a1   :  { %v2539_v39 = vmul.f32 0.020408163, %v1938_v4  ;;  %v1935_v51 = vpop.xlane.xlu0 %1934  ;;  %v1999_v4 = vsel %vm534_vm0, %v510_v47, 0.0 }
 0x3a2   :  { %v5214_v56 = vsel %vm4160_vm2, %v5213_v60, %v5209_v15  ;;  %v2538_v10 = vmul.f32 0.020408163, %v1935_v51  ;;  %v5130_v15 = vsel %vm4153_vm1, %v5129_v22, %v5125_v43  ;;  %v4078_v63 = vunpack.c.l.b16 %v15941_v25 }
 0x3a3   :  { %v15954_v38 = vsel %vm17779_vm3, %v5218_v9, %v5214_v56  ;;  %1145 = vadd.xlane.f32.xlu1 %v1144_v48 }
 0x3a4   :  { %v2817_v30 = vpack.c.bf16 %v2539_v39, %v2538_v10  ;;  %1142 = vadd.xlane.f32.xlu0 %v1141_v16  ;;  %v1122_v37 = vpop.xlane.xlu1 %1121  ;;  %v4079_v39 = vunpack.c.h.b16 %v15941_v25  ;;  %v242_v10 = vld [vmem:[%s17653_s0 + $0x6e0] sm:$0xff] }
 0x3a5   :  { %v2267_v28 = vmul.f32 0.020408163, %v1122_v37  ;;  %v1119_v3 = vpop.xlane.xlu0 %1118  ;;  %v1198_v37 = vsel %vm534_vm0, %v243_v19, 0.0  ;;  %v1195_v58 = vsel %vm534_vm0, %v242_v10, 0.0 }
 0x3a6   :  { %v4096_v45 = vunpack.c.l.b16 %v2817_v30  ;;  %v4097_v36 = vunpack.c.h.b16 %v2817_v30  ;;  %v2266_v32 = vmul.f32 0.020408163, %v1119_v3 }
 0x3a7   :  { %1235 = vadd.xlane.f32.xlu1 %v1234_v8  ;;  %v6389_v8 = vrot.slane %v4078_v63, %v17775_v31  ;;  %v17780_v63 = vld [vmem:[#allocation10_spill] sm:$0xff] }
 0x3a8   :  { %v6477_v42 = vrot.slane %v4096_v45, %v17777_v17  ;;  %v6482_v50 = vrot.slane %v4097_v36, %v17778_v11  ;;  %v2681_v12 = vpack.c.bf16 %v2267_v28, %v2266_v32  ;;  %1232 = vadd.xlane.f32.xlu0 %v1231_v0  ;;  %v1260_v53 = vpop.xlane.xlu1 %1259  ;;  %v6393_v0 = vrot.slane %v4079_v39, %v17776_v34  ;;  %v272_v45 = vld [vmem:[%s17653_s0 + $0x7d0] sm:$0xff] }
 0x3a9   :  { %v2313_v6 = vmul.f32 0.020408163, %v1260_v53  ;;  %v1257_v55 = vpop.xlane.xlu0 %1256  ;;  %v1285_v26 = vsel %vm534_vm0, %v272_v45, 0.0 }
 0x3aa   :  { %v6478_v44 = vsel %vm4160_vm2, %v6477_v42, %v6473_v27  ;;  %v3824_v13 = vunpack.c.l.b16 %v2681_v12  ;;  %v3825_v18 = vunpack.c.h.b16 %v2681_v12  ;;  %v2312_v54 = vmul.f32 0.020408163, %v1257_v55  ;;  %v499_v27 = vld [vmem:[%s17653_s0 + $0xee8] sm:$0xff] }
 0x3ab   :  { %v15983_v5 = vsel %vm17779_vm3, %v6482_v50, %v6478_v44  ;;  %1913 = vadd.xlane.f32.xlu1 %v1912_v2  ;;  %v1288_v50 = vsel %vm534_vm0, %v273_v33, 0.0  ;;  %v6394_v12 = vsel %vm4153_vm1, %v6393_v0, %v6389_v8  ;;  %v227_v0 = vld [vmem:[%s17653_s0 + $0x668] sm:$0xff] }
 0x3ac   :  { %v5134_v48 = vrot.slane %v3824_v13, %v17777_v17  ;;  %v5139_v57 = vrot.slane %v3825_v18, %v17778_v11  ;;  %v15988_v60 = vpack.c.bf16 %v2313_v6, %v2312_v54  ;;  %1910 = vadd.xlane.f32.xlu0 %v1909_v62  ;;  %v1890_v9 = vpop.xlane.xlu1 %1889  ;;  %v498_v6 = vld [vmem:[%s17653_s0 + $0xee0] sm:$0xff]  ;;  %v1966_v13 = vsel %vm534_vm0, %v499_v27, 0.0 }
 0x3ad   :  { %v2523_v51 = vmul.f32 0.020408163, %v1890_v9  ;;  %v1887_v16 = vpop.xlane.xlu0 %1886  ;;  %v11207_v27 = vld [vmem:[%s17654_s1 + $0xce0] ss:$16 sps:$4 sm:$0xff]  }
 0x3ae   :  { %v5135_v52 = vsel %vm4160_vm2, %v5134_v48, %v5130_v15  ;;  %v2522_v56 = vmul.f32 0.020408163, %v1887_v16  ;;  %v529_v48 = vld [vmem:[%s17653_s0 + $0xfd8] sm:$0xff]  ;;  %v528_v15 = vld [vmem:[%s17653_s0 + $0xfd0] sm:$0xff]  ;;  %v3870_v10 = vunpack.c.l.b16 %v15988_v60 }
 0x3af   :  { %v16002_v29 = vsel %vm17779_vm3, %v5139_v57, %v5135_v52  ;;  %2003 = vadd.xlane.f32.xlu1 %v2002_v59  ;;  %v1963_v59 = vsel %vm534_vm0, %v498_v6, 0.0  ;;  %v2053_v8 = vsel %vm534_vm0, %v528_v15, 0.0 }
 0x3b0   :  { %v2809_v30 = vpack.c.bf16 %v2523_v51, %v2522_v56  ;;  %2000 = vadd.xlane.f32.xlu0 %v1999_v4  ;;  %v2028_v25 = vpop.xlane.xlu1 %2027  ;;  %v17781_v51 = vld [vmem:[#allocation11_spill] sm:$0xff]  ;;  %v2056_v56 = vsel %vm534_vm0, %v529_v48, 0.0  ;;  %v483_v48 = vld [vmem:[%s17653_s0 + $0xe68] sm:$0xff] }
 0x3b1   :  { %v2569_v14 = vmul.f32 0.020408163, %v2028_v25  ;;  %v2025_v35 = vpop.xlane.xlu0 %2024 }
 0x3b2   :  { %v4080_v28 = vunpack.c.l.b16 %v2809_v30  ;;  %v4081_v3 = vunpack.c.h.b16 %v2809_v30  ;;  %v2568_v24 = vmul.f32 0.020408163, %v2025_v35  ;;  %v3871_v30 = vunpack.c.h.b16 %v15988_v60 }
 0x3b3   :  { %1199 = vadd.xlane.f32.xlu1 %v1198_v37 }
 0x3b4   :  { %v6398_v36 = vrot.slane %v4080_v28, %v17777_v17  ;;  %v6403_v32 = vrot.slane %v4081_v3, %v17778_v11  ;;  %v16016_v2 = vpack.c.bf16 %v2569_v14, %v2568_v24  ;;  %1196 = vadd.xlane.f32.xlu0 %v1195_v58  ;;  %v1176_v42 = vpop.xlane.xlu1 %1175  ;;  %v226_v58 = vld [vmem:[%s17653_s0 + $0x660] sm:$0xff]  ;;  %v1150_v3 = vsel %vm534_vm0, %v227_v0, 0.0 }
 0x3b5   :  { %v2285_v53 = vmul.f32 0.020408163, %v1176_v42  ;;  %v1173_v62 = vpop.xlane.xlu0 %1172  ;;  %v5362_v24 = vrot.slane %v3870_v10, %v17775_v31  ;;  %v5366_v45 = vrot.slane %v3871_v30, %v17776_v34  ;;  %v257_v42 = vld [vmem:[%s17653_s0 + $0x758] sm:$0xff] }
 0x3b6   :  { %v6399_v43 = vsel %vm4160_vm2, %v6398_v36, %v6394_v12  ;;  %v2284_v22 = vmul.f32 0.020408163, %v1173_v62  ;;  %v4126_v0 = vunpack.c.l.b16 %v16016_v2 }
 0x3b7   :  { %v16029_v55 = vsel %vm17779_vm3, %v6403_v32, %v6399_v43  ;;  %1289 = vadd.xlane.f32.xlu1 %v1288_v50  ;;  %v1147_v32 = vsel %vm534_vm0, %v226_v58, 0.0  ;;  %v11209_v50 = vld [vmem:[%s17654_s1 + $0xce4] ss:$16 sps:$4 sm:$0xff]  }
 0x3b8   :  { %v2690_v47 = vpack.c.bf16 %v2285_v53, %v2284_v22  ;;  %1286 = vadd.xlane.f32.xlu0 %v1285_v26  ;;  %v1212_v44 = vpop.xlane.xlu1 %1211  ;;  %v256_v26 = vld [vmem:[%s17653_s0 + $0x750] sm:$0xff]  ;;  %9557 = vmatprep.subr.bf16.mxu0 %v11209_v50 }
 0x3b9   :  { %v2297_v18 = vmul.f32 0.020408163, %v1212_v44  ;;  %v1209_v54 = vpop.xlane.xlu0 %1208  ;;  %v1240_v44 = vsel %vm534_vm0, %v257_v42, 0.0  ;;  %9558 = vmatpush1.bf16.msra.mxu0 %v11207_v27 }
 0x3ba   :  { %v3842_v57 = vunpack.c.l.b16 %v2690_v47  ;;  %v3843_v9 = vunpack.c.h.b16 %v2690_v47  ;;  %v2296_v4 = vmul.f32 0.020408163, %v1209_v54 }
 0x3bb   :  { %1967 = vadd.xlane.f32.xlu1 %v1966_v13  ;;  %v5367_v13 = vsel %vm4153_vm1, %v5366_v45, %v5362_v24 }
 0x3bc   :  { %v5223_v39 = vrot.slane %v3842_v57, %v17780_v63  ;;  %v5228_v16 = vrot.slane %v3843_v9, %v17781_v51  ;;  %v16041_v19 = vpack.c.bf16 %v2297_v18, %v2296_v4  ;;  %1964 = vadd.xlane.f32.xlu0 %v1963_v59  ;;  %v1266_v52 = vpop.xlane.xlu1 %1265  ;;  %v1237_v59 = vsel %vm534_vm0, %v256_v26, 0.0  ;;  %v11212_v57 = vld [vmem:[%s17654_s1 + $0xcc4] ss:$16 sps:$4 sm:$0xff]  }
 0x3bd   :  { %v2315_v25 = vmul.f32 0.020408163, %v1266_v52  ;;  %v1263_v37 = vpop.xlane.xlu0 %1262  ;;  %v11210_v52 = vld [vmem:[%s17654_s1 + $0xcc0] ss:$16 sps:$4 sm:$0xff]   ;;  %9559 = vmatprep.subr.bf16.mxu0 %v11212_v57 }
 0x3be   :  { %v5224_v14 = vsel %vm4174_vm4, %v5223_v39, %v15954_v38  ;;  %v2314_v35 = vmul.f32 0.020408163, %v1263_v37  ;;  %9560 = vmatpush1.bf16.msra.mxu0 %v11210_v52 }
 0x3bf   :  { %v16056_v33 = vsel %vm4181_vm5, %v5228_v16, %v5224_v14  ;;  %2057 = vadd.xlane.f32.xlu1 %v2056_v56  ;;  %v482_v16 = vld [vmem:[%s17653_s0 + $0xe60] sm:$0xff]  ;;  %v4127_v14 = vunpack.c.h.b16 %v16016_v2  ;;  %v512_v2 = vld [vmem:[%s17653_s0 + $0xf50] sm:$0xff] }
 0x3c0   :  { %v2705_v60 = vpack.c.bf16 %v2315_v25, %v2314_v35  ;;  %2054 = vadd.xlane.f32.xlu0 %v2053_v8  ;;  %v1944_v28 = vpop.xlane.xlu1 %1943  ;;  %v1918_v8 = vsel %vm534_vm0, %v483_v48, 0.0  ;;  %v2005_v27 = vsel %vm534_vm0, %v512_v2, 0.0 }
 0x3c1   :  { %v2541_v36 = vmul.f32 0.020408163, %v1944_v28  ;;  %v1941_v38 = vpop.xlane.xlu0 %1940  ;;  %v513_v28 = vld [vmem:[%s17653_s0 + $0xf58] sm:$0xff] }
 0x3c2   :  { %v3872_v12 = vunpack.c.l.b16 %v2705_v60  ;;  %v3873_v53 = vunpack.c.h.b16 %v2705_v60  ;;  %v2540_v62 = vmul.f32 0.020408163, %v1941_v38  ;;  %v1915_v60 = vsel %vm534_vm0, %v482_v16, 0.0 }
 0x3c3   :  { %1151 = vadd.xlane.f32.xlu1 %v1150_v3  ;;  %v11215_v3 = vld [vmem:[%s17654_s1 + $0xca4] ss:$16 sps:$4 sm:$0xff]   ;;  %v2008_v50 = vsel %vm534_vm0, %v513_v28, 0.0  ;;  %v3855_v16 = vunpack.c.h.b16 %v16041_v19 }
 0x3c4   :  { %v5371_v43 = vrot.slane %v3872_v12, %v17777_v17  ;;  %v5376_v22 = vrot.slane %v3873_v53, %v17778_v11  ;;  %v2818_v6 = vpack.c.bf16 %v2541_v36, %v2540_v62  ;;  %1148 = vadd.xlane.f32.xlu0 %v1147_v32  ;;  %v1980_v47 = vpop.xlane.xlu1 %1979  ;;  %v11213_v36 = vld [vmem:[%s17654_s1 + $0xca0] ss:$16 sps:$4 sm:$0xff]   ;;  %9561 = vmatprep.subr.bf16.mxu0 %v11215_v3 }
 0x3c5   :  { %v2553_v18 = vmul.f32 0.020408163, %v1980_v47  ;;  %v1977_v54 = vpop.xlane.xlu0 %1976  ;;  %9562 = vmatpush1.bf16.msra.mxu0 %v11213_v36  ;;  %v6626_v12 = vrot.slane %v4126_v0, %v17775_v31  ;;  %v6630_v53 = vrot.slane %v4127_v14, %v17776_v34  ;;  %v501_v36 = vld [vmem:[%s17653_s0 + $0xef8] sm:$0xff] }
 0x3c6   :  { %v5372_v9 = vsel %vm4160_vm2, %v5371_v43, %v5367_v13  ;;  %v4098_v4 = vunpack.c.l.b16 %v2818_v6  ;;  %v4099_v15 = vunpack.c.h.b16 %v2818_v6  ;;  %v2552_v39 = vmul.f32 0.020408163, %v1977_v54  ;;  %v244_v43 = vld [vmem:[%s17653_s0 + $0x6f0] sm:$0xff] }
 0x3c7   :  { %v16093_v56 = vsel %vm17779_vm3, %v5376_v22, %v5372_v9  ;;  %1241 = vadd.xlane.f32.xlu1 %v1240_v44  ;;  %v11218_v22 = vld [vmem:[%s17654_s1 + $0xc84] ss:$16 sps:$4 sm:$0xff]   ;;  %v11216_v13 = vld [vmem:[%s17654_s1 + $0xc80] ss:$16 sps:$4 sm:$0xff]   ;;  %v1201_v9 = vsel %vm534_vm0, %v244_v43, 0.0 }
 0x3c8   :  { %v6487_v10 = vrot.slane %v4098_v4, %v17780_v63  ;;  %v6492_v30 = vrot.slane %v4099_v15, %v17781_v51  ;;  %v16097_v25 = vpack.c.bf16 %v2553_v18, %v2552_v39  ;;  %1238 = vadd.xlane.f32.xlu0 %v1237_v59  ;;  %v2034_v37 = vpop.xlane.xlu1 %2033  ;;  %9563 = vmatprep.subr.bf16.mxu0 %v11218_v22  ;;  %v275_v4 = vld [vmem:[%s17653_s0 + $0x7e8] sm:$0xff]  ;;  %v3854_v39 = vunpack.c.l.b16 %v16041_v19 }
 0x3c9   :  { %v2571_v35 = vmul.f32 0.020408163, %v2034_v37  ;;  %v2031_v58 = vpop.xlane.xlu0 %2030  ;;  %9564 = vmatpush1.bf16.msra.mxu0 %v11216_v13  ;;  %v6631_v15 = vsel %vm4153_vm1, %v6630_v53, %v6626_v12  ;;  %v11221_v37 = vld [vmem:[%s17654_s1 + $0xc64] ss:$16 sps:$4 sm:$0xff]   ;;  %v1972_v13 = vsel %vm534_vm0, %v501_v36, 0.0  ;;  %v229_v36 = vld [vmem:[%s17653_s0 + $0x678] sm:$0xff] }
 0x3ca   :  { %v6488_v24 = vsel %vm4174_vm4, %v6487_v10, %v15983_v5  ;;  %v2570_v45 = vmul.f32 0.020408163, %v2031_v58  ;;  %v245_v5 = vld [vmem:[%s17653_s0 + $0x6f8] sm:$0xff]  ;;  %v11219_v58 = vld [vmem:[%s17654_s1 + $0xc60] ss:$16 sps:$4 sm:$0xff]   ;;  %9565 = vmatprep.subr.bf16.mxu0 %v11221_v37 }
 0x3cb   :  { %v16118_v38 = vsel %vm4181_vm5, %v6492_v30, %v6488_v24  ;;  %1919 = vadd.xlane.f32.xlu1 %v1918_v8  ;;  %v1204_v18 = vsel %vm534_vm0, %v245_v5, 0.0  ;;  %v274_v30 = vld [vmem:[%s17653_s0 + $0x7e0] sm:$0xff] }
 0x3cc   :  { %v2833_v32 = vpack.c.bf16 %v2571_v35, %v2570_v45  ;;  %1916 = vadd.xlane.f32.xlu0 %v1915_v60  ;;  %v1128_v42 = vpop.xlane.xlu1 %1127  ;;  %v1294_v60 = vsel %vm534_vm0, %v275_v4, 0.0  ;;  %v1291_v2 = vsel %vm534_vm0, %v274_v30, 0.0  ;;  %v11224_v53 = vld [vmem:[%s17654_s1 + $0xc44] ss:$16 sps:$4 sm:$0xff]  }
 0x3cd   :  { %v2269_v62 = vmul.f32 0.020408163, %v1128_v42  ;;  %v1125_v26 = vpop.xlane.xlu0 %1124  ;;  %9566 = vmatpush1.bf16.msra.mxu0 %v11219_v58  ;;  %v5283_v42 = vrot.slane %v3854_v39, %v17775_v31  ;;  %v4111_v39 = vunpack.c.h.b16 %v16097_v25  ;;  %v11233_v30 = vld [vmem:[%s17654_s1 + $0xec4] ss:$16 sps:$4 sm:$0xff]  }
 0x3ce   :  { %v4128_v6 = vunpack.c.l.b16 %v2833_v32  ;;  %v4129_v47 = vunpack.c.h.b16 %v2833_v32  ;;  %v2268_v44 = vmul.f32 0.020408163, %v1125_v26  ;;  %v500_v32 = vld [vmem:[%s17653_s0 + $0xef0] sm:$0xff]  ;;  %9567 = vmatprep.subr.bf16.mxu0 %v11224_v53 }
 0x3cf   :  { %2009 = vadd.xlane.f32.xlu1 %v2008_v50  ;;  %v5287_v50 = vrot.slane %v3855_v16, %v17776_v34  ;;  %v11236_v53 = vld [vmem:[%s17654_s1 + $0xc04] ss:$16 sps:$4 sm:$0xff]  }
 0x3d0   :  { %v6635_v54 = vrot.slane %v4128_v6, %v17777_v17  ;;  %v6640_v59 = vrot.slane %v4129_v47, %v17778_v11  ;;  %v2682_v48 = vpack.c.bf16 %v2269_v62, %v2268_v44  ;;  %2006 = vadd.xlane.f32.xlu0 %v2005_v27  ;;  %v1218_v57 = vpop.xlane.xlu1 %1217  ;;  %v11227_v62 = vld [vmem:[%s17654_s1 + $0xee4] ss:$16 sps:$4 sm:$0xff]   ;;  %v11222_v6 = vld [vmem:[%s17654_s1 + $0xc40] ss:$16 sps:$4 sm:$0xff]  }
 0x3d1   :  { %v2299_v52 = vmul.f32 0.020408163, %v1218_v57  ;;  %v1215_v10 = vpop.xlane.xlu0 %1214  ;;  %v11225_v47 = vld [vmem:[%s17654_s1 + $0xee0] ss:$16 sps:$4 sm:$0xff]   ;;  %v531_v57 = vld [vmem:[%s17653_s0 + $0xfe8] sm:$0xff]  ;;  %9598 = vmatprep.subr.bf16.mxu1 %v11227_v62  ;;  %v5288_v4 = vsel %vm4153_vm1, %v5287_v50, %v5283_v42  ;;  %9568 = vmatpush1.bf16.msra.mxu0 %v11222_v6  ;;  %v6551_v50 = vrot.slane %v4111_v39, %v17776_v34 }
 0x3d2   :  { %v6636_v8 = vsel %vm4160_vm2, %v6635_v54, %v6631_v15  ;;  %v3826_v0 = vunpack.c.l.b16 %v2682_v48  ;;  %v3827_v14 = vunpack.c.h.b16 %v2682_v48  ;;  %v2298_v35 = vmul.f32 0.020408163, %v1215_v10  ;;  %9599 = vmatpush1.bf16.msra.mxu1 %v11225_v47  ;;  %v11230_v10 = vld [vmem:[%s17654_s1 + $0xc24] ss:$16 sps:$4 sm:$0xff]   ;;  %v11234_v34 = vld [vmem:[%s17654_s1 + $0xc00] ss:$16 sps:$4 sm:$0xff]  }
 0x3d3   :  { %v16157_v19 = vsel %vm17779_vm3, %v6640_v59, %v6636_v8  ;;  %1205 = vadd.xlane.f32.xlu1 %v1204_v18  ;;  %v1969_v48 = vsel %vm534_vm0, %v500_v32, 0.0  ;;  %v4110_v15 = vunpack.c.l.b16 %v16097_v25  ;;  %v11228_v25 = vld [vmem:[%s17654_s1 + $0xc20] ss:$16 sps:$4 sm:$0xff]   ;;  %9569 = vmatprep.subr.bf16.mxu0 %v11230_v10  ;;  %v11239_v62 = vld [vmem:[%s17654_s1 + $0xea4] ss:$16 sps:$4 sm:$0xff]   ;;  %v1156_v47 = vsel %vm534_vm0, %v229_v36, 0.0 }
 0x3d4   :  { %v5144_v28 = vrot.slane %v3826_v0, %v17780_v63  ;;  %v5149_v3 = vrot.slane %v3827_v14, %v17781_v51  ;;  %v2697_v24 = vpack.c.bf16 %v2299_v52, %v2298_v35  ;;  %1202 = vadd.xlane.f32.xlu0 %v1201_v9  ;;  %v1896_v45 = vpop.xlane.xlu1 %1895  ;;  %v530_v9 = vld [vmem:[%s17653_s0 + $0xfe0] sm:$0xff]  ;;  %v228_v32 = vld [vmem:[%s17653_s0 + $0x670] sm:$0xff]  ;;  %9600 = vmatprep.subr.bf16.mxu1 %v11233_v30 }
 0x3d5   :  { %v2525_v5 = vmul.f32 0.020408163, %v1896_v45  ;;  %v1893_v12 = vpop.xlane.xlu0 %1892  ;;  %v11231_v35 = vld [vmem:[%s17654_s1 + $0xec0] ss:$16 sps:$4 sm:$0xff]   ;;  %v6547_v42 = vrot.slane %v4110_v15, %v17775_v31  ;;  %9570 = vmatpush1.bf16.msra.mxu0 %v11228_v25 }
 0x3d6   :  { %v5145_v26 = vsel %vm4174_vm4, %v5144_v28, %v16002_v29  ;;  %v3856_v27 = vunpack.c.l.b16 %v2697_v24  ;;  %v3857_v43 = vunpack.c.h.b16 %v2697_v24  ;;  %v2524_v22 = vmul.f32 0.020408163, %v1893_v12  ;;  %9601 = vmatpush1.bf16.msra.mxu1 %v11231_v35  ;;  %9571 = vmatprep.subr.bf16.mxu0 %v11236_v53  ;;  %v11240_v10 = vld [vmem:[%s17654_s1 + $0xde0] ss:$16 sps:$4 sm:$0xff]  }
 0x3d7   :  { %v16186_v44 = vsel %vm4181_vm5, %v5149_v3, %v5145_v26  ;;  %1295 = vadd.xlane.f32.xlu1 %v1294_v60  ;;  %v2062_v60 = vsel %vm534_vm0, %v531_v57, 0.0  ;;  %9602 = vmatprep.subr.bf16.mxu1 %v11239_v62  ;;  %v6552_v57 = vsel %vm4153_vm1, %v6551_v50, %v6547_v42  ;;  %v11243_v30 = vld [vmem:[%s17654_s1 + $0xe80] ss:$16 sps:$4 sm:$0xff]   ;;  %vm17782_vm1 = vmmov %vm17779_vm3  ;;  %v11251_v42 = vld [vmem:[%s17654_s1 + $0xe64] ss:$16 sps:$4 sm:$0xff]  }
 0x3d8   :  { %v5292_v29 = vrot.slane %v3856_v27, %v17777_v17  ;;  %v5297_v18 = vrot.slane %v3857_v43, %v17778_v11  ;;  %v2810_v54 = vpack.c.bf16 %v2525_v5, %v2524_v22  ;;  %1292 = vadd.xlane.f32.xlu0 %v1291_v2  ;;  %v1986_v59 = vpop.xlane.xlu1 %1985  ;;  %v2059_v2 = vsel %vm534_vm0, %v530_v9, 0.0  ;;  %v11237_v22 = vld [vmem:[%s17654_s1 + $0xea0] ss:$16 sps:$4 sm:$0xff]  }
 0x3d9   :  { %v2555_v16 = vmul.f32 0.020408163, %v1986_v59  ;;  %v1983_v52 = vpop.xlane.xlu0 %1982  ;;  %v259_v59 = vld [vmem:[%s17653_s0 + $0x768] sm:$0xff]  ;;  %9572 = vmatpush1.bf16.msra.mxu0 %v11234_v34  ;;  %v11246_v62 = vld [vmem:[%s17654_s1 + $0xdc0] ss:$16 sps:$4 sm:$0xff]  }
 0x3da   :  { %v5293_v37 = vsel %vm4160_vm2, %v5292_v29, %v5288_v4  ;;  %v4082_v8 = vunpack.c.l.b16 %v2810_v54  ;;  %v4083_v0 = vunpack.c.h.b16 %v2810_v54  ;;  %v2554_v14 = vmul.f32 0.020408163, %v1983_v52  ;;  %9603 = vmatpush1.bf16.msra.mxu1 %v11237_v22  ;;  %v11245_v4 = vld [vmem:[%s17654_s1 + $0xe84] ss:$16 sps:$4 sm:$0xff]  }
 0x3db   :  { %v16215_v58 = vsel %vm17779_vm3, %v5297_v18, %v5293_v37  ;;  %1973 = vadd.xlane.f32.xlu1 %v1972_v13  ;;  %v1153_v54 = vsel %vm534_vm0, %v228_v32, 0.0  ;;  %v17784_v25 = vld [vmem:[#allocation13_spill] sm:$0xff]  ;;  %9604 = vmatprep.subr.bf16.mxu1 %v11245_v4 }
 0x3dc   :  { %v6408_v28 = vrot.slane %v4082_v8, %v17780_v63  ;;  %v6413_v3 = vrot.slane %v4083_v0, %v17781_v51  ;;  %v2825_v24 = vpack.c.bf16 %v2555_v16, %v2554_v14  ;;  %1970 = vadd.xlane.f32.xlu0 %v1969_v48  ;;  %v1182_v45 = vpop.xlane.xlu1 %1181  ;;  %v258_v48 = vld [vmem:[%s17653_s0 + $0x760] sm:$0xff]  ;;  %v1246_v8 = vsel %vm534_vm0, %v259_v59, 0.0 }
 0x3dd   :  { %v2287_v5 = vmul.f32 0.020408163, %v1182_v45  ;;  %v1179_v12 = vpop.xlane.xlu0 %1178  ;;  %v17783_v0 = vld [vmem:[#allocation12_spill] sm:$0xff]  ;;  %v484_v45 = vld [vmem:[%s17653_s0 + $0xe70] sm:$0xff] }
 0x3de   :  { %v6409_v26 = vsel %vm4174_vm4, %v6408_v28, %v16029_v55  ;;  %v4112_v27 = vunpack.c.l.b16 %v2825_v24  ;;  %v4113_v43 = vunpack.c.h.b16 %v2825_v24  ;;  %v2286_v31 = vmul.f32 0.020408163, %v1179_v12  ;;  %v485_v24 = vld [vmem:[%s17653_s0 + $0xe78] sm:$0xff]  ;;  %9605 = vmatpush1.bf16.msra.mxu1 %v11243_v30  ;;  %v11248_v32 = vld [vmem:[%s17654_s1 + $0xdc4] ss:$16 sps:$4 sm:$0xff]  }
 0x3df   :  { %v16244_v6 = vsel %vm4181_vm5, %v6413_v3, %v6409_v26  ;;  %2063 = vadd.xlane.f32.xlu1 %v2062_v60  ;;  %v1243_v3 = vsel %vm534_vm0, %v258_v48, 0.0  ;;  %v11249_v26 = vld [vmem:[%s17654_s1 + $0xe60] ss:$16 sps:$4 sm:$0xff]   ;;  %9606 = vmatprep.subr.bf16.mxu1 %v11251_v42  ;;  %v11257_v59 = vld [vmem:[%s17654_s1 + $0xe44] ss:$16 sps:$4 sm:$0xff]  }
 0x3e0   :  { %v6556_v55 = vrot.slane %v4112_v27, %v17777_v17  ;;  %v6561_v13 = vrot.slane %v4113_v43, %v17778_v11  ;;  %v2691_v29 = vpack.c.bf16 %v2287_v5, %v2286_v31  ;;  %2060 = vadd.xlane.f32.xlu0 %v2059_v2  ;;  %v1272_v18 = vpop.xlane.xlu1 %1271  ;;  %v11242_v11 = vld [vmem:[%s17654_s1 + $0xde4] ss:$16 sps:$4 sm:$0xff]   ;;  %v1924_v43 = vsel %vm534_vm0, %v485_v24, 0.0  ;;  %v11255_v4 = vld [vmem:[%s17654_s1 + $0xe40] ss:$16 sps:$4 sm:$0xff]  }
 0x3e1   :  { %v2317_v9 = vmul.f32 0.020408163, %v1272_v18  ;;  %v1269_v17 = vpop.xlane.xlu0 %1268  ;;  %9573 = vmatprep.subr.bf16.mxu0 %v11242_v11  ;;  %v11252_v11 = vld [vmem:[%s17654_s1 + $0xda0] ss:$16 sps:$4 sm:$0xff]  }
 0x3e2   :  { %v6557_v15 = vsel %vm4160_vm2, %v6556_v55, %v6552_v57  ;;  %v3844_v39 = vunpack.c.l.b16 %v2691_v29  ;;  %v3845_v16 = vunpack.c.h.b16 %v2691_v29  ;;  %v2316_v52 = vmul.f32 0.020408163, %v1269_v17  ;;  %9574 = vmatpush2.bf16.msra.mxu0 %v11240_v10  ;;  %v515_v55 = vld [vmem:[%s17653_s0 + $0xf68] sm:$0xff]  ;;  %9607 = vmatpush1.bf16.msra.mxu1 %v11249_v26  ;;  %v11261_v42 = vld [vmem:[%s17654_s1 + $0xe20] ss:$16 sps:$4 sm:$0xff]  }
 0x3e3   :  { %v16271_v37 = vsel %vm17782_vm1, %v6561_v13, %v6557_v15  ;;  %1157 = vadd.xlane.f32.xlu1 %v1156_v47  ;;  %vm17785_vm2 = vcmask 523712   ;;  %9575 = vmatprep.subr.bf16.mxu0 %v11248_v32  ;;  %v1921_v47 = vsel %vm534_vm0, %v484_v45, 0.0  ;;  %v514_v13 = vld [vmem:[%s17653_s0 + $0xf60] sm:$0xff] }
 0x3e4   :  { %v5233_v14 = vrot.slane %v3844_v39, %v17783_v0  ;;  %v5238_v35 = vrot.slane %v3845_v16, %v17784_v25  ;;  %v2706_v60 = vpack.c.bf16 %v2317_v9, %v2316_v52  ;;  %1154 = vadd.xlane.f32.xlu0 %v1153_v54  ;;  %v1950_v28 = vpop.xlane.xlu1 %1949  ;;  %v11254_v54 = vld [vmem:[%s17654_s1 + $0xda4] ss:$16 sps:$4 sm:$0xff]   ;;  %v2014_v39 = vsel %vm534_vm0, %v515_v55, 0.0  ;;  %9608 = vmatprep.subr.bf16.mxu1 %v11257_v59  ;;  %v11258_v32 = vld [vmem:[%s17654_s1 + $0xd80] ss:$16 sps:$4 sm:$0xff]   ;;  %vm17786_vm3 = vmmov %vm17785_vm2 }
 0x3e5   :  { %v2543_v2 = vmul.f32 0.020408163, %v1950_v28  ;;  %v1947_v36 = vpop.xlane.xlu0 %1946  ;;  %v2011_v30 = vsel %vm534_vm0, %v514_v13, 0.0  ;;  %v11260_v28 = vld [vmem:[%s17654_s1 + $0xd84] ss:$16 sps:$4 sm:$0xff]   ;;  %vm17787_vm1 = vmmov %vm17785_vm2 }
 0x3e6   :  { %v5234_v50 = vsel %vm4188_vm6, %v5233_v14, %v16056_v33  ;;  %v3874_v5 = vunpack.c.l.b16 %v2706_v60  ;;  %v3875_v12 = vunpack.c.h.b16 %v2706_v60  ;;  %v2542_v53 = vmul.f32 0.020408163, %v1947_v36  ;;  %9576 = vmatpush2.bf16.msra.mxu0 %v11246_v62  ;;  %v276_v14 = vld [vmem:[%s17653_s0 + $0x7f0] sm:$0xff]  ;;  %9609 = vmatpush1.bf16.msra.mxu1 %v11255_v4 }
 0x3e7   :  { %v16298_v27 = vsel %vm17785_vm2, %v5238_v35, %v5234_v50  ;;  %1247 = vadd.xlane.f32.xlu1 %v1246_v8  ;;  %9577 = vmatprep.subr.bf16.mxu0 %v11254_v54  ;;  %v277_v8 = vld [vmem:[%s17653_s0 + $0x7f8] sm:$0xff]  ;;  %v1297_v26 = vsel %vm534_vm0, %v276_v14, 0.0  ;;  %v11264_v54 = vld [vmem:[%s17654_s1 + $0xd60] ss:$16 sps:$4 sm:$0xff]  }
 0x3e8   :  { %v5381_v33 = vrot.slane %v3874_v5, %v17780_v63  ;;  %v5386_v31 = vrot.slane %v3875_v12, %v17781_v51  ;;  %v2819_v34 = vpack.c.bf16 %v2543_v2, %v2542_v53  ;;  %1244 = vadd.xlane.f32.xlu0 %v1243_v3  ;;  %v2040_v22 = vpop.xlane.xlu1 %2039  ;;  %v11263_v3 = vld [vmem:[%s17654_s1 + $0xe24] ss:$16 sps:$4 sm:$0xff]   ;;  %v1300_v5 = vsel %vm534_vm0, %v277_v8, 0.0  ;;  %v11267_v59 = vld [vmem:[%s17654_s1 + $0xe00] ss:$16 sps:$4 sm:$0xff]  }
 0x3e9   :  { %v2573_v29 = vmul.f32 0.020408163, %v2040_v22  ;;  %v2037_v18 = vpop.xlane.xlu0 %2036  ;;  %9610 = vmatprep.subr.bf16.mxu1 %v11263_v3  ;;  %v11266_v22 = vld [vmem:[%s17654_s1 + $0xd64] ss:$16 sps:$4 sm:$0xff]   ;;  %v11273_v3 = vld [vmem:[%s17654_s1 + $0xfe0] ss:$16 sps:$4 sm:$0xff]  }
 0x3ea   :  { %v5382_v48 = vsel %vm4174_vm4, %v5381_v33, %v16093_v56  ;;  %v4100_v57 = vunpack.c.l.b16 %v2819_v34  ;;  %v4101_v9 = vunpack.c.h.b16 %v2819_v34  ;;  %v2572_v17 = vmul.f32 0.020408163, %v2037_v18  ;;  %9578 = vmatpush2.bf16.msra.mxu0 %v11252_v11  ;;  %v532_v33 = vld [vmem:[%s17653_s0 + $0xff0] sm:$0xff]  ;;  %9611 = vmatpush1.bf16.msra.mxu1 %v11261_v42 }
 0x3eb   :  { %v16325_v15 = vsel %vm4181_vm5, %v5386_v31, %v5382_v48  ;;  %1925 = vadd.xlane.f32.xlu1 %v1924_v43  ;;  %9579 = vmatprep.subr.bf16.mxu0 %v11260_v28  ;;  %v533_v43 = vld [vmem:[%s17653_s0 + $0xff8] sm:$0xff]  ;;  %v2065_v4 = vsel %vm534_vm0, %v532_v33, 0.0  ;;  %v11270_v28 = vld [vmem:[%s17654_s1 + $0xd40] ss:$16 sps:$4 sm:$0xff]  }
 0x3ec   :  { %v6497_v56 = vrot.slane %v4100_v57, %v17783_v0  ;;  %v6502_v16 = vrot.slane %v4101_v9, %v17784_v25  ;;  %v2834_v52 = vpack.c.bf16 %v2573_v29, %v2572_v17  ;;  %1922 = vadd.xlane.f32.xlu0 %v1921_v47  ;;  %v1134_v10 = vpop.xlane.xlu1 %1133  ;;  %v11269_v47 = vld [vmem:[%s17654_s1 + $0xe04] ss:$16 sps:$4 sm:$0xff]   ;;  %v2068_v57 = vsel %vm534_vm0, %v533_v43, 0.0 }
 0x3ed   :  { %v2271_v35 = vmul.f32 0.020408163, %v1134_v10  ;;  %v1131_v60 = vpop.xlane.xlu0 %1130  ;;  %9612 = vmatprep.subr.bf16.mxu1 %v11269_v47  ;;  %v11272_v10 = vld [vmem:[%s17654_s1 + $0xd44] ss:$16 sps:$4 sm:$0xff]   ;;  %v11279_v47 = vld [vmem:[%s17654_s1 + $0xfc0] ss:$16 sps:$4 sm:$0xff]  }
 0x3ee   :  { %v6498_v24 = vsel %vm4188_vm6, %v6497_v56, %v16118_v38  ;;  %v4130_v45 = vunpack.c.l.b16 %v2834_v52  ;;  %v4131_v2 = vunpack.c.h.b16 %v2834_v52  ;;  %v2270_v36 = vmul.f32 0.020408163, %v1131_v60  ;;  %9580 = vmatpush2.bf16.msra.mxu0 %v11258_v32  ;;  %v260_v56 = vld [vmem:[%s17653_s0 + $0x770] sm:$0xff]  ;;  %9613 = vmatpush1.bf16.msra.mxu1 %v11267_v59 }
 0x3ef   :  { %v16352_v50 = vsel %vm17786_vm3, %v6502_v16, %v6498_v24  ;;  %2015 = vadd.xlane.f32.xlu1 %v2014_v39  ;;  %9581 = vmatprep.subr.bf16.mxu0 %v11266_v22  ;;  %v261_v39 = vld [vmem:[%s17653_s0 + $0x778] sm:$0xff]  ;;  %v1249_v42 = vsel %vm534_vm0, %v260_v56, 0.0  ;;  %v11276_v22 = vld [vmem:[%s17654_s1 + $0xd20] ss:$16 sps:$4 sm:$0xff]  }
 0x3f0   :  { %v6645_v38 = vrot.slane %v4130_v45, %v17780_v63  ;;  %v6650_v12 = vrot.slane %v4131_v2, %v17781_v51  ;;  %v2683_v53 = vpack.c.bf16 %v2271_v35, %v2270_v36  ;;  %2012 = vadd.xlane.f32.xlu0 %v2011_v30  ;;  %v1224_v62 = vpop.xlane.xlu1 %1223  ;;  %v11275_v30 = vld [vmem:[%s17654_s1 + $0xfe4] ss:$16 sps:$4 sm:$0xff]   ;;  %v1252_v45 = vsel %vm534_vm0, %v261_v39, 0.0 }
 0x3f1   :  { %v2301_v31 = vmul.f32 0.020408163, %v1224_v62  ;;  %v1221_v34 = vpop.xlane.xlu0 %1220  ;;  %9614 = vmatprep.subr.bf16.mxu1 %v11275_v30  ;;  %v11278_v62 = vld [vmem:[%s17654_s1 + $0xd24] ss:$16 sps:$4 sm:$0xff]  }
 0x3f2   :  { %v6646_v55 = vsel %vm4174_vm4, %v6645_v38, %v16157_v19  ;;  %v3828_v13 = vunpack.c.l.b16 %v2683_v53  ;;  %v3829_v29 = vunpack.c.h.b16 %v2683_v53  ;;  %v2300_v18 = vmul.f32 0.020408163, %v1221_v34  ;;  %9582 = vmatpush2.bf16.msra.mxu0 %v11264_v54  ;;  %v516_v38 = vld [vmem:[%s17653_s0 + $0xf70] sm:$0xff]  ;;  %9615 = vmatpush2.bf16.msra.mxu1 %v11273_v3  ;;  %v11293_v3 = vld [vmem:[%s17654_s1 + $0xec] ss:$16 sps:$4 sm:$0xff]  }
 0x3f3   :  { %v16379_v48 = vsel %vm4181_vm5, %v6650_v12, %v6646_v55  ;;  %1301 = vadd.xlane.f32.xlu1 %v1300_v5  ;;  %9583 = vmatprep.subr.bf16.mxu0 %v11272_v10  ;;  %v517_v5 = vld [vmem:[%s17653_s0 + $0xf78] sm:$0xff]  ;;  %v2017_v59 = vsel %vm534_vm0, %v516_v38, 0.0 }
 0x3f4   :  { %v5154_v19 = vrot.slane %v3828_v13, %v17783_v0  ;;  %v5159_v9 = vrot.slane %v3829_v29, %v17784_v25  ;;  %v2698_v17 = vpack.c.bf16 %v2301_v31, %v2300_v18  ;;  %1298 = vadd.xlane.f32.xlu0 %v1297_v26  ;;  %v1902_v11 = vpop.xlane.xlu1 %1901  ;;  %v11281_v26 = vld [vmem:[%s17654_s1 + $0xfc4] ss:$16 sps:$4 sm:$0xff]   ;;  %v2020_v13 = vsel %vm534_vm0, %v517_v5, 0.0  ;;  %vm17788_vm0 = vmmov %vm17787_vm1 }
 0x3f5   :  { %v2527_v16 = vmul.f32 0.020408163, %v1902_v11  ;;  %v1899_v52 = vpop.xlane.xlu0 %1898  ;;  %9616 = vmatprep.subr.bf16.mxu1 %v11281_v26  ;;  %v17790_v5 = vld [vmem:[#allocation15_spill] sm:$0xff]  ;;  %vm17793_vm2 = vmmov %vm17788_vm0 }
 0x3f6   :  { %v5155_v8 = vsel %vm4188_vm6, %v5154_v19, %v16186_v44  ;;  %v3858_v14 = vunpack.c.l.b16 %v2698_v17  ;;  %v3859_v35 = vunpack.c.h.b16 %v2698_v17  ;;  %v2526_v60 = vmul.f32 0.020408163, %v1899_v52  ;;  %9584 = vmatpush2.bf16.msra.mxu0 %v11270_v28  ;;  %9617 = vmatpush2.bf16.msra.mxu1 %v11279_v47  ;;  %v11287_v17 = vld [vmem:[%s17654_s1 + $0xfa4] ss:$16 sps:$4 sm:$0xff]   ;;  %v11285_v52 = vld [vmem:[%s17654_s1 + $0xfa0] ss:$16 sps:$4 sm:$0xff]   ;;  %vm17794_vm3 = vmmov %vm17788_vm0 }
 0x3f7   :  { %v16406_v24 = vsel %vm17787_vm1, %v5159_v9, %v5155_v8  ;;  %2069 = vadd.xlane.f32.xlu1 %v2068_v57  ;;  %9585 = vmatprep.subr.bf16.mxu0 %v11278_v62  ;;  %v11284_v9 = vld [vmem:[%s17654_s1 + $0xd04] ss:$16 sps:$4 sm:$0xff]  }
 0x3f8   :  { %v5302_v44 = vrot.slane %v3858_v14, %v17780_v63  ;;  %v5307_v2 = vrot.slane %v3859_v35, %v17781_v51  ;;  %v2811_v36 = vpack.c.bf16 %v2527_v16, %v2526_v60  ;;  %2066 = vadd.xlane.f32.xlu0 %v2065_v4  ;;  %v1992_v32 = vpop.xlane.xlu1 %1991  ;;  %v11282_v16 = vld [vmem:[%s17654_s1 + $0xd00] ss:$16 sps:$4 sm:$0xff]   ;;  %9618 = vmatprep.subr.bf16.mxu1 %v11287_v17  ;;  %v11290_v28 = vld [vmem:[%s17654_s1 + $0xf84] ss:$16 sps:$4 sm:$0xff]  }
 0x3f9   :  { %v2557_v12 = vmul.f32 0.020408163, %v1992_v32  ;;  %v1989_v53 = vpop.xlane.xlu0 %1988  ;;  %v17789_v32 = vld [vmem:[#allocation14_spill] sm:$0xff]  ;;  %v11296_v26 = vld [vmem:[%s17654_s1 + $0xf64] ss:$16 sps:$4 sm:$0xff]  }
 0x3fa   :  { %v5303_v43 = vsel %vm4174_vm4, %v5302_v44, %v16215_v58  ;;  %v4084_v33 = vunpack.c.l.b16 %v2811_v36  ;;  %v4085_v31 = vunpack.c.h.b16 %v2811_v36  ;;  %v2556_v34 = vmul.f32 0.020408163, %v1989_v53  ;;  %9586 = vmatpush2.bf16.msra.mxu0 %v11276_v22  ;;  %9619 = vmatpush2.bf16.msra.mxu1 %v11285_v52  ;;  %v11294_v22 = vld [vmem:[%s17654_s1 + $0xf60] ss:$16 sps:$4 sm:$0xff]  }
 0x3fb   :  { %v16433_v55 = vsel %vm4181_vm5, %v5307_v2, %v5303_v43  ;;  %1253 = vadd.xlane.f32.xlu1 %v1252_v45  ;;  %9587 = vmatprep.subr.bf16.mxu0 %v11284_v9  ;;  %v11288_v2 = vld [vmem:[%s17654_s1 + $0xf80] ss:$16 sps:$4 sm:$0xff]  }
 0x3fc   :  { %v6418_v58 = vrot.slane %v4084_v33, %v17783_v0  ;;  %v6423_v29 = vrot.slane %v4085_v31, %v17784_v25  ;;  %v2826_v18 = vpack.c.bf16 %v2557_v12, %v2556_v34  ;;  %1250 = vadd.xlane.f32.xlu0 %v1249_v42  ;;  %v1188_v54 = vpop.xlane.xlu1 %1187  ;;  %9620 = vmatprep.subr.bf16.mxu1 %v11290_v28  ;;  %v11306_v28 = vld [vmem:[%s17654_s1 + $0xf20] ss:$16 sps:$4 sm:$0xff]  }
 0x3fd   :  { %v2289_v57 = vmul.f32 0.020408163, %v1188_v54  ;;  %v1185_v19 = vpop.xlane.xlu0 %1184 }
 0x3fe   :  { %v6419_v11 = vsel %vm4188_vm6, %v6418_v58, %v16244_v6  ;;  %v4114_v4 = vunpack.c.l.b16 %v2826_v18  ;;  %v4115_v39 = vunpack.c.h.b16 %v2826_v18  ;;  %v2288_v56 = vmul.f32 0.020408163, %v1185_v19  ;;  %9588 = vmatpush2.bf16.msra.mxu0 %v11282_v16  ;;  %9621 = vmatpush2.bf16.msra.mxu1 %v11288_v2 }
 0x3ff   :  { %v16454_v10 = vsel %vm17788_vm0, %v6423_v29, %v6419_v11  ;;  %2021 = vadd.xlane.f32.xlu1 %v2020_v13  ;;  %9639 = vmatprep.subr.bf16.mxu0 %v11293_v3  ;;  %v11300_v11 = vld [vmem:[%s17654_s1 + $0xf40] ss:$16 sps:$4 sm:$0xff]  }
 0x400   :  { %v6566_v30 = vrot.slane %v4114_v4, %v17780_v63  ;;  %v6571_v6 = vrot.slane %v4115_v39, %v17781_v51  ;;  %v2692_v8 = vpack.c.bf16 %v2289_v57, %v2288_v56  ;;  %2018 = vadd.xlane.f32.xlu0 %v2017_v59  ;;  %v1278_v14 = vpop.xlane.xlu1 %1277  ;;  %9622 = vmatprep.subr.bf16.mxu1 %v11296_v26 }
 0x401   :  { %v2319_v35 = vmul.f32 0.020408163, %v1278_v14  ;;  %v1275_v60 = vpop.xlane.xlu0 %1274 }
 0x402   :  { %v6567_v63 = vsel %vm4174_vm4, %v6566_v30, %v16271_v37  ;;  %v3846_v51 = vunpack.c.l.b16 %v2692_v8  ;;  %v3847_v45 = vunpack.c.h.b16 %v2692_v8  ;;  %v2318_v44 = vmul.f32 0.020408163, %v1275_v60  ;;  %9623 = vmatpush2.bf16.msra.mxu1 %v11294_v22  ;;  %vm17791_vm4 = vmmov %vm17788_vm0 }
 0x403   :  { %v16470_v36 = vsel %vm4181_vm5, %v6571_v6, %v6567_v63  ;;  %vm17792_vm5 = vmmov %vm17788_vm0 }
 0x404   :  { %v5243_v42 = vrot.slane %v3846_v51, %v17789_v32  ;;  %v5248_v38 = vrot.slane %v3847_v45, %v17790_v5  ;;  %v2707_v12 = vpack.c.bf16 %v2319_v35, %v2318_v44  ;;  %v1956_v53 = vpop.xlane.xlu1 %1955 }
 0x405   :  { %v2545_v62 = vmul.f32 0.020408163, %v1956_v53  ;;  %v1953_v37 = vpop.xlane.xlu0 %1952 }
 0x406   :  { %v5244_v43 = vsel %vm4202_vm8, %v5243_v42, %v16298_v27  ;;  %v3876_v33 = vunpack.c.l.b16 %v2707_v12  ;;  %v3877_v31 = vunpack.c.h.b16 %v2707_v12  ;;  %v2544_v34 = vmul.f32 0.020408163, %v1953_v37  ;;  %v11302_v27 = vld [vmem:[%s17654_s1 + $0xf44] ss:$16 sps:$4 sm:$0xff]   ;;  %v11312_v37 = vld [vmem:[%s17654_s1 + $0xf00] ss:$16 sps:$4 sm:$0xff]  }
 0x407   :  { %v16483_v47 = vsel %vm4209_vm9, %v5248_v38, %v5244_v43  ;;  %9624 = vmatprep.subr.bf16.mxu1 %v11302_v27 }
 0x408   :  { %v5391_v13 = vrot.slane %v3876_v33, %v17783_v0  ;;  %v5396_v58 = vrot.slane %v3877_v31, %v17784_v25  ;;  %v2820_v29 = vpack.c.bf16 %v2545_v62, %v2544_v34  ;;  %v2046_v18 = vpop.xlane.xlu1 %2045  ;;  %9625 = vmatpush2.bf16.msra.mxu1 %v11300_v11 }
 0x409   :  { %v2575_v54 = vmul.f32 0.020408163, %v2046_v18  ;;  %v2043_v59 = vpop.xlane.xlu0 %2042 }
 0x40a   :  { %v5392_v57 = vsel %vm4188_vm6, %v5391_v13, %v16325_v15  ;;  %v4102_v19 = vunpack.c.l.b16 %v2820_v29  ;;  %v4103_v9 = vunpack.c.h.b16 %v2820_v29  ;;  %v2574_v17 = vmul.f32 0.020408163, %v2043_v59  ;;  %v11308_v15 = vld [vmem:[%s17654_s1 + $0xf24] ss:$16 sps:$4 sm:$0xff]  }
 0x40b   :  { %v16496_v4 = vsel %vm17791_vm4, %v5396_v58, %v5392_v57  ;;  %9626 = vmatprep.subr.bf16.mxu1 %v11308_v15 }
 0x40c   :  { %v6507_v39 = vrot.slane %v4102_v19, %v17789_v32  ;;  %v6512_v56 = vrot.slane %v4103_v9, %v17790_v5  ;;  %v2835_v16 = vpack.c.bf16 %v2575_v54, %v2574_v17  ;;  %v1140_v52 = vpop.xlane.xlu1 %1139  ;;  %9627 = vmatpush2.bf16.msra.mxu1 %v11306_v28 }
 0x40d   :  { %v2273_v30 = vmul.f32 0.020408163, %v1140_v52  ;;  %v1137_v6 = vpop.xlane.xlu0 %1136 }
 0x40e   :  { %v6508_v8 = vsel %vm4202_vm8, %v6507_v39, %v16352_v50  ;;  %v4132_v14 = vunpack.c.l.b16 %v2835_v16  ;;  %v4133_v35 = vunpack.c.h.b16 %v2835_v16  ;;  %v2272_v60 = vmul.f32 0.020408163, %v1137_v6  ;;  %v11314_v50 = vld [vmem:[%s17654_s1 + $0xf04] ss:$16 sps:$4 sm:$0xff]  }
 0x40f   :  { %v16509_v3 = vsel %vm4209_vm9, %v6512_v56, %v6508_v8  ;;  %9628 = vmatprep.subr.bf16.mxu1 %v11314_v50 }
 0x410   :  { %v6655_v63 = vrot.slane %v4132_v14, %v17783_v0  ;;  %v6660_v51 = vrot.slane %v4133_v35, %v17784_v25  ;;  %v2684_v45 = vpack.c.bf16 %v2273_v30, %v2272_v60  ;;  %v1230_v44 = vpop.xlane.xlu1 %1229  ;;  %9629 = vmatpush2.bf16.msra.mxu1 %v11312_v37 }
 0x411   :  { %v2303_v2 = vmul.f32 0.020408163, %v1230_v44  ;;  %v1227_v42 = vpop.xlane.xlu0 %1226 }
 0x412   :  { %v6656_v38 = vsel %vm4188_vm6, %v6655_v63, %v16379_v48  ;;  %v3830_v12 = vunpack.c.l.b16 %v2684_v45  ;;  %v3831_v53 = vunpack.c.h.b16 %v2684_v45  ;;  %v2302_v62 = vmul.f32 0.020408163, %v1227_v42  ;;  %v11323_v48 = vld [vmem:[%s17654_s1 + $0x2ec] ss:$16 sps:$4 sm:$0xff]  }
 0x413   :  { %v16522_v26 = vsel %vm17792_vm5, %v6660_v51, %v6656_v38  ;;  %9680 = vmatprep.subr.bf16.mxu1 %v11323_v48 }
 0x414   :  { %v5164_v43 = vrot.slane %v3830_v12, %v17789_v32  ;;  %v5169_v33 = vrot.slane %v3831_v53, %v17790_v5  ;;  %v2699_v31 = vpack.c.bf16 %v2303_v2, %v2302_v62  ;;  %v1908_v34 = vpop.xlane.xlu1 %1907 }
 0x415   :  { %v2529_v22 = vmul.f32 0.020408163, %v1908_v34  ;;  %v1905_v13 = vpop.xlane.xlu0 %1904 }
 0x416   :  { %v5165_v58 = vsel %vm4202_vm8, %v5164_v43, %v16406_v24  ;;  %v3860_v29 = vunpack.c.l.b16 %v2699_v31  ;;  %v3861_v18 = vunpack.c.h.b16 %v2699_v31  ;;  %v2528_v54 = vmul.f32 0.020408163, %v1905_v13 }
 0x417   :  { %v16532_v59 = vsel %vm4209_vm9, %v5169_v33, %v5165_v58 }
 0x418   :  { %v5312_v27 = vrot.slane %v3860_v29, %v17783_v0  ;;  %v5317_v57 = vrot.slane %v3861_v18, %v17784_v25  ;;  %v2812_v19 = vpack.c.bf16 %v2529_v22, %v2528_v54  ;;  %v1998_v9 = vpop.xlane.xlu1 %1997 }
 0x419   :  { %v2559_v17 = vmul.f32 0.020408163, %v1998_v9  ;;  %v1995_v11 = vpop.xlane.xlu0 %1994 }
 0x41a   :  { %v5313_v39 = vsel %vm4188_vm6, %v5312_v27, %v16433_v55  ;;  %v4086_v56 = vunpack.c.l.b16 %v2812_v19  ;;  %v4087_v24 = vunpack.c.h.b16 %v2812_v19  ;;  %v2558_v16 = vmul.f32 0.020408163, %v1995_v11 }
 0x41b   :  { %v16539_v52 = vsel %vm17793_vm2, %v5317_v57, %v5313_v39 }
 0x41c   :  { %v6428_v30 = vrot.slane %v4086_v56, %v17789_v32  ;;  %v6433_v6 = vrot.slane %v4087_v24, %v17790_v5  ;;  %v2827_v15 = vpack.c.bf16 %v2559_v17, %v2558_v16  ;;  %v1194_v8 = vpop.xlane.xlu1 %1193 }
 0x41d   :  { %v2291_v14 = vmul.f32 0.020408163, %v1194_v8  ;;  %v1191_v35 = vpop.xlane.xlu0 %1190 }
 0x41e   :  { %v6429_v60 = vsel %vm4202_vm8, %v6428_v30, %v16454_v10  ;;  %v4116_v28 = vunpack.c.l.b16 %v2827_v15  ;;  %v4117_v63 = vunpack.c.h.b16 %v2827_v15  ;;  %v2290_v55 = vmul.f32 0.020408163, %v1191_v35 }
 0x41f   :  { %v16546_v51 = vsel %vm4209_vm9, %v6433_v6, %v6429_v60 }
 0x420   :  { %v6576_v45 = vrot.slane %v4116_v28, %v17783_v0  ;;  %v6581_v44 = vrot.slane %v4117_v63, %v17784_v25  ;;  %v2693_v2 = vpack.c.bf16 %v2291_v14, %v2290_v55  ;;  %v1284_v42 = vpop.xlane.xlu1 %1283 }
 0x421   :  { %v2321_v50 = vmul.f32 0.020408163, %v1284_v42  ;;  %v1281_v38 = vpop.xlane.xlu0 %1280 }
 0x422   :  { %v6577_v12 = vsel %vm4188_vm6, %v6576_v45, %v16470_v36  ;;  %v3848_v53 = vunpack.c.l.b16 %v2693_v2  ;;  %v3849_v62 = vunpack.c.h.b16 %v2693_v2  ;;  %v2320_v10 = vmul.f32 0.020408163, %v1281_v38 }
 0x423   :  { %v16553_v37 = vsel %vm17794_vm3, %v6581_v44, %v6577_v12 }
 0x424   :  { %v5253_v43 = vrot.slane %v3848_v53, %v12165_v49  ;;  %v5258_v33 = vrot.slane %v3849_v62, %v12172_v61  ;;  %v2708_v0 = vpack.c.bf16 %v2321_v50, %v2320_v10  ;;  %v16557_v31 = vpop.xlane.xlu1 %1961 }
 0x425   :  { %v16559_v25 = vpop.xlane.xlu0 %1958 }
 0x426   :  { %v5254_v34 = vsel %vm4216_vm10, %v5253_v43, %v16483_v47  ;;  %v3878_v22 = vunpack.c.l.b16 %v2708_v0  ;;  %v3879_v36 = vunpack.c.h.b16 %v2708_v0 }
 0x427   :  { %v16564_v13 = vsel %vm4223_vm11, %v5258_v33, %v5254_v34 }
 0x428   :  { %v5401_v48 = vrot.slane %v3878_v22, %v17789_v32  ;;  %v5406_v58 = vrot.slane %v3879_v36, %v17790_v5  ;;  %v2052_v29 = vpop.xlane.xlu1 %2051 }
 0x429   :  { %v2577_v18 = vmul.f32 0.020408163, %v2052_v29  ;;  %v2049_v54 = vpop.xlane.xlu0 %2048 }
 0x42a   :  { %v5402_v27 = vsel %vm4202_vm8, %v5401_v48, %v16496_v4  ;;  %v2576_v57 = vmul.f32 0.020408163, %v2049_v54 }
 0x42b   :  { %v16571_v19 = vsel %vm4209_vm9, %v5406_v58, %v5402_v27 }
 0x42c   :  { %v2836_v47 = vpack.c.bf16 %v2577_v18, %v2576_v57  ;;  %v1146_v9 = vpop.xlane.xlu1 %1145 }
 0x42d   :  { %v2275_v17 = vmul.f32 0.020408163, %v1146_v9  ;;  %v1143_v11 = vpop.xlane.xlu0 %1142 }
 0x42e   :  { %v4134_v39 = vunpack.c.l.b16 %v2836_v47  ;;  %v4135_v56 = vunpack.c.h.b16 %v2836_v47  ;;  %v2274_v24 = vmul.f32 0.020408163, %v1143_v11 }
 0x430   :  { %v6665_v16 = vrot.slane %v4134_v39, %v17789_v32  ;;  %v6670_v30 = vrot.slane %v4135_v56, %v17790_v5  ;;  %v2685_v6 = vpack.c.bf16 %v2275_v17, %v2274_v24  ;;  %v1236_v15 = vpop.xlane.xlu1 %1235  ;;  %v17795_v17 = vld [vmem:[#allocation21_spill] sm:$0xff] }
 0x431   :  { %v2305_v8 = vmul.f32 0.020408163, %v1236_v15  ;;  %v1233_v14 = vpop.xlane.xlu0 %1232 }
 0x432   :  { %v6666_v4 = vsel %vm4202_vm8, %v6665_v16, %v16522_v26  ;;  %v3832_v35 = vunpack.c.l.b16 %v2685_v6  ;;  %v3833_v60 = vunpack.c.h.b16 %v2685_v6  ;;  %v2304_v28 = vmul.f32 0.020408163, %v1233_v14  ;;  %v17796_v16 = vld [vmem:[#allocation22_spill] sm:$0xff] }
 0x433   :  { %v16578_v63 = vsel %vm4209_vm9, %v6670_v30, %v6666_v4 }
 0x434   :  { %v5174_v55 = vrot.slane %v3832_v35, %v12165_v49  ;;  %v5179_v45 = vrot.slane %v3833_v60, %v12172_v61  ;;  %v2700_v44 = vpack.c.bf16 %v2305_v8, %v2304_v28  ;;  %v1914_v2 = vpop.xlane.xlu1 %1913  ;;  %v2547_v35 = vmul.f32 0.020408163, %v16557_v31 }
 0x435   :  { %v1911_v42 = vpop.xlane.xlu0 %1910  ;;  %v2546_v60 = vmul.f32 0.020408163, %v16559_v25 }
 0x436   :  { %v5175_v50 = vsel %vm4216_vm10, %v5174_v55, %v16532_v59  ;;  %v3862_v38 = vunpack.c.l.b16 %v2700_v44  ;;  %v3863_v12 = vunpack.c.h.b16 %v2700_v44 }
 0x437   :  { %v16585_v26 = vsel %vm4223_vm11, %v5179_v45, %v5175_v50  ;;  %v2821_v45 = vpack.c.bf16 %v2547_v35, %v2546_v60 }
 0x438   :  { %v5322_v53 = vrot.slane %v3862_v38, %v17789_v32  ;;  %v5327_v62 = vrot.slane %v3863_v12, %v17790_v5  ;;  %v2004_v10 = vpop.xlane.xlu1 %2003 }
 0x439   :  { %v2561_v43 = vmul.f32 0.020408163, %v2004_v10  ;;  %v2001_v33 = vpop.xlane.xlu0 %2000  ;;  %v4104_v25 = vunpack.c.l.b16 %v2821_v45 }
 0x43a   :  { %v5323_v0 = vsel %vm4202_vm8, %v5322_v53, %v16539_v52  ;;  %v2560_v34 = vmul.f32 0.020408163, %v2001_v33 }
 0x43b   :  { %v16592_v22 = vsel %vm4209_vm9, %v5327_v62, %v5323_v0  ;;  %v2531_v0 = vmul.f32 0.020408163, %v1914_v2 }
 0x43c   :  { %v2828_v59 = vpack.c.bf16 %v2561_v43, %v2560_v34  ;;  %v1200_v36 = vpop.xlane.xlu1 %1199  ;;  %v2530_v34 = vmul.f32 0.020408163, %v1911_v42 }
 0x43d   :  { %v1197_v48 = vpop.xlane.xlu0 %1196  ;;  %v2293_v44 = vmul.f32 0.020408163, %v1200_v36 }
 0x43e   :  { %v4118_v58 = vunpack.c.l.b16 %v2828_v59  ;;  %v4119_v29 = vunpack.c.h.b16 %v2828_v59  ;;  %v2292_v50 = vmul.f32 0.020408163, %v1197_v48 }
 0x440   :  { %v6586_v18 = vrot.slane %v4118_v58, %v17789_v32  ;;  %v6591_v54 = vrot.slane %v4119_v29, %v17790_v5  ;;  %v1290_v27 = vpop.xlane.xlu1 %1289  ;;  %v2694_v59 = vpack.c.bf16 %v2293_v44, %v2292_v50 }
 0x441   :  { %v1287_v57 = vpop.xlane.xlu0 %1286 }
 0x442   :  { %v6587_v47 = vsel %vm4202_vm8, %v6586_v18, %v16553_v37  ;;  %v3851_v44 = vunpack.c.h.b16 %v2694_v59 }
 0x443   :  { %v16599_v52 = vsel %vm4209_vm9, %v6591_v54, %v6587_v47  ;;  %v9509_v9 = vpop.f32.mrf.mxu0  ;;  %v4105_v47 = vunpack.c.h.b16 %v2821_v45 }
 0x444   :  { %v9510_v11 = vadd.f32 %v9509_v9, %v17795_v17  ;;  %v1968_v39 = vpop.xlane.xlu1 %1967  ;;  %v6517_v17 = vrot.slane %v4104_v25, %v12165_v49 }
 0x445   :  { %v9511_v56 = vpop.f32.mrf.mxu0  ;;  %v1965_v24 = vpop.xlane.xlu0 %1964  ;;  %v2549_v62 = vmul.f32 0.020408163, %v1968_v39  ;;  %v3850_v39 = vunpack.c.l.b16 %v2694_v59  ;;  %v6522_v35 = vrot.slane %v4105_v47, %v12172_v61 }
 0x446   :  { %v9512_v30 = vadd.f32 %v9511_v56, %v17796_v16  ;;  %v2548_v10 = vmul.f32 0.020408163, %v1965_v24  ;;  %v2323_v56 = vmul.f32 0.020408163, %v1290_v27  ;;  %v2322_v24 = vmul.f32 0.020408163, %v1287_v57 }
 0x447   :  { %v9513_v6 = vpop.f32.mrf.mxu0  ;;  %v6518_v60 = vsel %vm4216_vm10, %v6517_v17, %v16509_v3  ;;  %v5263_v50 = vrot.slane %v3850_v39, %v12191_v20 }
 0x448   :  { %v2058_v32 = vpop.xlane.xlu1 %2057  ;;  %v2822_v36 = vpack.c.bf16 %v2549_v62, %v2548_v10  ;;  %v2709_v27 = vpack.c.bf16 %v2323_v56, %v2322_v24 }
 0x449   :  { %v9514_v15 = vpop.f32.mrf.mxu0  ;;  %v2055_v5 = vpop.xlane.xlu0 %2054  ;;  %v2579_v16 = vmul.f32 0.020408163, %v2058_v32 }
 0x44a   :  { %v4106_v6 = vunpack.c.l.b16 %v2822_v36  ;;  %v4107_v57 = vunpack.c.h.b16 %v2822_v36  ;;  %v5268_v36 = vrot.slane %v3851_v44, %v12194_v21 }
 0x44c   :  { %v1152_v8 = vpop.xlane.xlu1 %1151  ;;  %v6527_v62 = vrot.slane %v4106_v6, %v12191_v20  ;;  %v6532_v17 = vrot.slane %v4107_v57, %v12194_v21 }
 0x44d   :  { %v1149_v14 = vpop.xlane.xlu0 %1148  ;;  %v2277_v10 = vmul.f32 0.020408163, %v1152_v8 }
 0x450   :  { %v16603_v4 = vpop.xlane.xlu1 %1241 }
 0x451   :  { %v16605_v37 = vpop.xlane.xlu0 %1238 }
 0x452   :  { %v2306_v6 = vmul.f32 0.020408163, %v16605_v37 }
 0x454   :  { %v16609_v28 = vpop.xlane.xlu1 %1919 }
 0x455   :  { %v16611_v55 = vpop.xlane.xlu0 %1916  ;;  %v2533_v24 = vmul.f32 0.020408163, %v16609_v28 }
 0x457   :  { %v9550_v38 = vpop.f32.mrf.mxu1 }
 0x458   :  { %v16613_v12 = vadd.f32 %v9550_v38, %v9510_v11  ;;  %v16615_v53 = vpop.xlane.xlu1 %2009  ;;  %v16622_v11 = vpack.c.bf16 %v2531_v0, %v2530_v34  ;;  %v6523_v34 = vsel %vm4223_vm11, %v6522_v35, %v6518_v60 }
 0x459   :  { %v9552_v43 = vpop.f32.mrf.mxu1  ;;  %v16617_v33 = vpop.xlane.xlu0 %2006 }
 0x45a   :  { %v16619_v31 = vadd.f32 %v9552_v43, %v9512_v30  ;;  %v2578_v30 = vmul.f32 0.020408163, %v2055_v5  ;;  %v4088_v45 = vunpack.c.l.b16 %v16622_v11  ;;  %v2276_v43 = vmul.f32 0.020408163, %v1149_v14 }
 0x45b   :  { %v9554_v58 = vpop.f32.mrf.mxu1  ;;  %v4089_v3 = vunpack.c.h.b16 %v16622_v11 }
 0x45c   :  { %v1206_v29 = vpop.xlane.xlu1 %1205  ;;  %v2837_v32 = vpack.c.bf16 %v2579_v16, %v2578_v30  ;;  %v6438_v59 = vrot.slane %v4088_v45, %v12165_v49  ;;  %v2686_v39 = vpack.c.bf16 %v2277_v10, %v2276_v43 }
 0x45d   :  { %v2295_v48 = vmul.f32 0.020408163, %v1206_v29  ;;  %v9555_v18 = vpop.f32.mrf.mxu1  ;;  %v1203_v54 = vpop.xlane.xlu0 %1202  ;;  %v5264_v29 = vsel %vm4230_vm12, %v5263_v50, %v16564_v13  ;;  %v2532_v13 = vmul.f32 0.020408163, %v16611_v55 }
 0x45e   :  { %v2294_v9 = vmul.f32 0.020408163, %v1203_v54  ;;  %v3880_v18 = vunpack.c.l.b16 %v2709_v27  ;;  %v3881_v54 = vunpack.c.h.b16 %v2709_v27  ;;  %v4136_v11 = vunpack.c.l.b16 %v2837_v32 }
 0x45f   :  { %v5269_v60 = vsel %vm4237_vm13, %v5268_v36, %v5264_v29  ;;  %v4137_v55 = vunpack.c.h.b16 %v2837_v32 }
 0x460   :  { %v2695_v2 = vpack.c.bf16 %v2295_v48, %v2294_v9  ;;  %v16624_v42 = vpop.xlane.xlu1 %1295  ;;  %v6528_v9 = vsel %vm4230_vm12, %v6527_v62, %v6523_v34  ;;  %v5411_v45 = vrot.slane %v3880_v18, %v12165_v49  ;;  %v6675_v57 = vrot.slane %v4136_v11, %v12165_v49 }
 0x461   :  { %v16626_v15 = vpop.xlane.xlu0 %1292  ;;  %v6533_v37 = vsel %vm4237_vm13, %v6532_v17, %v6528_v9  ;;  %v2814_v62 = vpack.c.bf16 %v2533_v24, %v2532_v13  ;;  %v6443_v18 = vrot.slane %v4089_v3, %v12172_v61  ;;  %v6680_v11 = vrot.slane %v4137_v55, %v12172_v61 }
 0x462   :  { %v3852_v5 = vunpack.c.l.b16 %v2695_v2  ;;  %v3853_v48 = vunpack.c.h.b16 %v2695_v2  ;;  %v2307_v2 = vmul.f32 0.020408163, %v16603_v4  ;;  %v5412_v17 = vsel %vm4216_vm10, %v5411_v45, %v16571_v19 }
 0x463   :  { %v4090_v24 = vunpack.c.l.b16 %v2814_v62  ;;  %v6676_v13 = vsel %vm4216_vm10, %v6675_v57, %v16578_v63  ;;  %v2563_v3 = vmul.f32 0.020408163, %v16615_v53  ;;  %v2324_v19 = vmul.f32 0.020408163, %v16626_v15 }
 0x464   :  { %v1974_v38 = vpop.xlane.xlu1 %1973  ;;  %v5273_v8 = vrot.slane %v3852_v5, %v12208_v40  ;;  %v5278_v35 = vrot.slane %v3853_v48, %v12211_v41  ;;  %v6439_v48 = vsel %vm4216_vm10, %v6438_v59, %v16546_v51  ;;  %v16684_v55 = vsel %vm4223_vm11, %v6680_v11, %v6676_v13 }
 0x465   :  { %v2551_v25 = vmul.f32 0.020408163, %v1974_v38  ;;  %v1971_v0 = vpop.xlane.xlu0 %1970  ;;  %v3834_v38 = vunpack.c.l.b16 %v2686_v39  ;;  %v6448_v53 = vrot.slane %v4090_v24, %v12191_v20 }
 0x466   :  { %v2550_v58 = vmul.f32 0.020408163, %v1971_v0  ;;  %v5274_v28 = vsel %vm4244_vm14, %v5273_v8, %v5269_v60  ;;  %v2701_v0 = vpack.c.bf16 %v2307_v2, %v2306_v6  ;;  %v5416_v8 = vrot.slane %v3881_v54, %v12172_v61 }
 0x467   :  { %v5279_v34 = vsel %vm4251_vm15, %v5278_v35, %v5274_v28  ;;  %v2562_v54 = vmul.f32 0.020408163, %v16617_v33  ;;  %v4091_v6 = vunpack.c.h.b16 %v2814_v62  ;;  %v6444_v33 = vsel %vm4223_vm11, %v6443_v18, %v6439_v48 }
 0x468   :  { %v2823_v14 = vpack.c.bf16 %v2551_v25, %v2550_v58  ;;  %v2064_v47 = vpop.xlane.xlu1 %2063  ;;  %v3835_v25 = vunpack.c.h.b16 %v2686_v39  ;;  %v5184_v39 = vrot.slane %v3834_v38, %v12191_v20  ;;  %v3864_v59 = vunpack.c.l.b16 %v2701_v0 }
 0x469   :  { %v2061_v56 = vpop.xlane.xlu0 %2060  ;;  %v2581_v35 = vmul.f32 0.020408163, %v2064_v47 }
 0x46a   :  { %v4108_v16 = vunpack.c.l.b16 %v2823_v14  ;;  %v4109_v30 = vunpack.c.h.b16 %v2823_v14  ;;  %v5189_v51 = vrot.slane %v3835_v25, %v12194_v21  ;;  %v2580_v60 = vmul.f32 0.020408163, %v2061_v56 }
 0x46b   :  { %v5332_v15 = vrot.slane %v3864_v59, %v12165_v49 }
 0x46c   :  { %v6537_v44 = vrot.slane %v4108_v16, %v12208_v40  ;;  %v6542_v50 = vrot.slane %v4109_v30, %v12211_v41  ;;  %v1158_v27 = vpop.xlane.xlu1 %1157  ;;  %v2325_v16 = vmul.f32 0.020408163, %v16624_v42  ;;  %v5417_v42 = vsel %vm4223_vm11, %v5416_v8, %v5412_v17 }
 0x46d   :  { %v2279_v5 = vmul.f32 0.020408163, %v1158_v27  ;;  %v1155_v4 = vpop.xlane.xlu0 %1154  ;;  %v2838_v38 = vpack.c.bf16 %v2581_v35, %v2580_v60 }
 0x46e   :  { %v2278_v10 = vmul.f32 0.020408163, %v1155_v4  ;;  %v6538_v43 = vsel %vm4244_vm14, %v6537_v44, %v6533_v37  ;;  %v5185_v44 = vsel %vm4230_vm12, %v5184_v39, %v16585_v26  ;;  %v2710_v47 = vpack.c.bf16 %v2325_v16, %v2324_v19 }
 0x46f   :  { %v6543_v58 = vsel %vm4251_vm15, %v6542_v50, %v6538_v43  ;;  %v3865_v50 = vunpack.c.h.b16 %v2701_v0  ;;  %v5190_v26 = vsel %vm4237_vm13, %v5189_v51, %v5185_v44  ;;  %v6453_v4 = vrot.slane %v4091_v6, %v12194_v21 }
 0x470   :  { %v2687_v29 = vpack.c.bf16 %v2279_v5, %v2278_v10  ;;  %v1248_v36 = vpop.xlane.xlu1 %1247  ;;  %v6716_v32 = vsel %vm6702_vm7, %v6543_v58, %v5279_v34  ;;  %v2829_v37 = vpack.c.bf16 %v2563_v3, %v2562_v54  ;;  %v6449_v43 = vsel %vm4230_vm12, %v6448_v53, %v6444_v33 }
 0x471   :  { %v1245_v14 = vpop.xlane.xlu0 %1244  ;;  %v16663_v9 = vpack.c.b16 %v6716_v32, %v6716_v32  ;;  %v5337_v10 = vrot.slane %v3865_v50, %v12172_v61  ;;  %v5333_v34 = vsel %vm4216_vm10, %v5332_v15, %v16592_v22  ;;  %v3882_v48 = vunpack.c.l.b16 %v2710_v47  ;;  %v11299_v15 = vld [vmem:[%s17654_s1 + $0xcc] ss:$16 sps:$4 sm:$0xff]  }
 0x472   :  { %v3836_v30 = vunpack.c.l.b16 %v2687_v29  ;;  %v3837_v28 = vunpack.c.h.b16 %v2687_v29  ;;  %v2309_v29 = vmul.f32 0.020408163, %v1248_v36  ;;  %v2308_v32 = vmul.f32 0.020408163, %v1245_v14 }
 0x473   :  { %9589 = vmatprep.mubr.bf16.mxu0 %v16663_v9  ;;  %v6454_v39 = vsel %vm4237_vm13, %v6453_v4, %v6449_v43  ;;  %v4120_v24 = vunpack.c.l.b16 %v2829_v37  ;;  %v4138_v13 = vunpack.c.l.b16 %v2838_v38  ;;  %v3883_v14 = vunpack.c.h.b16 %v2710_v47 }
 0x474   :  { %v1926_v2 = vpop.xlane.xlu1 %1925  ;;  %v5194_v56 = vrot.slane %v3836_v30, %v12208_v40  ;;  %v5199_v58 = vrot.slane %v3837_v28, %v12211_v41  ;;  %v16699_v16 = vpack.c.bf16 %v2309_v29, %v2308_v32  ;;  %v5421_v6 = vrot.slane %v3882_v48, %v12191_v20  ;;  %v11305_v32 = vld [vmem:[%s17654_s1 + $0xac] ss:$16 sps:$4 sm:$0xff]  }
 0x475   :  { %v2535_v45 = vmul.f32 0.020408163, %v1926_v2  ;;  %v1923_v63 = vpop.xlane.xlu0 %1922  ;;  %v4121_v2 = vunpack.c.h.b16 %v2829_v37  ;;  %v4139_v44 = vunpack.c.h.b16 %v2838_v38  ;;  %v6685_v50 = vrot.slane %v4138_v13, %v12191_v20 }
 0x476   :  { %v2534_v27 = vmul.f32 0.020408163, %v1923_v63  ;;  %v5195_v18 = vsel %vm4244_vm14, %v5194_v56, %v5190_v26  ;;  %v5338_v28 = vsel %vm4223_vm11, %v5337_v10, %v5333_v34  ;;  %v5426_v26 = vrot.slane %v3883_v14, %v12194_v21 }
 0x477   :  { %v5200_v19 = vsel %vm4251_vm15, %v5199_v58, %v5195_v18  ;;  %v3866_v4 = vunpack.c.l.b16 %v16699_v16  ;;  %v5422_v38 = vsel %vm4230_vm12, %v5421_v6, %v5417_v42  ;;  %v6686_v34 = vsel %vm4230_vm12, %v6685_v50, %v16684_v55 }
 0x478   :  { %v2815_v57 = vpack.c.bf16 %v2535_v45, %v2534_v27  ;;  %v2016_v5 = vpop.xlane.xlu1 %2015  ;;  %v11291_v45 = vld [vmem:[%s17654_s1 + $0xe8] ss:$16 sps:$4 sm:$0xff]   ;;  %v6690_v58 = vrot.slane %v4139_v44, %v12194_v21  ;;  %v5427_v55 = vsel %vm4237_vm13, %v5426_v26, %v5422_v38 }
 0x479   :  { %v2013_v62 = vpop.xlane.xlu0 %2012  ;;  %v2565_v3 = vmul.f32 0.020408163, %v2016_v5  ;;  %v6596_v5 = vrot.slane %v4120_v24, %v12165_v49  ;;  %v11297_v49 = vld [vmem:[%s17654_s1 + $0xc8] ss:$16 sps:$4 sm:$0xff]  }
 0x47a   :  { %v4092_v25 = vunpack.c.l.b16 %v2815_v57  ;;  %v4093_v0 = vunpack.c.h.b16 %v2815_v57  ;;  %v2564_v54 = vmul.f32 0.020408163, %v2013_v62 }
 0x47c   :  { %v6458_v8 = vrot.slane %v4092_v25, %v12208_v40  ;;  %v6463_v17 = vrot.slane %v4093_v0, %v12211_v41  ;;  %v1302_v11 = vpop.xlane.xlu1 %1301  ;;  %v2830_v47 = vpack.c.bf16 %v2565_v3, %v2564_v54  ;;  %v17797_v25 = vld [vmem:[#allocation18_spill] sm:$0xff]  ;;  %v6601_v0 = vrot.slane %v4121_v2, %v12172_v61 }
 0x47d   :  { %v2327_v51 = vmul.f32 0.020408163, %v1302_v11  ;;  %v1299_v59 = vpop.xlane.xlu0 %1298  ;;  %v3867_v11 = vunpack.c.h.b16 %v16699_v16  ;;  %v5342_v61 = vrot.slane %v3866_v4, %v12191_v20  ;;  %v6597_v54 = vsel %vm4216_vm10, %v6596_v5, %v16599_v52 }
 0x47e   :  { %v6459_v22 = vsel %vm4244_vm14, %v6458_v8, %v6454_v39  ;;  %v2326_v36 = vmul.f32 0.020408163, %v1299_v59  ;;  %v4122_v48 = vunpack.c.l.b16 %v2830_v47 }
 0x47f   :  { %v6464_v30 = vsel %vm4251_vm15, %v6463_v17, %v6459_v22  ;;  %v11303_v22 = vld [vmem:[%s17654_s1 + $0xa8] ss:$16 sps:$4 sm:$0xff]   ;;  %v5343_v50 = vsel %vm4230_vm12, %v5342_v61, %v5338_v28  ;;  %v11317_v28 = vld [vmem:[%s17654_s1 + $0x6c] ss:$16 sps:$4 sm:$0xff]  }
 0x480   :  { %v2711_v35 = vpack.c.bf16 %v2327_v51, %v2326_v36  ;;  %v2070_v60 = vpop.xlane.xlu1 %2069  ;;  %v6715_v63 = vsel %vm6702_vm7, %v6464_v30, %v5200_v19  ;;  %v4123_v36 = vunpack.c.h.b16 %v2830_v47  ;;  %v11311_v19 = vld [vmem:[%s17654_s1 + $0x8c] ss:$16 sps:$4 sm:$0xff]   ;;  %v6691_v30 = vsel %vm4237_vm13, %v6690_v58, %v6686_v34  ;;  %v11321_v58 = vld [vmem:[%s17654_s1 + $0x2e8] ss:$16 sps:$4 sm:$0xff]  }
 0x481   :  { %v2583_v53 = vmul.f32 0.020408163, %v2070_v60  ;;  %v2067_v27 = vpop.xlane.xlu0 %2066  ;;  %v16709_v33 = vpack.c.b16 %v6715_v63, %v6715_v63  ;;  %v6606_v2 = vrot.slane %v4122_v48, %v12191_v20  ;;  %v11309_v20 = vld [vmem:[%s17654_s1 + $0x88] ss:$16 sps:$4 sm:$0xff]   ;;  %v6602_v47 = vsel %vm4223_vm11, %v6601_v0, %v6597_v54  ;;  %v11329_v48 = vld [vmem:[%s17654_s1 + $0x2cc] ss:$16 sps:$4 sm:$0xff]  }
 0x482   :  { %v3884_v56 = vunpack.c.l.b16 %v2711_v35  ;;  %v2582_v57 = vmul.f32 0.020408163, %v2067_v27  ;;  %v3885_v37 = vunpack.c.h.b16 %v2711_v35  ;;  %v11335_v61 = vld [vmem:[%s17654_s1 + $0x2ac] ss:$16 sps:$4 sm:$0xff]   ;;  %v11342_v54 = vld [vmem:[%s17654_s1 + $0x1c8] ss:$16 sps:$4 sm:$0xff]  }
 0x483   :  { %9590 = vmatmul.mubr.bf16.vlgmr.msra.gmra.mxu0 %v16709_v33  ;;  %v6607_v5 = vsel %vm4230_vm12, %v6606_v2, %v6602_v47  ;;  %v11356_v2 = vld [vmem:[%s17654_s1 + $0x18c] ss:$16 sps:$4 sm:$0xff]  }
 0x484   :  { %v5431_v62 = vrot.slane %v3884_v56, %v12208_v40  ;;  %v2839_v43 = vpack.c.bf16 %v2583_v53, %v2582_v57  ;;  %9640 = vmatpush1.bf16.msra.mxu0 %v11291_v45  ;;  %9671 = vmatprep.mubr.bf16.mxu0 %v17797_v25  ;;  %v1254_v10 = vpop.xlane.xlu1 %1253  ;;  %v5436_v39 = vrot.slane %v3885_v37, %v12211_v41  ;;  %v11315_v25 = vld [vmem:[%s17654_s1 + $0x68] ss:$16 sps:$4 sm:$0xff]   ;;  %v11377_v47 = vld [vmem:[%s17654_s1 + $0x3cc] ss:$16 sps:$4 sm:$0xff]  }
 0x485   :  { %v2311_v29 = vmul.f32 0.020408163, %v1254_v10  ;;  %v1251_v42 = vpop.xlane.xlu0 %1250  ;;  %9641 = vmatprep.subr.bf16.mxu0 %v11299_v15  ;;  %v5347_v45 = vrot.slane %v3867_v11, %v12194_v21  ;;  %v6611_v56 = vrot.slane %v4123_v36, %v12194_v21  ;;  %v11332_v11 = vld [vmem:[%s17654_s1 + $0xc] ss:$16 sps:$4 sm:$0xff]   ;;  %v11345_v36 = vld [vmem:[%s17654_s1 + $0x268] ss:$16 sps:$4 sm:$0xff]  }
 0x486   :  { %v4140_v18 = vunpack.c.l.b16 %v2839_v43  ;;  %v4141_v8 = vunpack.c.h.b16 %v2839_v43  ;;  %v2310_v17 = vmul.f32 0.020408163, %v1251_v42  ;;  %v5432_v3 = vsel %vm4244_vm14, %v5431_v62, %v5427_v55  ;;  %v11333_v55 = vld [vmem:[%s17654_s1 + $0x2a8] ss:$16 sps:$4 sm:$0xff]  }
 0x487   :  { %v5437_v52 = vsel %vm4251_vm15, %v5436_v39, %v5432_v3  ;;  %v5348_v37 = vsel %vm4237_vm13, %v5347_v45, %v5343_v50  ;;  %v6612_v10 = vsel %vm4237_vm13, %v6611_v56, %v6607_v5  ;;  %v11330_v39 = vld [vmem:[%s17654_s1 + $0x8] ss:$16 sps:$4 sm:$0xff]   ;;  %v11347_v3 = vld [vmem:[%s17654_s1 + $0x26c] ss:$16 sps:$4 sm:$0xff]  }
 0x488   :  { %v6695_v24 = vrot.slane %v4140_v18, %v12208_v40  ;;  %v6700_v13 = vrot.slane %v4141_v8, %v12211_v41  ;;  %v2703_v51 = vpack.c.bf16 %v2311_v29, %v2310_v17  ;;  %9642 = vmatpush1.bf16.msra.mxu0 %v11297_v49  ;;  %v2022_v59 = vpop.xlane.xlu1 %2021  ;;  %v11320_v49 = vld [vmem:[%s17654_s1 + $0x4c] ss:$16 sps:$4 sm:$0xff]   ;;  %v11324_v18 = vld [vmem:[%s17654_s1 + $0x28] ss:$16 sps:$4 sm:$0xff]  }
 0x489   :  { %v2567_v14 = vmul.f32 0.020408163, %v2022_v59  ;;  %v2019_v16 = vpop.xlane.xlu0 %2018  ;;  %9643 = vmatprep.subr.bf16.mxu0 %v11305_v32  ;;  %v11326_v32 = vld [vmem:[%s17654_s1 + $0x2c] ss:$16 sps:$4 sm:$0xff]   ;;  %v11327_v8 = vld [vmem:[%s17654_s1 + $0x2c8] ss:$16 sps:$4 sm:$0xff]  }
 0x48a   :  { %v3868_v6 = vunpack.c.l.b16 %v2703_v51  ;;  %v2566_v35 = vmul.f32 0.020408163, %v2019_v16  ;;  %v6696_v60 = vsel %vm4244_vm14, %v6695_v24, %v6691_v30  ;;  %v3869_v63 = vunpack.c.h.b16 %v2703_v51  ;;  %v17798_v17 = vld [vmem:[#allocation16_spill] sm:$0xff] }
 0x48b   :  { %v6701_v44 = vsel %vm4251_vm15, %v6700_v13, %v6696_v60  ;;  %v11338_v24 = vld [vmem:[%s17654_s1 + $0x1ec] ss:$16 sps:$4 sm:$0xff]   ;;  %v11336_v51 = vld [vmem:[%s17654_s1 + $0x1e8] ss:$16 sps:$4 sm:$0xff]  }
 0x48c   :  { %v5352_v53 = vrot.slane %v3868_v6, %v12208_v40  ;;  %v2831_v27 = vpack.c.bf16 %v2567_v14, %v2566_v35  ;;  %9644 = vmatpush1.bf16.msra.mxu0 %v11303_v22  ;;  %v6718_v15 = vsel %vm6702_vm7, %v6701_v44, %v5437_v52  ;;  %v5357_v38 = vrot.slane %v3869_v63, %v12211_v41  ;;  %v11341_v13 = vld [vmem:[%s17654_s1 + $0x28c] ss:$16 sps:$4 sm:$0xff]   ;;  %v11339_v59 = vld [vmem:[%s17654_s1 + $0x288] ss:$16 sps:$4 sm:$0xff]  }
 0x48d   :  { %9645 = vmatprep.subr.bf16.mxu0 %v11311_v19  ;;  %v16761_v57 = vpack.c.b16 %v6718_v15, %v6718_v15  ;;  %v11344_v22 = vld [vmem:[%s17654_s1 + $0x1cc] ss:$16 sps:$4 sm:$0xff]   ;;  %v11348_v19 = vld [vmem:[%s17654_s1 + $0x1a8] ss:$16 sps:$4 sm:$0xff]  }
 0x48e   :  { %v4124_v26 = vunpack.c.l.b16 %v2831_v27  ;;  %v4125_v4 = vunpack.c.h.b16 %v2831_v27  ;;  %v5353_v62 = vsel %vm4244_vm14, %v5352_v53, %v5348_v37  ;;  %v11350_v14 = vld [vmem:[%s17654_s1 + $0x1ac] ss:$16 sps:$4 sm:$0xff]   ;;  %v11351_v30 = vld [vmem:[%s17654_s1 + $0x248] ss:$16 sps:$4 sm:$0xff]  }
 0x48f   :  { %9630 = vmatprep.mubr.bf16.mxu1 %v16761_v57  ;;  %v5358_v34 = vsel %vm4251_vm15, %v5357_v38, %v5353_v62  ;;  %v11353_v16 = vld [vmem:[%s17654_s1 + $0x24c] ss:$16 sps:$4 sm:$0xff]   ;;  %v11354_v35 = vld [vmem:[%s17654_s1 + $0x188] ss:$16 sps:$4 sm:$0xff]  }
 0x490   :  { %v6616_v21 = vrot.slane %v4124_v26, %v12208_v40  ;;  %v6621_v43 = vrot.slane %v4125_v4, %v12211_v41  ;;  %9646 = vmatpush1.bf16.msra.mxu0 %v11309_v20  ;;  %v11318_v41 = vld [vmem:[%s17654_s1 + $0x48] ss:$16 sps:$4 sm:$0xff]   ;;  %v11359_v6 = vld [vmem:[%s17654_s1 + $0x22c] ss:$16 sps:$4 sm:$0xff]  }
 0x491   :  { %9647 = vmatprep.subr.bf16.mxu0 %v11317_v28  ;;  %v11357_v60 = vld [vmem:[%s17654_s1 + $0x228] ss:$16 sps:$4 sm:$0xff]   ;;  %v11362_v45 = vld [vmem:[%s17654_s1 + $0x16c] ss:$16 sps:$4 sm:$0xff]  }
 0x492   :  { %v6617_v0 = vsel %vm4244_vm14, %v6616_v21, %v6612_v10  ;;  %v11365_v63 = vld [vmem:[%s17654_s1 + $0x20c] ss:$16 sps:$4 sm:$0xff]   ;;  %v11360_v52 = vld [vmem:[%s17654_s1 + $0x168] ss:$16 sps:$4 sm:$0xff]  }
 0x493   :  { %v6622_v40 = vsel %vm4251_vm15, %v6621_v43, %v6617_v0  ;;  %v11363_v44 = vld [vmem:[%s17654_s1 + $0x208] ss:$16 sps:$4 sm:$0xff]   ;;  %v11368_v50 = vld [vmem:[%s17654_s1 + $0x14c] ss:$16 sps:$4 sm:$0xff]  }
 0x494   :  { %9648 = vmatpush1.bf16.msra.mxu0 %v11315_v25  ;;  %v6717_v29 = vsel %vm6702_vm7, %v6622_v40, %v5358_v34  ;;  %v11371_v53 = vld [vmem:[%s17654_s1 + $0x3ec] ss:$16 sps:$4 sm:$0xff]   ;;  %v11366_v27 = vld [vmem:[%s17654_s1 + $0x148] ss:$16 sps:$4 sm:$0xff]  }
 0x495   :  { %9649 = vmatprep.subr.bf16.mxu0 %v11320_v49  ;;  %v16790_v42 = vpack.c.b16 %v6717_v29, %v6717_v29  ;;  %v11369_v20 = vld [vmem:[%s17654_s1 + $0x3e8] ss:$16 sps:$4 sm:$0xff]   ;;  %v11374_v15 = vld [vmem:[%s17654_s1 + $0x12c] ss:$16 sps:$4 sm:$0xff]  }
 0x496   :  { %v11372_v56 = vld [vmem:[%s17654_s1 + $0x128] ss:$16 sps:$4 sm:$0xff]   ;;  %v11380_v5 = vld [vmem:[%s17654_s1 + $0x10c] ss:$16 sps:$4 sm:$0xff]  }
 0x497   :  { %9631 = vmatmul.mubr.bf16.vlgmr.msra.gmra.mxu1 %v16790_v42  ;;  %v11375_v28 = vld [vmem:[%s17654_s1 + $0x3c8] ss:$16 sps:$4 sm:$0xff]   ;;  %v11383_v26 = vld [vmem:[%s17654_s1 + $0x3ac] ss:$16 sps:$4 sm:$0xff]  }
 0x498   :  { %9650 = vmatpush1.bf16.msra.mxu0 %v11318_v41  ;;  %9681 = vmatpush1.bf16.msra.mxu1 %v11321_v58  ;;  %v11378_v4 = vld [vmem:[%s17654_s1 + $0x108] ss:$16 sps:$4 sm:$0xff]   ;;  %v11386_v38 = vld [vmem:[%s17654_s1 + $0x38c] ss:$16 sps:$4 sm:$0xff]  }
 0x499   :  { %9712 = vmatprep.mubr.bf16.mxu1 %v17798_v17  ;;  %9651 = vmatprep.subr.bf16.mxu0 %v11326_v32  ;;  %v11381_v37 = vld [vmem:[%s17654_s1 + $0x3a8] ss:$16 sps:$4 sm:$0xff]   ;;  %v11389_v62 = vld [vmem:[%s17654_s1 + $0x4ec] ss:$16 sps:$4 sm:$0xff]  }
 0x49a   :  { %9682 = vmatprep.subr.bf16.mxu1 %v11329_v48  ;;  %v11384_v21 = vld [vmem:[%s17654_s1 + $0x388] ss:$16 sps:$4 sm:$0xff]   ;;  %v11392_v25 = vld [vmem:[%s17654_s1 + $0x36c] ss:$16 sps:$4 sm:$0xff]  }
 0x49b   :  { %v11387_v43 = vld [vmem:[%s17654_s1 + $0x4e8] ss:$16 sps:$4 sm:$0xff]   ;;  %v11395_v10 = vld [vmem:[%s17654_s1 + $0x4cc] ss:$16 sps:$4 sm:$0xff]  }
 0x49c   :  { %9652 = vmatpush1.bf16.msra.mxu0 %v11324_v18  ;;  %9683 = vmatpush1.bf16.msra.mxu1 %v11327_v8  ;;  %v17799_v49 = vld [vmem:[#allocation19_spill] sm:$0xff]  ;;  %v17800_v40 = vld [vmem:[#allocation25_spill] sm:$0xff]  ;;  %v11398_v41 = vld [vmem:[%s17654_s1 + $0x34c] ss:$16 sps:$4 sm:$0xff]  }
 0x49d   :  { %9653 = vmatprep.subr.bf16.mxu0 %v11332_v11  ;;  %9684 = vmatprep.subr.bf16.mxu1 %v11335_v61  ;;  %v11390_v0 = vld [vmem:[%s17654_s1 + $0x368] ss:$16 sps:$4 sm:$0xff]   ;;  %v11401_v58 = vld [vmem:[%s17654_s1 + $0x4ac] ss:$16 sps:$4 sm:$0xff]  }
 0x49e   :  { %v11393_v34 = vld [vmem:[%s17654_s1 + $0x4c8] ss:$16 sps:$4 sm:$0xff]   ;;  %v11404_v48 = vld [vmem:[%s17654_s1 + $0x32c] ss:$16 sps:$4 sm:$0xff]  }
 0x49f   :  { %v11396_v29 = vld [vmem:[%s17654_s1 + $0x348] ss:$16 sps:$4 sm:$0xff]   ;;  %v11407_v18 = vld [vmem:[%s17654_s1 + $0x48c] ss:$16 sps:$4 sm:$0xff]  }
 0x4a0   :  { %9654 = vmatpush1.bf16.msra.mxu0 %v11330_v39  ;;  %9685 = vmatpush1.bf16.msra.mxu1 %v11333_v55  ;;  %v11399_v32 = vld [vmem:[%s17654_s1 + $0x4a8] ss:$16 sps:$4 sm:$0xff]   ;;  %v11410_v11 = vld [vmem:[%s17654_s1 + $0x30c] ss:$16 sps:$4 sm:$0xff]  }
 0x4a1   :  { %9655 = vmatprep.subr.bf16.mxu0 %v11338_v24  ;;  %9686 = vmatprep.subr.bf16.mxu1 %v11341_v13  ;;  %v11402_v8 = vld [vmem:[%s17654_s1 + $0x328] ss:$16 sps:$4 sm:$0xff]   ;;  %v11413_v61 = vld [vmem:[%s17654_s1 + $0x46c] ss:$16 sps:$4 sm:$0xff]  }
 0x4a2   :  { %v11405_v17 = vld [vmem:[%s17654_s1 + $0x488] ss:$16 sps:$4 sm:$0xff]   ;;  %v11416_v24 = vld [vmem:[%s17654_s1 + $0x44c] ss:$16 sps:$4 sm:$0xff]  }
 0x4a3   :  { %v11408_v39 = vld [vmem:[%s17654_s1 + $0x308] ss:$16 sps:$4 sm:$0xff]   ;;  %v11419_v13 = vld [vmem:[%s17654_s1 + $0x6ec] ss:$16 sps:$4 sm:$0xff]  }
 0x4a4   :  { %9656 = vmatpush2.bf16.msra.mxu0 %v11336_v51  ;;  %9687 = vmatpush1.bf16.msra.mxu1 %v11339_v59  ;;  %v11411_v55 = vld [vmem:[%s17654_s1 + $0x468] ss:$16 sps:$4 sm:$0xff]  }
 0x4a5   :  { %9657 = vmatprep.subr.bf16.mxu0 %v11344_v22  ;;  %9688 = vmatprep.subr.bf16.mxu1 %v11347_v3  ;;  %v11414_v51 = vld [vmem:[%s17654_s1 + $0x448] ss:$16 sps:$4 sm:$0xff]   ;;  %v11422_v22 = vld [vmem:[%s17654_s1 + $0x42c] ss:$16 sps:$4 sm:$0xff]  }
 0x4a6   :  { %v11417_v59 = vld [vmem:[%s17654_s1 + $0x6e8] ss:$16 sps:$4 sm:$0xff]   ;;  %v11425_v3 = vld [vmem:[%s17654_s1 + $0x6cc] ss:$16 sps:$4 sm:$0xff]  }
 0x4a8   :  { %9658 = vmatpush2.bf16.msra.mxu0 %v11342_v54  ;;  %9689 = vmatpush1.bf16.msra.mxu1 %v11345_v36  ;;  %v17801_v54 = vld [vmem:[#allocation17_spill] sm:$0xff] }
 0x4a9   :  { %9659 = vmatprep.subr.bf16.mxu0 %v11350_v14  ;;  %9690 = vmatprep.subr.bf16.mxu1 %v11353_v16  ;;  %v11420_v36 = vld [vmem:[%s17654_s1 + $0x428] ss:$16 sps:$4 sm:$0xff]  }
 0x4aa   :  { %v11423_v14 = vld [vmem:[%s17654_s1 + $0x6c8] ss:$16 sps:$4 sm:$0xff]  }
 0x4ab   :  { %v17802_v16 = vld [vmem:[#allocation23_spill] sm:$0xff] }
 0x4ac   :  { %9660 = vmatpush2.bf16.msra.mxu0 %v11348_v19  ;;  %9691 = vmatpush1.bf16.msra.mxu1 %v11351_v30  ;;  %v11428_v19 = vld [vmem:[%s17654_s1 + $0x40c] ss:$16 sps:$4 sm:$0xff]  }
 0x4ad   :  { %9661 = vmatprep.subr.bf16.mxu0 %v11356_v2  ;;  %9692 = vmatprep.subr.bf16.mxu1 %v11359_v6  ;;  %v11431_v30 = vld [vmem:[%s17654_s1 + $0x6ac] ss:$16 sps:$4 sm:$0xff]   ;;  %v11426_v2 = vld [vmem:[%s17654_s1 + $0x408] ss:$16 sps:$4 sm:$0xff]  }
 0x4ae   :  { %v11429_v6 = vld [vmem:[%s17654_s1 + $0x6a8] ss:$16 sps:$4 sm:$0xff]  }
 0x4b0   :  { %9662 = vmatpush2.bf16.msra.mxu0 %v11354_v35  ;;  %9693 = vmatpush1.bf16.msra.mxu1 %v11357_v60  ;;  %v11434_v35 = vld [vmem:[%s17654_s1 + $0x5ec] ss:$16 sps:$4 sm:$0xff]  }
 0x4b1   :  { %9663 = vmatprep.subr.bf16.mxu0 %v11362_v45  ;;  %9694 = vmatprep.subr.bf16.mxu1 %v11365_v63  ;;  %v11437_v60 = vld [vmem:[%s17654_s1 + $0x68c] ss:$16 sps:$4 sm:$0xff]   ;;  %v11432_v45 = vld [vmem:[%s17654_s1 + $0x5e8] ss:$16 sps:$4 sm:$0xff]  }
 0x4b2   :  { %v11435_v63 = vld [vmem:[%s17654_s1 + $0x688] ss:$16 sps:$4 sm:$0xff]  }
 0x4b4   :  { %9664 = vmatpush2.bf16.msra.mxu0 %v11360_v52  ;;  %9695 = vmatpush1.bf16.msra.mxu1 %v11363_v44  ;;  %v11440_v52 = vld [vmem:[%s17654_s1 + $0x5cc] ss:$16 sps:$4 sm:$0xff]  }
 0x4b5   :  { %9665 = vmatprep.subr.bf16.mxu0 %v11368_v50  ;;  %9696 = vmatprep.subr.bf16.mxu1 %v11371_v53  ;;  %v11443_v44 = vld [vmem:[%s17654_s1 + $0x66c] ss:$16 sps:$4 sm:$0xff]   ;;  %v11438_v50 = vld [vmem:[%s17654_s1 + $0x5c8] ss:$16 sps:$4 sm:$0xff]  }
 0x4b6   :  { %v11441_v53 = vld [vmem:[%s17654_s1 + $0x668] ss:$16 sps:$4 sm:$0xff]  }
 0x4b8   :  { %9666 = vmatpush2.bf16.msra.mxu0 %v11366_v27  ;;  %9697 = vmatpush2.bf16.msra.mxu1 %v11369_v20  ;;  %v11446_v27 = vld [vmem:[%s17654_s1 + $0x5ac] ss:$16 sps:$4 sm:$0xff]  }
 0x4b9   :  { %9667 = vmatprep.subr.bf16.mxu0 %v11374_v15  ;;  %9698 = vmatprep.subr.bf16.mxu1 %v11377_v47  ;;  %v11449_v20 = vld [vmem:[%s17654_s1 + $0x64c] ss:$16 sps:$4 sm:$0xff]   ;;  %v11444_v15 = vld [vmem:[%s17654_s1 + $0x5a8] ss:$16 sps:$4 sm:$0xff]  }
 0x4ba   :  { %v11447_v47 = vld [vmem:[%s17654_s1 + $0x648] ss:$16 sps:$4 sm:$0xff]  }
 0x4bc   :  { %9668 = vmatpush2.bf16.msra.mxu0 %v11372_v56  ;;  %9699 = vmatpush2.bf16.msra.mxu1 %v11375_v28  ;;  %v11452_v56 = vld [vmem:[%s17654_s1 + $0x58c] ss:$16 sps:$4 sm:$0xff]  }
 0x4bd   :  { %9669 = vmatprep.subr.bf16.mxu0 %v11380_v5  ;;  %9700 = vmatprep.subr.bf16.mxu1 %v11383_v26  ;;  %v11455_v28 = vld [vmem:[%s17654_s1 + $0x62c] ss:$16 sps:$4 sm:$0xff]   ;;  %v11450_v5 = vld [vmem:[%s17654_s1 + $0x588] ss:$16 sps:$4 sm:$0xff]  }
 0x4be   :  { %v11453_v26 = vld [vmem:[%s17654_s1 + $0x628] ss:$16 sps:$4 sm:$0xff]  }
 0x4c0   :  { %9670 = vmatpush2.bf16.msra.mxu0 %v11378_v4  ;;  %9701 = vmatpush2.bf16.msra.mxu1 %v11381_v37  ;;  %v11458_v4 = vld [vmem:[%s17654_s1 + $0x56c] ss:$16 sps:$4 sm:$0xff]  }
 0x4c1   :  { %9702 = vmatprep.subr.bf16.mxu1 %v11386_v38  ;;  %9721 = vmatprep.subr.bf16.mxu0 %v11389_v62  ;;  %v11461_v37 = vld [vmem:[%s17654_s1 + $0x60c] ss:$16 sps:$4 sm:$0xff]   ;;  %v11456_v38 = vld [vmem:[%s17654_s1 + $0x568] ss:$16 sps:$4 sm:$0xff]  }
 0x4c2   :  { %v11459_v62 = vld [vmem:[%s17654_s1 + $0x608] ss:$16 sps:$4 sm:$0xff]  }
 0x4c3   :  { %9672 = vmatmul.mubr.bf16.vlgmr.msra.gmra.mxu0 %v17799_v49  ;;  %v11470_v49 = vld [vmem:[%s17654_s1 + $0x52c] ss:$16 sps:$4 sm:$0xff]  }
 0x4c4   :  { %9703 = vmatpush2.bf16.msra.mxu1 %v11384_v21  ;;  %9722 = vmatpush1.bf16.msra.mxu0 %v11387_v43  ;;  %v11464_v21 = vld [vmem:[%s17654_s1 + $0x54c] ss:$16 sps:$4 sm:$0xff]  }
 0x4c5   :  { %9753 = vmatprep.mubr.bf16.mxu0 %v17800_v40  ;;  %9704 = vmatprep.subr.bf16.mxu1 %v11392_v25  ;;  %v11467_v43 = vld [vmem:[%s17654_s1 + $0x7ec] ss:$16 sps:$4 sm:$0xff]   ;;  %v11462_v25 = vld [vmem:[%s17654_s1 + $0x548] ss:$16 sps:$4 sm:$0xff]  }
 0x4c6   :  { %9723 = vmatprep.subr.bf16.mxu0 %v11395_v10  ;;  %v11465_v10 = vld [vmem:[%s17654_s1 + $0x7e8] ss:$16 sps:$4 sm:$0xff]  }
 0x4c7   :  { %v11471_v40 = vld [vmem:[%s17654_s1 + $0x7c8] ss:$16 sps:$4 sm:$0xff]  }
 0x4c8   :  { %9705 = vmatpush2.bf16.msra.mxu1 %v11390_v0  ;;  %9724 = vmatpush1.bf16.msra.mxu0 %v11393_v34  ;;  %v11473_v0 = vld [vmem:[%s17654_s1 + $0x7cc] ss:$16 sps:$4 sm:$0xff]   ;;  %v11468_v34 = vld [vmem:[%s17654_s1 + $0x528] ss:$16 sps:$4 sm:$0xff]  }
 0x4c9   :  { %9706 = vmatprep.subr.bf16.mxu1 %v11398_v41  ;;  %9725 = vmatprep.subr.bf16.mxu0 %v11401_v58  ;;  %v11476_v41 = vld [vmem:[%s17654_s1 + $0x50c] ss:$16 sps:$4 sm:$0xff]  }
 0x4ca   :  { %v11479_v58 = vld [vmem:[%s17654_s1 + $0x7ac] ss:$16 sps:$4 sm:$0xff]  }
 0x4cc   :  { %9707 = vmatpush2.bf16.msra.mxu1 %v11396_v29  ;;  %9726 = vmatpush1.bf16.msra.mxu0 %v11399_v32  ;;  %v11474_v29 = vld [vmem:[%s17654_s1 + $0x508] ss:$16 sps:$4 sm:$0xff]  }
 0x4cd   :  { %9708 = vmatprep.subr.bf16.mxu1 %v11404_v48  ;;  %9727 = vmatprep.subr.bf16.mxu0 %v11407_v18  ;;  %v11477_v32 = vld [vmem:[%s17654_s1 + $0x7a8] ss:$16 sps:$4 sm:$0xff]   ;;  %v11482_v48 = vld [vmem:[%s17654_s1 + $0x78c] ss:$16 sps:$4 sm:$0xff]  }
 0x4ce   :  { %v11485_v18 = vld [vmem:[%s17654_s1 + $0x8ec] ss:$16 sps:$4 sm:$0xff]  }
 0x4d0   :  { %9709 = vmatpush2.bf16.msra.mxu1 %v11402_v8  ;;  %9728 = vmatpush1.bf16.msra.mxu0 %v11405_v17  ;;  %v11480_v8 = vld [vmem:[%s17654_s1 + $0x788] ss:$16 sps:$4 sm:$0xff]  }
 0x4d1   :  { %9710 = vmatprep.subr.bf16.mxu1 %v11410_v11  ;;  %9729 = vmatprep.subr.bf16.mxu0 %v11413_v61  ;;  %v11483_v17 = vld [vmem:[%s17654_s1 + $0x8e8] ss:$16 sps:$4 sm:$0xff]   ;;  %v11488_v11 = vld [vmem:[%s17654_s1 + $0x76c] ss:$16 sps:$4 sm:$0xff]  }
 0x4d2   :  { %v11491_v61 = vld [vmem:[%s17654_s1 + $0x8cc] ss:$16 sps:$4 sm:$0xff]  }
 0x4d4   :  { %9711 = vmatpush2.bf16.msra.mxu1 %v11408_v39  ;;  %9730 = vmatpush1.bf16.msra.mxu0 %v11411_v55  ;;  %v17803_v39 = vld [vmem:[#allocation26_spill] sm:$0xff] }
 0x4d5   :  { %9731 = vmatprep.subr.bf16.mxu0 %v11416_v24  ;;  %9762 = vmatprep.subr.bf16.mxu1 %v11419_v13  ;;  %v11486_v55 = vld [vmem:[%s17654_s1 + $0x768] ss:$16 sps:$4 sm:$0xff]   ;;  %v11494_v13 = vld [vmem:[%s17654_s1 + $0x74c] ss:$16 sps:$4 sm:$0xff]  }
 0x4d6   :  { %v11489_v24 = vld [vmem:[%s17654_s1 + $0x8c8] ss:$16 sps:$4 sm:$0xff]  }
 0x4d7   :  { %9713 = vmatmul.mubr.bf16.vlgmr.msra.gmra.mxu1 %v17801_v54  ;;  %v11498_v54 = vld [vmem:[%s17654_s1 + $0x728] ss:$16 sps:$4 sm:$0xff]  }
 0x4d8   :  { %9732 = vmatpush1.bf16.msra.mxu0 %v11414_v51  ;;  %9763 = vmatpush1.bf16.msra.mxu1 %v11417_v59  ;;  %v11497_v51 = vld [vmem:[%s17654_s1 + $0x8ac] ss:$16 sps:$4 sm:$0xff]   ;;  %v11492_v59 = vld [vmem:[%s17654_s1 + $0x748] ss:$16 sps:$4 sm:$0xff]  }
 0x4d9   :  { %9794 = vmatprep.mubr.bf16.mxu1 %v17802_v16  ;;  %9733 = vmatprep.subr.bf16.mxu0 %v11422_v22  ;;  %v11500_v22 = vld [vmem:[%s17654_s1 + $0x72c] ss:$16 sps:$4 sm:$0xff]  }
 0x4da   :  { %9764 = vmatprep.subr.bf16.mxu1 %v11425_v3  ;;  %v11503_v3 = vld [vmem:[%s17654_s1 + $0x88c] ss:$16 sps:$4 sm:$0xff]  }
 0x4db   :  { %v11509_v16 = vld [vmem:[%s17654_s1 + $0x86c] ss:$16 sps:$4 sm:$0xff]  }
 0x4dc   :  { %9734 = vmatpush1.bf16.msra.mxu0 %v11420_v36  ;;  %9765 = vmatpush1.bf16.msra.mxu1 %v11423_v14  ;;  %v11501_v36 = vld [vmem:[%s17654_s1 + $0x888] ss:$16 sps:$4 sm:$0xff]   ;;  %v11506_v14 = vld [vmem:[%s17654_s1 + $0x70c] ss:$16 sps:$4 sm:$0xff]  }
 0x4dd   :  { %9735 = vmatprep.subr.bf16.mxu0 %v11428_v19  ;;  %9766 = vmatprep.subr.bf16.mxu1 %v11431_v30  ;;  %v11504_v19 = vld [vmem:[%s17654_s1 + $0x708] ss:$16 sps:$4 sm:$0xff]  }
 0x4de   :  { %v11507_v30 = vld [vmem:[%s17654_s1 + $0x868] ss:$16 sps:$4 sm:$0xff]  }
 0x4e0   :  { %9736 = vmatpush1.bf16.msra.mxu0 %v11426_v2  ;;  %9767 = vmatpush1.bf16.msra.mxu1 %v11429_v6  ;;  %v11512_v2 = vld [vmem:[%s17654_s1 + $0x84c] ss:$16 sps:$4 sm:$0xff]  }
 0x4e1   :  { %9737 = vmatprep.subr.bf16.mxu0 %v11434_v35  ;;  %9768 = vmatprep.subr.bf16.mxu1 %v11437_v60  ;;  %v11515_v6 = vld [vmem:[%s17654_s1 + $0xaec] ss:$16 sps:$4 sm:$0xff]   ;;  %v11510_v35 = vld [vmem:[%s17654_s1 + $0x848] ss:$16 sps:$4 sm:$0xff]  }
 0x4e2   :  { %v11513_v60 = vld [vmem:[%s17654_s1 + $0xae8] ss:$16 sps:$4 sm:$0xff]  }
 0x4e4   :  { %9738 = vmatpush2.bf16.msra.mxu0 %v11432_v45  ;;  %9769 = vmatpush1.bf16.msra.mxu1 %v11435_v63  ;;  %v11518_v45 = vld [vmem:[%s17654_s1 + $0x82c] ss:$16 sps:$4 sm:$0xff]  }
 0x4e5   :  { %9739 = vmatprep.subr.bf16.mxu0 %v11440_v52  ;;  %9770 = vmatprep.subr.bf16.mxu1 %v11443_v44  ;;  %v11521_v63 = vld [vmem:[%s17654_s1 + $0xacc] ss:$16 sps:$4 sm:$0xff]   ;;  %v11516_v44 = vld [vmem:[%s17654_s1 + $0x828] ss:$16 sps:$4 sm:$0xff]  }
 0x4e6   :  { %v17804_v52 = vld [vmem:[#allocation24_spill] sm:$0xff] }
 0x4e8   :  { %9740 = vmatpush2.bf16.msra.mxu0 %v11438_v50  ;;  %9771 = vmatpush1.bf16.msra.mxu1 %v11441_v53  ;;  %v11519_v50 = vld [vmem:[%s17654_s1 + $0xac8] ss:$16 sps:$4 sm:$0xff]   ;;  %v11524_v53 = vld [vmem:[%s17654_s1 + $0x80c] ss:$16 sps:$4 sm:$0xff]  }
 0x4e9   :  { %9741 = vmatprep.subr.bf16.mxu0 %v11446_v27  ;;  %9772 = vmatprep.subr.bf16.mxu1 %v11449_v20  ;;  %v11527_v27 = vld [vmem:[%s17654_s1 + $0xaac] ss:$16 sps:$4 sm:$0xff]   ;;  %v11522_v20 = vld [vmem:[%s17654_s1 + $0x808] ss:$16 sps:$4 sm:$0xff]  }
 0x4ec   :  { %9742 = vmatpush2.bf16.msra.mxu0 %v11444_v15  ;;  %9773 = vmatpush1.bf16.msra.mxu1 %v11447_v47  ;;  %v11530_v15 = vld [vmem:[%s17654_s1 + $0x9ec] ss:$16 sps:$4 sm:$0xff]  }
 0x4ed   :  { %9743 = vmatprep.subr.bf16.mxu0 %v11452_v56  ;;  %9774 = vmatprep.subr.bf16.mxu1 %v11455_v28  ;;  %v11533_v47 = vld [vmem:[%s17654_s1 + $0xa8c] ss:$16 sps:$4 sm:$0xff]   ;;  %v11528_v56 = vld [vmem:[%s17654_s1 + $0x9e8] ss:$16 sps:$4 sm:$0xff]  }
 0x4ee   :  { %v11531_v28 = vld [vmem:[%s17654_s1 + $0xa88] ss:$16 sps:$4 sm:$0xff]  }
 0x4f0   :  { %9744 = vmatpush2.bf16.msra.mxu0 %v11450_v5  ;;  %9775 = vmatpush1.bf16.msra.mxu1 %v11453_v26  ;;  %v11536_v5 = vld [vmem:[%s17654_s1 + $0x9cc] ss:$16 sps:$4 sm:$0xff]  }
 0x4f1   :  { %9745 = vmatprep.subr.bf16.mxu0 %v11458_v4  ;;  %9776 = vmatprep.subr.bf16.mxu1 %v11461_v37  ;;  %v11539_v26 = vld [vmem:[%s17654_s1 + $0xa6c] ss:$16 sps:$4 sm:$0xff]   ;;  %v11534_v4 = vld [vmem:[%s17654_s1 + $0x9c8] ss:$16 sps:$4 sm:$0xff]  }
 0x4f2   :  { %v11537_v37 = vld [vmem:[%s17654_s1 + $0xa68] ss:$16 sps:$4 sm:$0xff]  }
 0x4f4   :  { %9746 = vmatpush2.bf16.msra.mxu0 %v11456_v38  ;;  %9777 = vmatpush1.bf16.msra.mxu1 %v11459_v62  ;;  %v11542_v38 = vld [vmem:[%s17654_s1 + $0x9ac] ss:$16 sps:$4 sm:$0xff]  }
 0x4f5   :  { %9747 = vmatprep.subr.bf16.mxu0 %v11464_v21  ;;  %9778 = vmatprep.subr.bf16.mxu1 %v11467_v43  ;;  %v11545_v62 = vld [vmem:[%s17654_s1 + $0xa4c] ss:$16 sps:$4 sm:$0xff]   ;;  %v11540_v21 = vld [vmem:[%s17654_s1 + $0x9a8] ss:$16 sps:$4 sm:$0xff]  }
 0x4f6   :  { %v11543_v43 = vld [vmem:[%s17654_s1 + $0xa48] ss:$16 sps:$4 sm:$0xff]  }
 0x4f8   :  { %9748 = vmatpush2.bf16.msra.mxu0 %v11462_v25  ;;  %9779 = vmatpush2.bf16.msra.mxu1 %v11465_v10  ;;  %v11548_v25 = vld [vmem:[%s17654_s1 + $0x98c] ss:$16 sps:$4 sm:$0xff]  }
 0x4f9   :  { %9749 = vmatprep.subr.bf16.mxu0 %v11470_v49  ;;  %9780 = vmatprep.subr.bf16.mxu1 %v11473_v0  ;;  %v11551_v10 = vld [vmem:[%s17654_s1 + $0xa2c] ss:$16 sps:$4 sm:$0xff]   ;;  %v11546_v49 = vld [vmem:[%s17654_s1 + $0x988] ss:$16 sps:$4 sm:$0xff]  }
 0x4fa   :  { %v11549_v0 = vld [vmem:[%s17654_s1 + $0xa28] ss:$16 sps:$4 sm:$0xff]  }
 0x4fc   :  { %9750 = vmatpush2.bf16.msra.mxu0 %v11468_v34  ;;  %9781 = vmatpush2.bf16.msra.mxu1 %v11471_v40  ;;  %v11554_v34 = vld [vmem:[%s17654_s1 + $0x96c] ss:$16 sps:$4 sm:$0xff]  }
 0x4fd   :  { %9751 = vmatprep.subr.bf16.mxu0 %v11476_v41  ;;  %9782 = vmatprep.subr.bf16.mxu1 %v11479_v58  ;;  %v11557_v40 = vld [vmem:[%s17654_s1 + $0xa0c] ss:$16 sps:$4 sm:$0xff]   ;;  %v11552_v41 = vld [vmem:[%s17654_s1 + $0x968] ss:$16 sps:$4 sm:$0xff]  }
 0x4fe   :  { %v11555_v58 = vld [vmem:[%s17654_s1 + $0xa08] ss:$16 sps:$4 sm:$0xff]  }
 0x500   :  { %9752 = vmatpush2.bf16.msra.mxu0 %v11474_v29  ;;  %9783 = vmatpush2.bf16.msra.mxu1 %v11477_v32  ;;  %v11560_v29 = vld [vmem:[%s17654_s1 + $0x94c] ss:$16 sps:$4 sm:$0xff]  }
 0x501   :  { %9784 = vmatprep.subr.bf16.mxu1 %v11482_v48  ;;  %9803 = vmatprep.subr.bf16.mxu0 %v11485_v18  ;;  %v11563_v32 = vld [vmem:[%s17654_s1 + $0xbec] ss:$16 sps:$4 sm:$0xff]   ;;  %v11558_v48 = vld [vmem:[%s17654_s1 + $0x948] ss:$16 sps:$4 sm:$0xff]  }
 0x502   :  { %v11561_v18 = vld [vmem:[%s17654_s1 + $0xbe8] ss:$16 sps:$4 sm:$0xff]  }
 0x503   :  { %9754 = vmatmul.mubr.bf16.vlgmr.msra.gmra.mxu0 %v17803_v39  ;;  %v11572_v39 = vld [vmem:[%s17654_s1 + $0x90c] ss:$16 sps:$4 sm:$0xff]  }
 0x504   :  { %9785 = vmatpush2.bf16.msra.mxu1 %v11480_v8  ;;  %9804 = vmatpush1.bf16.msra.mxu0 %v11483_v17  ;;  %v11566_v8 = vld [vmem:[%s17654_s1 + $0x92c] ss:$16 sps:$4 sm:$0xff]  }
 0x505   :  { %9835 = vmatprep.mubr.bf16.mxu0 %v15783_v23  ;;  %9786 = vmatprep.subr.bf16.mxu1 %v11488_v11  ;;  %v11495_v23 = vld [vmem:[%s17654_s1 + $0x8a8] ss:$16 sps:$4 sm:$0xff]   ;;  %v11569_v17 = vld [vmem:[%s17654_s1 + $0xbcc] ss:$16 sps:$4 sm:$0xff]  }
 0x506   :  { %9805 = vmatprep.subr.bf16.mxu0 %v11491_v61  ;;  %v11564_v11 = vld [vmem:[%s17654_s1 + $0x928] ss:$16 sps:$4 sm:$0xff]  }
 0x507   :  { %v11567_v61 = vld [vmem:[%s17654_s1 + $0xbc8] ss:$16 sps:$4 sm:$0xff]  }
 0x508   :  { %9787 = vmatpush2.bf16.msra.mxu1 %v11486_v55  ;;  %9806 = vmatpush1.bf16.msra.mxu0 %v11489_v24  ;;  %v11575_v55 = vld [vmem:[%s17654_s1 + $0xbac] ss:$16 sps:$4 sm:$0xff]   ;;  %v11570_v24 = vld [vmem:[%s17654_s1 + $0x908] ss:$16 sps:$4 sm:$0xff]  }
 0x509   :  { %9788 = vmatprep.subr.bf16.mxu1 %v11494_v13  ;;  %9807 = vmatprep.subr.bf16.mxu0 %v11497_v51  ;;  %v11573_v13 = vld [vmem:[%s17654_s1 + $0xba8] ss:$16 sps:$4 sm:$0xff]   ;;  %v11578_v51 = vld [vmem:[%s17654_s1 + $0xb8c] ss:$16 sps:$4 sm:$0xff]  }
 0x50c   :  { %9789 = vmatpush2.bf16.msra.mxu1 %v11492_v59  ;;  %9808 = vmatpush1.bf16.msra.mxu0 %v11495_v23  ;;  %v11581_v59 = vld [vmem:[%s17654_s1 + $0xcec] ss:$16 sps:$4 sm:$0xff]   ;;  %v11576_v23 = vld [vmem:[%s17654_s1 + $0xb88] ss:$16 sps:$4 sm:$0xff]  }
 0x50d   :  { %9790 = vmatprep.subr.bf16.mxu1 %v11500_v22  ;;  %9809 = vmatprep.subr.bf16.mxu0 %v11503_v3  ;;  %v11579_v22 = vld [vmem:[%s17654_s1 + $0xce8] ss:$16 sps:$4 sm:$0xff]   ;;  %v11584_v3 = vld [vmem:[%s17654_s1 + $0xb6c] ss:$16 sps:$4 sm:$0xff]  }
 0x510   :  { %9791 = vmatpush2.bf16.msra.mxu1 %v11498_v54  ;;  %9810 = vmatpush1.bf16.msra.mxu0 %v11501_v36  ;;  %v11587_v54 = vld [vmem:[%s17654_s1 + $0xccc] ss:$16 sps:$4 sm:$0xff]  }
 0x511   :  { %9792 = vmatprep.subr.bf16.mxu1 %v11506_v14  ;;  %9811 = vmatprep.subr.bf16.mxu0 %v11509_v16  ;;  %v11582_v16 = vld [vmem:[%s17654_s1 + $0xb68] ss:$16 sps:$4 sm:$0xff]  }
 0x514   :  { %9793 = vmatpush2.bf16.msra.mxu1 %v11504_v19  ;;  %9812 = vmatpush1.bf16.msra.mxu0 %v11507_v30  ;;  %v11585_v19 = vld [vmem:[%s17654_s1 + $0xcc8] ss:$16 sps:$4 sm:$0xff]  }
 0x515   :  { %9813 = vmatprep.subr.bf16.mxu0 %v11512_v2  ;;  %9844 = vmatprep.subr.bf16.mxu1 %v11515_v6  ;;  %v11588_v6 = vld [vmem:[%s17654_s1 + $0xb48] ss:$16 sps:$4 sm:$0xff]  }
 0x517   :  { %9795 = vmatmul.mubr.bf16.vlgmr.msra.gmra.mxu1 %v17804_v52  ;;  %v11597_v52 = vld [vmem:[%s17654_s1 + $0xc88] ss:$16 sps:$4 sm:$0xff]  }
 0x518   :  { %9814 = vmatpush1.bf16.msra.mxu0 %v11510_v35  ;;  %9845 = vmatpush1.bf16.msra.mxu1 %v11513_v60  ;;  %v11596_v60 = vld [vmem:[%s17654_s1 + $0xb2c] ss:$16 sps:$4 sm:$0xff]  }
 0x519   :  { %9876 = vmatprep.mubr.bf16.mxu1 %v15877_v46  ;;  %9815 = vmatprep.subr.bf16.mxu0 %v11518_v45  ;;  %v11525_v46 = vld [vmem:[%s17654_s1 + $0xaa8] ss:$16 sps:$4 sm:$0xff]   ;;  %v11599_v45 = vld [vmem:[%s17654_s1 + $0xc8c] ss:$16 sps:$4 sm:$0xff]  }
 0x51a   :  { %9846 = vmatprep.subr.bf16.mxu1 %v11521_v63  ;;  %v11594_v63 = vld [vmem:[%s17654_s1 + $0xb28] ss:$16 sps:$4 sm:$0xff]  }
 0x51c   :  { %9816 = vmatpush1.bf16.msra.mxu0 %v11516_v44  ;;  %9847 = vmatpush1.bf16.msra.mxu1 %v11519_v50  ;;  %v11602_v44 = vld [vmem:[%s17654_s1 + $0xb0c] ss:$16 sps:$4 sm:$0xff]  }
 0x51d   :  { %9817 = vmatprep.subr.bf16.mxu0 %v11524_v53  ;;  %9848 = vmatprep.subr.bf16.mxu1 %v11527_v27  ;;  %v11605_v50 = vld [vmem:[%s17654_s1 + $0xc6c] ss:$16 sps:$4 sm:$0xff]   ;;  %v11600_v53 = vld [vmem:[%s17654_s1 + $0xb08] ss:$16 sps:$4 sm:$0xff]  }
 0x51e   :  { %v11603_v27 = vld [vmem:[%s17654_s1 + $0xc68] ss:$16 sps:$4 sm:$0xff]  }
 0x520   :  { %9818 = vmatpush1.bf16.msra.mxu0 %v11522_v20  ;;  %9849 = vmatpush1.bf16.msra.mxu1 %v11525_v46  ;;  %v11608_v20 = vld [vmem:[%s17654_s1 + $0xc4c] ss:$16 sps:$4 sm:$0xff]  }
 0x521   :  { %9819 = vmatprep.subr.bf16.mxu0 %v11530_v15  ;;  %9850 = vmatprep.subr.bf16.mxu1 %v11533_v47  ;;  %v11611_v46 = vld [vmem:[%s17654_s1 + $0xeec] ss:$16 sps:$4 sm:$0xff]   ;;  %v11606_v15 = vld [vmem:[%s17654_s1 + $0xc48] ss:$16 sps:$4 sm:$0xff]  }
 0x522   :  { %v11609_v47 = vld [vmem:[%s17654_s1 + $0xee8] ss:$16 sps:$4 sm:$0xff]  }
 0x524   :  { %9820 = vmatpush2.bf16.msra.mxu0 %v11528_v56  ;;  %9851 = vmatpush1.bf16.msra.mxu1 %v11531_v28  ;;  %v11614_v56 = vld [vmem:[%s17654_s1 + $0xc2c] ss:$16 sps:$4 sm:$0xff]  }
 0x525   :  { %9821 = vmatprep.subr.bf16.mxu0 %v11536_v5  ;;  %9852 = vmatprep.subr.bf16.mxu1 %v11539_v26  ;;  %v11617_v28 = vld [vmem:[%s17654_s1 + $0xecc] ss:$16 sps:$4 sm:$0xff]  }
 0x528   :  { %9822 = vmatpush2.bf16.msra.mxu0 %v11534_v4  ;;  %9853 = vmatpush1.bf16.msra.mxu1 %v11537_v37  ;;  %v11612_v4 = vld [vmem:[%s17654_s1 + $0xc28] ss:$16 sps:$4 sm:$0xff]  }
 0x529   :  { %9823 = vmatprep.subr.bf16.mxu0 %v11542_v38  ;;  %9854 = vmatprep.subr.bf16.mxu1 %v11545_v62  ;;  %v11615_v37 = vld [vmem:[%s17654_s1 + $0xec8] ss:$16 sps:$4 sm:$0xff]   ;;  %v11623_v62 = vld [vmem:[%s17654_s1 + $0xeac] ss:$16 sps:$4 sm:$0xff]  }
 0x52c   :  { %9824 = vmatpush2.bf16.msra.mxu0 %v11540_v21  ;;  %9855 = vmatpush1.bf16.msra.mxu1 %v11543_v43  ;;  %v11618_v43 = vld [vmem:[%s17654_s1 + $0xc08] ss:$16 sps:$4 sm:$0xff]  }
 0x52d   :  { %9825 = vmatprep.subr.bf16.mxu0 %v11548_v25  ;;  %9856 = vmatprep.subr.bf16.mxu1 %v11551_v10  ;;  %v11626_v10 = vld [vmem:[%s17654_s1 + $0xdec] ss:$16 sps:$4 sm:$0xff]  }
 0x530   :  { %9826 = vmatpush2.bf16.msra.mxu0 %v11546_v49  ;;  %9857 = vmatpush1.bf16.msra.mxu1 %v11549_v0  ;;  %v11629_v49 = vld [vmem:[%s17654_s1 + $0xe8c] ss:$16 sps:$4 sm:$0xff]   ;;  %v11624_v0 = vld [vmem:[%s17654_s1 + $0xde8] ss:$16 sps:$4 sm:$0xff]  }
 0x531   :  { %9827 = vmatprep.subr.bf16.mxu0 %v11554_v34  ;;  %9858 = vmatprep.subr.bf16.mxu1 %v11557_v40  ;;  %v11627_v34 = vld [vmem:[%s17654_s1 + $0xe88] ss:$16 sps:$4 sm:$0xff]   ;;  %v11632_v40 = vld [vmem:[%s17654_s1 + $0xdcc] ss:$16 sps:$4 sm:$0xff]  }
 0x534   :  { %9828 = vmatpush2.bf16.msra.mxu0 %v11552_v41  ;;  %9859 = vmatpush1.bf16.msra.mxu1 %v11555_v58  ;;  %v11635_v41 = vld [vmem:[%s17654_s1 + $0xe6c] ss:$16 sps:$4 sm:$0xff]   ;;  %v11630_v58 = vld [vmem:[%s17654_s1 + $0xdc8] ss:$16 sps:$4 sm:$0xff]  }
 0x535   :  { %9829 = vmatprep.subr.bf16.mxu0 %v11560_v29  ;;  %9860 = vmatprep.subr.bf16.mxu1 %v11563_v32  ;;  %v11633_v29 = vld [vmem:[%s17654_s1 + $0xe68] ss:$16 sps:$4 sm:$0xff]   ;;  %v11638_v32 = vld [vmem:[%s17654_s1 + $0xdac] ss:$16 sps:$4 sm:$0xff]  }
 0x538   :  { %9830 = vmatpush2.bf16.msra.mxu0 %v11558_v48  ;;  %9861 = vmatpush2.bf16.msra.mxu1 %v11561_v18  ;;  %v11641_v48 = vld [vmem:[%s17654_s1 + $0xe4c] ss:$16 sps:$4 sm:$0xff]   ;;  %v11636_v18 = vld [vmem:[%s17654_s1 + $0xda8] ss:$16 sps:$4 sm:$0xff]  }
 0x539   :  { %9831 = vmatprep.subr.bf16.mxu0 %v11566_v8  ;;  %9862 = vmatprep.subr.bf16.mxu1 %v11569_v17  ;;  %v11639_v8 = vld [vmem:[%s17654_s1 + $0xe48] ss:$16 sps:$4 sm:$0xff]   ;;  %v11644_v17 = vld [vmem:[%s17654_s1 + $0xd8c] ss:$16 sps:$4 sm:$0xff]  }
 0x53c   :  { %9832 = vmatpush2.bf16.msra.mxu0 %v11564_v11  ;;  %9863 = vmatpush2.bf16.msra.mxu1 %v11567_v61  ;;  %v11647_v11 = vld [vmem:[%s17654_s1 + $0xe2c] ss:$16 sps:$4 sm:$0xff]   ;;  %v11642_v61 = vld [vmem:[%s17654_s1 + $0xd88] ss:$16 sps:$4 sm:$0xff]  }
 0x53d   :  { %9833 = vmatprep.subr.bf16.mxu0 %v11572_v39  ;;  %9864 = vmatprep.subr.bf16.mxu1 %v11575_v55  ;;  %v11645_v39 = vld [vmem:[%s17654_s1 + $0xe28] ss:$16 sps:$4 sm:$0xff]   ;;  %v11650_v55 = vld [vmem:[%s17654_s1 + $0xd6c] ss:$16 sps:$4 sm:$0xff]  }
 0x540   :  { %9834 = vmatpush2.bf16.msra.mxu0 %v11570_v24  ;;  %9865 = vmatpush2.bf16.msra.mxu1 %v11573_v13  ;;  %v11653_v24 = vld [vmem:[%s17654_s1 + $0xe0c] ss:$16 sps:$4 sm:$0xff]   ;;  %v11648_v13 = vld [vmem:[%s17654_s1 + $0xd68] ss:$16 sps:$4 sm:$0xff]  }
 0x541   :  { %9866 = vmatprep.subr.bf16.mxu1 %v11578_v51  ;;  %9885 = vmatprep.subr.bf16.mxu0 %v11581_v59  ;;  %v11651_v51 = vld [vmem:[%s17654_s1 + $0xe08] ss:$16 sps:$4 sm:$0xff]   ;;  %v11656_v59 = vld [vmem:[%s17654_s1 + $0xd4c] ss:$16 sps:$4 sm:$0xff]  }
 0x543   :  { %9836 = vmatmul.mubr.bf16.vlgmr.msra.gmra.mxu0 %v15836_v1  ;;  %v9591_v36 = vpop.f32.mrf.mxu0  ;;  %v11590_v1 = vld [vmem:[%s17654_s1 + $0xb4c] ss:$16 sps:$4 sm:$0xff]  }
 0x544   :  { %v9592_v14 = vadd.f32 %v9591_v36, %v16613_v12  ;;  %9867 = vmatpush2.bf16.msra.mxu1 %v11576_v23  ;;  %9886 = vmatpush1.bf16.msra.mxu0 %v11579_v22  ;;  %v11593_v12 = vld [vmem:[%s17654_s1 + $0xcac] ss:$16 sps:$4 sm:$0xff]   ;;  %v11654_v22 = vld [vmem:[%s17654_s1 + $0xd48] ss:$16 sps:$4 sm:$0xff]  }
 0x545   :  { %9917 = vmatprep.mubr.bf16.mxu0 %v16663_v9  ;;  %v17333_v30 = vpop.f32.mrf.mxu0  ;;  %9868 = vmatprep.subr.bf16.mxu1 %v11584_v3  ;;  %v11591_v9 = vld [vmem:[%s17654_s1 + $0xca8] ss:$16 sps:$4 sm:$0xff]   ;;  %v11659_v23 = vld [vmem:[%s17654_s1 + $0xfec] ss:$16 sps:$4 sm:$0xff]  }
 0x546   :  { %9887 = vmatprep.subr.bf16.mxu0 %v11587_v54  ;;  %v11657_v3 = vld [vmem:[%s17654_s1 + $0xfe8] ss:$16 sps:$4 sm:$0xff]   ;;  %v11662_v54 = vld [vmem:[%s17654_s1 + $0xd2c] ss:$16 sps:$4 sm:$0xff]  }
 0x547   :  { %v9595_v2 = vpop.f32.mrf.mxu0  ;;  %v11665_v36 = vld [vmem:[%s17654_s1 + $0xfcc] ss:$16 sps:$4 sm:$0xff]  }
 0x548   :  { %9869 = vmatpush2.bf16.msra.mxu1 %v11582_v16  ;;  %9888 = vmatpush1.bf16.msra.mxu0 %v11585_v19  ;;  %v11663_v16 = vld [vmem:[%s17654_s1 + $0xfc8] ss:$16 sps:$4 sm:$0xff]   ;;  %v11668_v19 = vld [vmem:[%s17654_s1 + $0xd0c] ss:$16 sps:$4 sm:$0xff]  }
 0x549   :  { %v9596_v35 = vpop.f32.mrf.mxu0  ;;  %9870 = vmatprep.subr.bf16.mxu1 %v11590_v1  ;;  %9889 = vmatprep.subr.bf16.mxu0 %v11593_v12  ;;  %v11671_v1 = vld [vmem:[%s17654_s1 + $0xfac] ss:$16 sps:$4 sm:$0xff]   ;;  %v11666_v12 = vld [vmem:[%s17654_s1 + $0xd08] ss:$16 sps:$4 sm:$0xff]  }
 0x54a   :  { %v11669_v2 = vld [vmem:[%s17654_s1 + $0xfa8] ss:$16 sps:$4 sm:$0xff]  }
 0x54b   :  { %v11675_v35 = vld [vmem:[%s17656_s3 + $0x78] sm:$0xff]  }
 0x54c   :  { %9871 = vmatpush2.bf16.msra.mxu1 %v11588_v6  ;;  %9890 = vmatpush1.bf16.msra.mxu0 %v11591_v9  ;;  %v9594_v6 = vadd.f32 %v17333_v30, %v16619_v31  ;;  %v11674_v9 = vld [vmem:[%s17654_s1 + $0xf8c] ss:$16 sps:$4 sm:$0xff]  }
 0x54d   :  { %9872 = vmatprep.subr.bf16.mxu1 %v11596_v60  ;;  %9891 = vmatprep.subr.bf16.mxu0 %v11599_v45  ;;  %v11672_v45 = vld [vmem:[%s17654_s1 + $0xf88] ss:$16 sps:$4 sm:$0xff]   ;;  %v11679_v30 = vld [vmem:[%s17654_s1 + $0xf6c] ss:$16 sps:$4 sm:$0xff]  }
 0x54e   :  { %v11676_v31 = vld [vmem:[%s17656_s3 + $0x38] sm:$0xff]  }
 0x550   :  { %9873 = vmatpush2.bf16.msra.mxu1 %v11594_v63  ;;  %9892 = vmatpush1.bf16.msra.mxu0 %v11597_v52  ;;  %v11680_v63 = vld [vmem:[%s17656_s3 + $0x70] sm:$0xff]  }
 0x551   :  { %9874 = vmatprep.subr.bf16.mxu1 %v11602_v44  ;;  %9893 = vmatprep.subr.bf16.mxu0 %v11605_v50  ;;  %v11677_v50 = vld [vmem:[%s17654_s1 + $0xf68] ss:$16 sps:$4 sm:$0xff]  }
 0x554   :  { %9875 = vmatpush2.bf16.msra.mxu1 %v11600_v53  ;;  %9894 = vmatpush1.bf16.msra.mxu0 %v11603_v27  ;;  %v11681_v53 = vld [vmem:[%s17656_s3 + $0x30] sm:$0xff]  }
 0x555   :  { %9895 = vmatprep.subr.bf16.mxu0 %v11608_v20  ;;  %9926 = vmatprep.subr.bf16.mxu1 %v11611_v46  ;;  %v11684_v20 = vld [vmem:[%s17654_s1 + $0xf4c] ss:$16 sps:$4 sm:$0xff]  }
 0x557   :  { %9877 = vmatmul.mubr.bf16.vlgmr.msra.gmra.mxu1 %v15907_v7  ;;  %v9632_v5 = vpop.f32.mrf.mxu1  ;;  %v11620_v7 = vld [vmem:[%s17654_s1 + $0xc0c] ss:$16 sps:$4 sm:$0xff]  }
 0x558   :  { %v17390_v26 = vadd.f32 %v9632_v5, %v9592_v14  ;;  %9896 = vmatpush1.bf16.msra.mxu0 %v11606_v15  ;;  %9927 = vmatpush1.bf16.msra.mxu1 %v11609_v47  ;;  %v11660_v14 = vld [vmem:[%s17654_s1 + $0xd28] ss:$16 sps:$4 sm:$0xff]   ;;  %v11690_v5 = vld [vmem:[%s17656_s3 + $0x60] sm:$0xff]  }
 0x559   :  { %9958 = vmatprep.mubr.bf16.mxu1 %v16761_v57  ;;  %v17399_v38 = vpop.f32.mrf.mxu1  ;;  %9897 = vmatprep.subr.bf16.mxu0 %v11614_v56  ;;  %v11621_v57 = vld [vmem:[%s17654_s1 + $0xea8] ss:$16 sps:$4 sm:$0xff]  }
 0x55a   :  { %9928 = vmatprep.subr.bf16.mxu1 %v11617_v28  ;;  %v9635_v60 = vadd.f32 %v17399_v38, %v9594_v6  ;;  %v11682_v15 = vld [vmem:[%s17654_s1 + $0xf48] ss:$16 sps:$4 sm:$0xff]   ;;  %v11689_v28 = vld [vmem:[%s17654_s1 + $0xf2c] ss:$16 sps:$4 sm:$0xff]   ;;  %v11713_v6 = vld [vmem:[%s17656_s3 + $0xd0] sm:$0xff]  }
 0x55b   :  { %v9636_v21 = vpop.f32.mrf.mxu1  ;;  %v11686_v47 = vld [vmem:[%s17656_s3 + $0x28] sm:$0xff]  }
 0x55c   :  { %9898 = vmatpush1.bf16.msra.mxu0 %v11612_v4  ;;  %9929 = vmatpush1.bf16.msra.mxu1 %v11615_v37  ;;  %v9968_v52 = vpack.c.bf16 %v9635_v60, %v9635_v60  ;;  %v11687_v4 = vld [vmem:[%s17654_s1 + $0xf28] ss:$16 sps:$4 sm:$0xff]   ;;  %v11691_v37 = vld [vmem:[%s17656_s3 + $0x20] sm:$0xff]   ;;  %v11694_v38 = vld [vmem:[%s17654_s1 + $0xf0c] ss:$16 sps:$4 sm:$0xff]  }
 0x55d   :  { %v9637_v25 = vpop.f32.mrf.mxu1  ;;  %9899 = vmatprep.subr.bf16.mxu0 %v11620_v7  ;;  %9930 = vmatprep.subr.bf16.mxu1 %v11623_v62  ;;  %v11695_v7 = vld [vmem:[%s17656_s3 + $0x58] sm:$0xff]   ;;  %v17805_v62 = vld [vmem:[#allocation5_spill] sm:$0xff] }
 0x55e   :  { %v3364_v21 = vsub.s32 2, %v17805_v62  ;;  %v11696_v25 = vld [vmem:[%s17656_s3 + $0x18] sm:$0xff]  }
 0x560   :  { %9900 = vmatpush1.bf16.msra.mxu0 %v11618_v43  ;;  %9931 = vmatpush1.bf16.msra.mxu1 %v11621_v57  ;;  %v3368_v43 = vsub.s32 3, %v17805_v62  ;;  %v11692_v57 = vld [vmem:[%s17654_s1 + $0xf08] ss:$16 sps:$4 sm:$0xff]  }
 0x561   :  { %9901 = vmatprep.subr.bf16.mxu0 %v11626_v10  ;;  %9932 = vmatprep.subr.bf16.mxu1 %v11629_v49  ;;  %v11697_v10 = vld [vmem:[%s17656_s3 + $0x50] sm:$0xff]   ;;  %v11719_v49 = vld [vmem:[%s17655_s2] sm:$0xf] }
 0x564   :  { %9902 = vmatpush2.bf16.msra.mxu0 %v11624_v0  ;;  %9933 = vmatpush1.bf16.msra.mxu1 %v11627_v34  ;;  %v3365_v0 = vrot.slane %v11719_v49, %v3364_v21  ;;  %v3369_v34 = vrot.slane %v11719_v49, %v3368_v43 }
 0x565   :  { %9903 = vmatprep.subr.bf16.mxu0 %v11632_v40  ;;  %9934 = vmatprep.subr.bf16.mxu1 %v11635_v41  ;;  %v11698_v40 = vld [vmem:[%s17656_s3 + $0x10] sm:$0xff]   ;;  %v11699_v41 = vld [vmem:[%s17656_s3 + $0x48] sm:$0xff]  }
 0x568   :  { %9904 = vmatpush2.bf16.msra.mxu0 %v11630_v58  ;;  %9935 = vmatpush1.bf16.msra.mxu1 %v11633_v29 }
 0x569   :  { %9905 = vmatprep.subr.bf16.mxu0 %v11638_v32  ;;  %9936 = vmatprep.subr.bf16.mxu1 %v11641_v48 }
 0x56c   :  { %9906 = vmatpush2.bf16.msra.mxu0 %v11636_v18  ;;  %9937 = vmatpush1.bf16.msra.mxu1 %v11639_v8  ;;  %v11700_v18 = vld [vmem:[%s17656_s3 + $0x8] sm:$0xff]  }
 0x56d   :  { %9907 = vmatprep.subr.bf16.mxu0 %v11644_v17  ;;  %9938 = vmatprep.subr.bf16.mxu1 %v11647_v11  ;;  %v11701_v17 = vld [vmem:[%s17656_s3 + $0x40] sm:$0xff]  }
 0x570   :  { %9908 = vmatpush2.bf16.msra.mxu0 %v11642_v61  ;;  %9939 = vmatpush1.bf16.msra.mxu1 %v11645_v39 }
 0x571   :  { %9909 = vmatprep.subr.bf16.mxu0 %v11650_v55  ;;  %9940 = vmatprep.subr.bf16.mxu1 %v11653_v24  ;;  %v11703_v55 = vld [vmem:[%s17656_s3 + $0xf8] sm:$0xff]  }
 0x572   :  { %v11704_v24 = vld [vmem:[%s17656_s3 + $0xb8] sm:$0xff]  }
 0x574   :  { %9910 = vmatpush2.bf16.msra.mxu0 %v11648_v13  ;;  %9941 = vmatpush1.bf16.msra.mxu1 %v11651_v51  ;;  %v9967_v13 = vpack.c.bf16 %v17390_v26, %v17390_v26  ;;  %v11705_v51 = vld [vmem:[%s17656_s3 + $0xf0] sm:$0xff]  }
 0x575   :  { %9911 = vmatprep.subr.bf16.mxu0 %v11656_v59  ;;  %9942 = vmatprep.subr.bf16.mxu1 %v11659_v23  ;;  %v11706_v23 = vld [vmem:[%s17656_s3 + $0xb0] sm:$0xff]  }
 0x578   :  { %9912 = vmatpush2.bf16.msra.mxu0 %v11654_v22  ;;  %9943 = vmatpush2.bf16.msra.mxu1 %v11657_v3 }
 0x579   :  { %9913 = vmatprep.subr.bf16.mxu0 %v11662_v54  ;;  %9944 = vmatprep.subr.bf16.mxu1 %v11665_v36  ;;  %v11707_v36 = vld [vmem:[%s17656_s3 + $0xe8] sm:$0xff]  }
 0x57c   :  { %9914 = vmatpush2.bf16.msra.mxu0 %v11660_v14  ;;  %9945 = vmatpush2.bf16.msra.mxu1 %v11663_v16  ;;  %v11708_v14 = vld [vmem:[%s17656_s3 + $0xa8] sm:$0xff]  }
 0x57d   :  { %9915 = vmatprep.subr.bf16.mxu0 %v11668_v19  ;;  %9946 = vmatprep.subr.bf16.mxu1 %v11671_v1  ;;  %v11709_v19 = vld [vmem:[%s17656_s3 + $0xe0] sm:$0xff]  }
 0x57e   :  { %v11710_v1 = vld [vmem:[%s17656_s3 + $0xa0] sm:$0xff]  }
 0x580   :  { %9916 = vmatpush2.bf16.msra.mxu0 %v11666_v12  ;;  %9947 = vmatpush2.bf16.msra.mxu1 %v11669_v2  ;;  %v11711_v12 = vld [vmem:[%s17656_s3 + $0xd8] sm:$0xff]  }
 0x581   :  { %9948 = vmatprep.subr.bf16.mxu1 %v11674_v9  ;;  %10874 = vmatprep.subr.bf16.mxu0 %v11675_v35  ;;  %v11712_v2 = vld [vmem:[%s17656_s3 + $0x98] sm:$0xff]   ;;  %v11714_v9 = vld [vmem:[%s17656_s3 + $0x90] sm:$0xff]   ;;  %v11715_v35 = vld [vmem:[%s17656_s3 + $0xc8] sm:$0xff]  }
 0x583   :  { %v9673_v44 = vpop.f32.mrf.mxu0  ;;  %9918 = vmatmul.mubr.bf16.vlgmr.msra.gmra.mxu0 %v16709_v33  ;;  %v11685_v33 = vld [vmem:[%s17656_s3 + $0x68] sm:$0xff]  }
 0x584   :  { %9949 = vmatpush2.bf16.msra.mxu1 %v11672_v45  ;;  %10875 = vmatpush3.bf16.msra.mxu0 %v11676_v31  ;;  %v9674_v58 = vadd.f32 %v9673_v44, %v3365_v0  ;;  %v11716_v45 = vld [vmem:[%s17656_s3 + $0x88] sm:$0xff]  }
 0x585   :  { %10266 = vmatprep.mubr.bf16.mxu0 %v9968_v52  ;;  %v9675_v27 = vpop.f32.mrf.mxu0  ;;  %9950 = vmatprep.subr.bf16.mxu1 %v11679_v30  ;;  %v11717_v52 = vld [vmem:[%s17656_s3 + $0xc0] sm:$0xff]  }
 0x586   :  { %10876 = vmatprep.subr.bf16.mxu0 %v11680_v63  ;;  %v9676_v32 = vadd.f32 %v9675_v27, %v3369_v34 }
 0x587   :  { %v9677_v46 = vpop.f32.mrf.mxu0 }
 0x588   :  { %9951 = vmatpush2.bf16.msra.mxu1 %v11677_v50  ;;  %10877 = vmatpush3.bf16.msra.mxu0 %v11681_v53  ;;  %v11718_v50 = vld [vmem:[%s17656_s3 + $0x80] sm:$0xff]  }
 0x589   :  { %v9678_v56 = vpop.f32.mrf.mxu0  ;;  %9952 = vmatprep.subr.bf16.mxu1 %v11684_v20  ;;  %10878 = vmatprep.subr.bf16.mxu0 %v11685_v33 }
 0x58c   :  { %9953 = vmatpush2.bf16.msra.mxu1 %v11682_v15  ;;  %10879 = vmatpush3.bf16.msra.mxu0 %v11686_v47 }
 0x58d   :  { %9954 = vmatprep.subr.bf16.mxu1 %v11689_v28  ;;  %10880 = vmatprep.subr.bf16.mxu0 %v11690_v5 }
 0x590   :  { %9955 = vmatpush2.bf16.msra.mxu1 %v11687_v4  ;;  %10881 = vmatpush3.bf16.msra.mxu0 %v11691_v37 }
 0x591   :  { %9956 = vmatprep.subr.bf16.mxu1 %v11694_v38  ;;  %10882 = vmatprep.subr.bf16.mxu0 %v11695_v7 }
 0x594   :  { %9957 = vmatpush2.bf16.msra.mxu1 %v11692_v57  ;;  %10883 = vmatpush3.bf16.msra.mxu0 %v11696_v25 }
 0x595   :  { %10884 = vmatprep.subr.bf16.mxu0 %v11697_v10  ;;  %10896 = vmatprep.subr.bf16.mxu1 %v11703_v55 }
 0x597   :  { %v9714_v29 = vpop.f32.mrf.mxu1  ;;  %9959 = vmatmul.mubr.bf16.vlgmr.msra.gmra.mxu1 %v16790_v42  ;;  %v11702_v42 = vld [vmem:[%s17656_s3] sm:$0xff]  }
 0x598   :  { %v9715_v48 = vadd.f32 %v9714_v29, %v9674_v58  ;;  %10885 = vmatpush3.bf16.msra.mxu0 %v11698_v40  ;;  %10897 = vmatpush3.bf16.msra.mxu1 %v11704_v24 }
 0x599   :  { %v9716_v8 = vpop.f32.mrf.mxu1  ;;  %10886 = vmatprep.subr.bf16.mxu0 %v11699_v41  ;;  %10898 = vmatprep.subr.bf16.mxu1 %v11705_v51 }
 0x59a   :  { %v9717_v11 = vadd.f32 %v9716_v8, %v9676_v32 }
 0x59b   :  { %v9718_v61 = vpop.f32.mrf.mxu1 }
 0x59c   :  { %10887 = vmatpush3.bf16.msra.mxu0 %v11700_v18  ;;  %10899 = vmatpush3.bf16.msra.mxu1 %v11706_v23 }
 0x59d   :  { %v9719_v39 = vpop.f32.mrf.mxu1  ;;  %10888 = vmatprep.subr.bf16.mxu0 %v11701_v17  ;;  %10900 = vmatprep.subr.bf16.mxu1 %v11707_v36 }
 0x5a0   :  { %10889 = vmatpush3.bf16.msra.mxu0 %v11702_v42  ;;  %10901 = vmatpush3.bf16.msra.mxu1 %v11708_v14 }
 0x5a1   :  { %10902 = vmatprep.subr.bf16.mxu1 %v11709_v19 }
 0x5a3   :  { %10267 = vmatmul.mubr.bf16.vlgmr.msra.gmra.mxu0 %v9967_v13 }
 0x5a4   :  { %10903 = vmatpush3.bf16.msra.mxu1 %v11710_v1 }
 0x5a5   :  { %10904 = vmatprep.subr.bf16.mxu1 %v11711_v12 }
 0x5a8   :  { %10905 = vmatpush3.bf16.msra.mxu1 %v11712_v2 }
 0x5a9   :  { %10906 = vmatprep.subr.bf16.mxu1 %v11713_v6 }
 0x5ac   :  { %10907 = vmatpush3.bf16.msra.mxu1 %v11714_v9 }
 0x5ad   :  { %10908 = vmatprep.subr.bf16.mxu1 %v11715_v35 }
 0x5b0   :  { %10909 = vmatpush3.bf16.msra.mxu1 %v11716_v45 }
 0x5b1   :  { %10910 = vmatprep.subr.bf16.mxu1 %v11717_v52 }
 0x5b4   :  { %10911 = vmatpush3.bf16.msra.mxu1 %v11718_v50 }
 0x5c3   :  { %v9755_v59 = vpop.f32.mrf.mxu0 }
 0x5c4   :  { %v9756_v22 = vadd.f32 %v9755_v59, %v9715_v48 }
 0x5c5   :  { %v9757_v3 = vpop.f32.mrf.mxu0 }
 0x5c6   :  { %v9758_v54 = vadd.f32 %v9757_v3, %v9717_v11  ;;  %v10841_v11 = vld [vmem:[%s17657_s4] ss:$0 sm:$0xff] }
 0x5c7   :  { %v9759_v26 = vpop.f32.mrf.mxu0 }
 0x5c9   :  { %v9760_v16 = vpop.f32.mrf.mxu0 }
 0x5d7   :  { %v9796_v60 = vpop.f32.mrf.mxu1 }
 0x5d8   :  { %v9797_v31 = vadd.f32 %v9796_v60, %v9756_v22 }
 0x5d9   :  { %v9798_v30 = vpop.f32.mrf.mxu1 }
 0x5da   :  { %v9799_v63 = vadd.f32 %v9798_v30, %v9758_v54 }
 0x5db   :  { %v9800_v44 = vpop.f32.mrf.mxu1 }
 0x5dd   :  { %v9801_v53 = vpop.f32.mrf.mxu1 }
 0x603   :  { %v9837_v27 = vpop.f32.mrf.mxu0 }
 0x604   :  { %v9838_v20 = vadd.f32 %v9837_v27, %v9797_v31 }
 0x605   :  { %v9839_v33 = vpop.f32.mrf.mxu0 }
 0x606   :  { %v9840_v46 = vadd.f32 %v9839_v33, %v9799_v63 }
 0x607   :  { %v9841_v15 = vpop.f32.mrf.mxu0 }
 0x609   :  { %v9842_v47 = vpop.f32.mrf.mxu0 }
 0x617   :  { %v9878_v56 = vpop.f32.mrf.mxu1 }
 0x618   :  { %v9879_v21 = vadd.f32 %v9878_v56, %v9838_v20 }
 0x619   :  { %v9880_v28 = vpop.f32.mrf.mxu1 }
 0x61a   :  { %v9881_v43 = vadd.f32 %v9880_v28, %v9840_v46 }
 0x61b   :  { %v9882_v5 = vpop.f32.mrf.mxu1 }
 0x61d   :  { %v9883_v4 = vpop.f32.mrf.mxu1 }
 0x643   :  { %v9919_v37 = vpop.f32.mrf.mxu0 }
 0x644   :  { %v9920_v57 = vadd.f32 %v9919_v37, %v9879_v21 }
 0x645   :  { %v9921_v38 = vpop.f32.mrf.mxu0 }
 0x646   :  { %v9922_v10 = vadd.f32 %v9921_v38, %v9881_v43 }
 0x647   :  { %v9923_v7 = vpop.f32.mrf.mxu0 }
 0x649   :  { %v9924_v62 = vpop.f32.mrf.mxu0 }
 0x657   :  { %v9960_v25 = vpop.f32.mrf.mxu1 }
 0x658   :  { %v9961_v49 = vadd.f32 %v9960_v25, %v9920_v57 }
 0x659   :  { %v9962_v0 = vpop.f32.mrf.mxu1 }
 0x65a   :  { %v9963_v34 = vadd.f32 %v9962_v0, %v9922_v10  ;;  %v9969_v58 = vpack.c.bf16 %v9961_v49, %v9961_v49 }
 0x65b   :  { %v9964_v40 = vpop.f32.mrf.mxu1 }
 0x65c   :  { %v9970_v41 = vpack.c.bf16 %v9963_v34, %v9963_v34 }
 0x65d   :  { %v9965_v29 = vpop.f32.mrf.mxu1 }
 0x65e   :  { %10306 = vmatprep.mubr.bf16.mxu1 %v9970_v41 }
 0x65f   :  { %10307 = vmatmul.mubr.bf16.vlgmr.msra.gmra.mxu1 %v9969_v58 }
 0x663   :  { %v10890_v32 = vpop.f32.mrf.mxu0 }
 0x665   :  { %v10891_v48 = vpop.f32.mrf.mxu0 }
 0x666   :  { %v10892_v18 = vadd.f32 %v10891_v48, %v10890_v32 }
 0x667   :  { %v10893_v8 = vpop.f32.mrf.mxu0 }
 0x668   :  { %v10269_v39 = vadd.f32 %v10892_v18, %v10841_v11 }
 0x669   :  { %v10894_v17 = vpop.f32.mrf.mxu0 }
 0x71f   :  { %v10912_v61 = vpop.f32.mrf.mxu1 }
 0x721   :  { %v10913_v42 = vpop.f32.mrf.mxu1 }
 0x722   :  { %v10914_v55 = vadd.f32 %v10913_v42, %v10912_v61 }
 0x723   :  { %v10915_v24 = vpop.f32.mrf.mxu1 }
 0x724   :  { %v10309_v13 = vadd.f32 %v10914_v55, %v10269_v39 }
 0x725   :  { %v10916_v51 = vpop.f32.mrf.mxu1 }
 0x726   :  { %10314 = vst [vmem:[#allocation2] sm:$0x3] %v10309_v13 }
 0x727   :  { %11731 = shalt.err (!%p11728_p4)
}
 0x728   :  { %10324 = dma.vmem_to_hbm [thread:$0]  %s10322_s8, 32, %s17658_s5, [#allocation3]  }
 0x729   :  { %11740 = dma.done.wait [#allocation3], 32  }
 0x72a   :  { %11741 = vsyncadd [#allocation3], 4294967264 }
 0x72b   :  { %10328 = vsyncpa [#allocation3], 1 }

</bundles_post_ra>
